<compile_context>
chip_gen: v6e
topology: v6e:2x2x1
jax: 0.10.0
libtpu: 0.0.40
codegen_flags: <defaults>
</compile_context>

<pallas_src>
import functools

import jax
import jax.numpy as jnp
from jax.experimental import pallas as pl
from jax.experimental.pallas import tpu as pltpu

EPS = 1e-5  # InstanceNorm2d default eps


# --------------------------- Pallas kernel body --------------------------- #
def _resnet_block_kernel(xp_ref, w1_ref, w2_ref, o_ref, pad2_ref, *, C, H, W):
    """Fully fused ResnetBlock for one batch sample.

    xp_ref  : (1, C, H+2, W+2) reflection-padded input tile (VMEM)
    w1_ref  : (C*C*9,) conv1 weights, (co, ci, kh, kw) row-major (SMEM)
    w2_ref  : (C*C*9,) conv2 weights (SMEM)
    o_ref   : (1, C, H, W) output tile (VMEM)
    pad2_ref: (C, H+2, W+2) f32 VMEM scratch holding the reflection-padded
              stage-1 activation (never touches HBM)
    """
    f32 = jnp.float32
    inv_n = 1.0 / float(H * W)

    def conv3x3_in(read_padded_chan, w_ref, relu):
        # Shift-and-MAC 3x3 conv (VPU) with scalar weights from SMEM,
        # followed by InstanceNorm2d(affine=False) with single-pass stats.
        accs = [jnp.zeros((H, W), f32) for _ in range(C)]
        for ci in range(C):
            src = read_padded_chan(ci)                       # (H+2, W+2) f32
            for kh in range(3):
                for kw in range(3):
                    slab = src[kh:kh + H, kw:kw + W]         # (H, W)
                    for co in range(C):
                        wv = w_ref[((co * C + ci) * 3 + kh) * 3 + kw]
                        accs[co] = accs[co] + wv * slab
        outs = []
        for co in range(C):
            a = accs[co]
            s1 = jnp.sum(a, keepdims=True)                   # (1, 1)
            s2 = jnp.sum(a * a, keepdims=True)               # (1, 1)
            mean = s1 * inv_n
            var = jnp.maximum(s2 * inv_n - mean * mean, 0.0)
            y = (a - mean) * jax.lax.rsqrt(var + EPS)
            if relu:
                y = jnp.maximum(y, 0.0)
            outs.append(y)
        return outs

    # ---- Stage 1: conv1 -> IN -> ReLU (source: resident padded x tile) ----
    h1 = conv3x3_in(lambda ci: xp_ref[0, ci].astype(f32), w1_ref, relu=True)

    # ---- Reflection-pad the stage-1 activation into VMEM scratch ----------
    for c in range(C):
        t = h1[c]                                            # (H, W)
        pad2_ref[c, 1:H + 1, 1:W + 1] = t                    # interior
        pad2_ref[c, 0:1, 1:W + 1] = t[1:2, :]                # top reflect
        pad2_ref[c, H + 1:H + 2, 1:W + 1] = t[H - 2:H - 1, :]  # bottom reflect
    for c in range(C):
        # Column reflection; corners come out right because the top/bottom
        # rows above already hold reflected values.
        pad2_ref[c, :, 0:1] = pad2_ref[c, :, 2:3]
        pad2_ref[c, :, W + 1:W + 2] = pad2_ref[c, :, W - 1:W]

    # ---- Stage 2: conv2 -> IN (source: VMEM scratch) -----------------------
    h2 = conv3x3_in(lambda ci: pad2_ref[ci], w2_ref, relu=False)

    # ---- Residual add: residual is the interior of the padded x tile ------
    for c in range(C):
        res = xp_ref[0, c, 1:H + 1, 1:W + 1].astype(f32)
        o_ref[0, c] = (res + h2[c]).astype(o_ref.dtype)


# ------------------------------ wrapper ------------------------------------ #
def resnet_block(x, w1, b1, w2, b2):
    """ResnetBlock forward. x: (N, C, H, W); w*: (C, C, 3, 3); b*: (C,).

    b1/b2 are accepted for API parity with the PyTorch module but unused:
    InstanceNorm2d(affine=False) cancels a per-channel constant exactly.
    """
    del b1, b2  # exactly cancelled by the instance norms
    N, C, H, W = x.shape
    Hp, Wp = H + 2, W + 2

    # Reflection-pad once in JAX (only ~(Hp*Wp/HW - 1) extra bytes); the 9
    # shifted conv views are formed inside the kernel, so no im2col tensor
    # is ever materialized in HBM.
    xp = jnp.pad(x, ((0, 0), (0, 0), (1, 1), (1, 1)), mode="reflect")

    kernel = functools.partial(_resnet_block_kernel, C=C, H=H, W=W)

    return pl.pallas_call(
        kernel,
        out_shape=jax.ShapeDtypeStruct((N, C, H, W), x.dtype),
        grid=(N,),
        in_specs=[
            pl.BlockSpec((1, C, Hp, Wp), lambda n: (n, 0, 0, 0)),
            pl.BlockSpec(memory_space=pltpu.MemorySpace.SMEM),   # w1 (flat)
            pl.BlockSpec(memory_space=pltpu.MemorySpace.SMEM),   # w2 (flat)
        ],
        out_specs=pl.BlockSpec((1, C, H, W), lambda n: (n, 0, 0, 0)),
        scratch_shapes=[pltpu.VMEM((C, Hp, Wp), jnp.float32)],
        compiler_params=pltpu.CompilerParams(
            dimension_semantics=("parallel",)),
    )(xp, w1.reshape(-1), w2.reshape(-1))


# ------------------------------ reference ---------------------------------- #
def _reference(x, w1, b1, w2, b2):
    def conv(xp, w, b):
        y = jax.lax.conv_general_dilated(
            xp, w, (1, 1), "VALID",
            dimension_numbers=("NCHW", "OIHW", "NCHW"))
        return y + b[None, :, None, None]

    def inorm(y):
        mean = y.mean(axis=(2, 3), keepdims=True)
        var = ((y - mean) ** 2).mean(axis=(2, 3), keepdims=True)
        return (y - mean) / jnp.sqrt(var + EPS)

    pad = lambda t: jnp.pad(t, ((0, 0), (0, 0), (1, 1), (1, 1)), mode="reflect")
    h = jax.nn.relu(inorm(conv(pad(x), w1, b1)))
    return x + inorm(conv(pad(h), w2, b2))


# --------------------------------- main ------------------------------------ #
if __name__ == "__main__":
    N, C, H, W = 2, 4, 16, 16
    key = jax.random.PRNGKey(0)
    kx, kw1, kb1, kw2, kb2 = jax.random.split(key, 5)

    x = jax.random.normal(kx, (N, C, H, W), dtype=jnp.float32)

    # PyTorch Conv2d default init: U(-b, b), b = 1/sqrt(fan_in)
    fan_in = C * 3 * 3
    bound = 1.0 / (fan_in ** 0.5)
    w1 = jax.random.uniform(kw1, (C, C, 3, 3), jnp.float32, -bound, bound)
    b1 = jax.random.uniform(kb1, (C,), jnp.float32, -bound, bound)
    w2 = jax.random.uniform(kw2, (C, C, 3, 3), jnp.float32, -bound, bound)
    b2 = jax.random.uniform(kb2, (C,), jnp.float32, -bound, bound)

    out = jax.block_until_ready(resnet_block(x, w1, b1, w2, b2))

    ref = jax.block_until_ready(_reference(x, w1, b1, w2, b2))
    assert out.shape == (N, C, H, W)
    assert jnp.allclose(out, ref, atol=1e-3, rtol=1e-3), (
        float(jnp.max(jnp.abs(out - ref))))

    print("KERNEL_OK")
</pallas_src>

<mosaic_0001>
module attributes {stable_mosaic.version = 11 : i64} {
  func.func @_resnet_block_kernel(%arg0: i32, %arg1: memref<1x4x18x18xf32, #tpu.memory_space<vmem>>, %arg2: memref<144xf32, #tpu.memory_space<smem>>, %arg3: memref<144xf32, #tpu.memory_space<smem>>, %arg4: memref<1x4x16x16xf32, #tpu.memory_space<vmem>>, %arg5: memref<4x18x18xf32, #tpu.memory_space<vmem>>) attributes {dimension_semantics = [#tpu.dimension_semantics<parallel>], iteration_bounds = array<i64: 2>, scalar_prefetch = 0 : i64, scratch_operands = 1 : i64, tpu.core_type = #tpu.core_type<tc>, window_params = [{transform_indices = @transform_0, window_bounds = array<i64: 1, 4, 18, 18>}, {transform_indices = @transform_1, window_bounds = array<i64: 144>}, {transform_indices = @transform_2, window_bounds = array<i64: 144>}, {transform_indices = @transform_3, window_bounds = array<i64: 1, 4, 16, 16>}]} {
    %cst = arith.constant 0.000000e+00 : f32
    %0 = vector.broadcast %cst : f32 to vector<16x16xf32>
    %cst_0 = arith.constant 0.000000e+00 : f32
    %1 = vector.broadcast %cst_0 : f32 to vector<16x16xf32>
    %cst_1 = arith.constant 0.000000e+00 : f32
    %2 = vector.broadcast %cst_1 : f32 to vector<16x16xf32>
    %cst_2 = arith.constant 0.000000e+00 : f32
    %3 = vector.broadcast %cst_2 : f32 to vector<16x16xf32>
    %c0 = arith.constant 0 : index
    %c0_3 = arith.constant 0 : index
    %c0_4 = arith.constant 0 : index
    %c0_5 = arith.constant 0 : index
    %4 = vector.load %arg1[%c0, %c0_3, %c0_4, %c0_5] : memref<1x4x18x18xf32, #tpu.memory_space<vmem>>, vector<1x1x18x18xf32>
    %5 = vector.shape_cast %4 : vector<1x1x18x18xf32> to vector<18x18xf32>
    %6 = vector.extract_strided_slice %5 {offsets = [0, 0], sizes = [16, 16], strides = [1, 1]} : vector<18x18xf32> to vector<16x16xf32>
    %c0_6 = arith.constant 0 : index
    %7 = memref.load %arg2[%c0_6] : memref<144xf32, #tpu.memory_space<smem>>
    %8 = vector.broadcast %7 : f32 to vector<16x16xf32>
    %9 = arith.mulf %8, %6 : vector<16x16xf32>
    %10 = arith.addf %0, %9 : vector<16x16xf32>
    %c36 = arith.constant 36 : index
    %11 = memref.load %arg2[%c36] : memref<144xf32, #tpu.memory_space<smem>>
    %12 = vector.broadcast %11 : f32 to vector<16x16xf32>
    %13 = arith.mulf %12, %6 : vector<16x16xf32>
    %14 = arith.addf %1, %13 : vector<16x16xf32>
    %c72 = arith.constant 72 : index
    %15 = memref.load %arg2[%c72] : memref<144xf32, #tpu.memory_space<smem>>
    %16 = vector.broadcast %15 : f32 to vector<16x16xf32>
    %17 = arith.mulf %16, %6 : vector<16x16xf32>
    %18 = arith.addf %2, %17 : vector<16x16xf32>
    %c108 = arith.constant 108 : index
    %19 = memref.load %arg2[%c108] : memref<144xf32, #tpu.memory_space<smem>>
    %20 = vector.broadcast %19 : f32 to vector<16x16xf32>
    %21 = arith.mulf %20, %6 : vector<16x16xf32>
    %22 = arith.addf %3, %21 : vector<16x16xf32>
    %23 = vector.extract_strided_slice %5 {offsets = [0, 1], sizes = [16, 16], strides = [1, 1]} : vector<18x18xf32> to vector<16x16xf32>
    %c1 = arith.constant 1 : index
    %24 = memref.load %arg2[%c1] : memref<144xf32, #tpu.memory_space<smem>>
    %25 = vector.broadcast %24 : f32 to vector<16x16xf32>
    %26 = arith.mulf %25, %23 : vector<16x16xf32>
    %27 = arith.addf %10, %26 : vector<16x16xf32>
    %c37 = arith.constant 37 : index
    %28 = memref.load %arg2[%c37] : memref<144xf32, #tpu.memory_space<smem>>
    %29 = vector.broadcast %28 : f32 to vector<16x16xf32>
    %30 = arith.mulf %29, %23 : vector<16x16xf32>
    %31 = arith.addf %14, %30 : vector<16x16xf32>
    %c73 = arith.constant 73 : index
    %32 = memref.load %arg2[%c73] : memref<144xf32, #tpu.memory_space<smem>>
    %33 = vector.broadcast %32 : f32 to vector<16x16xf32>
    %34 = arith.mulf %33, %23 : vector<16x16xf32>
    %35 = arith.addf %18, %34 : vector<16x16xf32>
    %c109 = arith.constant 109 : index
    %36 = memref.load %arg2[%c109] : memref<144xf32, #tpu.memory_space<smem>>
    %37 = vector.broadcast %36 : f32 to vector<16x16xf32>
    %38 = arith.mulf %37, %23 : vector<16x16xf32>
    %39 = arith.addf %22, %38 : vector<16x16xf32>
    %40 = vector.extract_strided_slice %5 {offsets = [0, 2], sizes = [16, 16], strides = [1, 1]} : vector<18x18xf32> to vector<16x16xf32>
    %c2 = arith.constant 2 : index
    %41 = memref.load %arg2[%c2] : memref<144xf32, #tpu.memory_space<smem>>
    %42 = vector.broadcast %41 : f32 to vector<16x16xf32>
    %43 = arith.mulf %42, %40 : vector<16x16xf32>
    %44 = arith.addf %27, %43 : vector<16x16xf32>
    %c38 = arith.constant 38 : index
    %45 = memref.load %arg2[%c38] : memref<144xf32, #tpu.memory_space<smem>>
    %46 = vector.broadcast %45 : f32 to vector<16x16xf32>
    %47 = arith.mulf %46, %40 : vector<16x16xf32>
    %48 = arith.addf %31, %47 : vector<16x16xf32>
    %c74 = arith.constant 74 : index
    %49 = memref.load %arg2[%c74] : memref<144xf32, #tpu.memory_space<smem>>
    %50 = vector.broadcast %49 : f32 to vector<16x16xf32>
    %51 = arith.mulf %50, %40 : vector<16x16xf32>
    %52 = arith.addf %35, %51 : vector<16x16xf32>
    %c110 = arith.constant 110 : index
    %53 = memref.load %arg2[%c110] : memref<144xf32, #tpu.memory_space<smem>>
    %54 = vector.broadcast %53 : f32 to vector<16x16xf32>
    %55 = arith.mulf %54, %40 : vector<16x16xf32>
    %56 = arith.addf %39, %55 : vector<16x16xf32>
    %57 = vector.extract_strided_slice %5 {offsets = [1, 0], sizes = [16, 16], strides = [1, 1]} : vector<18x18xf32> to vector<16x16xf32>
    %c3 = arith.constant 3 : index
    %58 = memref.load %arg2[%c3] : memref<144xf32, #tpu.memory_space<smem>>
    %59 = vector.broadcast %58 : f32 to vector<16x16xf32>
    %60 = arith.mulf %59, %57 : vector<16x16xf32>
    %61 = arith.addf %44, %60 : vector<16x16xf32>
    %c39 = arith.constant 39 : index
    %62 = memref.load %arg2[%c39] : memref<144xf32, #tpu.memory_space<smem>>
    %63 = vector.broadcast %62 : f32 to vector<16x16xf32>
    %64 = arith.mulf %63, %57 : vector<16x16xf32>
    %65 = arith.addf %48, %64 : vector<16x16xf32>
    %c75 = arith.constant 75 : index
    %66 = memref.load %arg2[%c75] : memref<144xf32, #tpu.memory_space<smem>>
    %67 = vector.broadcast %66 : f32 to vector<16x16xf32>
    %68 = arith.mulf %67, %57 : vector<16x16xf32>
    %69 = arith.addf %52, %68 : vector<16x16xf32>
    %c111 = arith.constant 111 : index
    %70 = memref.load %arg2[%c111] : memref<144xf32, #tpu.memory_space<smem>>
    %71 = vector.broadcast %70 : f32 to vector<16x16xf32>
    %72 = arith.mulf %71, %57 : vector<16x16xf32>
    %73 = arith.addf %56, %72 : vector<16x16xf32>
    %74 = vector.extract_strided_slice %5 {offsets = [1, 1], sizes = [16, 16], strides = [1, 1]} : vector<18x18xf32> to vector<16x16xf32>
    %c4 = arith.constant 4 : index
    %75 = memref.load %arg2[%c4] : memref<144xf32, #tpu.memory_space<smem>>
    %76 = vector.broadcast %75 : f32 to vector<16x16xf32>
    %77 = arith.mulf %76, %74 : vector<16x16xf32>
    %78 = arith.addf %61, %77 : vector<16x16xf32>
    %c40 = arith.constant 40 : index
    %79 = memref.load %arg2[%c40] : memref<144xf32, #tpu.memory_space<smem>>
    %80 = vector.broadcast %79 : f32 to vector<16x16xf32>
    %81 = arith.mulf %80, %74 : vector<16x16xf32>
    %82 = arith.addf %65, %81 : vector<16x16xf32>
    %c76 = arith.constant 76 : index
    %83 = memref.load %arg2[%c76] : memref<144xf32, #tpu.memory_space<smem>>
    %84 = vector.broadcast %83 : f32 to vector<16x16xf32>
    %85 = arith.mulf %84, %74 : vector<16x16xf32>
    %86 = arith.addf %69, %85 : vector<16x16xf32>
    %c112 = arith.constant 112 : index
    %87 = memref.load %arg2[%c112] : memref<144xf32, #tpu.memory_space<smem>>
    %88 = vector.broadcast %87 : f32 to vector<16x16xf32>
    %89 = arith.mulf %88, %74 : vector<16x16xf32>
    %90 = arith.addf %73, %89 : vector<16x16xf32>
    %91 = vector.extract_strided_slice %5 {offsets = [1, 2], sizes = [16, 16], strides = [1, 1]} : vector<18x18xf32> to vector<16x16xf32>
    %c5 = arith.constant 5 : index
    %92 = memref.load %arg2[%c5] : memref<144xf32, #tpu.memory_space<smem>>
    %93 = vector.broadcast %92 : f32 to vector<16x16xf32>
    %94 = arith.mulf %93, %91 : vector<16x16xf32>
    %95 = arith.addf %78, %94 : vector<16x16xf32>
    %c41 = arith.constant 41 : index
    %96 = memref.load %arg2[%c41] : memref<144xf32, #tpu.memory_space<smem>>
    %97 = vector.broadcast %96 : f32 to vector<16x16xf32>
    %98 = arith.mulf %97, %91 : vector<16x16xf32>
    %99 = arith.addf %82, %98 : vector<16x16xf32>
    %c77 = arith.constant 77 : index
    %100 = memref.load %arg2[%c77] : memref<144xf32, #tpu.memory_space<smem>>
    %101 = vector.broadcast %100 : f32 to vector<16x16xf32>
    %102 = arith.mulf %101, %91 : vector<16x16xf32>
    %103 = arith.addf %86, %102 : vector<16x16xf32>
    %c113 = arith.constant 113 : index
    %104 = memref.load %arg2[%c113] : memref<144xf32, #tpu.memory_space<smem>>
    %105 = vector.broadcast %104 : f32 to vector<16x16xf32>
    %106 = arith.mulf %105, %91 : vector<16x16xf32>
    %107 = arith.addf %90, %106 : vector<16x16xf32>
    %108 = vector.extract_strided_slice %5 {offsets = [2, 0], sizes = [16, 16], strides = [1, 1]} : vector<18x18xf32> to vector<16x16xf32>
    %c6 = arith.constant 6 : index
    %109 = memref.load %arg2[%c6] : memref<144xf32, #tpu.memory_space<smem>>
    %110 = vector.broadcast %109 : f32 to vector<16x16xf32>
    %111 = arith.mulf %110, %108 : vector<16x16xf32>
    %112 = arith.addf %95, %111 : vector<16x16xf32>
    %c42 = arith.constant 42 : index
    %113 = memref.load %arg2[%c42] : memref<144xf32, #tpu.memory_space<smem>>
    %114 = vector.broadcast %113 : f32 to vector<16x16xf32>
    %115 = arith.mulf %114, %108 : vector<16x16xf32>
    %116 = arith.addf %99, %115 : vector<16x16xf32>
    %c78 = arith.constant 78 : index
    %117 = memref.load %arg2[%c78] : memref<144xf32, #tpu.memory_space<smem>>
    %118 = vector.broadcast %117 : f32 to vector<16x16xf32>
    %119 = arith.mulf %118, %108 : vector<16x16xf32>
    %120 = arith.addf %103, %119 : vector<16x16xf32>
    %c114 = arith.constant 114 : index
    %121 = memref.load %arg2[%c114] : memref<144xf32, #tpu.memory_space<smem>>
    %122 = vector.broadcast %121 : f32 to vector<16x16xf32>
    %123 = arith.mulf %122, %108 : vector<16x16xf32>
    %124 = arith.addf %107, %123 : vector<16x16xf32>
    %125 = vector.extract_strided_slice %5 {offsets = [2, 1], sizes = [16, 16], strides = [1, 1]} : vector<18x18xf32> to vector<16x16xf32>
    %c7 = arith.constant 7 : index
    %126 = memref.load %arg2[%c7] : memref<144xf32, #tpu.memory_space<smem>>
    %127 = vector.broadcast %126 : f32 to vector<16x16xf32>
    %128 = arith.mulf %127, %125 : vector<16x16xf32>
    %129 = arith.addf %112, %128 : vector<16x16xf32>
    %c43 = arith.constant 43 : index
    %130 = memref.load %arg2[%c43] : memref<144xf32, #tpu.memory_space<smem>>
    %131 = vector.broadcast %130 : f32 to vector<16x16xf32>
    %132 = arith.mulf %131, %125 : vector<16x16xf32>
    %133 = arith.addf %116, %132 : vector<16x16xf32>
    %c79 = arith.constant 79 : index
    %134 = memref.load %arg2[%c79] : memref<144xf32, #tpu.memory_space<smem>>
    %135 = vector.broadcast %134 : f32 to vector<16x16xf32>
    %136 = arith.mulf %135, %125 : vector<16x16xf32>
    %137 = arith.addf %120, %136 : vector<16x16xf32>
    %c115 = arith.constant 115 : index
    %138 = memref.load %arg2[%c115] : memref<144xf32, #tpu.memory_space<smem>>
    %139 = vector.broadcast %138 : f32 to vector<16x16xf32>
    %140 = arith.mulf %139, %125 : vector<16x16xf32>
    %141 = arith.addf %124, %140 : vector<16x16xf32>
    %142 = vector.extract_strided_slice %5 {offsets = [2, 2], sizes = [16, 16], strides = [1, 1]} : vector<18x18xf32> to vector<16x16xf32>
    %c8 = arith.constant 8 : index
    %143 = memref.load %arg2[%c8] : memref<144xf32, #tpu.memory_space<smem>>
    %144 = vector.broadcast %143 : f32 to vector<16x16xf32>
    %145 = arith.mulf %144, %142 : vector<16x16xf32>
    %146 = arith.addf %129, %145 : vector<16x16xf32>
    %c44 = arith.constant 44 : index
    %147 = memref.load %arg2[%c44] : memref<144xf32, #tpu.memory_space<smem>>
    %148 = vector.broadcast %147 : f32 to vector<16x16xf32>
    %149 = arith.mulf %148, %142 : vector<16x16xf32>
    %150 = arith.addf %133, %149 : vector<16x16xf32>
    %c80 = arith.constant 80 : index
    %151 = memref.load %arg2[%c80] : memref<144xf32, #tpu.memory_space<smem>>
    %152 = vector.broadcast %151 : f32 to vector<16x16xf32>
    %153 = arith.mulf %152, %142 : vector<16x16xf32>
    %154 = arith.addf %137, %153 : vector<16x16xf32>
    %c116 = arith.constant 116 : index
    %155 = memref.load %arg2[%c116] : memref<144xf32, #tpu.memory_space<smem>>
    %156 = vector.broadcast %155 : f32 to vector<16x16xf32>
    %157 = arith.mulf %156, %142 : vector<16x16xf32>
    %158 = arith.addf %141, %157 : vector<16x16xf32>
    %c0_7 = arith.constant 0 : index
    %c1_8 = arith.constant 1 : index
    %c0_9 = arith.constant 0 : index
    %c0_10 = arith.constant 0 : index
    %159 = vector.load %arg1[%c0_7, %c1_8, %c0_9, %c0_10] : memref<1x4x18x18xf32, #tpu.memory_space<vmem>>, vector<1x1x18x18xf32>
    %160 = vector.shape_cast %159 : vector<1x1x18x18xf32> to vector<18x18xf32>
    %161 = vector.extract_strided_slice %160 {offsets = [0, 0], sizes = [16, 16], strides = [1, 1]} : vector<18x18xf32> to vector<16x16xf32>
    %c9 = arith.constant 9 : index
    %162 = memref.load %arg2[%c9] : memref<144xf32, #tpu.memory_space<smem>>
    %163 = vector.broadcast %162 : f32 to vector<16x16xf32>
    %164 = arith.mulf %163, %161 : vector<16x16xf32>
    %165 = arith.addf %146, %164 : vector<16x16xf32>
    %c45 = arith.constant 45 : index
    %166 = memref.load %arg2[%c45] : memref<144xf32, #tpu.memory_space<smem>>
    %167 = vector.broadcast %166 : f32 to vector<16x16xf32>
    %168 = arith.mulf %167, %161 : vector<16x16xf32>
    %169 = arith.addf %150, %168 : vector<16x16xf32>
    %c81 = arith.constant 81 : index
    %170 = memref.load %arg2[%c81] : memref<144xf32, #tpu.memory_space<smem>>
    %171 = vector.broadcast %170 : f32 to vector<16x16xf32>
    %172 = arith.mulf %171, %161 : vector<16x16xf32>
    %173 = arith.addf %154, %172 : vector<16x16xf32>
    %c117 = arith.constant 117 : index
    %174 = memref.load %arg2[%c117] : memref<144xf32, #tpu.memory_space<smem>>
    %175 = vector.broadcast %174 : f32 to vector<16x16xf32>
    %176 = arith.mulf %175, %161 : vector<16x16xf32>
    %177 = arith.addf %158, %176 : vector<16x16xf32>
    %178 = vector.extract_strided_slice %160 {offsets = [0, 1], sizes = [16, 16], strides = [1, 1]} : vector<18x18xf32> to vector<16x16xf32>
    %c10 = arith.constant 10 : index
    %179 = memref.load %arg2[%c10] : memref<144xf32, #tpu.memory_space<smem>>
    %180 = vector.broadcast %179 : f32 to vector<16x16xf32>
    %181 = arith.mulf %180, %178 : vector<16x16xf32>
    %182 = arith.addf %165, %181 : vector<16x16xf32>
    %c46 = arith.constant 46 : index
    %183 = memref.load %arg2[%c46] : memref<144xf32, #tpu.memory_space<smem>>
    %184 = vector.broadcast %183 : f32 to vector<16x16xf32>
    %185 = arith.mulf %184, %178 : vector<16x16xf32>
    %186 = arith.addf %169, %185 : vector<16x16xf32>
    %c82 = arith.constant 82 : index
    %187 = memref.load %arg2[%c82] : memref<144xf32, #tpu.memory_space<smem>>
    %188 = vector.broadcast %187 : f32 to vector<16x16xf32>
    %189 = arith.mulf %188, %178 : vector<16x16xf32>
    %190 = arith.addf %173, %189 : vector<16x16xf32>
    %c118 = arith.constant 118 : index
    %191 = memref.load %arg2[%c118] : memref<144xf32, #tpu.memory_space<smem>>
    %192 = vector.broadcast %191 : f32 to vector<16x16xf32>
    %193 = arith.mulf %192, %178 : vector<16x16xf32>
    %194 = arith.addf %177, %193 : vector<16x16xf32>
    %195 = vector.extract_strided_slice %160 {offsets = [0, 2], sizes = [16, 16], strides = [1, 1]} : vector<18x18xf32> to vector<16x16xf32>
    %c11 = arith.constant 11 : index
    %196 = memref.load %arg2[%c11] : memref<144xf32, #tpu.memory_space<smem>>
    %197 = vector.broadcast %196 : f32 to vector<16x16xf32>
    %198 = arith.mulf %197, %195 : vector<16x16xf32>
    %199 = arith.addf %182, %198 : vector<16x16xf32>
    %c47 = arith.constant 47 : index
    %200 = memref.load %arg2[%c47] : memref<144xf32, #tpu.memory_space<smem>>
    %201 = vector.broadcast %200 : f32 to vector<16x16xf32>
    %202 = arith.mulf %201, %195 : vector<16x16xf32>
    %203 = arith.addf %186, %202 : vector<16x16xf32>
    %c83 = arith.constant 83 : index
    %204 = memref.load %arg2[%c83] : memref<144xf32, #tpu.memory_space<smem>>
    %205 = vector.broadcast %204 : f32 to vector<16x16xf32>
    %206 = arith.mulf %205, %195 : vector<16x16xf32>
    %207 = arith.addf %190, %206 : vector<16x16xf32>
    %c119 = arith.constant 119 : index
    %208 = memref.load %arg2[%c119] : memref<144xf32, #tpu.memory_space<smem>>
    %209 = vector.broadcast %208 : f32 to vector<16x16xf32>
    %210 = arith.mulf %209, %195 : vector<16x16xf32>
    %211 = arith.addf %194, %210 : vector<16x16xf32>
    %212 = vector.extract_strided_slice %160 {offsets = [1, 0], sizes = [16, 16], strides = [1, 1]} : vector<18x18xf32> to vector<16x16xf32>
    %c12 = arith.constant 12 : index
    %213 = memref.load %arg2[%c12] : memref<144xf32, #tpu.memory_space<smem>>
    %214 = vector.broadcast %213 : f32 to vector<16x16xf32>
    %215 = arith.mulf %214, %212 : vector<16x16xf32>
    %216 = arith.addf %199, %215 : vector<16x16xf32>
    %c48 = arith.constant 48 : index
    %217 = memref.load %arg2[%c48] : memref<144xf32, #tpu.memory_space<smem>>
    %218 = vector.broadcast %217 : f32 to vector<16x16xf32>
    %219 = arith.mulf %218, %212 : vector<16x16xf32>
    %220 = arith.addf %203, %219 : vector<16x16xf32>
    %c84 = arith.constant 84 : index
    %221 = memref.load %arg2[%c84] : memref<144xf32, #tpu.memory_space<smem>>
    %222 = vector.broadcast %221 : f32 to vector<16x16xf32>
    %223 = arith.mulf %222, %212 : vector<16x16xf32>
    %224 = arith.addf %207, %223 : vector<16x16xf32>
    %c120 = arith.constant 120 : index
    %225 = memref.load %arg2[%c120] : memref<144xf32, #tpu.memory_space<smem>>
    %226 = vector.broadcast %225 : f32 to vector<16x16xf32>
    %227 = arith.mulf %226, %212 : vector<16x16xf32>
    %228 = arith.addf %211, %227 : vector<16x16xf32>
    %229 = vector.extract_strided_slice %160 {offsets = [1, 1], sizes = [16, 16], strides = [1, 1]} : vector<18x18xf32> to vector<16x16xf32>
    %c13 = arith.constant 13 : index
    %230 = memref.load %arg2[%c13] : memref<144xf32, #tpu.memory_space<smem>>
    %231 = vector.broadcast %230 : f32 to vector<16x16xf32>
    %232 = arith.mulf %231, %229 : vector<16x16xf32>
    %233 = arith.addf %216, %232 : vector<16x16xf32>
    %c49 = arith.constant 49 : index
    %234 = memref.load %arg2[%c49] : memref<144xf32, #tpu.memory_space<smem>>
    %235 = vector.broadcast %234 : f32 to vector<16x16xf32>
    %236 = arith.mulf %235, %229 : vector<16x16xf32>
    %237 = arith.addf %220, %236 : vector<16x16xf32>
    %c85 = arith.constant 85 : index
    %238 = memref.load %arg2[%c85] : memref<144xf32, #tpu.memory_space<smem>>
    %239 = vector.broadcast %238 : f32 to vector<16x16xf32>
    %240 = arith.mulf %239, %229 : vector<16x16xf32>
    %241 = arith.addf %224, %240 : vector<16x16xf32>
    %c121 = arith.constant 121 : index
    %242 = memref.load %arg2[%c121] : memref<144xf32, #tpu.memory_space<smem>>
    %243 = vector.broadcast %242 : f32 to vector<16x16xf32>
    %244 = arith.mulf %243, %229 : vector<16x16xf32>
    %245 = arith.addf %228, %244 : vector<16x16xf32>
    %246 = vector.extract_strided_slice %160 {offsets = [1, 2], sizes = [16, 16], strides = [1, 1]} : vector<18x18xf32> to vector<16x16xf32>
    %c14 = arith.constant 14 : index
    %247 = memref.load %arg2[%c14] : memref<144xf32, #tpu.memory_space<smem>>
    %248 = vector.broadcast %247 : f32 to vector<16x16xf32>
    %249 = arith.mulf %248, %246 : vector<16x16xf32>
    %250 = arith.addf %233, %249 : vector<16x16xf32>
    %c50 = arith.constant 50 : index
    %251 = memref.load %arg2[%c50] : memref<144xf32, #tpu.memory_space<smem>>
    %252 = vector.broadcast %251 : f32 to vector<16x16xf32>
    %253 = arith.mulf %252, %246 : vector<16x16xf32>
    %254 = arith.addf %237, %253 : vector<16x16xf32>
    %c86 = arith.constant 86 : index
    %255 = memref.load %arg2[%c86] : memref<144xf32, #tpu.memory_space<smem>>
    %256 = vector.broadcast %255 : f32 to vector<16x16xf32>
    %257 = arith.mulf %256, %246 : vector<16x16xf32>
    %258 = arith.addf %241, %257 : vector<16x16xf32>
    %c122 = arith.constant 122 : index
    %259 = memref.load %arg2[%c122] : memref<144xf32, #tpu.memory_space<smem>>
    %260 = vector.broadcast %259 : f32 to vector<16x16xf32>
    %261 = arith.mulf %260, %246 : vector<16x16xf32>
    %262 = arith.addf %245, %261 : vector<16x16xf32>
    %263 = vector.extract_strided_slice %160 {offsets = [2, 0], sizes = [16, 16], strides = [1, 1]} : vector<18x18xf32> to vector<16x16xf32>
    %c15 = arith.constant 15 : index
    %264 = memref.load %arg2[%c15] : memref<144xf32, #tpu.memory_space<smem>>
    %265 = vector.broadcast %264 : f32 to vector<16x16xf32>
    %266 = arith.mulf %265, %263 : vector<16x16xf32>
    %267 = arith.addf %250, %266 : vector<16x16xf32>
    %c51 = arith.constant 51 : index
    %268 = memref.load %arg2[%c51] : memref<144xf32, #tpu.memory_space<smem>>
    %269 = vector.broadcast %268 : f32 to vector<16x16xf32>
    %270 = arith.mulf %269, %263 : vector<16x16xf32>
    %271 = arith.addf %254, %270 : vector<16x16xf32>
    %c87 = arith.constant 87 : index
    %272 = memref.load %arg2[%c87] : memref<144xf32, #tpu.memory_space<smem>>
    %273 = vector.broadcast %272 : f32 to vector<16x16xf32>
    %274 = arith.mulf %273, %263 : vector<16x16xf32>
    %275 = arith.addf %258, %274 : vector<16x16xf32>
    %c123 = arith.constant 123 : index
    %276 = memref.load %arg2[%c123] : memref<144xf32, #tpu.memory_space<smem>>
    %277 = vector.broadcast %276 : f32 to vector<16x16xf32>
    %278 = arith.mulf %277, %263 : vector<16x16xf32>
    %279 = arith.addf %262, %278 : vector<16x16xf32>
    %280 = vector.extract_strided_slice %160 {offsets = [2, 1], sizes = [16, 16], strides = [1, 1]} : vector<18x18xf32> to vector<16x16xf32>
    %c16 = arith.constant 16 : index
    %281 = memref.load %arg2[%c16] : memref<144xf32, #tpu.memory_space<smem>>
    %282 = vector.broadcast %281 : f32 to vector<16x16xf32>
    %283 = arith.mulf %282, %280 : vector<16x16xf32>
    %284 = arith.addf %267, %283 : vector<16x16xf32>
    %c52 = arith.constant 52 : index
    %285 = memref.load %arg2[%c52] : memref<144xf32, #tpu.memory_space<smem>>
    %286 = vector.broadcast %285 : f32 to vector<16x16xf32>
    %287 = arith.mulf %286, %280 : vector<16x16xf32>
    %288 = arith.addf %271, %287 : vector<16x16xf32>
    %c88 = arith.constant 88 : index
    %289 = memref.load %arg2[%c88] : memref<144xf32, #tpu.memory_space<smem>>
    %290 = vector.broadcast %289 : f32 to vector<16x16xf32>
    %291 = arith.mulf %290, %280 : vector<16x16xf32>
    %292 = arith.addf %275, %291 : vector<16x16xf32>
    %c124 = arith.constant 124 : index
    %293 = memref.load %arg2[%c124] : memref<144xf32, #tpu.memory_space<smem>>
    %294 = vector.broadcast %293 : f32 to vector<16x16xf32>
    %295 = arith.mulf %294, %280 : vector<16x16xf32>
    %296 = arith.addf %279, %295 : vector<16x16xf32>
    %297 = vector.extract_strided_slice %160 {offsets = [2, 2], sizes = [16, 16], strides = [1, 1]} : vector<18x18xf32> to vector<16x16xf32>
    %c17 = arith.constant 17 : index
    %298 = memref.load %arg2[%c17] : memref<144xf32, #tpu.memory_space<smem>>
    %299 = vector.broadcast %298 : f32 to vector<16x16xf32>
    %300 = arith.mulf %299, %297 : vector<16x16xf32>
    %301 = arith.addf %284, %300 : vector<16x16xf32>
    %c53 = arith.constant 53 : index
    %302 = memref.load %arg2[%c53] : memref<144xf32, #tpu.memory_space<smem>>
    %303 = vector.broadcast %302 : f32 to vector<16x16xf32>
    %304 = arith.mulf %303, %297 : vector<16x16xf32>
    %305 = arith.addf %288, %304 : vector<16x16xf32>
    %c89 = arith.constant 89 : index
    %306 = memref.load %arg2[%c89] : memref<144xf32, #tpu.memory_space<smem>>
    %307 = vector.broadcast %306 : f32 to vector<16x16xf32>
    %308 = arith.mulf %307, %297 : vector<16x16xf32>
    %309 = arith.addf %292, %308 : vector<16x16xf32>
    %c125 = arith.constant 125 : index
    %310 = memref.load %arg2[%c125] : memref<144xf32, #tpu.memory_space<smem>>
    %311 = vector.broadcast %310 : f32 to vector<16x16xf32>
    %312 = arith.mulf %311, %297 : vector<16x16xf32>
    %313 = arith.addf %296, %312 : vector<16x16xf32>
    %c0_11 = arith.constant 0 : index
    %c2_12 = arith.constant 2 : index
    %c0_13 = arith.constant 0 : index
    %c0_14 = arith.constant 0 : index
    %314 = vector.load %arg1[%c0_11, %c2_12, %c0_13, %c0_14] : memref<1x4x18x18xf32, #tpu.memory_space<vmem>>, vector<1x1x18x18xf32>
    %315 = vector.shape_cast %314 : vector<1x1x18x18xf32> to vector<18x18xf32>
    %316 = vector.extract_strided_slice %315 {offsets = [0, 0], sizes = [16, 16], strides = [1, 1]} : vector<18x18xf32> to vector<16x16xf32>
    %c18 = arith.constant 18 : index
    %317 = memref.load %arg2[%c18] : memref<144xf32, #tpu.memory_space<smem>>
    %318 = vector.broadcast %317 : f32 to vector<16x16xf32>
    %319 = arith.mulf %318, %316 : vector<16x16xf32>
    %320 = arith.addf %301, %319 : vector<16x16xf32>
    %c54 = arith.constant 54 : index
    %321 = memref.load %arg2[%c54] : memref<144xf32, #tpu.memory_space<smem>>
    %322 = vector.broadcast %321 : f32 to vector<16x16xf32>
    %323 = arith.mulf %322, %316 : vector<16x16xf32>
    %324 = arith.addf %305, %323 : vector<16x16xf32>
    %c90 = arith.constant 90 : index
    %325 = memref.load %arg2[%c90] : memref<144xf32, #tpu.memory_space<smem>>
    %326 = vector.broadcast %325 : f32 to vector<16x16xf32>
    %327 = arith.mulf %326, %316 : vector<16x16xf32>
    %328 = arith.addf %309, %327 : vector<16x16xf32>
    %c126 = arith.constant 126 : index
    %329 = memref.load %arg2[%c126] : memref<144xf32, #tpu.memory_space<smem>>
    %330 = vector.broadcast %329 : f32 to vector<16x16xf32>
    %331 = arith.mulf %330, %316 : vector<16x16xf32>
    %332 = arith.addf %313, %331 : vector<16x16xf32>
    %333 = vector.extract_strided_slice %315 {offsets = [0, 1], sizes = [16, 16], strides = [1, 1]} : vector<18x18xf32> to vector<16x16xf32>
    %c19 = arith.constant 19 : index
    %334 = memref.load %arg2[%c19] : memref<144xf32, #tpu.memory_space<smem>>
    %335 = vector.broadcast %334 : f32 to vector<16x16xf32>
    %336 = arith.mulf %335, %333 : vector<16x16xf32>
    %337 = arith.addf %320, %336 : vector<16x16xf32>
    %c55 = arith.constant 55 : index
    %338 = memref.load %arg2[%c55] : memref<144xf32, #tpu.memory_space<smem>>
    %339 = vector.broadcast %338 : f32 to vector<16x16xf32>
    %340 = arith.mulf %339, %333 : vector<16x16xf32>
    %341 = arith.addf %324, %340 : vector<16x16xf32>
    %c91 = arith.constant 91 : index
    %342 = memref.load %arg2[%c91] : memref<144xf32, #tpu.memory_space<smem>>
    %343 = vector.broadcast %342 : f32 to vector<16x16xf32>
    %344 = arith.mulf %343, %333 : vector<16x16xf32>
    %345 = arith.addf %328, %344 : vector<16x16xf32>
    %c127 = arith.constant 127 : index
    %346 = memref.load %arg2[%c127] : memref<144xf32, #tpu.memory_space<smem>>
    %347 = vector.broadcast %346 : f32 to vector<16x16xf32>
    %348 = arith.mulf %347, %333 : vector<16x16xf32>
    %349 = arith.addf %332, %348 : vector<16x16xf32>
    %350 = vector.extract_strided_slice %315 {offsets = [0, 2], sizes = [16, 16], strides = [1, 1]} : vector<18x18xf32> to vector<16x16xf32>
    %c20 = arith.constant 20 : index
    %351 = memref.load %arg2[%c20] : memref<144xf32, #tpu.memory_space<smem>>
    %352 = vector.broadcast %351 : f32 to vector<16x16xf32>
    %353 = arith.mulf %352, %350 : vector<16x16xf32>
    %354 = arith.addf %337, %353 : vector<16x16xf32>
    %c56 = arith.constant 56 : index
    %355 = memref.load %arg2[%c56] : memref<144xf32, #tpu.memory_space<smem>>
    %356 = vector.broadcast %355 : f32 to vector<16x16xf32>
    %357 = arith.mulf %356, %350 : vector<16x16xf32>
    %358 = arith.addf %341, %357 : vector<16x16xf32>
    %c92 = arith.constant 92 : index
    %359 = memref.load %arg2[%c92] : memref<144xf32, #tpu.memory_space<smem>>
    %360 = vector.broadcast %359 : f32 to vector<16x16xf32>
    %361 = arith.mulf %360, %350 : vector<16x16xf32>
    %362 = arith.addf %345, %361 : vector<16x16xf32>
    %c128 = arith.constant 128 : index
    %363 = memref.load %arg2[%c128] : memref<144xf32, #tpu.memory_space<smem>>
    %364 = vector.broadcast %363 : f32 to vector<16x16xf32>
    %365 = arith.mulf %364, %350 : vector<16x16xf32>
    %366 = arith.addf %349, %365 : vector<16x16xf32>
    %367 = vector.extract_strided_slice %315 {offsets = [1, 0], sizes = [16, 16], strides = [1, 1]} : vector<18x18xf32> to vector<16x16xf32>
    %c21 = arith.constant 21 : index
    %368 = memref.load %arg2[%c21] : memref<144xf32, #tpu.memory_space<smem>>
    %369 = vector.broadcast %368 : f32 to vector<16x16xf32>
    %370 = arith.mulf %369, %367 : vector<16x16xf32>
    %371 = arith.addf %354, %370 : vector<16x16xf32>
    %c57 = arith.constant 57 : index
    %372 = memref.load %arg2[%c57] : memref<144xf32, #tpu.memory_space<smem>>
    %373 = vector.broadcast %372 : f32 to vector<16x16xf32>
    %374 = arith.mulf %373, %367 : vector<16x16xf32>
    %375 = arith.addf %358, %374 : vector<16x16xf32>
    %c93 = arith.constant 93 : index
    %376 = memref.load %arg2[%c93] : memref<144xf32, #tpu.memory_space<smem>>
    %377 = vector.broadcast %376 : f32 to vector<16x16xf32>
    %378 = arith.mulf %377, %367 : vector<16x16xf32>
    %379 = arith.addf %362, %378 : vector<16x16xf32>
    %c129 = arith.constant 129 : index
    %380 = memref.load %arg2[%c129] : memref<144xf32, #tpu.memory_space<smem>>
    %381 = vector.broadcast %380 : f32 to vector<16x16xf32>
    %382 = arith.mulf %381, %367 : vector<16x16xf32>
    %383 = arith.addf %366, %382 : vector<16x16xf32>
    %384 = vector.extract_strided_slice %315 {offsets = [1, 1], sizes = [16, 16], strides = [1, 1]} : vector<18x18xf32> to vector<16x16xf32>
    %c22 = arith.constant 22 : index
    %385 = memref.load %arg2[%c22] : memref<144xf32, #tpu.memory_space<smem>>
    %386 = vector.broadcast %385 : f32 to vector<16x16xf32>
    %387 = arith.mulf %386, %384 : vector<16x16xf32>
    %388 = arith.addf %371, %387 : vector<16x16xf32>
    %c58 = arith.constant 58 : index
    %389 = memref.load %arg2[%c58] : memref<144xf32, #tpu.memory_space<smem>>
    %390 = vector.broadcast %389 : f32 to vector<16x16xf32>
    %391 = arith.mulf %390, %384 : vector<16x16xf32>
    %392 = arith.addf %375, %391 : vector<16x16xf32>
    %c94 = arith.constant 94 : index
    %393 = memref.load %arg2[%c94] : memref<144xf32, #tpu.memory_space<smem>>
    %394 = vector.broadcast %393 : f32 to vector<16x16xf32>
    %395 = arith.mulf %394, %384 : vector<16x16xf32>
    %396 = arith.addf %379, %395 : vector<16x16xf32>
    %c130 = arith.constant 130 : index
    %397 = memref.load %arg2[%c130] : memref<144xf32, #tpu.memory_space<smem>>
    %398 = vector.broadcast %397 : f32 to vector<16x16xf32>
    %399 = arith.mulf %398, %384 : vector<16x16xf32>
    %400 = arith.addf %383, %399 : vector<16x16xf32>
    %401 = vector.extract_strided_slice %315 {offsets = [1, 2], sizes = [16, 16], strides = [1, 1]} : vector<18x18xf32> to vector<16x16xf32>
    %c23 = arith.constant 23 : index
    %402 = memref.load %arg2[%c23] : memref<144xf32, #tpu.memory_space<smem>>
    %403 = vector.broadcast %402 : f32 to vector<16x16xf32>
    %404 = arith.mulf %403, %401 : vector<16x16xf32>
    %405 = arith.addf %388, %404 : vector<16x16xf32>
    %c59 = arith.constant 59 : index
    %406 = memref.load %arg2[%c59] : memref<144xf32, #tpu.memory_space<smem>>
    %407 = vector.broadcast %406 : f32 to vector<16x16xf32>
    %408 = arith.mulf %407, %401 : vector<16x16xf32>
    %409 = arith.addf %392, %408 : vector<16x16xf32>
    %c95 = arith.constant 95 : index
    %410 = memref.load %arg2[%c95] : memref<144xf32, #tpu.memory_space<smem>>
    %411 = vector.broadcast %410 : f32 to vector<16x16xf32>
    %412 = arith.mulf %411, %401 : vector<16x16xf32>
    %413 = arith.addf %396, %412 : vector<16x16xf32>
    %c131 = arith.constant 131 : index
    %414 = memref.load %arg2[%c131] : memref<144xf32, #tpu.memory_space<smem>>
    %415 = vector.broadcast %414 : f32 to vector<16x16xf32>
    %416 = arith.mulf %415, %401 : vector<16x16xf32>
    %417 = arith.addf %400, %416 : vector<16x16xf32>
    %418 = vector.extract_strided_slice %315 {offsets = [2, 0], sizes = [16, 16], strides = [1, 1]} : vector<18x18xf32> to vector<16x16xf32>
    %c24 = arith.constant 24 : index
    %419 = memref.load %arg2[%c24] : memref<144xf32, #tpu.memory_space<smem>>
    %420 = vector.broadcast %419 : f32 to vector<16x16xf32>
    %421 = arith.mulf %420, %418 : vector<16x16xf32>
    %422 = arith.addf %405, %421 : vector<16x16xf32>
    %c60 = arith.constant 60 : index
    %423 = memref.load %arg2[%c60] : memref<144xf32, #tpu.memory_space<smem>>
    %424 = vector.broadcast %423 : f32 to vector<16x16xf32>
    %425 = arith.mulf %424, %418 : vector<16x16xf32>
    %426 = arith.addf %409, %425 : vector<16x16xf32>
    %c96 = arith.constant 96 : index
    %427 = memref.load %arg2[%c96] : memref<144xf32, #tpu.memory_space<smem>>
    %428 = vector.broadcast %427 : f32 to vector<16x16xf32>
    %429 = arith.mulf %428, %418 : vector<16x16xf32>
    %430 = arith.addf %413, %429 : vector<16x16xf32>
    %c132 = arith.constant 132 : index
    %431 = memref.load %arg2[%c132] : memref<144xf32, #tpu.memory_space<smem>>
    %432 = vector.broadcast %431 : f32 to vector<16x16xf32>
    %433 = arith.mulf %432, %418 : vector<16x16xf32>
    %434 = arith.addf %417, %433 : vector<16x16xf32>
    %435 = vector.extract_strided_slice %315 {offsets = [2, 1], sizes = [16, 16], strides = [1, 1]} : vector<18x18xf32> to vector<16x16xf32>
    %c25 = arith.constant 25 : index
    %436 = memref.load %arg2[%c25] : memref<144xf32, #tpu.memory_space<smem>>
    %437 = vector.broadcast %436 : f32 to vector<16x16xf32>
    %438 = arith.mulf %437, %435 : vector<16x16xf32>
    %439 = arith.addf %422, %438 : vector<16x16xf32>
    %c61 = arith.constant 61 : index
    %440 = memref.load %arg2[%c61] : memref<144xf32, #tpu.memory_space<smem>>
    %441 = vector.broadcast %440 : f32 to vector<16x16xf32>
    %442 = arith.mulf %441, %435 : vector<16x16xf32>
    %443 = arith.addf %426, %442 : vector<16x16xf32>
    %c97 = arith.constant 97 : index
    %444 = memref.load %arg2[%c97] : memref<144xf32, #tpu.memory_space<smem>>
    %445 = vector.broadcast %444 : f32 to vector<16x16xf32>
    %446 = arith.mulf %445, %435 : vector<16x16xf32>
    %447 = arith.addf %430, %446 : vector<16x16xf32>
    %c133 = arith.constant 133 : index
    %448 = memref.load %arg2[%c133] : memref<144xf32, #tpu.memory_space<smem>>
    %449 = vector.broadcast %448 : f32 to vector<16x16xf32>
    %450 = arith.mulf %449, %435 : vector<16x16xf32>
    %451 = arith.addf %434, %450 : vector<16x16xf32>
    %452 = vector.extract_strided_slice %315 {offsets = [2, 2], sizes = [16, 16], strides = [1, 1]} : vector<18x18xf32> to vector<16x16xf32>
    %c26 = arith.constant 26 : index
    %453 = memref.load %arg2[%c26] : memref<144xf32, #tpu.memory_space<smem>>
    %454 = vector.broadcast %453 : f32 to vector<16x16xf32>
    %455 = arith.mulf %454, %452 : vector<16x16xf32>
    %456 = arith.addf %439, %455 : vector<16x16xf32>
    %c62 = arith.constant 62 : index
    %457 = memref.load %arg2[%c62] : memref<144xf32, #tpu.memory_space<smem>>
    %458 = vector.broadcast %457 : f32 to vector<16x16xf32>
    %459 = arith.mulf %458, %452 : vector<16x16xf32>
    %460 = arith.addf %443, %459 : vector<16x16xf32>
    %c98 = arith.constant 98 : index
    %461 = memref.load %arg2[%c98] : memref<144xf32, #tpu.memory_space<smem>>
    %462 = vector.broadcast %461 : f32 to vector<16x16xf32>
    %463 = arith.mulf %462, %452 : vector<16x16xf32>
    %464 = arith.addf %447, %463 : vector<16x16xf32>
    %c134 = arith.constant 134 : index
    %465 = memref.load %arg2[%c134] : memref<144xf32, #tpu.memory_space<smem>>
    %466 = vector.broadcast %465 : f32 to vector<16x16xf32>
    %467 = arith.mulf %466, %452 : vector<16x16xf32>
    %468 = arith.addf %451, %467 : vector<16x16xf32>
    %c0_15 = arith.constant 0 : index
    %c3_16 = arith.constant 3 : index
    %c0_17 = arith.constant 0 : index
    %c0_18 = arith.constant 0 : index
    %469 = vector.load %arg1[%c0_15, %c3_16, %c0_17, %c0_18] : memref<1x4x18x18xf32, #tpu.memory_space<vmem>>, vector<1x1x18x18xf32>
    %470 = vector.shape_cast %469 : vector<1x1x18x18xf32> to vector<18x18xf32>
    %471 = vector.extract_strided_slice %470 {offsets = [0, 0], sizes = [16, 16], strides = [1, 1]} : vector<18x18xf32> to vector<16x16xf32>
    %c27 = arith.constant 27 : index
    %472 = memref.load %arg2[%c27] : memref<144xf32, #tpu.memory_space<smem>>
    %473 = vector.broadcast %472 : f32 to vector<16x16xf32>
    %474 = arith.mulf %473, %471 : vector<16x16xf32>
    %475 = arith.addf %456, %474 : vector<16x16xf32>
    %c63 = arith.constant 63 : index
    %476 = memref.load %arg2[%c63] : memref<144xf32, #tpu.memory_space<smem>>
    %477 = vector.broadcast %476 : f32 to vector<16x16xf32>
    %478 = arith.mulf %477, %471 : vector<16x16xf32>
    %479 = arith.addf %460, %478 : vector<16x16xf32>
    %c99 = arith.constant 99 : index
    %480 = memref.load %arg2[%c99] : memref<144xf32, #tpu.memory_space<smem>>
    %481 = vector.broadcast %480 : f32 to vector<16x16xf32>
    %482 = arith.mulf %481, %471 : vector<16x16xf32>
    %483 = arith.addf %464, %482 : vector<16x16xf32>
    %c135 = arith.constant 135 : index
    %484 = memref.load %arg2[%c135] : memref<144xf32, #tpu.memory_space<smem>>
    %485 = vector.broadcast %484 : f32 to vector<16x16xf32>
    %486 = arith.mulf %485, %471 : vector<16x16xf32>
    %487 = arith.addf %468, %486 : vector<16x16xf32>
    %488 = vector.extract_strided_slice %470 {offsets = [0, 1], sizes = [16, 16], strides = [1, 1]} : vector<18x18xf32> to vector<16x16xf32>
    %c28 = arith.constant 28 : index
    %489 = memref.load %arg2[%c28] : memref<144xf32, #tpu.memory_space<smem>>
    %490 = vector.broadcast %489 : f32 to vector<16x16xf32>
    %491 = arith.mulf %490, %488 : vector<16x16xf32>
    %492 = arith.addf %475, %491 : vector<16x16xf32>
    %c64 = arith.constant 64 : index
    %493 = memref.load %arg2[%c64] : memref<144xf32, #tpu.memory_space<smem>>
    %494 = vector.broadcast %493 : f32 to vector<16x16xf32>
    %495 = arith.mulf %494, %488 : vector<16x16xf32>
    %496 = arith.addf %479, %495 : vector<16x16xf32>
    %c100 = arith.constant 100 : index
    %497 = memref.load %arg2[%c100] : memref<144xf32, #tpu.memory_space<smem>>
    %498 = vector.broadcast %497 : f32 to vector<16x16xf32>
    %499 = arith.mulf %498, %488 : vector<16x16xf32>
    %500 = arith.addf %483, %499 : vector<16x16xf32>
    %c136 = arith.constant 136 : index
    %501 = memref.load %arg2[%c136] : memref<144xf32, #tpu.memory_space<smem>>
    %502 = vector.broadcast %501 : f32 to vector<16x16xf32>
    %503 = arith.mulf %502, %488 : vector<16x16xf32>
    %504 = arith.addf %487, %503 : vector<16x16xf32>
    %505 = vector.extract_strided_slice %470 {offsets = [0, 2], sizes = [16, 16], strides = [1, 1]} : vector<18x18xf32> to vector<16x16xf32>
    %c29 = arith.constant 29 : index
    %506 = memref.load %arg2[%c29] : memref<144xf32, #tpu.memory_space<smem>>
    %507 = vector.broadcast %506 : f32 to vector<16x16xf32>
    %508 = arith.mulf %507, %505 : vector<16x16xf32>
    %509 = arith.addf %492, %508 : vector<16x16xf32>
    %c65 = arith.constant 65 : index
    %510 = memref.load %arg2[%c65] : memref<144xf32, #tpu.memory_space<smem>>
    %511 = vector.broadcast %510 : f32 to vector<16x16xf32>
    %512 = arith.mulf %511, %505 : vector<16x16xf32>
    %513 = arith.addf %496, %512 : vector<16x16xf32>
    %c101 = arith.constant 101 : index
    %514 = memref.load %arg2[%c101] : memref<144xf32, #tpu.memory_space<smem>>
    %515 = vector.broadcast %514 : f32 to vector<16x16xf32>
    %516 = arith.mulf %515, %505 : vector<16x16xf32>
    %517 = arith.addf %500, %516 : vector<16x16xf32>
    %c137 = arith.constant 137 : index
    %518 = memref.load %arg2[%c137] : memref<144xf32, #tpu.memory_space<smem>>
    %519 = vector.broadcast %518 : f32 to vector<16x16xf32>
    %520 = arith.mulf %519, %505 : vector<16x16xf32>
    %521 = arith.addf %504, %520 : vector<16x16xf32>
    %522 = vector.extract_strided_slice %470 {offsets = [1, 0], sizes = [16, 16], strides = [1, 1]} : vector<18x18xf32> to vector<16x16xf32>
    %c30 = arith.constant 30 : index
    %523 = memref.load %arg2[%c30] : memref<144xf32, #tpu.memory_space<smem>>
    %524 = vector.broadcast %523 : f32 to vector<16x16xf32>
    %525 = arith.mulf %524, %522 : vector<16x16xf32>
    %526 = arith.addf %509, %525 : vector<16x16xf32>
    %c66 = arith.constant 66 : index
    %527 = memref.load %arg2[%c66] : memref<144xf32, #tpu.memory_space<smem>>
    %528 = vector.broadcast %527 : f32 to vector<16x16xf32>
    %529 = arith.mulf %528, %522 : vector<16x16xf32>
    %530 = arith.addf %513, %529 : vector<16x16xf32>
    %c102 = arith.constant 102 : index
    %531 = memref.load %arg2[%c102] : memref<144xf32, #tpu.memory_space<smem>>
    %532 = vector.broadcast %531 : f32 to vector<16x16xf32>
    %533 = arith.mulf %532, %522 : vector<16x16xf32>
    %534 = arith.addf %517, %533 : vector<16x16xf32>
    %c138 = arith.constant 138 : index
    %535 = memref.load %arg2[%c138] : memref<144xf32, #tpu.memory_space<smem>>
    %536 = vector.broadcast %535 : f32 to vector<16x16xf32>
    %537 = arith.mulf %536, %522 : vector<16x16xf32>
    %538 = arith.addf %521, %537 : vector<16x16xf32>
    %539 = vector.extract_strided_slice %470 {offsets = [1, 1], sizes = [16, 16], strides = [1, 1]} : vector<18x18xf32> to vector<16x16xf32>
    %c31 = arith.constant 31 : index
    %540 = memref.load %arg2[%c31] : memref<144xf32, #tpu.memory_space<smem>>
    %541 = vector.broadcast %540 : f32 to vector<16x16xf32>
    %542 = arith.mulf %541, %539 : vector<16x16xf32>
    %543 = arith.addf %526, %542 : vector<16x16xf32>
    %c67 = arith.constant 67 : index
    %544 = memref.load %arg2[%c67] : memref<144xf32, #tpu.memory_space<smem>>
    %545 = vector.broadcast %544 : f32 to vector<16x16xf32>
    %546 = arith.mulf %545, %539 : vector<16x16xf32>
    %547 = arith.addf %530, %546 : vector<16x16xf32>
    %c103 = arith.constant 103 : index
    %548 = memref.load %arg2[%c103] : memref<144xf32, #tpu.memory_space<smem>>
    %549 = vector.broadcast %548 : f32 to vector<16x16xf32>
    %550 = arith.mulf %549, %539 : vector<16x16xf32>
    %551 = arith.addf %534, %550 : vector<16x16xf32>
    %c139 = arith.constant 139 : index
    %552 = memref.load %arg2[%c139] : memref<144xf32, #tpu.memory_space<smem>>
    %553 = vector.broadcast %552 : f32 to vector<16x16xf32>
    %554 = arith.mulf %553, %539 : vector<16x16xf32>
    %555 = arith.addf %538, %554 : vector<16x16xf32>
    %556 = vector.extract_strided_slice %470 {offsets = [1, 2], sizes = [16, 16], strides = [1, 1]} : vector<18x18xf32> to vector<16x16xf32>
    %c32 = arith.constant 32 : index
    %557 = memref.load %arg2[%c32] : memref<144xf32, #tpu.memory_space<smem>>
    %558 = vector.broadcast %557 : f32 to vector<16x16xf32>
    %559 = arith.mulf %558, %556 : vector<16x16xf32>
    %560 = arith.addf %543, %559 : vector<16x16xf32>
    %c68 = arith.constant 68 : index
    %561 = memref.load %arg2[%c68] : memref<144xf32, #tpu.memory_space<smem>>
    %562 = vector.broadcast %561 : f32 to vector<16x16xf32>
    %563 = arith.mulf %562, %556 : vector<16x16xf32>
    %564 = arith.addf %547, %563 : vector<16x16xf32>
    %c104 = arith.constant 104 : index
    %565 = memref.load %arg2[%c104] : memref<144xf32, #tpu.memory_space<smem>>
    %566 = vector.broadcast %565 : f32 to vector<16x16xf32>
    %567 = arith.mulf %566, %556 : vector<16x16xf32>
    %568 = arith.addf %551, %567 : vector<16x16xf32>
    %c140 = arith.constant 140 : index
    %569 = memref.load %arg2[%c140] : memref<144xf32, #tpu.memory_space<smem>>
    %570 = vector.broadcast %569 : f32 to vector<16x16xf32>
    %571 = arith.mulf %570, %556 : vector<16x16xf32>
    %572 = arith.addf %555, %571 : vector<16x16xf32>
    %573 = vector.extract_strided_slice %470 {offsets = [2, 0], sizes = [16, 16], strides = [1, 1]} : vector<18x18xf32> to vector<16x16xf32>
    %c33 = arith.constant 33 : index
    %574 = memref.load %arg2[%c33] : memref<144xf32, #tpu.memory_space<smem>>
    %575 = vector.broadcast %574 : f32 to vector<16x16xf32>
    %576 = arith.mulf %575, %573 : vector<16x16xf32>
    %577 = arith.addf %560, %576 : vector<16x16xf32>
    %c69 = arith.constant 69 : index
    %578 = memref.load %arg2[%c69] : memref<144xf32, #tpu.memory_space<smem>>
    %579 = vector.broadcast %578 : f32 to vector<16x16xf32>
    %580 = arith.mulf %579, %573 : vector<16x16xf32>
    %581 = arith.addf %564, %580 : vector<16x16xf32>
    %c105 = arith.constant 105 : index
    %582 = memref.load %arg2[%c105] : memref<144xf32, #tpu.memory_space<smem>>
    %583 = vector.broadcast %582 : f32 to vector<16x16xf32>
    %584 = arith.mulf %583, %573 : vector<16x16xf32>
    %585 = arith.addf %568, %584 : vector<16x16xf32>
    %c141 = arith.constant 141 : index
    %586 = memref.load %arg2[%c141] : memref<144xf32, #tpu.memory_space<smem>>
    %587 = vector.broadcast %586 : f32 to vector<16x16xf32>
    %588 = arith.mulf %587, %573 : vector<16x16xf32>
    %589 = arith.addf %572, %588 : vector<16x16xf32>
    %590 = vector.extract_strided_slice %470 {offsets = [2, 1], sizes = [16, 16], strides = [1, 1]} : vector<18x18xf32> to vector<16x16xf32>
    %c34 = arith.constant 34 : index
    %591 = memref.load %arg2[%c34] : memref<144xf32, #tpu.memory_space<smem>>
    %592 = vector.broadcast %591 : f32 to vector<16x16xf32>
    %593 = arith.mulf %592, %590 : vector<16x16xf32>
    %594 = arith.addf %577, %593 : vector<16x16xf32>
    %c70 = arith.constant 70 : index
    %595 = memref.load %arg2[%c70] : memref<144xf32, #tpu.memory_space<smem>>
    %596 = vector.broadcast %595 : f32 to vector<16x16xf32>
    %597 = arith.mulf %596, %590 : vector<16x16xf32>
    %598 = arith.addf %581, %597 : vector<16x16xf32>
    %c106 = arith.constant 106 : index
    %599 = memref.load %arg2[%c106] : memref<144xf32, #tpu.memory_space<smem>>
    %600 = vector.broadcast %599 : f32 to vector<16x16xf32>
    %601 = arith.mulf %600, %590 : vector<16x16xf32>
    %602 = arith.addf %585, %601 : vector<16x16xf32>
    %c142 = arith.constant 142 : index
    %603 = memref.load %arg2[%c142] : memref<144xf32, #tpu.memory_space<smem>>
    %604 = vector.broadcast %603 : f32 to vector<16x16xf32>
    %605 = arith.mulf %604, %590 : vector<16x16xf32>
    %606 = arith.addf %589, %605 : vector<16x16xf32>
    %607 = vector.extract_strided_slice %470 {offsets = [2, 2], sizes = [16, 16], strides = [1, 1]} : vector<18x18xf32> to vector<16x16xf32>
    %c35 = arith.constant 35 : index
    %608 = memref.load %arg2[%c35] : memref<144xf32, #tpu.memory_space<smem>>
    %609 = vector.broadcast %608 : f32 to vector<16x16xf32>
    %610 = arith.mulf %609, %607 : vector<16x16xf32>
    %611 = arith.addf %594, %610 : vector<16x16xf32>
    %c71 = arith.constant 71 : index
    %612 = memref.load %arg2[%c71] : memref<144xf32, #tpu.memory_space<smem>>
    %613 = vector.broadcast %612 : f32 to vector<16x16xf32>
    %614 = arith.mulf %613, %607 : vector<16x16xf32>
    %615 = arith.addf %598, %614 : vector<16x16xf32>
    %c107 = arith.constant 107 : index
    %616 = memref.load %arg2[%c107] : memref<144xf32, #tpu.memory_space<smem>>
    %617 = vector.broadcast %616 : f32 to vector<16x16xf32>
    %618 = arith.mulf %617, %607 : vector<16x16xf32>
    %619 = arith.addf %602, %618 : vector<16x16xf32>
    %c143 = arith.constant 143 : index
    %620 = memref.load %arg2[%c143] : memref<144xf32, #tpu.memory_space<smem>>
    %621 = vector.broadcast %620 : f32 to vector<16x16xf32>
    %622 = arith.mulf %621, %607 : vector<16x16xf32>
    %623 = arith.addf %606, %622 : vector<16x16xf32>
    %624 = vector.shape_cast %611 : vector<16x16xf32> to vector<1x16x16xf32>
    %cst_19 = arith.constant dense<0.000000e+00> : vector<1xf32>
    %625 = vector.multi_reduction <add>, %624, %cst_19 [1, 2] : vector<1x16x16xf32> to vector<1xf32>
    %626 = vector.shape_cast %625 : vector<1xf32> to vector<1x1x1xf32>
    %627 = vector.extract %626[0, 0, 0] : f32 from vector<1x1x1xf32>
    %628 = vector.broadcast %627 : f32 to vector<1x1xf32>
    %629 = arith.mulf %611, %611 : vector<16x16xf32>
    %630 = vector.shape_cast %629 : vector<16x16xf32> to vector<1x16x16xf32>
    %cst_20 = arith.constant dense<0.000000e+00> : vector<1xf32>
    %631 = vector.multi_reduction <add>, %630, %cst_20 [1, 2] : vector<1x16x16xf32> to vector<1xf32>
    %632 = vector.shape_cast %631 : vector<1xf32> to vector<1x1x1xf32>
    %633 = vector.extract %632[0, 0, 0] : f32 from vector<1x1x1xf32>
    %634 = vector.broadcast %633 : f32 to vector<1x1xf32>
    %cst_21 = arith.constant 3.906250e-03 : f32
    %635 = vector.broadcast %cst_21 : f32 to vector<1x1xf32>
    %636 = arith.mulf %628, %635 : vector<1x1xf32>
    %cst_22 = arith.constant 3.906250e-03 : f32
    %637 = vector.broadcast %cst_22 : f32 to vector<1x1xf32>
    %638 = arith.mulf %634, %637 : vector<1x1xf32>
    %639 = arith.mulf %636, %636 : vector<1x1xf32>
    %640 = arith.subf %638, %639 : vector<1x1xf32>
    %cst_23 = arith.constant 0.000000e+00 : f32
    %641 = vector.broadcast %cst_23 : f32 to vector<1x1xf32>
    %642 = arith.maximumf %640, %641 : vector<1x1xf32>
    %643 = vector.broadcast %636 : vector<1x1xf32> to vector<16x16xf32>
    %644 = arith.subf %611, %643 : vector<16x16xf32>
    %cst_24 = arith.constant 9.99999974E-6 : f32
    %645 = vector.broadcast %cst_24 : f32 to vector<1x1xf32>
    %646 = arith.addf %642, %645 : vector<1x1xf32>
    %647 = math.rsqrt %646 : vector<1x1xf32>
    %648 = vector.broadcast %647 : vector<1x1xf32> to vector<16x16xf32>
    %649 = arith.mulf %644, %648 : vector<16x16xf32>
    %cst_25 = arith.constant 0.000000e+00 : f32
    %650 = vector.broadcast %cst_25 : f32 to vector<16x16xf32>
    %651 = arith.maximumf %649, %650 : vector<16x16xf32>
    %652 = vector.shape_cast %615 : vector<16x16xf32> to vector<1x16x16xf32>
    %cst_26 = arith.constant dense<0.000000e+00> : vector<1xf32>
    %653 = vector.multi_reduction <add>, %652, %cst_26 [1, 2] : vector<1x16x16xf32> to vector<1xf32>
    %654 = vector.shape_cast %653 : vector<1xf32> to vector<1x1x1xf32>
    %655 = vector.extract %654[0, 0, 0] : f32 from vector<1x1x1xf32>
    %656 = vector.broadcast %655 : f32 to vector<1x1xf32>
    %657 = arith.mulf %615, %615 : vector<16x16xf32>
    %658 = vector.shape_cast %657 : vector<16x16xf32> to vector<1x16x16xf32>
    %cst_27 = arith.constant dense<0.000000e+00> : vector<1xf32>
    %659 = vector.multi_reduction <add>, %658, %cst_27 [1, 2] : vector<1x16x16xf32> to vector<1xf32>
    %660 = vector.shape_cast %659 : vector<1xf32> to vector<1x1x1xf32>
    %661 = vector.extract %660[0, 0, 0] : f32 from vector<1x1x1xf32>
    %662 = vector.broadcast %661 : f32 to vector<1x1xf32>
    %cst_28 = arith.constant 3.906250e-03 : f32
    %663 = vector.broadcast %cst_28 : f32 to vector<1x1xf32>
    %664 = arith.mulf %656, %663 : vector<1x1xf32>
    %cst_29 = arith.constant 3.906250e-03 : f32
    %665 = vector.broadcast %cst_29 : f32 to vector<1x1xf32>
    %666 = arith.mulf %662, %665 : vector<1x1xf32>
    %667 = arith.mulf %664, %664 : vector<1x1xf32>
    %668 = arith.subf %666, %667 : vector<1x1xf32>
    %cst_30 = arith.constant 0.000000e+00 : f32
    %669 = vector.broadcast %cst_30 : f32 to vector<1x1xf32>
    %670 = arith.maximumf %668, %669 : vector<1x1xf32>
    %671 = vector.broadcast %664 : vector<1x1xf32> to vector<16x16xf32>
    %672 = arith.subf %615, %671 : vector<16x16xf32>
    %cst_31 = arith.constant 9.99999974E-6 : f32
    %673 = vector.broadcast %cst_31 : f32 to vector<1x1xf32>
    %674 = arith.addf %670, %673 : vector<1x1xf32>
    %675 = math.rsqrt %674 : vector<1x1xf32>
    %676 = vector.broadcast %675 : vector<1x1xf32> to vector<16x16xf32>
    %677 = arith.mulf %672, %676 : vector<16x16xf32>
    %cst_32 = arith.constant 0.000000e+00 : f32
    %678 = vector.broadcast %cst_32 : f32 to vector<16x16xf32>
    %679 = arith.maximumf %677, %678 : vector<16x16xf32>
    %680 = vector.shape_cast %619 : vector<16x16xf32> to vector<1x16x16xf32>
    %cst_33 = arith.constant dense<0.000000e+00> : vector<1xf32>
    %681 = vector.multi_reduction <add>, %680, %cst_33 [1, 2] : vector<1x16x16xf32> to vector<1xf32>
    %682 = vector.shape_cast %681 : vector<1xf32> to vector<1x1x1xf32>
    %683 = vector.extract %682[0, 0, 0] : f32 from vector<1x1x1xf32>
    %684 = vector.broadcast %683 : f32 to vector<1x1xf32>
    %685 = arith.mulf %619, %619 : vector<16x16xf32>
    %686 = vector.shape_cast %685 : vector<16x16xf32> to vector<1x16x16xf32>
    %cst_34 = arith.constant dense<0.000000e+00> : vector<1xf32>
    %687 = vector.multi_reduction <add>, %686, %cst_34 [1, 2] : vector<1x16x16xf32> to vector<1xf32>
    %688 = vector.shape_cast %687 : vector<1xf32> to vector<1x1x1xf32>
    %689 = vector.extract %688[0, 0, 0] : f32 from vector<1x1x1xf32>
    %690 = vector.broadcast %689 : f32 to vector<1x1xf32>
    %cst_35 = arith.constant 3.906250e-03 : f32
    %691 = vector.broadcast %cst_35 : f32 to vector<1x1xf32>
    %692 = arith.mulf %684, %691 : vector<1x1xf32>
    %cst_36 = arith.constant 3.906250e-03 : f32
    %693 = vector.broadcast %cst_36 : f32 to vector<1x1xf32>
    %694 = arith.mulf %690, %693 : vector<1x1xf32>
    %695 = arith.mulf %692, %692 : vector<1x1xf32>
    %696 = arith.subf %694, %695 : vector<1x1xf32>
    %cst_37 = arith.constant 0.000000e+00 : f32
    %697 = vector.broadcast %cst_37 : f32 to vector<1x1xf32>
    %698 = arith.maximumf %696, %697 : vector<1x1xf32>
    %699 = vector.broadcast %692 : vector<1x1xf32> to vector<16x16xf32>
    %700 = arith.subf %619, %699 : vector<16x16xf32>
    %cst_38 = arith.constant 9.99999974E-6 : f32
    %701 = vector.broadcast %cst_38 : f32 to vector<1x1xf32>
    %702 = arith.addf %698, %701 : vector<1x1xf32>
    %703 = math.rsqrt %702 : vector<1x1xf32>
    %704 = vector.broadcast %703 : vector<1x1xf32> to vector<16x16xf32>
    %705 = arith.mulf %700, %704 : vector<16x16xf32>
    %cst_39 = arith.constant 0.000000e+00 : f32
    %706 = vector.broadcast %cst_39 : f32 to vector<16x16xf32>
    %707 = arith.maximumf %705, %706 : vector<16x16xf32>
    %708 = vector.shape_cast %623 : vector<16x16xf32> to vector<1x16x16xf32>
    %cst_40 = arith.constant dense<0.000000e+00> : vector<1xf32>
    %709 = vector.multi_reduction <add>, %708, %cst_40 [1, 2] : vector<1x16x16xf32> to vector<1xf32>
    %710 = vector.shape_cast %709 : vector<1xf32> to vector<1x1x1xf32>
    %711 = vector.extract %710[0, 0, 0] : f32 from vector<1x1x1xf32>
    %712 = vector.broadcast %711 : f32 to vector<1x1xf32>
    %713 = arith.mulf %623, %623 : vector<16x16xf32>
    %714 = vector.shape_cast %713 : vector<16x16xf32> to vector<1x16x16xf32>
    %cst_41 = arith.constant dense<0.000000e+00> : vector<1xf32>
    %715 = vector.multi_reduction <add>, %714, %cst_41 [1, 2] : vector<1x16x16xf32> to vector<1xf32>
    %716 = vector.shape_cast %715 : vector<1xf32> to vector<1x1x1xf32>
    %717 = vector.extract %716[0, 0, 0] : f32 from vector<1x1x1xf32>
    %718 = vector.broadcast %717 : f32 to vector<1x1xf32>
    %cst_42 = arith.constant 3.906250e-03 : f32
    %719 = vector.broadcast %cst_42 : f32 to vector<1x1xf32>
    %720 = arith.mulf %712, %719 : vector<1x1xf32>
    %cst_43 = arith.constant 3.906250e-03 : f32
    %721 = vector.broadcast %cst_43 : f32 to vector<1x1xf32>
    %722 = arith.mulf %718, %721 : vector<1x1xf32>
    %723 = arith.mulf %720, %720 : vector<1x1xf32>
    %724 = arith.subf %722, %723 : vector<1x1xf32>
    %cst_44 = arith.constant 0.000000e+00 : f32
    %725 = vector.broadcast %cst_44 : f32 to vector<1x1xf32>
    %726 = arith.maximumf %724, %725 : vector<1x1xf32>
    %727 = vector.broadcast %720 : vector<1x1xf32> to vector<16x16xf32>
    %728 = arith.subf %623, %727 : vector<16x16xf32>
    %cst_45 = arith.constant 9.99999974E-6 : f32
    %729 = vector.broadcast %cst_45 : f32 to vector<1x1xf32>
    %730 = arith.addf %726, %729 : vector<1x1xf32>
    %731 = math.rsqrt %730 : vector<1x1xf32>
    %732 = vector.broadcast %731 : vector<1x1xf32> to vector<16x16xf32>
    %733 = arith.mulf %728, %732 : vector<16x16xf32>
    %cst_46 = arith.constant 0.000000e+00 : f32
    %734 = vector.broadcast %cst_46 : f32 to vector<16x16xf32>
    %735 = arith.maximumf %733, %734 : vector<16x16xf32>
    %c0_47 = arith.constant 0 : index
    %c1_48 = arith.constant 1 : index
    %c1_49 = arith.constant 1 : index
    %736 = vector.load %arg5[%c0_47, %c1_48, %c1_49] : memref<4x18x18xf32, #tpu.memory_space<vmem>>, vector<1x16x16xf32>
    %737 = vector.shape_cast %736 : vector<1x16x16xf32> to vector<16x16xf32>
    %738 = vector.shape_cast %651 : vector<16x16xf32> to vector<1x16x16xf32>
    tpu.vector_store %arg5[%c0_47, %c1_48, %c1_49], %738 {strides = array<i32>} : memref<4x18x18xf32, #tpu.memory_space<vmem>>, vector<1x16x16xf32>,
    %739 = vector.extract_strided_slice %651 {offsets = [1, 0], sizes = [1, 16], strides = [1, 1]} : vector<16x16xf32> to vector<1x16xf32>
    %c0_50 = arith.constant 0 : index
    %c0_51 = arith.constant 0 : index
    %c1_52 = arith.constant 1 : index
    %740 = vector.load %arg5[%c0_50, %c0_51, %c1_52] : memref<4x18x18xf32, #tpu.memory_space<vmem>>, vector<1x1x16xf32>
    %741 = vector.shape_cast %740 : vector<1x1x16xf32> to vector<1x16xf32>
    %742 = vector.shape_cast %739 : vector<1x16xf32> to vector<1x1x16xf32>
    tpu.vector_store %arg5[%c0_50, %c0_51, %c1_52], %742 {strides = array<i32>} : memref<4x18x18xf32, #tpu.memory_space<vmem>>, vector<1x1x16xf32>,
    %743 = vector.extract_strided_slice %651 {offsets = [14, 0], sizes = [1, 16], strides = [1, 1]} : vector<16x16xf32> to vector<1x16xf32>
    %c0_53 = arith.constant 0 : index
    %c17_54 = arith.constant 17 : index
    %c1_55 = arith.constant 1 : index
    %744 = vector.load %arg5[%c0_53, %c17_54, %c1_55] : memref<4x18x18xf32, #tpu.memory_space<vmem>>, vector<1x1x16xf32>
    %745 = vector.shape_cast %744 : vector<1x1x16xf32> to vector<1x16xf32>
    %746 = vector.shape_cast %743 : vector<1x16xf32> to vector<1x1x16xf32>
    tpu.vector_store %arg5[%c0_53, %c17_54, %c1_55], %746 {strides = array<i32>} : memref<4x18x18xf32, #tpu.memory_space<vmem>>, vector<1x1x16xf32>,
    %c1_56 = arith.constant 1 : index
    %c1_57 = arith.constant 1 : index
    %c1_58 = arith.constant 1 : index
    %747 = vector.load %arg5[%c1_56, %c1_57, %c1_58] : memref<4x18x18xf32, #tpu.memory_space<vmem>>, vector<1x16x16xf32>
    %748 = vector.shape_cast %747 : vector<1x16x16xf32> to vector<16x16xf32>
    %749 = vector.shape_cast %679 : vector<16x16xf32> to vector<1x16x16xf32>
    tpu.vector_store %arg5[%c1_56, %c1_57, %c1_58], %749 {strides = array<i32>} : memref<4x18x18xf32, #tpu.memory_space<vmem>>, vector<1x16x16xf32>,
    %750 = vector.extract_strided_slice %679 {offsets = [1, 0], sizes = [1, 16], strides = [1, 1]} : vector<16x16xf32> to vector<1x16xf32>
    %c1_59 = arith.constant 1 : index
    %c0_60 = arith.constant 0 : index
    %c1_61 = arith.constant 1 : index
    %751 = vector.load %arg5[%c1_59, %c0_60, %c1_61] : memref<4x18x18xf32, #tpu.memory_space<vmem>>, vector<1x1x16xf32>
    %752 = vector.shape_cast %751 : vector<1x1x16xf32> to vector<1x16xf32>
    %753 = vector.shape_cast %750 : vector<1x16xf32> to vector<1x1x16xf32>
    tpu.vector_store %arg5[%c1_59, %c0_60, %c1_61], %753 {strides = array<i32>} : memref<4x18x18xf32, #tpu.memory_space<vmem>>, vector<1x1x16xf32>,
    %754 = vector.extract_strided_slice %679 {offsets = [14, 0], sizes = [1, 16], strides = [1, 1]} : vector<16x16xf32> to vector<1x16xf32>
    %c1_62 = arith.constant 1 : index
    %c17_63 = arith.constant 17 : index
    %c1_64 = arith.constant 1 : index
    %755 = vector.load %arg5[%c1_62, %c17_63, %c1_64] : memref<4x18x18xf32, #tpu.memory_space<vmem>>, vector<1x1x16xf32>
    %756 = vector.shape_cast %755 : vector<1x1x16xf32> to vector<1x16xf32>
    %757 = vector.shape_cast %754 : vector<1x16xf32> to vector<1x1x16xf32>
    tpu.vector_store %arg5[%c1_62, %c17_63, %c1_64], %757 {strides = array<i32>} : memref<4x18x18xf32, #tpu.memory_space<vmem>>, vector<1x1x16xf32>,
    %c2_65 = arith.constant 2 : index
    %c1_66 = arith.constant 1 : index
    %c1_67 = arith.constant 1 : index
    %758 = vector.load %arg5[%c2_65, %c1_66, %c1_67] : memref<4x18x18xf32, #tpu.memory_space<vmem>>, vector<1x16x16xf32>
    %759 = vector.shape_cast %758 : vector<1x16x16xf32> to vector<16x16xf32>
    %760 = vector.shape_cast %707 : vector<16x16xf32> to vector<1x16x16xf32>
    tpu.vector_store %arg5[%c2_65, %c1_66, %c1_67], %760 {strides = array<i32>} : memref<4x18x18xf32, #tpu.memory_space<vmem>>, vector<1x16x16xf32>,
    %761 = vector.extract_strided_slice %707 {offsets = [1, 0], sizes = [1, 16], strides = [1, 1]} : vector<16x16xf32> to vector<1x16xf32>
    %c2_68 = arith.constant 2 : index
    %c0_69 = arith.constant 0 : index
    %c1_70 = arith.constant 1 : index
    %762 = vector.load %arg5[%c2_68, %c0_69, %c1_70] : memref<4x18x18xf32, #tpu.memory_space<vmem>>, vector<1x1x16xf32>
    %763 = vector.shape_cast %762 : vector<1x1x16xf32> to vector<1x16xf32>
    %764 = vector.shape_cast %761 : vector<1x16xf32> to vector<1x1x16xf32>
    tpu.vector_store %arg5[%c2_68, %c0_69, %c1_70], %764 {strides = array<i32>} : memref<4x18x18xf32, #tpu.memory_space<vmem>>, vector<1x1x16xf32>,
    %765 = vector.extract_strided_slice %707 {offsets = [14, 0], sizes = [1, 16], strides = [1, 1]} : vector<16x16xf32> to vector<1x16xf32>
    %c2_71 = arith.constant 2 : index
    %c17_72 = arith.constant 17 : index
    %c1_73 = arith.constant 1 : index
    %766 = vector.load %arg5[%c2_71, %c17_72, %c1_73] : memref<4x18x18xf32, #tpu.memory_space<vmem>>, vector<1x1x16xf32>
    %767 = vector.shape_cast %766 : vector<1x1x16xf32> to vector<1x16xf32>
    %768 = vector.shape_cast %765 : vector<1x16xf32> to vector<1x1x16xf32>
    tpu.vector_store %arg5[%c2_71, %c17_72, %c1_73], %768 {strides = array<i32>} : memref<4x18x18xf32, #tpu.memory_space<vmem>>, vector<1x1x16xf32>,
    %c3_74 = arith.constant 3 : index
    %c1_75 = arith.constant 1 : index
    %c1_76 = arith.constant 1 : index
    %769 = vector.load %arg5[%c3_74, %c1_75, %c1_76] : memref<4x18x18xf32, #tpu.memory_space<vmem>>, vector<1x16x16xf32>
    %770 = vector.shape_cast %769 : vector<1x16x16xf32> to vector<16x16xf32>
    %771 = vector.shape_cast %735 : vector<16x16xf32> to vector<1x16x16xf32>
    tpu.vector_store %arg5[%c3_74, %c1_75, %c1_76], %771 {strides = array<i32>} : memref<4x18x18xf32, #tpu.memory_space<vmem>>, vector<1x16x16xf32>,
    %772 = vector.extract_strided_slice %735 {offsets = [1, 0], sizes = [1, 16], strides = [1, 1]} : vector<16x16xf32> to vector<1x16xf32>
    %c3_77 = arith.constant 3 : index
    %c0_78 = arith.constant 0 : index
    %c1_79 = arith.constant 1 : index
    %773 = vector.load %arg5[%c3_77, %c0_78, %c1_79] : memref<4x18x18xf32, #tpu.memory_space<vmem>>, vector<1x1x16xf32>
    %774 = vector.shape_cast %773 : vector<1x1x16xf32> to vector<1x16xf32>
    %775 = vector.shape_cast %772 : vector<1x16xf32> to vector<1x1x16xf32>
    tpu.vector_store %arg5[%c3_77, %c0_78, %c1_79], %775 {strides = array<i32>} : memref<4x18x18xf32, #tpu.memory_space<vmem>>, vector<1x1x16xf32>,
    %776 = vector.extract_strided_slice %735 {offsets = [14, 0], sizes = [1, 16], strides = [1, 1]} : vector<16x16xf32> to vector<1x16xf32>
    %c3_80 = arith.constant 3 : index
    %c17_81 = arith.constant 17 : index
    %c1_82 = arith.constant 1 : index
    %777 = vector.load %arg5[%c3_80, %c17_81, %c1_82] : memref<4x18x18xf32, #tpu.memory_space<vmem>>, vector<1x1x16xf32>
    %778 = vector.shape_cast %777 : vector<1x1x16xf32> to vector<1x16xf32>
    %779 = vector.shape_cast %776 : vector<1x16xf32> to vector<1x1x16xf32>
    tpu.vector_store %arg5[%c3_80, %c17_81, %c1_82], %779 {strides = array<i32>} : memref<4x18x18xf32, #tpu.memory_space<vmem>>, vector<1x1x16xf32>,
    %c0_83 = arith.constant 0 : index
    %c0_84 = arith.constant 0 : index
    %c2_85 = arith.constant 2 : index
    %780 = vector.load %arg5[%c0_83, %c0_84, %c2_85] : memref<4x18x18xf32, #tpu.memory_space<vmem>>, vector<1x18x1xf32>
    %781 = vector.shape_cast %780 : vector<1x18x1xf32> to vector<18x1xf32>
    %c0_86 = arith.constant 0 : index
    %c0_87 = arith.constant 0 : index
    %c0_88 = arith.constant 0 : index
    %782 = vector.load %arg5[%c0_86, %c0_87, %c0_88] : memref<4x18x18xf32, #tpu.memory_space<vmem>>, vector<1x18x1xf32>
    %783 = vector.shape_cast %782 : vector<1x18x1xf32> to vector<18x1xf32>
    %784 = vector.shape_cast %781 : vector<18x1xf32> to vector<1x18x1xf32>
    tpu.vector_store %arg5[%c0_86, %c0_87, %c0_88], %784 {strides = array<i32>} : memref<4x18x18xf32, #tpu.memory_space<vmem>>, vector<1x18x1xf32>,
    %c0_89 = arith.constant 0 : index
    %c0_90 = arith.constant 0 : index
    %c15_91 = arith.constant 15 : index
    %785 = vector.load %arg5[%c0_89, %c0_90, %c15_91] : memref<4x18x18xf32, #tpu.memory_space<vmem>>, vector<1x18x1xf32>
    %786 = vector.shape_cast %785 : vector<1x18x1xf32> to vector<18x1xf32>
    %c0_92 = arith.constant 0 : index
    %c0_93 = arith.constant 0 : index
    %c17_94 = arith.constant 17 : index
    %787 = vector.load %arg5[%c0_92, %c0_93, %c17_94] : memref<4x18x18xf32, #tpu.memory_space<vmem>>, vector<1x18x1xf32>
    %788 = vector.shape_cast %787 : vector<1x18x1xf32> to vector<18x1xf32>
    %789 = vector.shape_cast %786 : vector<18x1xf32> to vector<1x18x1xf32>
    tpu.vector_store %arg5[%c0_92, %c0_93, %c17_94], %789 {strides = array<i32>} : memref<4x18x18xf32, #tpu.memory_space<vmem>>, vector<1x18x1xf32>,
    %c1_95 = arith.constant 1 : index
    %c0_96 = arith.constant 0 : index
    %c2_97 = arith.constant 2 : index
    %790 = vector.load %arg5[%c1_95, %c0_96, %c2_97] : memref<4x18x18xf32, #tpu.memory_space<vmem>>, vector<1x18x1xf32>
    %791 = vector.shape_cast %790 : vector<1x18x1xf32> to vector<18x1xf32>
    %c1_98 = arith.constant 1 : index
    %c0_99 = arith.constant 0 : index
    %c0_100 = arith.constant 0 : index
    %792 = vector.load %arg5[%c1_98, %c0_99, %c0_100] : memref<4x18x18xf32, #tpu.memory_space<vmem>>, vector<1x18x1xf32>
    %793 = vector.shape_cast %792 : vector<1x18x1xf32> to vector<18x1xf32>
    %794 = vector.shape_cast %791 : vector<18x1xf32> to vector<1x18x1xf32>
    tpu.vector_store %arg5[%c1_98, %c0_99, %c0_100], %794 {strides = array<i32>} : memref<4x18x18xf32, #tpu.memory_space<vmem>>, vector<1x18x1xf32>,
    %c1_101 = arith.constant 1 : index
    %c0_102 = arith.constant 0 : index
    %c15_103 = arith.constant 15 : index
    %795 = vector.load %arg5[%c1_101, %c0_102, %c15_103] : memref<4x18x18xf32, #tpu.memory_space<vmem>>, vector<1x18x1xf32>
    %796 = vector.shape_cast %795 : vector<1x18x1xf32> to vector<18x1xf32>
    %c1_104 = arith.constant 1 : index
    %c0_105 = arith.constant 0 : index
    %c17_106 = arith.constant 17 : index
    %797 = vector.load %arg5[%c1_104, %c0_105, %c17_106] : memref<4x18x18xf32, #tpu.memory_space<vmem>>, vector<1x18x1xf32>
    %798 = vector.shape_cast %797 : vector<1x18x1xf32> to vector<18x1xf32>
    %799 = vector.shape_cast %796 : vector<18x1xf32> to vector<1x18x1xf32>
    tpu.vector_store %arg5[%c1_104, %c0_105, %c17_106], %799 {strides = array<i32>} : memref<4x18x18xf32, #tpu.memory_space<vmem>>, vector<1x18x1xf32>,
    %c2_107 = arith.constant 2 : index
    %c0_108 = arith.constant 0 : index
    %c2_109 = arith.constant 2 : index
    %800 = vector.load %arg5[%c2_107, %c0_108, %c2_109] : memref<4x18x18xf32, #tpu.memory_space<vmem>>, vector<1x18x1xf32>
    %801 = vector.shape_cast %800 : vector<1x18x1xf32> to vector<18x1xf32>
    %c2_110 = arith.constant 2 : index
    %c0_111 = arith.constant 0 : index
    %c0_112 = arith.constant 0 : index
    %802 = vector.load %arg5[%c2_110, %c0_111, %c0_112] : memref<4x18x18xf32, #tpu.memory_space<vmem>>, vector<1x18x1xf32>
    %803 = vector.shape_cast %802 : vector<1x18x1xf32> to vector<18x1xf32>
    %804 = vector.shape_cast %801 : vector<18x1xf32> to vector<1x18x1xf32>
    tpu.vector_store %arg5[%c2_110, %c0_111, %c0_112], %804 {strides = array<i32>} : memref<4x18x18xf32, #tpu.memory_space<vmem>>, vector<1x18x1xf32>,
    %c2_113 = arith.constant 2 : index
    %c0_114 = arith.constant 0 : index
    %c15_115 = arith.constant 15 : index
    %805 = vector.load %arg5[%c2_113, %c0_114, %c15_115] : memref<4x18x18xf32, #tpu.memory_space<vmem>>, vector<1x18x1xf32>
    %806 = vector.shape_cast %805 : vector<1x18x1xf32> to vector<18x1xf32>
    %c2_116 = arith.constant 2 : index
    %c0_117 = arith.constant 0 : index
    %c17_118 = arith.constant 17 : index
    %807 = vector.load %arg5[%c2_116, %c0_117, %c17_118] : memref<4x18x18xf32, #tpu.memory_space<vmem>>, vector<1x18x1xf32>
    %808 = vector.shape_cast %807 : vector<1x18x1xf32> to vector<18x1xf32>
    %809 = vector.shape_cast %806 : vector<18x1xf32> to vector<1x18x1xf32>
    tpu.vector_store %arg5[%c2_116, %c0_117, %c17_118], %809 {strides = array<i32>} : memref<4x18x18xf32, #tpu.memory_space<vmem>>, vector<1x18x1xf32>,
    %c3_119 = arith.constant 3 : index
    %c0_120 = arith.constant 0 : index
    %c2_121 = arith.constant 2 : index
    %810 = vector.load %arg5[%c3_119, %c0_120, %c2_121] : memref<4x18x18xf32, #tpu.memory_space<vmem>>, vector<1x18x1xf32>
    %811 = vector.shape_cast %810 : vector<1x18x1xf32> to vector<18x1xf32>
    %c3_122 = arith.constant 3 : index
    %c0_123 = arith.constant 0 : index
    %c0_124 = arith.constant 0 : index
    %812 = vector.load %arg5[%c3_122, %c0_123, %c0_124] : memref<4x18x18xf32, #tpu.memory_space<vmem>>, vector<1x18x1xf32>
    %813 = vector.shape_cast %812 : vector<1x18x1xf32> to vector<18x1xf32>
    %814 = vector.shape_cast %811 : vector<18x1xf32> to vector<1x18x1xf32>
    tpu.vector_store %arg5[%c3_122, %c0_123, %c0_124], %814 {strides = array<i32>} : memref<4x18x18xf32, #tpu.memory_space<vmem>>, vector<1x18x1xf32>,
    %c3_125 = arith.constant 3 : index
    %c0_126 = arith.constant 0 : index
    %c15_127 = arith.constant 15 : index
    %815 = vector.load %arg5[%c3_125, %c0_126, %c15_127] : memref<4x18x18xf32, #tpu.memory_space<vmem>>, vector<1x18x1xf32>
    %816 = vector.shape_cast %815 : vector<1x18x1xf32> to vector<18x1xf32>
    %c3_128 = arith.constant 3 : index
    %c0_129 = arith.constant 0 : index
    %c17_130 = arith.constant 17 : index
    %817 = vector.load %arg5[%c3_128, %c0_129, %c17_130] : memref<4x18x18xf32, #tpu.memory_space<vmem>>, vector<1x18x1xf32>
    %818 = vector.shape_cast %817 : vector<1x18x1xf32> to vector<18x1xf32>
    %819 = vector.shape_cast %816 : vector<18x1xf32> to vector<1x18x1xf32>
    tpu.vector_store %arg5[%c3_128, %c0_129, %c17_130], %819 {strides = array<i32>} : memref<4x18x18xf32, #tpu.memory_space<vmem>>, vector<1x18x1xf32>,
    %cst_131 = arith.constant 0.000000e+00 : f32
    %820 = vector.broadcast %cst_131 : f32 to vector<16x16xf32>
    %cst_132 = arith.constant 0.000000e+00 : f32
    %821 = vector.broadcast %cst_132 : f32 to vector<16x16xf32>
    %cst_133 = arith.constant 0.000000e+00 : f32
    %822 = vector.broadcast %cst_133 : f32 to vector<16x16xf32>
    %cst_134 = arith.constant 0.000000e+00 : f32
    %823 = vector.broadcast %cst_134 : f32 to vector<16x16xf32>
    %c0_135 = arith.constant 0 : index
    %c0_136 = arith.constant 0 : index
    %c0_137 = arith.constant 0 : index
    %824 = vector.load %arg5[%c0_135, %c0_136, %c0_137] : memref<4x18x18xf32, #tpu.memory_space<vmem>>, vector<1x18x18xf32>
    %825 = vector.shape_cast %824 : vector<1x18x18xf32> to vector<18x18xf32>
    %826 = vector.extract_strided_slice %825 {offsets = [0, 0], sizes = [16, 16], strides = [1, 1]} : vector<18x18xf32> to vector<16x16xf32>
    %c0_138 = arith.constant 0 : index
    %827 = memref.load %arg3[%c0_138] : memref<144xf32, #tpu.memory_space<smem>>
    %828 = vector.broadcast %827 : f32 to vector<16x16xf32>
    %829 = arith.mulf %828, %826 : vector<16x16xf32>
    %830 = arith.addf %820, %829 : vector<16x16xf32>
    %c36_139 = arith.constant 36 : index
    %831 = memref.load %arg3[%c36_139] : memref<144xf32, #tpu.memory_space<smem>>
    %832 = vector.broadcast %831 : f32 to vector<16x16xf32>
    %833 = arith.mulf %832, %826 : vector<16x16xf32>
    %834 = arith.addf %821, %833 : vector<16x16xf32>
    %c72_140 = arith.constant 72 : index
    %835 = memref.load %arg3[%c72_140] : memref<144xf32, #tpu.memory_space<smem>>
    %836 = vector.broadcast %835 : f32 to vector<16x16xf32>
    %837 = arith.mulf %836, %826 : vector<16x16xf32>
    %838 = arith.addf %822, %837 : vector<16x16xf32>
    %c108_141 = arith.constant 108 : index
    %839 = memref.load %arg3[%c108_141] : memref<144xf32, #tpu.memory_space<smem>>
    %840 = vector.broadcast %839 : f32 to vector<16x16xf32>
    %841 = arith.mulf %840, %826 : vector<16x16xf32>
    %842 = arith.addf %823, %841 : vector<16x16xf32>
    %843 = vector.extract_strided_slice %825 {offsets = [0, 1], sizes = [16, 16], strides = [1, 1]} : vector<18x18xf32> to vector<16x16xf32>
    %c1_142 = arith.constant 1 : index
    %844 = memref.load %arg3[%c1_142] : memref<144xf32, #tpu.memory_space<smem>>
    %845 = vector.broadcast %844 : f32 to vector<16x16xf32>
    %846 = arith.mulf %845, %843 : vector<16x16xf32>
    %847 = arith.addf %830, %846 : vector<16x16xf32>
    %c37_143 = arith.constant 37 : index
    %848 = memref.load %arg3[%c37_143] : memref<144xf32, #tpu.memory_space<smem>>
    %849 = vector.broadcast %848 : f32 to vector<16x16xf32>
    %850 = arith.mulf %849, %843 : vector<16x16xf32>
    %851 = arith.addf %834, %850 : vector<16x16xf32>
    %c73_144 = arith.constant 73 : index
    %852 = memref.load %arg3[%c73_144] : memref<144xf32, #tpu.memory_space<smem>>
    %853 = vector.broadcast %852 : f32 to vector<16x16xf32>
    %854 = arith.mulf %853, %843 : vector<16x16xf32>
    %855 = arith.addf %838, %854 : vector<16x16xf32>
    %c109_145 = arith.constant 109 : index
    %856 = memref.load %arg3[%c109_145] : memref<144xf32, #tpu.memory_space<smem>>
    %857 = vector.broadcast %856 : f32 to vector<16x16xf32>
    %858 = arith.mulf %857, %843 : vector<16x16xf32>
    %859 = arith.addf %842, %858 : vector<16x16xf32>
    %860 = vector.extract_strided_slice %825 {offsets = [0, 2], sizes = [16, 16], strides = [1, 1]} : vector<18x18xf32> to vector<16x16xf32>
    %c2_146 = arith.constant 2 : index
    %861 = memref.load %arg3[%c2_146] : memref<144xf32, #tpu.memory_space<smem>>
    %862 = vector.broadcast %861 : f32 to vector<16x16xf32>
    %863 = arith.mulf %862, %860 : vector<16x16xf32>
    %864 = arith.addf %847, %863 : vector<16x16xf32>
    %c38_147 = arith.constant 38 : index
    %865 = memref.load %arg3[%c38_147] : memref<144xf32, #tpu.memory_space<smem>>
    %866 = vector.broadcast %865 : f32 to vector<16x16xf32>
    %867 = arith.mulf %866, %860 : vector<16x16xf32>
    %868 = arith.addf %851, %867 : vector<16x16xf32>
    %c74_148 = arith.constant 74 : index
    %869 = memref.load %arg3[%c74_148] : memref<144xf32, #tpu.memory_space<smem>>
    %870 = vector.broadcast %869 : f32 to vector<16x16xf32>
    %871 = arith.mulf %870, %860 : vector<16x16xf32>
    %872 = arith.addf %855, %871 : vector<16x16xf32>
    %c110_149 = arith.constant 110 : index
    %873 = memref.load %arg3[%c110_149] : memref<144xf32, #tpu.memory_space<smem>>
    %874 = vector.broadcast %873 : f32 to vector<16x16xf32>
    %875 = arith.mulf %874, %860 : vector<16x16xf32>
    %876 = arith.addf %859, %875 : vector<16x16xf32>
    %877 = vector.extract_strided_slice %825 {offsets = [1, 0], sizes = [16, 16], strides = [1, 1]} : vector<18x18xf32> to vector<16x16xf32>
    %c3_150 = arith.constant 3 : index
    %878 = memref.load %arg3[%c3_150] : memref<144xf32, #tpu.memory_space<smem>>
    %879 = vector.broadcast %878 : f32 to vector<16x16xf32>
    %880 = arith.mulf %879, %877 : vector<16x16xf32>
    %881 = arith.addf %864, %880 : vector<16x16xf32>
    %c39_151 = arith.constant 39 : index
    %882 = memref.load %arg3[%c39_151] : memref<144xf32, #tpu.memory_space<smem>>
    %883 = vector.broadcast %882 : f32 to vector<16x16xf32>
    %884 = arith.mulf %883, %877 : vector<16x16xf32>
    %885 = arith.addf %868, %884 : vector<16x16xf32>
    %c75_152 = arith.constant 75 : index
    %886 = memref.load %arg3[%c75_152] : memref<144xf32, #tpu.memory_space<smem>>
    %887 = vector.broadcast %886 : f32 to vector<16x16xf32>
    %888 = arith.mulf %887, %877 : vector<16x16xf32>
    %889 = arith.addf %872, %888 : vector<16x16xf32>
    %c111_153 = arith.constant 111 : index
    %890 = memref.load %arg3[%c111_153] : memref<144xf32, #tpu.memory_space<smem>>
    %891 = vector.broadcast %890 : f32 to vector<16x16xf32>
    %892 = arith.mulf %891, %877 : vector<16x16xf32>
    %893 = arith.addf %876, %892 : vector<16x16xf32>
    %894 = vector.extract_strided_slice %825 {offsets = [1, 1], sizes = [16, 16], strides = [1, 1]} : vector<18x18xf32> to vector<16x16xf32>
    %c4_154 = arith.constant 4 : index
    %895 = memref.load %arg3[%c4_154] : memref<144xf32, #tpu.memory_space<smem>>
    %896 = vector.broadcast %895 : f32 to vector<16x16xf32>
    %897 = arith.mulf %896, %894 : vector<16x16xf32>
    %898 = arith.addf %881, %897 : vector<16x16xf32>
    %c40_155 = arith.constant 40 : index
    %899 = memref.load %arg3[%c40_155] : memref<144xf32, #tpu.memory_space<smem>>
    %900 = vector.broadcast %899 : f32 to vector<16x16xf32>
    %901 = arith.mulf %900, %894 : vector<16x16xf32>
    %902 = arith.addf %885, %901 : vector<16x16xf32>
    %c76_156 = arith.constant 76 : index
    %903 = memref.load %arg3[%c76_156] : memref<144xf32, #tpu.memory_space<smem>>
    %904 = vector.broadcast %903 : f32 to vector<16x16xf32>
    %905 = arith.mulf %904, %894 : vector<16x16xf32>
    %906 = arith.addf %889, %905 : vector<16x16xf32>
    %c112_157 = arith.constant 112 : index
    %907 = memref.load %arg3[%c112_157] : memref<144xf32, #tpu.memory_space<smem>>
    %908 = vector.broadcast %907 : f32 to vector<16x16xf32>
    %909 = arith.mulf %908, %894 : vector<16x16xf32>
    %910 = arith.addf %893, %909 : vector<16x16xf32>
    %911 = vector.extract_strided_slice %825 {offsets = [1, 2], sizes = [16, 16], strides = [1, 1]} : vector<18x18xf32> to vector<16x16xf32>
    %c5_158 = arith.constant 5 : index
    %912 = memref.load %arg3[%c5_158] : memref<144xf32, #tpu.memory_space<smem>>
    %913 = vector.broadcast %912 : f32 to vector<16x16xf32>
    %914 = arith.mulf %913, %911 : vector<16x16xf32>
    %915 = arith.addf %898, %914 : vector<16x16xf32>
    %c41_159 = arith.constant 41 : index
    %916 = memref.load %arg3[%c41_159] : memref<144xf32, #tpu.memory_space<smem>>
    %917 = vector.broadcast %916 : f32 to vector<16x16xf32>
    %918 = arith.mulf %917, %911 : vector<16x16xf32>
    %919 = arith.addf %902, %918 : vector<16x16xf32>
    %c77_160 = arith.constant 77 : index
    %920 = memref.load %arg3[%c77_160] : memref<144xf32, #tpu.memory_space<smem>>
    %921 = vector.broadcast %920 : f32 to vector<16x16xf32>
    %922 = arith.mulf %921, %911 : vector<16x16xf32>
    %923 = arith.addf %906, %922 : vector<16x16xf32>
    %c113_161 = arith.constant 113 : index
    %924 = memref.load %arg3[%c113_161] : memref<144xf32, #tpu.memory_space<smem>>
    %925 = vector.broadcast %924 : f32 to vector<16x16xf32>
    %926 = arith.mulf %925, %911 : vector<16x16xf32>
    %927 = arith.addf %910, %926 : vector<16x16xf32>
    %928 = vector.extract_strided_slice %825 {offsets = [2, 0], sizes = [16, 16], strides = [1, 1]} : vector<18x18xf32> to vector<16x16xf32>
    %c6_162 = arith.constant 6 : index
    %929 = memref.load %arg3[%c6_162] : memref<144xf32, #tpu.memory_space<smem>>
    %930 = vector.broadcast %929 : f32 to vector<16x16xf32>
    %931 = arith.mulf %930, %928 : vector<16x16xf32>
    %932 = arith.addf %915, %931 : vector<16x16xf32>
    %c42_163 = arith.constant 42 : index
    %933 = memref.load %arg3[%c42_163] : memref<144xf32, #tpu.memory_space<smem>>
    %934 = vector.broadcast %933 : f32 to vector<16x16xf32>
    %935 = arith.mulf %934, %928 : vector<16x16xf32>
    %936 = arith.addf %919, %935 : vector<16x16xf32>
    %c78_164 = arith.constant 78 : index
    %937 = memref.load %arg3[%c78_164] : memref<144xf32, #tpu.memory_space<smem>>
    %938 = vector.broadcast %937 : f32 to vector<16x16xf32>
    %939 = arith.mulf %938, %928 : vector<16x16xf32>
    %940 = arith.addf %923, %939 : vector<16x16xf32>
    %c114_165 = arith.constant 114 : index
    %941 = memref.load %arg3[%c114_165] : memref<144xf32, #tpu.memory_space<smem>>
    %942 = vector.broadcast %941 : f32 to vector<16x16xf32>
    %943 = arith.mulf %942, %928 : vector<16x16xf32>
    %944 = arith.addf %927, %943 : vector<16x16xf32>
    %945 = vector.extract_strided_slice %825 {offsets = [2, 1], sizes = [16, 16], strides = [1, 1]} : vector<18x18xf32> to vector<16x16xf32>
    %c7_166 = arith.constant 7 : index
    %946 = memref.load %arg3[%c7_166] : memref<144xf32, #tpu.memory_space<smem>>
    %947 = vector.broadcast %946 : f32 to vector<16x16xf32>
    %948 = arith.mulf %947, %945 : vector<16x16xf32>
    %949 = arith.addf %932, %948 : vector<16x16xf32>
    %c43_167 = arith.constant 43 : index
    %950 = memref.load %arg3[%c43_167] : memref<144xf32, #tpu.memory_space<smem>>
    %951 = vector.broadcast %950 : f32 to vector<16x16xf32>
    %952 = arith.mulf %951, %945 : vector<16x16xf32>
    %953 = arith.addf %936, %952 : vector<16x16xf32>
    %c79_168 = arith.constant 79 : index
    %954 = memref.load %arg3[%c79_168] : memref<144xf32, #tpu.memory_space<smem>>
    %955 = vector.broadcast %954 : f32 to vector<16x16xf32>
    %956 = arith.mulf %955, %945 : vector<16x16xf32>
    %957 = arith.addf %940, %956 : vector<16x16xf32>
    %c115_169 = arith.constant 115 : index
    %958 = memref.load %arg3[%c115_169] : memref<144xf32, #tpu.memory_space<smem>>
    %959 = vector.broadcast %958 : f32 to vector<16x16xf32>
    %960 = arith.mulf %959, %945 : vector<16x16xf32>
    %961 = arith.addf %944, %960 : vector<16x16xf32>
    %962 = vector.extract_strided_slice %825 {offsets = [2, 2], sizes = [16, 16], strides = [1, 1]} : vector<18x18xf32> to vector<16x16xf32>
    %c8_170 = arith.constant 8 : index
    %963 = memref.load %arg3[%c8_170] : memref<144xf32, #tpu.memory_space<smem>>
    %964 = vector.broadcast %963 : f32 to vector<16x16xf32>
    %965 = arith.mulf %964, %962 : vector<16x16xf32>
    %966 = arith.addf %949, %965 : vector<16x16xf32>
    %c44_171 = arith.constant 44 : index
    %967 = memref.load %arg3[%c44_171] : memref<144xf32, #tpu.memory_space<smem>>
    %968 = vector.broadcast %967 : f32 to vector<16x16xf32>
    %969 = arith.mulf %968, %962 : vector<16x16xf32>
    %970 = arith.addf %953, %969 : vector<16x16xf32>
    %c80_172 = arith.constant 80 : index
    %971 = memref.load %arg3[%c80_172] : memref<144xf32, #tpu.memory_space<smem>>
    %972 = vector.broadcast %971 : f32 to vector<16x16xf32>
    %973 = arith.mulf %972, %962 : vector<16x16xf32>
    %974 = arith.addf %957, %973 : vector<16x16xf32>
    %c116_173 = arith.constant 116 : index
    %975 = memref.load %arg3[%c116_173] : memref<144xf32, #tpu.memory_space<smem>>
    %976 = vector.broadcast %975 : f32 to vector<16x16xf32>
    %977 = arith.mulf %976, %962 : vector<16x16xf32>
    %978 = arith.addf %961, %977 : vector<16x16xf32>
    %c1_174 = arith.constant 1 : index
    %c0_175 = arith.constant 0 : index
    %c0_176 = arith.constant 0 : index
    %979 = vector.load %arg5[%c1_174, %c0_175, %c0_176] : memref<4x18x18xf32, #tpu.memory_space<vmem>>, vector<1x18x18xf32>
    %980 = vector.shape_cast %979 : vector<1x18x18xf32> to vector<18x18xf32>
    %981 = vector.extract_strided_slice %980 {offsets = [0, 0], sizes = [16, 16], strides = [1, 1]} : vector<18x18xf32> to vector<16x16xf32>
    %c9_177 = arith.constant 9 : index
    %982 = memref.load %arg3[%c9_177] : memref<144xf32, #tpu.memory_space<smem>>
    %983 = vector.broadcast %982 : f32 to vector<16x16xf32>
    %984 = arith.mulf %983, %981 : vector<16x16xf32>
    %985 = arith.addf %966, %984 : vector<16x16xf32>
    %c45_178 = arith.constant 45 : index
    %986 = memref.load %arg3[%c45_178] : memref<144xf32, #tpu.memory_space<smem>>
    %987 = vector.broadcast %986 : f32 to vector<16x16xf32>
    %988 = arith.mulf %987, %981 : vector<16x16xf32>
    %989 = arith.addf %970, %988 : vector<16x16xf32>
    %c81_179 = arith.constant 81 : index
    %990 = memref.load %arg3[%c81_179] : memref<144xf32, #tpu.memory_space<smem>>
    %991 = vector.broadcast %990 : f32 to vector<16x16xf32>
    %992 = arith.mulf %991, %981 : vector<16x16xf32>
    %993 = arith.addf %974, %992 : vector<16x16xf32>
    %c117_180 = arith.constant 117 : index
    %994 = memref.load %arg3[%c117_180] : memref<144xf32, #tpu.memory_space<smem>>
    %995 = vector.broadcast %994 : f32 to vector<16x16xf32>
    %996 = arith.mulf %995, %981 : vector<16x16xf32>
    %997 = arith.addf %978, %996 : vector<16x16xf32>
    %998 = vector.extract_strided_slice %980 {offsets = [0, 1], sizes = [16, 16], strides = [1, 1]} : vector<18x18xf32> to vector<16x16xf32>
    %c10_181 = arith.constant 10 : index
    %999 = memref.load %arg3[%c10_181] : memref<144xf32, #tpu.memory_space<smem>>
    %1000 = vector.broadcast %999 : f32 to vector<16x16xf32>
    %1001 = arith.mulf %1000, %998 : vector<16x16xf32>
    %1002 = arith.addf %985, %1001 : vector<16x16xf32>
    %c46_182 = arith.constant 46 : index
    %1003 = memref.load %arg3[%c46_182] : memref<144xf32, #tpu.memory_space<smem>>
    %1004 = vector.broadcast %1003 : f32 to vector<16x16xf32>
    %1005 = arith.mulf %1004, %998 : vector<16x16xf32>
    %1006 = arith.addf %989, %1005 : vector<16x16xf32>
    %c82_183 = arith.constant 82 : index
    %1007 = memref.load %arg3[%c82_183] : memref<144xf32, #tpu.memory_space<smem>>
    %1008 = vector.broadcast %1007 : f32 to vector<16x16xf32>
    %1009 = arith.mulf %1008, %998 : vector<16x16xf32>
    %1010 = arith.addf %993, %1009 : vector<16x16xf32>
    %c118_184 = arith.constant 118 : index
    %1011 = memref.load %arg3[%c118_184] : memref<144xf32, #tpu.memory_space<smem>>
    %1012 = vector.broadcast %1011 : f32 to vector<16x16xf32>
    %1013 = arith.mulf %1012, %998 : vector<16x16xf32>
    %1014 = arith.addf %997, %1013 : vector<16x16xf32>
    %1015 = vector.extract_strided_slice %980 {offsets = [0, 2], sizes = [16, 16], strides = [1, 1]} : vector<18x18xf32> to vector<16x16xf32>
    %c11_185 = arith.constant 11 : index
    %1016 = memref.load %arg3[%c11_185] : memref<144xf32, #tpu.memory_space<smem>>
    %1017 = vector.broadcast %1016 : f32 to vector<16x16xf32>
    %1018 = arith.mulf %1017, %1015 : vector<16x16xf32>
    %1019 = arith.addf %1002, %1018 : vector<16x16xf32>
    %c47_186 = arith.constant 47 : index
    %1020 = memref.load %arg3[%c47_186] : memref<144xf32, #tpu.memory_space<smem>>
    %1021 = vector.broadcast %1020 : f32 to vector<16x16xf32>
    %1022 = arith.mulf %1021, %1015 : vector<16x16xf32>
    %1023 = arith.addf %1006, %1022 : vector<16x16xf32>
    %c83_187 = arith.constant 83 : index
    %1024 = memref.load %arg3[%c83_187] : memref<144xf32, #tpu.memory_space<smem>>
    %1025 = vector.broadcast %1024 : f32 to vector<16x16xf32>
    %1026 = arith.mulf %1025, %1015 : vector<16x16xf32>
    %1027 = arith.addf %1010, %1026 : vector<16x16xf32>
    %c119_188 = arith.constant 119 : index
    %1028 = memref.load %arg3[%c119_188] : memref<144xf32, #tpu.memory_space<smem>>
    %1029 = vector.broadcast %1028 : f32 to vector<16x16xf32>
    %1030 = arith.mulf %1029, %1015 : vector<16x16xf32>
    %1031 = arith.addf %1014, %1030 : vector<16x16xf32>
    %1032 = vector.extract_strided_slice %980 {offsets = [1, 0], sizes = [16, 16], strides = [1, 1]} : vector<18x18xf32> to vector<16x16xf32>
    %c12_189 = arith.constant 12 : index
    %1033 = memref.load %arg3[%c12_189] : memref<144xf32, #tpu.memory_space<smem>>
    %1034 = vector.broadcast %1033 : f32 to vector<16x16xf32>
    %1035 = arith.mulf %1034, %1032 : vector<16x16xf32>
    %1036 = arith.addf %1019, %1035 : vector<16x16xf32>
    %c48_190 = arith.constant 48 : index
    %1037 = memref.load %arg3[%c48_190] : memref<144xf32, #tpu.memory_space<smem>>
    %1038 = vector.broadcast %1037 : f32 to vector<16x16xf32>
    %1039 = arith.mulf %1038, %1032 : vector<16x16xf32>
    %1040 = arith.addf %1023, %1039 : vector<16x16xf32>
    %c84_191 = arith.constant 84 : index
    %1041 = memref.load %arg3[%c84_191] : memref<144xf32, #tpu.memory_space<smem>>
    %1042 = vector.broadcast %1041 : f32 to vector<16x16xf32>
    %1043 = arith.mulf %1042, %1032 : vector<16x16xf32>
    %1044 = arith.addf %1027, %1043 : vector<16x16xf32>
    %c120_192 = arith.constant 120 : index
    %1045 = memref.load %arg3[%c120_192] : memref<144xf32, #tpu.memory_space<smem>>
    %1046 = vector.broadcast %1045 : f32 to vector<16x16xf32>
    %1047 = arith.mulf %1046, %1032 : vector<16x16xf32>
    %1048 = arith.addf %1031, %1047 : vector<16x16xf32>
    %1049 = vector.extract_strided_slice %980 {offsets = [1, 1], sizes = [16, 16], strides = [1, 1]} : vector<18x18xf32> to vector<16x16xf32>
    %c13_193 = arith.constant 13 : index
    %1050 = memref.load %arg3[%c13_193] : memref<144xf32, #tpu.memory_space<smem>>
    %1051 = vector.broadcast %1050 : f32 to vector<16x16xf32>
    %1052 = arith.mulf %1051, %1049 : vector<16x16xf32>
    %1053 = arith.addf %1036, %1052 : vector<16x16xf32>
    %c49_194 = arith.constant 49 : index
    %1054 = memref.load %arg3[%c49_194] : memref<144xf32, #tpu.memory_space<smem>>
    %1055 = vector.broadcast %1054 : f32 to vector<16x16xf32>
    %1056 = arith.mulf %1055, %1049 : vector<16x16xf32>
    %1057 = arith.addf %1040, %1056 : vector<16x16xf32>
    %c85_195 = arith.constant 85 : index
    %1058 = memref.load %arg3[%c85_195] : memref<144xf32, #tpu.memory_space<smem>>
    %1059 = vector.broadcast %1058 : f32 to vector<16x16xf32>
    %1060 = arith.mulf %1059, %1049 : vector<16x16xf32>
    %1061 = arith.addf %1044, %1060 : vector<16x16xf32>
    %c121_196 = arith.constant 121 : index
    %1062 = memref.load %arg3[%c121_196] : memref<144xf32, #tpu.memory_space<smem>>
    %1063 = vector.broadcast %1062 : f32 to vector<16x16xf32>
    %1064 = arith.mulf %1063, %1049 : vector<16x16xf32>
    %1065 = arith.addf %1048, %1064 : vector<16x16xf32>
    %1066 = vector.extract_strided_slice %980 {offsets = [1, 2], sizes = [16, 16], strides = [1, 1]} : vector<18x18xf32> to vector<16x16xf32>
    %c14_197 = arith.constant 14 : index
    %1067 = memref.load %arg3[%c14_197] : memref<144xf32, #tpu.memory_space<smem>>
    %1068 = vector.broadcast %1067 : f32 to vector<16x16xf32>
    %1069 = arith.mulf %1068, %1066 : vector<16x16xf32>
    %1070 = arith.addf %1053, %1069 : vector<16x16xf32>
    %c50_198 = arith.constant 50 : index
    %1071 = memref.load %arg3[%c50_198] : memref<144xf32, #tpu.memory_space<smem>>
    %1072 = vector.broadcast %1071 : f32 to vector<16x16xf32>
    %1073 = arith.mulf %1072, %1066 : vector<16x16xf32>
    %1074 = arith.addf %1057, %1073 : vector<16x16xf32>
    %c86_199 = arith.constant 86 : index
    %1075 = memref.load %arg3[%c86_199] : memref<144xf32, #tpu.memory_space<smem>>
    %1076 = vector.broadcast %1075 : f32 to vector<16x16xf32>
    %1077 = arith.mulf %1076, %1066 : vector<16x16xf32>
    %1078 = arith.addf %1061, %1077 : vector<16x16xf32>
    %c122_200 = arith.constant 122 : index
    %1079 = memref.load %arg3[%c122_200] : memref<144xf32, #tpu.memory_space<smem>>
    %1080 = vector.broadcast %1079 : f32 to vector<16x16xf32>
    %1081 = arith.mulf %1080, %1066 : vector<16x16xf32>
    %1082 = arith.addf %1065, %1081 : vector<16x16xf32>
    %1083 = vector.extract_strided_slice %980 {offsets = [2, 0], sizes = [16, 16], strides = [1, 1]} : vector<18x18xf32> to vector<16x16xf32>
    %c15_201 = arith.constant 15 : index
    %1084 = memref.load %arg3[%c15_201] : memref<144xf32, #tpu.memory_space<smem>>
    %1085 = vector.broadcast %1084 : f32 to vector<16x16xf32>
    %1086 = arith.mulf %1085, %1083 : vector<16x16xf32>
    %1087 = arith.addf %1070, %1086 : vector<16x16xf32>
    %c51_202 = arith.constant 51 : index
    %1088 = memref.load %arg3[%c51_202] : memref<144xf32, #tpu.memory_space<smem>>
    %1089 = vector.broadcast %1088 : f32 to vector<16x16xf32>
    %1090 = arith.mulf %1089, %1083 : vector<16x16xf32>
    %1091 = arith.addf %1074, %1090 : vector<16x16xf32>
    %c87_203 = arith.constant 87 : index
    %1092 = memref.load %arg3[%c87_203] : memref<144xf32, #tpu.memory_space<smem>>
    %1093 = vector.broadcast %1092 : f32 to vector<16x16xf32>
    %1094 = arith.mulf %1093, %1083 : vector<16x16xf32>
    %1095 = arith.addf %1078, %1094 : vector<16x16xf32>
    %c123_204 = arith.constant 123 : index
    %1096 = memref.load %arg3[%c123_204] : memref<144xf32, #tpu.memory_space<smem>>
    %1097 = vector.broadcast %1096 : f32 to vector<16x16xf32>
    %1098 = arith.mulf %1097, %1083 : vector<16x16xf32>
    %1099 = arith.addf %1082, %1098 : vector<16x16xf32>
    %1100 = vector.extract_strided_slice %980 {offsets = [2, 1], sizes = [16, 16], strides = [1, 1]} : vector<18x18xf32> to vector<16x16xf32>
    %c16_205 = arith.constant 16 : index
    %1101 = memref.load %arg3[%c16_205] : memref<144xf32, #tpu.memory_space<smem>>
    %1102 = vector.broadcast %1101 : f32 to vector<16x16xf32>
    %1103 = arith.mulf %1102, %1100 : vector<16x16xf32>
    %1104 = arith.addf %1087, %1103 : vector<16x16xf32>
    %c52_206 = arith.constant 52 : index
    %1105 = memref.load %arg3[%c52_206] : memref<144xf32, #tpu.memory_space<smem>>
    %1106 = vector.broadcast %1105 : f32 to vector<16x16xf32>
    %1107 = arith.mulf %1106, %1100 : vector<16x16xf32>
    %1108 = arith.addf %1091, %1107 : vector<16x16xf32>
    %c88_207 = arith.constant 88 : index
    %1109 = memref.load %arg3[%c88_207] : memref<144xf32, #tpu.memory_space<smem>>
    %1110 = vector.broadcast %1109 : f32 to vector<16x16xf32>
    %1111 = arith.mulf %1110, %1100 : vector<16x16xf32>
    %1112 = arith.addf %1095, %1111 : vector<16x16xf32>
    %c124_208 = arith.constant 124 : index
    %1113 = memref.load %arg3[%c124_208] : memref<144xf32, #tpu.memory_space<smem>>
    %1114 = vector.broadcast %1113 : f32 to vector<16x16xf32>
    %1115 = arith.mulf %1114, %1100 : vector<16x16xf32>
    %1116 = arith.addf %1099, %1115 : vector<16x16xf32>
    %1117 = vector.extract_strided_slice %980 {offsets = [2, 2], sizes = [16, 16], strides = [1, 1]} : vector<18x18xf32> to vector<16x16xf32>
    %c17_209 = arith.constant 17 : index
    %1118 = memref.load %arg3[%c17_209] : memref<144xf32, #tpu.memory_space<smem>>
    %1119 = vector.broadcast %1118 : f32 to vector<16x16xf32>
    %1120 = arith.mulf %1119, %1117 : vector<16x16xf32>
    %1121 = arith.addf %1104, %1120 : vector<16x16xf32>
    %c53_210 = arith.constant 53 : index
    %1122 = memref.load %arg3[%c53_210] : memref<144xf32, #tpu.memory_space<smem>>
    %1123 = vector.broadcast %1122 : f32 to vector<16x16xf32>
    %1124 = arith.mulf %1123, %1117 : vector<16x16xf32>
    %1125 = arith.addf %1108, %1124 : vector<16x16xf32>
    %c89_211 = arith.constant 89 : index
    %1126 = memref.load %arg3[%c89_211] : memref<144xf32, #tpu.memory_space<smem>>
    %1127 = vector.broadcast %1126 : f32 to vector<16x16xf32>
    %1128 = arith.mulf %1127, %1117 : vector<16x16xf32>
    %1129 = arith.addf %1112, %1128 : vector<16x16xf32>
    %c125_212 = arith.constant 125 : index
    %1130 = memref.load %arg3[%c125_212] : memref<144xf32, #tpu.memory_space<smem>>
    %1131 = vector.broadcast %1130 : f32 to vector<16x16xf32>
    %1132 = arith.mulf %1131, %1117 : vector<16x16xf32>
    %1133 = arith.addf %1116, %1132 : vector<16x16xf32>
    %c2_213 = arith.constant 2 : index
    %c0_214 = arith.constant 0 : index
    %c0_215 = arith.constant 0 : index
    %1134 = vector.load %arg5[%c2_213, %c0_214, %c0_215] : memref<4x18x18xf32, #tpu.memory_space<vmem>>, vector<1x18x18xf32>
    %1135 = vector.shape_cast %1134 : vector<1x18x18xf32> to vector<18x18xf32>
    %1136 = vector.extract_strided_slice %1135 {offsets = [0, 0], sizes = [16, 16], strides = [1, 1]} : vector<18x18xf32> to vector<16x16xf32>
    %c18_216 = arith.constant 18 : index
    %1137 = memref.load %arg3[%c18_216] : memref<144xf32, #tpu.memory_space<smem>>
    %1138 = vector.broadcast %1137 : f32 to vector<16x16xf32>
    %1139 = arith.mulf %1138, %1136 : vector<16x16xf32>
    %1140 = arith.addf %1121, %1139 : vector<16x16xf32>
    %c54_217 = arith.constant 54 : index
    %1141 = memref.load %arg3[%c54_217] : memref<144xf32, #tpu.memory_space<smem>>
    %1142 = vector.broadcast %1141 : f32 to vector<16x16xf32>
    %1143 = arith.mulf %1142, %1136 : vector<16x16xf32>
    %1144 = arith.addf %1125, %1143 : vector<16x16xf32>
    %c90_218 = arith.constant 90 : index
    %1145 = memref.load %arg3[%c90_218] : memref<144xf32, #tpu.memory_space<smem>>
    %1146 = vector.broadcast %1145 : f32 to vector<16x16xf32>
    %1147 = arith.mulf %1146, %1136 : vector<16x16xf32>
    %1148 = arith.addf %1129, %1147 : vector<16x16xf32>
    %c126_219 = arith.constant 126 : index
    %1149 = memref.load %arg3[%c126_219] : memref<144xf32, #tpu.memory_space<smem>>
    %1150 = vector.broadcast %1149 : f32 to vector<16x16xf32>
    %1151 = arith.mulf %1150, %1136 : vector<16x16xf32>
    %1152 = arith.addf %1133, %1151 : vector<16x16xf32>
    %1153 = vector.extract_strided_slice %1135 {offsets = [0, 1], sizes = [16, 16], strides = [1, 1]} : vector<18x18xf32> to vector<16x16xf32>
    %c19_220 = arith.constant 19 : index
    %1154 = memref.load %arg3[%c19_220] : memref<144xf32, #tpu.memory_space<smem>>
    %1155 = vector.broadcast %1154 : f32 to vector<16x16xf32>
    %1156 = arith.mulf %1155, %1153 : vector<16x16xf32>
    %1157 = arith.addf %1140, %1156 : vector<16x16xf32>
    %c55_221 = arith.constant 55 : index
    %1158 = memref.load %arg3[%c55_221] : memref<144xf32, #tpu.memory_space<smem>>
    %1159 = vector.broadcast %1158 : f32 to vector<16x16xf32>
    %1160 = arith.mulf %1159, %1153 : vector<16x16xf32>
    %1161 = arith.addf %1144, %1160 : vector<16x16xf32>
    %c91_222 = arith.constant 91 : index
    %1162 = memref.load %arg3[%c91_222] : memref<144xf32, #tpu.memory_space<smem>>
    %1163 = vector.broadcast %1162 : f32 to vector<16x16xf32>
    %1164 = arith.mulf %1163, %1153 : vector<16x16xf32>
    %1165 = arith.addf %1148, %1164 : vector<16x16xf32>
    %c127_223 = arith.constant 127 : index
    %1166 = memref.load %arg3[%c127_223] : memref<144xf32, #tpu.memory_space<smem>>
    %1167 = vector.broadcast %1166 : f32 to vector<16x16xf32>
    %1168 = arith.mulf %1167, %1153 : vector<16x16xf32>
    %1169 = arith.addf %1152, %1168 : vector<16x16xf32>
    %1170 = vector.extract_strided_slice %1135 {offsets = [0, 2], sizes = [16, 16], strides = [1, 1]} : vector<18x18xf32> to vector<16x16xf32>
    %c20_224 = arith.constant 20 : index
    %1171 = memref.load %arg3[%c20_224] : memref<144xf32, #tpu.memory_space<smem>>
    %1172 = vector.broadcast %1171 : f32 to vector<16x16xf32>
    %1173 = arith.mulf %1172, %1170 : vector<16x16xf32>
    %1174 = arith.addf %1157, %1173 : vector<16x16xf32>
    %c56_225 = arith.constant 56 : index
    %1175 = memref.load %arg3[%c56_225] : memref<144xf32, #tpu.memory_space<smem>>
    %1176 = vector.broadcast %1175 : f32 to vector<16x16xf32>
    %1177 = arith.mulf %1176, %1170 : vector<16x16xf32>
    %1178 = arith.addf %1161, %1177 : vector<16x16xf32>
    %c92_226 = arith.constant 92 : index
    %1179 = memref.load %arg3[%c92_226] : memref<144xf32, #tpu.memory_space<smem>>
    %1180 = vector.broadcast %1179 : f32 to vector<16x16xf32>
    %1181 = arith.mulf %1180, %1170 : vector<16x16xf32>
    %1182 = arith.addf %1165, %1181 : vector<16x16xf32>
    %c128_227 = arith.constant 128 : index
    %1183 = memref.load %arg3[%c128_227] : memref<144xf32, #tpu.memory_space<smem>>
    %1184 = vector.broadcast %1183 : f32 to vector<16x16xf32>
    %1185 = arith.mulf %1184, %1170 : vector<16x16xf32>
    %1186 = arith.addf %1169, %1185 : vector<16x16xf32>
    %1187 = vector.extract_strided_slice %1135 {offsets = [1, 0], sizes = [16, 16], strides = [1, 1]} : vector<18x18xf32> to vector<16x16xf32>
    %c21_228 = arith.constant 21 : index
    %1188 = memref.load %arg3[%c21_228] : memref<144xf32, #tpu.memory_space<smem>>
    %1189 = vector.broadcast %1188 : f32 to vector<16x16xf32>
    %1190 = arith.mulf %1189, %1187 : vector<16x16xf32>
    %1191 = arith.addf %1174, %1190 : vector<16x16xf32>
    %c57_229 = arith.constant 57 : index
    %1192 = memref.load %arg3[%c57_229] : memref<144xf32, #tpu.memory_space<smem>>
    %1193 = vector.broadcast %1192 : f32 to vector<16x16xf32>
    %1194 = arith.mulf %1193, %1187 : vector<16x16xf32>
    %1195 = arith.addf %1178, %1194 : vector<16x16xf32>
    %c93_230 = arith.constant 93 : index
    %1196 = memref.load %arg3[%c93_230] : memref<144xf32, #tpu.memory_space<smem>>
    %1197 = vector.broadcast %1196 : f32 to vector<16x16xf32>
    %1198 = arith.mulf %1197, %1187 : vector<16x16xf32>
    %1199 = arith.addf %1182, %1198 : vector<16x16xf32>
    %c129_231 = arith.constant 129 : index
    %1200 = memref.load %arg3[%c129_231] : memref<144xf32, #tpu.memory_space<smem>>
    %1201 = vector.broadcast %1200 : f32 to vector<16x16xf32>
    %1202 = arith.mulf %1201, %1187 : vector<16x16xf32>
    %1203 = arith.addf %1186, %1202 : vector<16x16xf32>
    %1204 = vector.extract_strided_slice %1135 {offsets = [1, 1], sizes = [16, 16], strides = [1, 1]} : vector<18x18xf32> to vector<16x16xf32>
    %c22_232 = arith.constant 22 : index
    %1205 = memref.load %arg3[%c22_232] : memref<144xf32, #tpu.memory_space<smem>>
    %1206 = vector.broadcast %1205 : f32 to vector<16x16xf32>
    %1207 = arith.mulf %1206, %1204 : vector<16x16xf32>
    %1208 = arith.addf %1191, %1207 : vector<16x16xf32>
    %c58_233 = arith.constant 58 : index
    %1209 = memref.load %arg3[%c58_233] : memref<144xf32, #tpu.memory_space<smem>>
    %1210 = vector.broadcast %1209 : f32 to vector<16x16xf32>
    %1211 = arith.mulf %1210, %1204 : vector<16x16xf32>
    %1212 = arith.addf %1195, %1211 : vector<16x16xf32>
    %c94_234 = arith.constant 94 : index
    %1213 = memref.load %arg3[%c94_234] : memref<144xf32, #tpu.memory_space<smem>>
    %1214 = vector.broadcast %1213 : f32 to vector<16x16xf32>
    %1215 = arith.mulf %1214, %1204 : vector<16x16xf32>
    %1216 = arith.addf %1199, %1215 : vector<16x16xf32>
    %c130_235 = arith.constant 130 : index
    %1217 = memref.load %arg3[%c130_235] : memref<144xf32, #tpu.memory_space<smem>>
    %1218 = vector.broadcast %1217 : f32 to vector<16x16xf32>
    %1219 = arith.mulf %1218, %1204 : vector<16x16xf32>
    %1220 = arith.addf %1203, %1219 : vector<16x16xf32>
    %1221 = vector.extract_strided_slice %1135 {offsets = [1, 2], sizes = [16, 16], strides = [1, 1]} : vector<18x18xf32> to vector<16x16xf32>
    %c23_236 = arith.constant 23 : index
    %1222 = memref.load %arg3[%c23_236] : memref<144xf32, #tpu.memory_space<smem>>
    %1223 = vector.broadcast %1222 : f32 to vector<16x16xf32>
    %1224 = arith.mulf %1223, %1221 : vector<16x16xf32>
    %1225 = arith.addf %1208, %1224 : vector<16x16xf32>
    %c59_237 = arith.constant 59 : index
    %1226 = memref.load %arg3[%c59_237] : memref<144xf32, #tpu.memory_space<smem>>
    %1227 = vector.broadcast %1226 : f32 to vector<16x16xf32>
    %1228 = arith.mulf %1227, %1221 : vector<16x16xf32>
    %1229 = arith.addf %1212, %1228 : vector<16x16xf32>
    %c95_238 = arith.constant 95 : index
    %1230 = memref.load %arg3[%c95_238] : memref<144xf32, #tpu.memory_space<smem>>
    %1231 = vector.broadcast %1230 : f32 to vector<16x16xf32>
    %1232 = arith.mulf %1231, %1221 : vector<16x16xf32>
    %1233 = arith.addf %1216, %1232 : vector<16x16xf32>
    %c131_239 = arith.constant 131 : index
    %1234 = memref.load %arg3[%c131_239] : memref<144xf32, #tpu.memory_space<smem>>
    %1235 = vector.broadcast %1234 : f32 to vector<16x16xf32>
    %1236 = arith.mulf %1235, %1221 : vector<16x16xf32>
    %1237 = arith.addf %1220, %1236 : vector<16x16xf32>
    %1238 = vector.extract_strided_slice %1135 {offsets = [2, 0], sizes = [16, 16], strides = [1, 1]} : vector<18x18xf32> to vector<16x16xf32>
    %c24_240 = arith.constant 24 : index
    %1239 = memref.load %arg3[%c24_240] : memref<144xf32, #tpu.memory_space<smem>>
    %1240 = vector.broadcast %1239 : f32 to vector<16x16xf32>
    %1241 = arith.mulf %1240, %1238 : vector<16x16xf32>
    %1242 = arith.addf %1225, %1241 : vector<16x16xf32>
    %c60_241 = arith.constant 60 : index
    %1243 = memref.load %arg3[%c60_241] : memref<144xf32, #tpu.memory_space<smem>>
    %1244 = vector.broadcast %1243 : f32 to vector<16x16xf32>
    %1245 = arith.mulf %1244, %1238 : vector<16x16xf32>
    %1246 = arith.addf %1229, %1245 : vector<16x16xf32>
    %c96_242 = arith.constant 96 : index
    %1247 = memref.load %arg3[%c96_242] : memref<144xf32, #tpu.memory_space<smem>>
    %1248 = vector.broadcast %1247 : f32 to vector<16x16xf32>
    %1249 = arith.mulf %1248, %1238 : vector<16x16xf32>
    %1250 = arith.addf %1233, %1249 : vector<16x16xf32>
    %c132_243 = arith.constant 132 : index
    %1251 = memref.load %arg3[%c132_243] : memref<144xf32, #tpu.memory_space<smem>>
    %1252 = vector.broadcast %1251 : f32 to vector<16x16xf32>
    %1253 = arith.mulf %1252, %1238 : vector<16x16xf32>
    %1254 = arith.addf %1237, %1253 : vector<16x16xf32>
    %1255 = vector.extract_strided_slice %1135 {offsets = [2, 1], sizes = [16, 16], strides = [1, 1]} : vector<18x18xf32> to vector<16x16xf32>
    %c25_244 = arith.constant 25 : index
    %1256 = memref.load %arg3[%c25_244] : memref<144xf32, #tpu.memory_space<smem>>
    %1257 = vector.broadcast %1256 : f32 to vector<16x16xf32>
    %1258 = arith.mulf %1257, %1255 : vector<16x16xf32>
    %1259 = arith.addf %1242, %1258 : vector<16x16xf32>
    %c61_245 = arith.constant 61 : index
    %1260 = memref.load %arg3[%c61_245] : memref<144xf32, #tpu.memory_space<smem>>
    %1261 = vector.broadcast %1260 : f32 to vector<16x16xf32>
    %1262 = arith.mulf %1261, %1255 : vector<16x16xf32>
    %1263 = arith.addf %1246, %1262 : vector<16x16xf32>
    %c97_246 = arith.constant 97 : index
    %1264 = memref.load %arg3[%c97_246] : memref<144xf32, #tpu.memory_space<smem>>
    %1265 = vector.broadcast %1264 : f32 to vector<16x16xf32>
    %1266 = arith.mulf %1265, %1255 : vector<16x16xf32>
    %1267 = arith.addf %1250, %1266 : vector<16x16xf32>
    %c133_247 = arith.constant 133 : index
    %1268 = memref.load %arg3[%c133_247] : memref<144xf32, #tpu.memory_space<smem>>
    %1269 = vector.broadcast %1268 : f32 to vector<16x16xf32>
    %1270 = arith.mulf %1269, %1255 : vector<16x16xf32>
    %1271 = arith.addf %1254, %1270 : vector<16x16xf32>
    %1272 = vector.extract_strided_slice %1135 {offsets = [2, 2], sizes = [16, 16], strides = [1, 1]} : vector<18x18xf32> to vector<16x16xf32>
    %c26_248 = arith.constant 26 : index
    %1273 = memref.load %arg3[%c26_248] : memref<144xf32, #tpu.memory_space<smem>>
    %1274 = vector.broadcast %1273 : f32 to vector<16x16xf32>
    %1275 = arith.mulf %1274, %1272 : vector<16x16xf32>
    %1276 = arith.addf %1259, %1275 : vector<16x16xf32>
    %c62_249 = arith.constant 62 : index
    %1277 = memref.load %arg3[%c62_249] : memref<144xf32, #tpu.memory_space<smem>>
    %1278 = vector.broadcast %1277 : f32 to vector<16x16xf32>
    %1279 = arith.mulf %1278, %1272 : vector<16x16xf32>
    %1280 = arith.addf %1263, %1279 : vector<16x16xf32>
    %c98_250 = arith.constant 98 : index
    %1281 = memref.load %arg3[%c98_250] : memref<144xf32, #tpu.memory_space<smem>>
    %1282 = vector.broadcast %1281 : f32 to vector<16x16xf32>
    %1283 = arith.mulf %1282, %1272 : vector<16x16xf32>
    %1284 = arith.addf %1267, %1283 : vector<16x16xf32>
    %c134_251 = arith.constant 134 : index
    %1285 = memref.load %arg3[%c134_251] : memref<144xf32, #tpu.memory_space<smem>>
    %1286 = vector.broadcast %1285 : f32 to vector<16x16xf32>
    %1287 = arith.mulf %1286, %1272 : vector<16x16xf32>
    %1288 = arith.addf %1271, %1287 : vector<16x16xf32>
    %c3_252 = arith.constant 3 : index
    %c0_253 = arith.constant 0 : index
    %c0_254 = arith.constant 0 : index
    %1289 = vector.load %arg5[%c3_252, %c0_253, %c0_254] : memref<4x18x18xf32, #tpu.memory_space<vmem>>, vector<1x18x18xf32>
    %1290 = vector.shape_cast %1289 : vector<1x18x18xf32> to vector<18x18xf32>
    %1291 = vector.extract_strided_slice %1290 {offsets = [0, 0], sizes = [16, 16], strides = [1, 1]} : vector<18x18xf32> to vector<16x16xf32>
    %c27_255 = arith.constant 27 : index
    %1292 = memref.load %arg3[%c27_255] : memref<144xf32, #tpu.memory_space<smem>>
    %1293 = vector.broadcast %1292 : f32 to vector<16x16xf32>
    %1294 = arith.mulf %1293, %1291 : vector<16x16xf32>
    %1295 = arith.addf %1276, %1294 : vector<16x16xf32>
    %c63_256 = arith.constant 63 : index
    %1296 = memref.load %arg3[%c63_256] : memref<144xf32, #tpu.memory_space<smem>>
    %1297 = vector.broadcast %1296 : f32 to vector<16x16xf32>
    %1298 = arith.mulf %1297, %1291 : vector<16x16xf32>
    %1299 = arith.addf %1280, %1298 : vector<16x16xf32>
    %c99_257 = arith.constant 99 : index
    %1300 = memref.load %arg3[%c99_257] : memref<144xf32, #tpu.memory_space<smem>>
    %1301 = vector.broadcast %1300 : f32 to vector<16x16xf32>
    %1302 = arith.mulf %1301, %1291 : vector<16x16xf32>
    %1303 = arith.addf %1284, %1302 : vector<16x16xf32>
    %c135_258 = arith.constant 135 : index
    %1304 = memref.load %arg3[%c135_258] : memref<144xf32, #tpu.memory_space<smem>>
    %1305 = vector.broadcast %1304 : f32 to vector<16x16xf32>
    %1306 = arith.mulf %1305, %1291 : vector<16x16xf32>
    %1307 = arith.addf %1288, %1306 : vector<16x16xf32>
    %1308 = vector.extract_strided_slice %1290 {offsets = [0, 1], sizes = [16, 16], strides = [1, 1]} : vector<18x18xf32> to vector<16x16xf32>
    %c28_259 = arith.constant 28 : index
    %1309 = memref.load %arg3[%c28_259] : memref<144xf32, #tpu.memory_space<smem>>
    %1310 = vector.broadcast %1309 : f32 to vector<16x16xf32>
    %1311 = arith.mulf %1310, %1308 : vector<16x16xf32>
    %1312 = arith.addf %1295, %1311 : vector<16x16xf32>
    %c64_260 = arith.constant 64 : index
    %1313 = memref.load %arg3[%c64_260] : memref<144xf32, #tpu.memory_space<smem>>
    %1314 = vector.broadcast %1313 : f32 to vector<16x16xf32>
    %1315 = arith.mulf %1314, %1308 : vector<16x16xf32>
    %1316 = arith.addf %1299, %1315 : vector<16x16xf32>
    %c100_261 = arith.constant 100 : index
    %1317 = memref.load %arg3[%c100_261] : memref<144xf32, #tpu.memory_space<smem>>
    %1318 = vector.broadcast %1317 : f32 to vector<16x16xf32>
    %1319 = arith.mulf %1318, %1308 : vector<16x16xf32>
    %1320 = arith.addf %1303, %1319 : vector<16x16xf32>
    %c136_262 = arith.constant 136 : index
    %1321 = memref.load %arg3[%c136_262] : memref<144xf32, #tpu.memory_space<smem>>
    %1322 = vector.broadcast %1321 : f32 to vector<16x16xf32>
    %1323 = arith.mulf %1322, %1308 : vector<16x16xf32>
    %1324 = arith.addf %1307, %1323 : vector<16x16xf32>
    %1325 = vector.extract_strided_slice %1290 {offsets = [0, 2], sizes = [16, 16], strides = [1, 1]} : vector<18x18xf32> to vector<16x16xf32>
    %c29_263 = arith.constant 29 : index
    %1326 = memref.load %arg3[%c29_263] : memref<144xf32, #tpu.memory_space<smem>>
    %1327 = vector.broadcast %1326 : f32 to vector<16x16xf32>
    %1328 = arith.mulf %1327, %1325 : vector<16x16xf32>
    %1329 = arith.addf %1312, %1328 : vector<16x16xf32>
    %c65_264 = arith.constant 65 : index
    %1330 = memref.load %arg3[%c65_264] : memref<144xf32, #tpu.memory_space<smem>>
    %1331 = vector.broadcast %1330 : f32 to vector<16x16xf32>
    %1332 = arith.mulf %1331, %1325 : vector<16x16xf32>
    %1333 = arith.addf %1316, %1332 : vector<16x16xf32>
    %c101_265 = arith.constant 101 : index
    %1334 = memref.load %arg3[%c101_265] : memref<144xf32, #tpu.memory_space<smem>>
    %1335 = vector.broadcast %1334 : f32 to vector<16x16xf32>
    %1336 = arith.mulf %1335, %1325 : vector<16x16xf32>
    %1337 = arith.addf %1320, %1336 : vector<16x16xf32>
    %c137_266 = arith.constant 137 : index
    %1338 = memref.load %arg3[%c137_266] : memref<144xf32, #tpu.memory_space<smem>>
    %1339 = vector.broadcast %1338 : f32 to vector<16x16xf32>
    %1340 = arith.mulf %1339, %1325 : vector<16x16xf32>
    %1341 = arith.addf %1324, %1340 : vector<16x16xf32>
    %1342 = vector.extract_strided_slice %1290 {offsets = [1, 0], sizes = [16, 16], strides = [1, 1]} : vector<18x18xf32> to vector<16x16xf32>
    %c30_267 = arith.constant 30 : index
    %1343 = memref.load %arg3[%c30_267] : memref<144xf32, #tpu.memory_space<smem>>
    %1344 = vector.broadcast %1343 : f32 to vector<16x16xf32>
    %1345 = arith.mulf %1344, %1342 : vector<16x16xf32>
    %1346 = arith.addf %1329, %1345 : vector<16x16xf32>
    %c66_268 = arith.constant 66 : index
    %1347 = memref.load %arg3[%c66_268] : memref<144xf32, #tpu.memory_space<smem>>
    %1348 = vector.broadcast %1347 : f32 to vector<16x16xf32>
    %1349 = arith.mulf %1348, %1342 : vector<16x16xf32>
    %1350 = arith.addf %1333, %1349 : vector<16x16xf32>
    %c102_269 = arith.constant 102 : index
    %1351 = memref.load %arg3[%c102_269] : memref<144xf32, #tpu.memory_space<smem>>
    %1352 = vector.broadcast %1351 : f32 to vector<16x16xf32>
    %1353 = arith.mulf %1352, %1342 : vector<16x16xf32>
    %1354 = arith.addf %1337, %1353 : vector<16x16xf32>
    %c138_270 = arith.constant 138 : index
    %1355 = memref.load %arg3[%c138_270] : memref<144xf32, #tpu.memory_space<smem>>
    %1356 = vector.broadcast %1355 : f32 to vector<16x16xf32>
    %1357 = arith.mulf %1356, %1342 : vector<16x16xf32>
    %1358 = arith.addf %1341, %1357 : vector<16x16xf32>
    %1359 = vector.extract_strided_slice %1290 {offsets = [1, 1], sizes = [16, 16], strides = [1, 1]} : vector<18x18xf32> to vector<16x16xf32>
    %c31_271 = arith.constant 31 : index
    %1360 = memref.load %arg3[%c31_271] : memref<144xf32, #tpu.memory_space<smem>>
    %1361 = vector.broadcast %1360 : f32 to vector<16x16xf32>
    %1362 = arith.mulf %1361, %1359 : vector<16x16xf32>
    %1363 = arith.addf %1346, %1362 : vector<16x16xf32>
    %c67_272 = arith.constant 67 : index
    %1364 = memref.load %arg3[%c67_272] : memref<144xf32, #tpu.memory_space<smem>>
    %1365 = vector.broadcast %1364 : f32 to vector<16x16xf32>
    %1366 = arith.mulf %1365, %1359 : vector<16x16xf32>
    %1367 = arith.addf %1350, %1366 : vector<16x16xf32>
    %c103_273 = arith.constant 103 : index
    %1368 = memref.load %arg3[%c103_273] : memref<144xf32, #tpu.memory_space<smem>>
    %1369 = vector.broadcast %1368 : f32 to vector<16x16xf32>
    %1370 = arith.mulf %1369, %1359 : vector<16x16xf32>
    %1371 = arith.addf %1354, %1370 : vector<16x16xf32>
    %c139_274 = arith.constant 139 : index
    %1372 = memref.load %arg3[%c139_274] : memref<144xf32, #tpu.memory_space<smem>>
    %1373 = vector.broadcast %1372 : f32 to vector<16x16xf32>
    %1374 = arith.mulf %1373, %1359 : vector<16x16xf32>
    %1375 = arith.addf %1358, %1374 : vector<16x16xf32>
    %1376 = vector.extract_strided_slice %1290 {offsets = [1, 2], sizes = [16, 16], strides = [1, 1]} : vector<18x18xf32> to vector<16x16xf32>
    %c32_275 = arith.constant 32 : index
    %1377 = memref.load %arg3[%c32_275] : memref<144xf32, #tpu.memory_space<smem>>
    %1378 = vector.broadcast %1377 : f32 to vector<16x16xf32>
    %1379 = arith.mulf %1378, %1376 : vector<16x16xf32>
    %1380 = arith.addf %1363, %1379 : vector<16x16xf32>
    %c68_276 = arith.constant 68 : index
    %1381 = memref.load %arg3[%c68_276] : memref<144xf32, #tpu.memory_space<smem>>
    %1382 = vector.broadcast %1381 : f32 to vector<16x16xf32>
    %1383 = arith.mulf %1382, %1376 : vector<16x16xf32>
    %1384 = arith.addf %1367, %1383 : vector<16x16xf32>
    %c104_277 = arith.constant 104 : index
    %1385 = memref.load %arg3[%c104_277] : memref<144xf32, #tpu.memory_space<smem>>
    %1386 = vector.broadcast %1385 : f32 to vector<16x16xf32>
    %1387 = arith.mulf %1386, %1376 : vector<16x16xf32>
    %1388 = arith.addf %1371, %1387 : vector<16x16xf32>
    %c140_278 = arith.constant 140 : index
    %1389 = memref.load %arg3[%c140_278] : memref<144xf32, #tpu.memory_space<smem>>
    %1390 = vector.broadcast %1389 : f32 to vector<16x16xf32>
    %1391 = arith.mulf %1390, %1376 : vector<16x16xf32>
    %1392 = arith.addf %1375, %1391 : vector<16x16xf32>
    %1393 = vector.extract_strided_slice %1290 {offsets = [2, 0], sizes = [16, 16], strides = [1, 1]} : vector<18x18xf32> to vector<16x16xf32>
    %c33_279 = arith.constant 33 : index
    %1394 = memref.load %arg3[%c33_279] : memref<144xf32, #tpu.memory_space<smem>>
    %1395 = vector.broadcast %1394 : f32 to vector<16x16xf32>
    %1396 = arith.mulf %1395, %1393 : vector<16x16xf32>
    %1397 = arith.addf %1380, %1396 : vector<16x16xf32>
    %c69_280 = arith.constant 69 : index
    %1398 = memref.load %arg3[%c69_280] : memref<144xf32, #tpu.memory_space<smem>>
    %1399 = vector.broadcast %1398 : f32 to vector<16x16xf32>
    %1400 = arith.mulf %1399, %1393 : vector<16x16xf32>
    %1401 = arith.addf %1384, %1400 : vector<16x16xf32>
    %c105_281 = arith.constant 105 : index
    %1402 = memref.load %arg3[%c105_281] : memref<144xf32, #tpu.memory_space<smem>>
    %1403 = vector.broadcast %1402 : f32 to vector<16x16xf32>
    %1404 = arith.mulf %1403, %1393 : vector<16x16xf32>
    %1405 = arith.addf %1388, %1404 : vector<16x16xf32>
    %c141_282 = arith.constant 141 : index
    %1406 = memref.load %arg3[%c141_282] : memref<144xf32, #tpu.memory_space<smem>>
    %1407 = vector.broadcast %1406 : f32 to vector<16x16xf32>
    %1408 = arith.mulf %1407, %1393 : vector<16x16xf32>
    %1409 = arith.addf %1392, %1408 : vector<16x16xf32>
    %1410 = vector.extract_strided_slice %1290 {offsets = [2, 1], sizes = [16, 16], strides = [1, 1]} : vector<18x18xf32> to vector<16x16xf32>
    %c34_283 = arith.constant 34 : index
    %1411 = memref.load %arg3[%c34_283] : memref<144xf32, #tpu.memory_space<smem>>
    %1412 = vector.broadcast %1411 : f32 to vector<16x16xf32>
    %1413 = arith.mulf %1412, %1410 : vector<16x16xf32>
    %1414 = arith.addf %1397, %1413 : vector<16x16xf32>
    %c70_284 = arith.constant 70 : index
    %1415 = memref.load %arg3[%c70_284] : memref<144xf32, #tpu.memory_space<smem>>
    %1416 = vector.broadcast %1415 : f32 to vector<16x16xf32>
    %1417 = arith.mulf %1416, %1410 : vector<16x16xf32>
    %1418 = arith.addf %1401, %1417 : vector<16x16xf32>
    %c106_285 = arith.constant 106 : index
    %1419 = memref.load %arg3[%c106_285] : memref<144xf32, #tpu.memory_space<smem>>
    %1420 = vector.broadcast %1419 : f32 to vector<16x16xf32>
    %1421 = arith.mulf %1420, %1410 : vector<16x16xf32>
    %1422 = arith.addf %1405, %1421 : vector<16x16xf32>
    %c142_286 = arith.constant 142 : index
    %1423 = memref.load %arg3[%c142_286] : memref<144xf32, #tpu.memory_space<smem>>
    %1424 = vector.broadcast %1423 : f32 to vector<16x16xf32>
    %1425 = arith.mulf %1424, %1410 : vector<16x16xf32>
    %1426 = arith.addf %1409, %1425 : vector<16x16xf32>
    %1427 = vector.extract_strided_slice %1290 {offsets = [2, 2], sizes = [16, 16], strides = [1, 1]} : vector<18x18xf32> to vector<16x16xf32>
    %c35_287 = arith.constant 35 : index
    %1428 = memref.load %arg3[%c35_287] : memref<144xf32, #tpu.memory_space<smem>>
    %1429 = vector.broadcast %1428 : f32 to vector<16x16xf32>
    %1430 = arith.mulf %1429, %1427 : vector<16x16xf32>
    %1431 = arith.addf %1414, %1430 : vector<16x16xf32>
    %c71_288 = arith.constant 71 : index
    %1432 = memref.load %arg3[%c71_288] : memref<144xf32, #tpu.memory_space<smem>>
    %1433 = vector.broadcast %1432 : f32 to vector<16x16xf32>
    %1434 = arith.mulf %1433, %1427 : vector<16x16xf32>
    %1435 = arith.addf %1418, %1434 : vector<16x16xf32>
    %c107_289 = arith.constant 107 : index
    %1436 = memref.load %arg3[%c107_289] : memref<144xf32, #tpu.memory_space<smem>>
    %1437 = vector.broadcast %1436 : f32 to vector<16x16xf32>
    %1438 = arith.mulf %1437, %1427 : vector<16x16xf32>
    %1439 = arith.addf %1422, %1438 : vector<16x16xf32>
    %c143_290 = arith.constant 143 : index
    %1440 = memref.load %arg3[%c143_290] : memref<144xf32, #tpu.memory_space<smem>>
    %1441 = vector.broadcast %1440 : f32 to vector<16x16xf32>
    %1442 = arith.mulf %1441, %1427 : vector<16x16xf32>
    %1443 = arith.addf %1426, %1442 : vector<16x16xf32>
    %1444 = vector.shape_cast %1431 : vector<16x16xf32> to vector<1x16x16xf32>
    %cst_291 = arith.constant dense<0.000000e+00> : vector<1xf32>
    %1445 = vector.multi_reduction <add>, %1444, %cst_291 [1, 2] : vector<1x16x16xf32> to vector<1xf32>
    %1446 = vector.shape_cast %1445 : vector<1xf32> to vector<1x1x1xf32>
    %1447 = vector.extract %1446[0, 0, 0] : f32 from vector<1x1x1xf32>
    %1448 = vector.broadcast %1447 : f32 to vector<1x1xf32>
    %1449 = arith.mulf %1431, %1431 : vector<16x16xf32>
    %1450 = vector.shape_cast %1449 : vector<16x16xf32> to vector<1x16x16xf32>
    %cst_292 = arith.constant dense<0.000000e+00> : vector<1xf32>
    %1451 = vector.multi_reduction <add>, %1450, %cst_292 [1, 2] : vector<1x16x16xf32> to vector<1xf32>
    %1452 = vector.shape_cast %1451 : vector<1xf32> to vector<1x1x1xf32>
    %1453 = vector.extract %1452[0, 0, 0] : f32 from vector<1x1x1xf32>
    %1454 = vector.broadcast %1453 : f32 to vector<1x1xf32>
    %cst_293 = arith.constant 3.906250e-03 : f32
    %1455 = vector.broadcast %cst_293 : f32 to vector<1x1xf32>
    %1456 = arith.mulf %1448, %1455 : vector<1x1xf32>
    %cst_294 = arith.constant 3.906250e-03 : f32
    %1457 = vector.broadcast %cst_294 : f32 to vector<1x1xf32>
    %1458 = arith.mulf %1454, %1457 : vector<1x1xf32>
    %1459 = arith.mulf %1456, %1456 : vector<1x1xf32>
    %1460 = arith.subf %1458, %1459 : vector<1x1xf32>
    %cst_295 = arith.constant 0.000000e+00 : f32
    %1461 = vector.broadcast %cst_295 : f32 to vector<1x1xf32>
    %1462 = arith.maximumf %1460, %1461 : vector<1x1xf32>
    %1463 = vector.broadcast %1456 : vector<1x1xf32> to vector<16x16xf32>
    %1464 = arith.subf %1431, %1463 : vector<16x16xf32>
    %cst_296 = arith.constant 9.99999974E-6 : f32
    %1465 = vector.broadcast %cst_296 : f32 to vector<1x1xf32>
    %1466 = arith.addf %1462, %1465 : vector<1x1xf32>
    %1467 = math.rsqrt %1466 : vector<1x1xf32>
    %1468 = vector.broadcast %1467 : vector<1x1xf32> to vector<16x16xf32>
    %1469 = arith.mulf %1464, %1468 : vector<16x16xf32>
    %1470 = vector.shape_cast %1435 : vector<16x16xf32> to vector<1x16x16xf32>
    %cst_297 = arith.constant dense<0.000000e+00> : vector<1xf32>
    %1471 = vector.multi_reduction <add>, %1470, %cst_297 [1, 2] : vector<1x16x16xf32> to vector<1xf32>
    %1472 = vector.shape_cast %1471 : vector<1xf32> to vector<1x1x1xf32>
    %1473 = vector.extract %1472[0, 0, 0] : f32 from vector<1x1x1xf32>
    %1474 = vector.broadcast %1473 : f32 to vector<1x1xf32>
    %1475 = arith.mulf %1435, %1435 : vector<16x16xf32>
    %1476 = vector.shape_cast %1475 : vector<16x16xf32> to vector<1x16x16xf32>
    %cst_298 = arith.constant dense<0.000000e+00> : vector<1xf32>
    %1477 = vector.multi_reduction <add>, %1476, %cst_298 [1, 2] : vector<1x16x16xf32> to vector<1xf32>
    %1478 = vector.shape_cast %1477 : vector<1xf32> to vector<1x1x1xf32>
    %1479 = vector.extract %1478[0, 0, 0] : f32 from vector<1x1x1xf32>
    %1480 = vector.broadcast %1479 : f32 to vector<1x1xf32>
    %cst_299 = arith.constant 3.906250e-03 : f32
    %1481 = vector.broadcast %cst_299 : f32 to vector<1x1xf32>
    %1482 = arith.mulf %1474, %1481 : vector<1x1xf32>
    %cst_300 = arith.constant 3.906250e-03 : f32
    %1483 = vector.broadcast %cst_300 : f32 to vector<1x1xf32>
    %1484 = arith.mulf %1480, %1483 : vector<1x1xf32>
    %1485 = arith.mulf %1482, %1482 : vector<1x1xf32>
    %1486 = arith.subf %1484, %1485 : vector<1x1xf32>
    %cst_301 = arith.constant 0.000000e+00 : f32
    %1487 = vector.broadcast %cst_301 : f32 to vector<1x1xf32>
    %1488 = arith.maximumf %1486, %1487 : vector<1x1xf32>
    %1489 = vector.broadcast %1482 : vector<1x1xf32> to vector<16x16xf32>
    %1490 = arith.subf %1435, %1489 : vector<16x16xf32>
    %cst_302 = arith.constant 9.99999974E-6 : f32
    %1491 = vector.broadcast %cst_302 : f32 to vector<1x1xf32>
    %1492 = arith.addf %1488, %1491 : vector<1x1xf32>
    %1493 = math.rsqrt %1492 : vector<1x1xf32>
    %1494 = vector.broadcast %1493 : vector<1x1xf32> to vector<16x16xf32>
    %1495 = arith.mulf %1490, %1494 : vector<16x16xf32>
    %1496 = vector.shape_cast %1439 : vector<16x16xf32> to vector<1x16x16xf32>
    %cst_303 = arith.constant dense<0.000000e+00> : vector<1xf32>
    %1497 = vector.multi_reduction <add>, %1496, %cst_303 [1, 2] : vector<1x16x16xf32> to vector<1xf32>
    %1498 = vector.shape_cast %1497 : vector<1xf32> to vector<1x1x1xf32>
    %1499 = vector.extract %1498[0, 0, 0] : f32 from vector<1x1x1xf32>
    %1500 = vector.broadcast %1499 : f32 to vector<1x1xf32>
    %1501 = arith.mulf %1439, %1439 : vector<16x16xf32>
    %1502 = vector.shape_cast %1501 : vector<16x16xf32> to vector<1x16x16xf32>
    %cst_304 = arith.constant dense<0.000000e+00> : vector<1xf32>
    %1503 = vector.multi_reduction <add>, %1502, %cst_304 [1, 2] : vector<1x16x16xf32> to vector<1xf32>
    %1504 = vector.shape_cast %1503 : vector<1xf32> to vector<1x1x1xf32>
    %1505 = vector.extract %1504[0, 0, 0] : f32 from vector<1x1x1xf32>
    %1506 = vector.broadcast %1505 : f32 to vector<1x1xf32>
    %cst_305 = arith.constant 3.906250e-03 : f32
    %1507 = vector.broadcast %cst_305 : f32 to vector<1x1xf32>
    %1508 = arith.mulf %1500, %1507 : vector<1x1xf32>
    %cst_306 = arith.constant 3.906250e-03 : f32
    %1509 = vector.broadcast %cst_306 : f32 to vector<1x1xf32>
    %1510 = arith.mulf %1506, %1509 : vector<1x1xf32>
    %1511 = arith.mulf %1508, %1508 : vector<1x1xf32>
    %1512 = arith.subf %1510, %1511 : vector<1x1xf32>
    %cst_307 = arith.constant 0.000000e+00 : f32
    %1513 = vector.broadcast %cst_307 : f32 to vector<1x1xf32>
    %1514 = arith.maximumf %1512, %1513 : vector<1x1xf32>
    %1515 = vector.broadcast %1508 : vector<1x1xf32> to vector<16x16xf32>
    %1516 = arith.subf %1439, %1515 : vector<16x16xf32>
    %cst_308 = arith.constant 9.99999974E-6 : f32
    %1517 = vector.broadcast %cst_308 : f32 to vector<1x1xf32>
    %1518 = arith.addf %1514, %1517 : vector<1x1xf32>
    %1519 = math.rsqrt %1518 : vector<1x1xf32>
    %1520 = vector.broadcast %1519 : vector<1x1xf32> to vector<16x16xf32>
    %1521 = arith.mulf %1516, %1520 : vector<16x16xf32>
    %1522 = vector.shape_cast %1443 : vector<16x16xf32> to vector<1x16x16xf32>
    %cst_309 = arith.constant dense<0.000000e+00> : vector<1xf32>
    %1523 = vector.multi_reduction <add>, %1522, %cst_309 [1, 2] : vector<1x16x16xf32> to vector<1xf32>
    %1524 = vector.shape_cast %1523 : vector<1xf32> to vector<1x1x1xf32>
    %1525 = vector.extract %1524[0, 0, 0] : f32 from vector<1x1x1xf32>
    %1526 = vector.broadcast %1525 : f32 to vector<1x1xf32>
    %1527 = arith.mulf %1443, %1443 : vector<16x16xf32>
    %1528 = vector.shape_cast %1527 : vector<16x16xf32> to vector<1x16x16xf32>
    %cst_310 = arith.constant dense<0.000000e+00> : vector<1xf32>
    %1529 = vector.multi_reduction <add>, %1528, %cst_310 [1, 2] : vector<1x16x16xf32> to vector<1xf32>
    %1530 = vector.shape_cast %1529 : vector<1xf32> to vector<1x1x1xf32>
    %1531 = vector.extract %1530[0, 0, 0] : f32 from vector<1x1x1xf32>
    %1532 = vector.broadcast %1531 : f32 to vector<1x1xf32>
    %cst_311 = arith.constant 3.906250e-03 : f32
    %1533 = vector.broadcast %cst_311 : f32 to vector<1x1xf32>
    %1534 = arith.mulf %1526, %1533 : vector<1x1xf32>
    %cst_312 = arith.constant 3.906250e-03 : f32
    %1535 = vector.broadcast %cst_312 : f32 to vector<1x1xf32>
    %1536 = arith.mulf %1532, %1535 : vector<1x1xf32>
    %1537 = arith.mulf %1534, %1534 : vector<1x1xf32>
    %1538 = arith.subf %1536, %1537 : vector<1x1xf32>
    %cst_313 = arith.constant 0.000000e+00 : f32
    %1539 = vector.broadcast %cst_313 : f32 to vector<1x1xf32>
    %1540 = arith.maximumf %1538, %1539 : vector<1x1xf32>
    %1541 = vector.broadcast %1534 : vector<1x1xf32> to vector<16x16xf32>
    %1542 = arith.subf %1443, %1541 : vector<16x16xf32>
    %cst_314 = arith.constant 9.99999974E-6 : f32
    %1543 = vector.broadcast %cst_314 : f32 to vector<1x1xf32>
    %1544 = arith.addf %1540, %1543 : vector<1x1xf32>
    %1545 = math.rsqrt %1544 : vector<1x1xf32>
    %1546 = vector.broadcast %1545 : vector<1x1xf32> to vector<16x16xf32>
    %1547 = arith.mulf %1542, %1546 : vector<16x16xf32>
    %c0_315 = arith.constant 0 : index
    %c0_316 = arith.constant 0 : index
    %c1_317 = arith.constant 1 : index
    %c1_318 = arith.constant 1 : index
    %1548 = vector.load %arg1[%c0_315, %c0_316, %c1_317, %c1_318] : memref<1x4x18x18xf32, #tpu.memory_space<vmem>>, vector<1x1x16x16xf32>
    %1549 = vector.shape_cast %1548 : vector<1x1x16x16xf32> to vector<16x16xf32>
    %1550 = arith.addf %1549, %1469 : vector<16x16xf32>
    %c0_319 = arith.constant 0 : index
    %c0_320 = arith.constant 0 : index
    %c0_321 = arith.constant 0 : index
    %c0_322 = arith.constant 0 : index
    %1551 = vector.load %arg4[%c0_319, %c0_320, %c0_321, %c0_322] : memref<1x4x16x16xf32, #tpu.memory_space<vmem>>, vector<1x1x16x16xf32>
    %1552 = vector.shape_cast %1551 : vector<1x1x16x16xf32> to vector<16x16xf32>
    %1553 = vector.shape_cast %1550 : vector<16x16xf32> to vector<1x1x16x16xf32>
    tpu.vector_store %arg4[%c0_319, %c0_320, %c0_321, %c0_322], %1553 {strides = array<i32>} : memref<1x4x16x16xf32, #tpu.memory_space<vmem>>, vector<1x1x16x16xf32>,
    %c0_323 = arith.constant 0 : index
    %c1_324 = arith.constant 1 : index
    %c1_325 = arith.constant 1 : index
    %c1_326 = arith.constant 1 : index
    %1554 = vector.load %arg1[%c0_323, %c1_324, %c1_325, %c1_326] : memref<1x4x18x18xf32, #tpu.memory_space<vmem>>, vector<1x1x16x16xf32>
    %1555 = vector.shape_cast %1554 : vector<1x1x16x16xf32> to vector<16x16xf32>
    %1556 = arith.addf %1555, %1495 : vector<16x16xf32>
    %c0_327 = arith.constant 0 : index
    %c1_328 = arith.constant 1 : index
    %c0_329 = arith.constant 0 : index
    %c0_330 = arith.constant 0 : index
    %1557 = vector.load %arg4[%c0_327, %c1_328, %c0_329, %c0_330] : memref<1x4x16x16xf32, #tpu.memory_space<vmem>>, vector<1x1x16x16xf32>
    %1558 = vector.shape_cast %1557 : vector<1x1x16x16xf32> to vector<16x16xf32>
    %1559 = vector.shape_cast %1556 : vector<16x16xf32> to vector<1x1x16x16xf32>
    tpu.vector_store %arg4[%c0_327, %c1_328, %c0_329, %c0_330], %1559 {strides = array<i32>} : memref<1x4x16x16xf32, #tpu.memory_space<vmem>>, vector<1x1x16x16xf32>,
    %c0_331 = arith.constant 0 : index
    %c2_332 = arith.constant 2 : index
    %c1_333 = arith.constant 1 : index
    %c1_334 = arith.constant 1 : index
    %1560 = vector.load %arg1[%c0_331, %c2_332, %c1_333, %c1_334] : memref<1x4x18x18xf32, #tpu.memory_space<vmem>>, vector<1x1x16x16xf32>
    %1561 = vector.shape_cast %1560 : vector<1x1x16x16xf32> to vector<16x16xf32>
    %1562 = arith.addf %1561, %1521 : vector<16x16xf32>
    %c0_335 = arith.constant 0 : index
    %c2_336 = arith.constant 2 : index
    %c0_337 = arith.constant 0 : index
    %c0_338 = arith.constant 0 : index
    %1563 = vector.load %arg4[%c0_335, %c2_336, %c0_337, %c0_338] : memref<1x4x16x16xf32, #tpu.memory_space<vmem>>, vector<1x1x16x16xf32>
    %1564 = vector.shape_cast %1563 : vector<1x1x16x16xf32> to vector<16x16xf32>
    %1565 = vector.shape_cast %1562 : vector<16x16xf32> to vector<1x1x16x16xf32>
    tpu.vector_store %arg4[%c0_335, %c2_336, %c0_337, %c0_338], %1565 {strides = array<i32>} : memref<1x4x16x16xf32, #tpu.memory_space<vmem>>, vector<1x1x16x16xf32>,
    %c0_339 = arith.constant 0 : index
    %c3_340 = arith.constant 3 : index
    %c1_341 = arith.constant 1 : index
    %c1_342 = arith.constant 1 : index
    %1566 = vector.load %arg1[%c0_339, %c3_340, %c1_341, %c1_342] : memref<1x4x18x18xf32, #tpu.memory_space<vmem>>, vector<1x1x16x16xf32>
    %1567 = vector.shape_cast %1566 : vector<1x1x16x16xf32> to vector<16x16xf32>
    %1568 = arith.addf %1567, %1547 : vector<16x16xf32>
    %c0_343 = arith.constant 0 : index
    %c3_344 = arith.constant 3 : index
    %c0_345 = arith.constant 0 : index
    %c0_346 = arith.constant 0 : index
    %1569 = vector.load %arg4[%c0_343, %c3_344, %c0_345, %c0_346] : memref<1x4x16x16xf32, #tpu.memory_space<vmem>>, vector<1x1x16x16xf32>
    %1570 = vector.shape_cast %1569 : vector<1x1x16x16xf32> to vector<16x16xf32>
    %1571 = vector.shape_cast %1568 : vector<16x16xf32> to vector<1x1x16x16xf32>
    tpu.vector_store %arg4[%c0_343, %c3_344, %c0_345, %c0_346], %1571 {strides = array<i32>} : memref<1x4x16x16xf32, #tpu.memory_space<vmem>>, vector<1x1x16x16xf32>,
    return
  }
  func.func @transform_0(%arg0: i32) -> (i32, i32, i32, i32) {
    %c0_i32 = arith.constant 0 : i32
    %c0_i32_0 = arith.constant 0 : i32
    %c0_i32_1 = arith.constant 0 : i32
    %c0_i32_2 = arith.constant 0 : i32
    return %arg0, %c0_i32, %c0_i32_0, %c0_i32_1 : i32, i32, i32, i32
  }
  func.func @transform_1(%arg0: i32) -> i32 {
    %c0_i32 = arith.constant 0 : i32
    %c0_i32_0 = arith.constant 0 : i32
    return %c0_i32 : i32
  }
  func.func @transform_2(%arg0: i32) -> i32 {
    %c0_i32 = arith.constant 0 : i32
    %c0_i32_0 = arith.constant 0 : i32
    return %c0_i32 : i32
  }
  func.func @transform_3(%arg0: i32) -> (i32, i32, i32, i32) {
    %c0_i32 = arith.constant 0 : i32
    %c0_i32_0 = arith.constant 0 : i32
    %c0_i32_1 = arith.constant 0 : i32
    %c0_i32_2 = arith.constant 0 : i32
    return %arg0, %c0_i32, %c0_i32_0, %c0_i32_1 : i32, i32, i32, i32
  }
}

</mosaic_0001>

<bundles_post_ra>
// kernel: tpu_custom_call.1
= control target key start
LH: loop header
LB: loop body
LE: loop exit
PB: predicated region body
PF: predicated region fallthrough
CT: control target
= control target key end

     0   :  { %s10920_s0 = inlined_call_operand.vmem [shape: f32[2,4,18,18], index: 0, kind: input, shape index: {}]   ;;  %s10921_s1 = inlined_call_operand.vmem [shape: f32[144], index: 1, kind: input, shape index: {}]   ;;  %s10922_s2 = inlined_call_operand.vmem [shape: f32[144], index: 2, kind: input, shape index: {}]   ;;  %s10923_s3 = inlined_call_operand.hbm [shape: f32[2,4,16,16], index: 3, kind: output, shape index: {}]  }
   0x1   :  { %10949 = sst [smem:[#allocation136_spill]] %s10920_s0 }
   0x2   :  { %10950 = sst [smem:[#allocation137_spill]] %s10921_s1 }
   0x3   :  { %10951 = sst [smem:[#allocation138_spill]] %s10922_s2 }
   0x4   :  { %10952 = sst [smem:[#allocation139_spill]] %s10923_s3 }
   0x5   :  { %8 = vsyncpa [#allocation5], 0 }
   0x6   :  { %9 = vsyncpa [#allocation7], 0 }
   0x7   :  { %10 = vsyncpa [#allocation4], 0 }
   0x8   :  { %12 = vsyncpa [#allocation4 + $0x1], 0  ;;  %s6410_s12 = smov 0   ;;  %s6412_s13 = smov 0  }
   0x9   :  { %s6414_s14 = smov 0   ;;  %s6416_s15 = smov 0  }
   0xa LB: > { %10953 = sst [smem:[#allocation12_spill]] %s6367_s12  ;;  %s6431_s16 = sadd.s32 4294967295, %s6379_s15   ;;  %s6379_s15 = sphi %s6416_s15, %s11519_s15   ;;  %s6375_s14 = sphi %s6414_s14, %s11521_s14   ;;  %s6371_s13 = sphi %s6412_s13, %s11523_s13   ;;  %s6367_s12 = sphi %s6410_s12, %s11522_s12  }
   0xb   : > { %10954 = sst [smem:[#allocation13_spill]] %s6375_s14  ;;  %s5801_s17 = sadd.s32 4294967294, %s6379_s15  }
   0xc   : > { %10955 = sst [smem:[#allocation14_spill]] %s6379_s15  ;;  %s6435_s18 = sadd.s32 1, %s6379_s15  }
   0xd   : > { %10956 = sst [smem:[#allocation15_spill]] %s6435_s18  ;;  %s93_s19 = sadd.s32 1, %s6375_s14 }
   0xe   : > { %s90_s20 = ssub.s32 %s6379_s15, %s6435_s18  ;;  %p103_p0 = scmp.ne.s32.totalorder %s6375_s14, %s6371_s13 }
   0xf   : > { %p91_p1 = scmp.eq.s32.totalorder %s90_s20, 0  ;;  %p104_p2 = scmp.eq.s32.totalorder %s6431_s16, 1 }
  0x10   : > { %p109_p3 = scmp.ne.s32.totalorder %s6371_s13, %s6367_s12  ;;  %p110_p4 = scmp.eq.s32.totalorder %s5801_s17, 1 }
  0x11   : > { %s6446_s21 = scalar_select %p91_p1, %s6375_s14, %s93_s19  }
  0x12   : > { %p6448_p5 = por %p104_p2, %p103_p0  ;;  %p6452_p6 = por %p110_p4, %p109_p3 }
  0x13   : > { %10957 = sst [smem:[#allocation16_spill]] %s6446_s21  ;;  %p5802_p7 = scmp.ge.s32.totalorder %s6379_s15, 1 }
  0x14   : > { %s10958_s22 = scalar_select %p6448_p5, 1, 0 }
  0x15   : > { %s10960_s23 = scalar_select %p6452_p6, 1, 0 }
  0x16   : > { %10959 = sst [smem:[#allocation17_spill]] %s10958_s22  ;;  %p117_p8 = scmp.lt.s32.totalorder %s6379_s15, 3 }
  0x17   : > { %10961 = sst [smem:[#allocation18_spill]] %s10960_s23  ;;  %p10924_p9 = scmp.eq.s32.totalorder %s6431_s16, 0 }
  0x18   : > { %p6459_p10 = pnand %p5802_p7, %p117_p8  ;;  %s10963_s1 = sld [smem:[#allocation137_spill]] }
  0x19   : > { %s10964_s2 = sld [smem:[#allocation138_spill]] }
  0x1a   : > { %s10962_s24 = scalar_select %p6459_p10, 1, 0 }
  0x1b   : > { %p6167_p11 = pneg %p6459_p10 }
  0x1d   : > { %p6473_p12 = pnand %p10924_p9, %p6167_p11 }
  0x1e   : > { %s130_s27 = sshll.u32 %s10963_s1, 4  ;;  %s131_s27 = int_to_ptr.vmem [resolvable:$true] %s130_s27 }
  0x1f   : > { %s141_s30 = sshll.u32 %s10964_s2, 4  ;;  %s6281_s5 = scalar_lea.vmem %s131_s27, 32  ;;  %s142_s30 = int_to_ptr.vmem [resolvable:$true] %s141_s30 }
  0x20   : > { %p6282_p13 = scmp.ne.s32.totalorder %s131_s27, %s6281_s5  ;;  %p6283_p0 = pneg %p6473_p12 }
  0x21   : > { %p6289_p3 = scmp.lt.s32.totalorder %s131_s27, %s131_s27  ;;  %p6290_p4 = scmp.lt.s32.totalorder %s6281_s5, %s6281_s5 }
  0x22   : > { %p6284_p1 = pnand %p6283_p0, %p6282_p13 }
  0x23   : > { %p6291_p7 = por %p6290_p4, %p6289_p3 }
  0x24   : > { %p6285_p2 = pneg %p6284_p1 }
  0x26   : > { %p6292_p8 = pnand %p6291_p7, %p6285_p2 }
  0x28   : > { %6295 = shalt.err (!%p6292_p8)
}
  0x29   : > { %s6381_s6 = smov [#allocation3]   ;;  %s6296_s7 = scalar_lea.vmem %s142_s30, 32 }
  0x2a   : > { %6170 = dma.vmem_to_smem (!%p6473_p12), %s131_s27, 32, %s6381_s6, [#allocation5]  }
  0x2b   : > { %p6297_p11 = scmp.ne.s32.totalorder %s142_s30, %s6296_s7  ;;  %p6304_p5 = scmp.lt.s32.totalorder %s142_s30, %s142_s30 }
  0x2c   : > { %p6305_p10 = scmp.lt.s32.totalorder %s6296_s7, %s6296_s7 }
  0x2d   : > { %p6299_p9 = pnand %p6297_p11, %p6283_p0 }
  0x2e   : > { %p6306_p13 = por %p6305_p10, %p6304_p5 }
  0x2f   : > { %p6300_p6 = pneg %p6299_p9 }
  0x31   : > { %p6307_p1 = pnand %p6306_p13, %p6300_p6 }
  0x33   : > { %6310 = shalt.err (!%p6307_p1)
}
  0x34   : > { %s6382_s8 = smov [#allocation6]   ;;  %p10966_p2 = scmp.ne.s32.totalorder %s10962_s24, 0 }
  0x35   : > { %6173 = dma.vmem_to_smem (!%p6473_p12), %s142_s30, 32, %s6382_s8, [#allocation7]  }
  0x36   : > { %162 = sbr.rel (%p10966_p2) target bundleno = 2084 (0x824), region = 32 }
  0x3b   : > { %p10967_p3 = scmp.eq.s32.totalorder %s6431_s16, 0 }
  0x3d   : > { %6354 = dma.done.wait (%p10967_p3), [#allocation5], 32   ;;  %p10968_p4 = pmov %p10967_p3 }
  0x3e   : > { %p10969_p9 = pmov %p10967_p3 }
  0x3f   : > { %6356 = vsyncadd (%p10968_p4), [#allocation5], 4294967264 }
  0x40   : > { %6358 = dma.done.wait (%p10969_p9), [#allocation7], 32   ;;  %p10970_p5 = pmov %p10967_p3 }
  0x42   : > { %6360 = vsyncadd (%p10970_p5), [#allocation7], 4294967264 }
  0x43   : > { %172 = sfence }
  0x44   : > { %p191_p6 = scmp.lt.s32.totalorder %s6431_s16, 1  ;;  %s5815_s9 = sld [smem:[#allocation3 + $0x25]]  ;;  %vm343_vm0 = vcmask 1046528   ;;  %vm580_vm1 = vcmask 1045504   ;;  %vm2645_vm2 = vcmask 130048   ;;  %vm2818_vm3 = vcmask 138248  }
  0x45   : > { %s5814_s11 = sld [smem:[#allocation3 + $0x1]]  ;;  %s10932_s27 = smov 127   ;;  %vm2821_vm4 = vcmask 132105   ;;  %vm2823_vm5 = vcmask 137230   ;;  %vm2879_vm6 = vcmask 7168   ;;  %vm2882_vm7 = vcmask 1024  }
  0x46   : > { %s192_s10 = scalar_select %p191_p6, %s6431_s16, 1  ;;  %vm2899_vm8 = vcmask 146568   ;;  %vm2902_vm9 = vcmask 140424  }
  0x47   : > { %s5816_s19 = sld [smem:[#allocation3 + $0x49]]  ;;  %s10930_s7 = smov 126  }
  0x48   : > { %s6124_s17 = smul.u32 96, %s192_s10  ;;  %s10971_s0 = sld [smem:[#allocation136_spill]] }
  0x49   : > { %s5817_s26 = sld [smem:[#allocation3 + $0x6d]] }
  0x4a   : > { %v238_v2 = vstv %s5815_s9  ;;  %s5818_s28 = sld [smem:[#allocation3 + $0x2]] }
  0x4b   : > { %v224_v4 = vstv %s5814_s11  ;;  %s5819_s29 = sld [smem:[#allocation3 + $0x26]] }
  0x4c   : > { %s5820_s30 = sld [smem:[#allocation3 + $0x4a]] }
  0x4d   : > { %v252_v7 = vstv %s5816_s19  ;;  %s5826_s4 = sld [smem:[#allocation3 + $0x4]] }
  0x4e   : > { %s6498_s25 = scalar_lea.vmem %s10971_s0, %s6124_s17  ;;  %s6522_s5 = sld [smem:[#allocation3 + $0x6e]] }
  0x4f   : > { %v6501_v0 = vld [vmem:[%s6498_s25] sm:$0xff]  ;;  %v6504_v1 = vld [vmem:[%s6498_s25 + $0x8] sm:$0xff]  ;;  %v266_v10 = vstv %s5817_s26  ;;  %s5827_s6 = sld [smem:[#allocation3 + $0x28]]  ;;  %v6531_v21 = vld [vmem:[%s6498_s25 + $0x10] sm:$0x3] }
  0x50   : > { %v239_v3 = vmul.f32 %v238_v2, %v6501_v0  ;;  %v240_v5 = vmul.f32 %v238_v2, %v6504_v1  ;;  %v225_v6 = vmul.f32 %v224_v4, %v6501_v0  ;;  %v226_v8 = vmul.f32 %v224_v4, %v6504_v1  ;;  %s5828_s8 = sld [smem:[#allocation3 + $0x4c]] }
  0x51   : > { %v254_v9 = vmul.f32 %v252_v7, %v6504_v1  ;;  %v253_v11 = vmul.f32 %v252_v7, %v6501_v0  ;;  %v268_v12 = vmul.f32 %v266_v10, %v6504_v1  ;;  %v280_v13 = vstv %s5818_s28  ;;  %s5829_s9 = sld [smem:[#allocation3 + $0x70]] }
  0x52   : > { %243 = vrot.lane.b32.xlu1 %v239_v3, %s10932_s27  ;;  %229 = vrot.lane.b32.xlu0 %v225_v6, %s10932_s27  ;;  %v267_v14 = vmul.f32 %v266_v10, %v6501_v0  ;;  %v282_v15 = vmul.f32 %v280_v13, %v6504_v1  ;;  %v294_v16 = vstv %s5819_s29  ;;  %v281_v17 = vmul.f32 %v280_v13, %v6501_v0  ;;  %s5830_s10 = sld [smem:[#allocation3 + $0x5]] }
  0x53   : > { %v296_v18 = vmul.f32 %v294_v16, %v6504_v1  ;;  %v308_v19 = vstv %s5820_s30  ;;  %v295_v20 = vmul.f32 %v294_v16, %v6501_v0  ;;  %v405_v22 = vstv %s5826_s4  ;;  %s5838_s11 = sld [smem:[#allocation3 + $0x7]] }
  0x54   : > { %v310_v23 = vmul.f32 %v308_v19, %v6504_v1  ;;  %v322_v24 = vstv %s6522_s5  ;;  %v407_v25 = vmul.f32 %v405_v22, %v6504_v1  ;;  %v408_v26 = vmul.f32 %v405_v22, %v6531_v21  ;;  %s5842_s17 = sld [smem:[#allocation3 + $0x8]] }
  0x55   : > { %v426_v27 = vstv %s5827_s6  ;;  %v309_v28 = vmul.f32 %v308_v19, %v6501_v0  ;;  %v406_v29 = vmul.f32 %v405_v22, %v6501_v0  ;;  %v324_v30 = vmul.f32 %v322_v24, %v6504_v1  ;;  %s6580_s19 = sld [smem:[#allocation3 + $0xa]] }
  0x56   : > { %245 = vrot.lane.b32.xlu1 %v240_v5, %s10932_s27  ;;  %231 = vrot.lane.b32.xlu0 %v226_v8, %s10932_s27  ;;  %v428_v31 = vmul.f32 %v426_v27, %v6504_v1  ;;  %v413_v32 = vrot.slane %v407_v25, 1  ;;  %v415_v33 = vrot.slane %v408_v26, 1  ;;  %v429_v34 = vmul.f32 %v426_v27, %v6531_v21  ;;  %s5865_s20 = sld [smem:[#allocation3 + $0xd]] }
  0x57   : > { %v447_v35 = vstv %s5828_s8  ;;  %v323_v36 = vmul.f32 %v322_v24, %v6501_v0  ;;  %v412_v37 = vrot.slane %v406_v29, 1  ;;  %v427_v38 = vmul.f32 %v426_v27, %v6501_v0  ;;  %s6587_s24 = sld [smem:[#allocation3 + $0xb]] }
  0x58   : > { %v449_v39 = vmul.f32 %v447_v35, %v6504_v1  ;;  %v450_v40 = vmul.f32 %v447_v35, %v6531_v21  ;;  %v416_v41 = vsel %vm343_vm0, %v413_v32, %v415_v33  ;;  %v434_v42 = vrot.slane %v428_v31, 1  ;;  %s5831_s26 = sld [smem:[#allocation3 + $0x29]]  ;;  %v6603_v33 = vld [vmem:[%s6498_s25 + $0x18] sm:$0xff] }
  0x59   : > { %v436_v43 = vrot.slane %v429_v34, 1  ;;  %v468_v44 = vstv %s5829_s9  ;;  %v414_v45 = vsel %vm343_vm0, %v412_v37, %v413_v32  ;;  %v433_v46 = vrot.slane %v427_v38, 1  ;;  %s5869_s28 = sld [smem:[#allocation3 + $0xe]] }
  0x5a   : > { %259 = vrot.lane.b32.xlu1 %v254_v9, %s10932_s27  ;;  %257 = vrot.lane.b32.xlu0 %v253_v11, %s10932_s27  ;;  %v448_v47 = vmul.f32 %v447_v35, %v6501_v0  ;;  %v455_v48 = vrot.slane %v449_v39, 1  ;;  %v457_v49 = vrot.slane %v450_v40, 1  ;;  %v470_v51 = vmul.f32 %v468_v44, %v6504_v1  ;;  %s5839_s29 = sld [smem:[#allocation3 + $0x2b]] }
  0x5b   : > { %v437_v50 = vsel %vm343_vm0, %v434_v42, %v436_v43  ;;  %v471_v52 = vmul.f32 %v468_v44, %v6531_v21  ;;  %v489_v53 = vstv %s5830_s10  ;;  %v435_v54 = vsel %vm343_vm0, %v433_v46, %v434_v42  ;;  %s5877_s30 = sld [smem:[#allocation3 + $0x10]] }
  0x5c   : > { %v454_v55 = vrot.slane %v448_v47, 1  ;;  %v469_v56 = vmul.f32 %v468_v44, %v6501_v0  ;;  %v458_v57 = vsel %vm343_vm0, %v455_v48, %v457_v49  ;;  %v642_v58 = vstv %s5838_s11  ;;  %s5843_s4 = sld [smem:[#allocation3 + $0x2c]] }
  0x5d   : > { %v476_v59 = vrot.slane %v470_v51, 1  ;;  %v478_v60 = vrot.slane %v471_v52, 1  ;;  %v491_v61 = vmul.f32 %v489_v53, %v6504_v1  ;;  %v492_v62 = vmul.f32 %v489_v53, %v6531_v21  ;;  %s5881_s5 = sld [smem:[#allocation3 + $0x11]] }
  0x5e   : > { %273 = vrot.lane.b32.xlu1 %v268_v12, %s10932_s27  ;;  %271 = vrot.lane.b32.xlu0 %v267_v14, %s10932_s27  ;;  %v456_v63 = vsel %vm343_vm0, %v454_v55, %v455_v48  ;;  %v475_v2 = vrot.slane %v469_v56, 1  ;;  %v490_v3 = vmul.f32 %v489_v53, %v6501_v0  ;;  %v644_v4 = vmul.f32 %v642_v58, %v6504_v1  ;;  %s5854_s6 = sld [smem:[#allocation3 + $0x2e]] }
  0x5f   : > { %v479_v5 = vsel %vm343_vm0, %v476_v59, %v478_v60  ;;  %v497_v6 = vrot.slane %v491_v61, 1  ;;  %v499_v7 = vrot.slane %v492_v62, 1  ;;  %v645_v8 = vmul.f32 %v642_v58, %v6531_v21  ;;  %s5892_s8 = sld [smem:[#allocation3 + $0x13]] }
  0x60   : > { %v726_v9 = vstv %s5842_s17  ;;  %v477_v10 = vsel %vm343_vm0, %v475_v2, %v476_v59  ;;  %v496_v11 = vrot.slane %v490_v3, 1  ;;  %v643_v12 = vmul.f32 %v642_v58, %v6501_v0  ;;  %s5858_s9 = sld [smem:[#allocation3 + $0x2f]] }
  0x61   : > { %v650_v13 = vrot.slane %v644_v4, 2  ;;  %v500_v14 = vsel %vm343_vm0, %v497_v6, %v499_v7  ;;  %v728_v16 = vmul.f32 %v726_v9, %v6504_v1  ;;  %v838_v29 = vstv %s6580_s19  ;;  %s5866_s10 = sld [smem:[#allocation3 + $0x31]] }
  0x62   : > { %287 = vrot.lane.b32.xlu1 %v282_v15, %s10930_s7  ;;  %285 = vrot.lane.b32.xlu0 %v281_v17, %s10930_s7  ;;  %v652_v15 = vrot.slane %v645_v8, 2  ;;  %v729_v17 = vmul.f32 %v726_v9, %v6531_v21  ;;  %v649_v19 = vrot.slane %v643_v12, 2  ;;  %v1018_v31 = vstv %s5865_s20  ;;  %s6668_s11 = sld [smem:[#allocation3 + $0x14]] }
  0x63   : > { %v894_v35 = vstv %s6587_s24  ;;  %v839_v38 = vmul.f32 %v6603_v33, %v838_v29  ;;  %v510_v39 = vstv %s5831_s26  ;;  %v1019_v40 = vmul.f32 %v6603_v33, %v1018_v31  ;;  %s5904_s17 = sld [smem:[#allocation3 + $0x16]] }
  0x64   : > { %v653_v22 = vsel %vm580_vm1, %v650_v13, %v652_v15  ;;  %v736_v24 = vrot.slane %v729_v17, 2  ;;  %v651_v25 = vsel %vm580_vm1, %v649_v19, %v650_v13  ;;  %v1102_v42 = vstv %s5869_s28  ;;  %s5832_s19 = sld [smem:[#allocation3 + $0x4d]] }
  0x65   : > { %v513_v46 = vmul.f32 %v510_v39, %v6531_v21  ;;  %v895_v47 = vmul.f32 %v6603_v33, %v894_v35  ;;  %v1025_v48 = vrot.slane %v1019_v40, 1  ;;  %v511_v49 = vmul.f32 %v510_v39, %v6501_v0  ;;  %s5870_s20 = sld [smem:[#allocation3 + $0x32]] }
  0x66   : > { %301 = vrot.lane.b32.xlu1 %v296_v18, %s10930_s7  ;;  %299 = vrot.lane.b32.xlu0 %v295_v20, %s10930_s7  ;;  %v498_v18 = vsel %vm343_vm0, %v496_v11, %v497_v6  ;;  %v727_v20 = vmul.f32 %v726_v9, %v6501_v0  ;;  %v663_v55 = vstv %s5839_s29  ;;  %v1103_v58 = vmul.f32 %v6603_v33, %v1102_v42  ;;  %s5908_s24 = sld [smem:[#allocation3 + $0x17]] }
  0x67   : > { %v665_v62 = vmul.f32 %v663_v55, %v6504_v1  ;;  %v1254_v2 = vstv %s5877_s30  ;;  %v747_v11 = vstv %s5843_s4  ;;  %s5840_s26 = sld [smem:[#allocation3 + $0x4f]] }
  0x68   : > { %v733_v26 = vrot.slane %v727_v20, 2  ;;  %v1109_v4 = vrot.slane %v1103_v58, 1  ;;  %v749_v15 = vmul.f32 %v747_v11, %v6504_v1  ;;  %v750_v19 = vmul.f32 %v747_v11, %v6531_v21  ;;  %v6687_v58 = vld [vmem:[%s6498_s25 + $0x40] sm:$0x3]  ;;  %s5878_s28 = sld [smem:[#allocation3 + $0x34]] }
  0x69   : > { %v671_v8 = vrot.slane %v665_v62, 2  ;;  %v1338_v20 = vstv %s5881_s5  ;;  %s5916_s29 = sld [smem:[#allocation3 + $0x19]] }
  0x6a   : > { %315 = vrot.lane.b32.xlu1 %v310_v23, %s10930_s7  ;;  %313 = vrot.lane.b32.xlu0 %v309_v28, %s10930_s7  ;;  %v734_v23 = vrot.slane %v728_v16, 2  ;;  %v6594_v28 = vld [vmem:[%s6498_s25 + $0x20] sm:$0xff]  ;;  %s5844_s30 = sld [smem:[#allocation3 + $0x50]] }
  0x6b   : > { %v840_v34 = vmul.f32 %v6594_v28, %v838_v29  ;;  %v1256_v7 = vmul.f32 %v6594_v28, %v1254_v2  ;;  %v1340_v29 = vmul.f32 %v6594_v28, %v1338_v20  ;;  %s5882_s4 = sld [smem:[#allocation3 + $0x35]] }
  0x6c   : > { %v737_v27 = vsel %vm580_vm1, %v734_v23, %v736_v24  ;;  %v735_v32 = vsel %vm580_vm1, %v733_v26, %v734_v23  ;;  %v748_v24 = vmul.f32 %v747_v11, %v6501_v0  ;;  %s5920_s5 = sld [smem:[#allocation3 + $0x1a]] }
  0x6d   : > { %v1262_v17 = vrot.slane %v1256_v7, 2  ;;  %s8804_s0 = sld [smem:[#allocation6 + $0x58]] }
  0x6e   : > { %329 = vrot.lane.b32.xlu1 %v324_v30, %s10930_s7  ;;  %327 = vrot.lane.b32.xlu0 %v323_v36, %s10930_s7  ;;  %v6599_v30 = vld [vmem:[%s6498_s25 + $0x28] sm:$0x3]  ;;  %v1020_v36 = vmul.f32 %v6594_v28, %v1018_v31  ;;  %s8811_s1 = sld [smem:[#allocation6 + $0x7c]] }
  0x6f   : > { %v1021_v37 = vmul.f32 %v6599_v30, %v1018_v31  ;;  %v1105_v51 = vmul.f32 %v6599_v30, %v1102_v42  ;;  %v1341_v31 = vmul.f32 %v6599_v30, %v1338_v20  ;;  %s8815_s2 = sld [smem:[#allocation6 + $0x11]] }
  0x70   : > { %v1026_v43 = vrot.slane %v1020_v36, 1  ;;  %s8820_s21 = sld [smem:[#allocation6 + $0x27]] }
  0x71   : > { %v1028_v44 = vrot.slane %v1021_v37, 1  ;;  %v1112_v60 = vrot.slane %v1105_v51, 1  ;;  %v1346_v37 = vrot.slane %v1340_v29, 2  ;;  %v1039_v51 = vstv %s5866_s10  ;;  %s6813_s10 = sld [smem:[#allocation3 + $0x53]] }
  0x72   : > { %419 = vrot.lane.b32.xlu1 %v416_v41, %s10932_s27  ;;  %417 = vrot.lane.b32.xlu0 %v414_v45, %s10932_s27  ;;  %v896_v41 = vmul.f32 %v6594_v28, %v894_v35  ;;  %v512_v45 = vmul.f32 %v510_v39, %v6504_v1  ;;  %v1027_v56 = vsel %vm343_vm0, %v1025_v48, %v1026_v43  ;;  %v6673_v48 = vld [vmem:[%s6498_s25 + $0x30] sm:$0xff]  ;;  %s8824_s14 = sld [smem:[#allocation6 + $0x4b]] }
  0x73   : > { %v1029_v52 = vsel %vm343_vm0, %v1026_v43, %v1028_v44  ;;  %v1339_v35 = vmul.f32 %v6603_v33, %v1338_v20  ;;  %s8831_s18 = sld [smem:[#allocation6 + $0x6f]] }
  0x74   : > { %v518_v53 = vrot.slane %v512_v45, 1  ;;  %v6666_v45 = vld [vmem:[%s6498_s25 + $0x38] sm:$0xff]  ;;  %s8835_s23 = sld [smem:[#allocation6 + $0x6]] }
  0x75   : > { %v1345_v40 = vrot.slane %v1339_v35, 2  ;;  %s8840_s12 = sld [smem:[#allocation6 + $0x35]] }
  0x76   : > { %440 = vrot.lane.b32.xlu1 %v437_v50, %s10932_s27  ;;  %438 = vrot.lane.b32.xlu0 %v435_v54, %s10932_s27  ;;  %v1104_v50 = vmul.f32 %v6594_v28, %v1102_v42  ;;  %v520_v54 = vrot.slane %v513_v46, 1  ;;  %v852_v42 = vstv %s5854_s6  ;;  %v1450_v46 = vstv %s5892_s8  ;;  %s6785_s6 = sld [smem:[#allocation3 + $0x52]] }
  0x77   : > { %v1347_v43 = vsel %vm580_vm1, %v1345_v40, %v1346_v37  ;;  %v854_v44 = vmul.f32 %v6594_v28, %v852_v42  ;;  %s5893_s8 = sld [smem:[#allocation3 + $0x37]] }
  0x78   : > { %v1110_v59 = vrot.slane %v1104_v50, 1  ;;  %v521_v61 = vsel %vm343_vm0, %v518_v53, %v520_v54  ;;  %v908_v50 = vstv %s5858_s9  ;;  %v1041_v54 = vmul.f32 %v6594_v28, %v1039_v51  ;;  %s5931_s9 = sld [smem:[#allocation3 + $0x1c]] }
  0x79   : > { %s8848_s15 = sld [smem:[#allocation6 + $0x59]] }
  0x7a   : > { %461 = vrot.lane.b32.xlu1 %v458_v57, %s10932_s27  ;;  %459 = vrot.lane.b32.xlu0 %v456_v63, %s10932_s27  ;;  %v517_v57 = vrot.slane %v511_v49, 1  ;;  %v666_v63 = vmul.f32 %v663_v55, %v6531_v21  ;;  %v1113_v6 = vsel %vm343_vm0, %v1110_v59, %v1112_v60  ;;  %v1111_v12 = vsel %vm343_vm0, %v1109_v4, %v1110_v59  ;;  %s8860_s3 = sld [smem:[#allocation6 + $0x7d]] }
  0x7b   : > { %v1452_v49 = vmul.f32 %v6666_v45, %v1450_v46  ;;  %v1630_v59 = vstv %s5904_s17  ;;  %v1040_v60 = vmul.f32 %v6603_v33, %v1039_v51  ;;  %v1047_v62 = vrot.slane %v1041_v54, 1  ;;  %s5867_s17 = sld [smem:[#allocation3 + $0x55]] }
  0x7c   : > { %v519_v3 = vsel %vm343_vm0, %v517_v57, %v518_v53  ;;  %v673_v9 = vrot.slane %v666_v63, 2  ;;  %v910_v53 = vmul.f32 %v6594_v28, %v908_v50  ;;  %v909_v57 = vmul.f32 %v6603_v33, %v908_v50  ;;  %s8865_s22 = sld [smem:[#allocation6 + $0x2a]] }
  0x7d   : > { %v531_v4 = vstv %s5832_s19  ;;  %v1631_v7 = vmul.f32 %v6673_v48, %v1630_v59  ;;  %v1275_v50 = vstv %s5878_s28  ;;  %s6840_s19 = sld [smem:[#allocation3 + $0x1d]] }
  0x7e   : > { %482 = vrot.lane.b32.xlu1 %v479_v5, %s10932_s27  ;;  %480 = vrot.lane.b32.xlu0 %v477_v10, %s10932_s27  ;;  %v664_v5 = vmul.f32 %v663_v55, %v6501_v0  ;;  %v1257_v10 = vmul.f32 %v6599_v30, %v1254_v2  ;;  %v674_v16 = vsel %vm580_vm1, %v671_v8, %v673_v9  ;;  %v1506_v55 = vstv %s6668_s11  ;;  %s6823_s11 = sld [smem:[#allocation3 + $0x38]] }
  0x7f   : > { %v534_v9 = vmul.f32 %v531_v4, %v6531_v21  ;;  %s5871_s28 = sld [smem:[#allocation3 + $0x56]] }
  0x80   : > { %v670_v13 = vrot.slane %v664_v5, 2  ;;  %v1507_v5 = vmul.f32 %v6673_v48, %v1506_v55 }
  0x82   : > { %503 = vrot.lane.b32.xlu1 %v500_v14, %s10930_s7  ;;  %501 = vrot.lane.b32.xlu0 %v498_v18, %s10930_s7  ;;  %v1255_v14 = vmul.f32 %v6603_v33, %v1254_v2  ;;  %v1264_v18 = vrot.slane %v1257_v10, 2  ;;  %v1632_v2 = vmul.f32 %v6666_v45, %v1630_v59 }
  0x84   : > { %v1261_v23 = vrot.slane %v1255_v14, 2  ;;  %v1265_v26 = vsel %vm580_vm1, %v1262_v17, %v1264_v18  ;;  %v1638_v11 = vrot.slane %v1632_v2, 1  ;;  %v541_v18 = vrot.slane %v534_v9, 1 }
  0x86   : > { %656 = vrot.lane.b32.xlu1 %v653_v22, %s10932_s27  ;;  %654 = vrot.lane.b32.xlu0 %v651_v25, %s10932_s27  ;;  %v672_v22 = vsel %vm580_vm1, %v670_v13, %v671_v8  ;;  %v755_v25 = vrot.slane %v749_v15, 2  ;;  %v533_v8 = vmul.f32 %v531_v4, %v6504_v1  ;;  %v1123_v13 = vstv %s5870_s20  ;;  %s5905_s20 = sld [smem:[#allocation3 + $0x3a]] }
  0x87   : > { %v1637_v15 = vrot.slane %v1631_v7, 1  ;;  %v1125_v20 = vmul.f32 %v6594_v28, %v1123_v13 }
  0x8a   : > { %740 = vrot.lane.b32.xlu1 %v737_v27, %s10930_s7  ;;  %738 = vrot.lane.b32.xlu0 %v735_v32, %s10930_s7  ;;  %v757_v27 = vrot.slane %v750_v19, 2  ;;  %v1263_v32 = vsel %vm580_vm1, %v1261_v23, %v1262_v17  ;;  %v539_v17 = vrot.slane %v533_v8, 1 }
  0x8c   : > { %v758_v36 = vsel %vm580_vm1, %v755_v25, %v757_v27  ;;  %v1124_v27 = vmul.f32 %v6603_v33, %v1123_v13 }
  0x8e   : > { %845 = vrot.lane.b32.xlu1 %v840_v34, %s10932_s27  ;;  %843 = vrot.lane.b32.xlu0 %v839_v38, %s10932_s27  ;;  %v754_v34 = vrot.slane %v748_v24, 2  ;;  %v1348_v38 = vrot.slane %v1341_v31, 2  ;;  %v1714_v24 = vstv %s5908_s24  ;;  %v542_v31 = vsel %vm343_vm0, %v539_v17, %v541_v18  ;;  %s5943_s24 = sld [smem:[#allocation3 + $0x1f]] }
  0x8f   : > { %v1130_v40 = vrot.slane %v1124_v27, 1 }
  0x90   : > { %v756_v39 = vsel %vm580_vm1, %v754_v34, %v755_v25  ;;  %v1639_v25 = vsel %vm343_vm0, %v1637_v15, %v1638_v11  ;;  %v1131_v34 = vrot.slane %v1125_v20, 1 }
  0x92   : > { %901 = vrot.lane.b32.xlu1 %v896_v41, %s10930_s7  ;;  %899 = vrot.lane.b32.xlu0 %v895_v47, %s10930_s7  ;;  %v1349_v41 = vsel %vm580_vm1, %v1346_v37, %v1348_v38  ;;  %v853_v47 = vmul.f32 %v6603_v33, %v852_v42  ;;  %v1717_v37 = vmul.f32 %v6687_v58, %v1714_v24 }
  0x96   : > { %1032 = vrot.lane.b32.xlu1 %v1029_v52, %s10932_s27  ;;  %1030 = vrot.lane.b32.xlu0 %v1027_v56, %s10932_s27  ;;  %v1451_v52 = vmul.f32 %v6673_v48, %v1450_v46  ;;  %v1042_v56 = vmul.f32 %v6599_v30, %v1039_v51 }
  0x98   : > { %v1049_v63 = vrot.slane %v1042_v56, 1 }
  0x9a   : > { %524 = vrot.lane.b32.xlu1 %v521_v61, %s10930_s7  ;;  %522 = vrot.lane.b32.xlu0 %v519_v3, %s10930_s7  ;;  %v1508_v61 = vmul.f32 %v6666_v45, %v1506_v55  ;;  %v1633_v3 = vmul.f32 %v6687_v58, %v1630_v59  ;;  %v1050_v10 = vsel %vm343_vm0, %v1047_v62, %v1049_v63  ;;  %v1866_v63 = vstv %s5916_s29  ;;  %s5909_s29 = sld [smem:[#allocation3 + $0x3b]] }
  0x9b   : > { %v1277_v59 = vmul.f32 %v6594_v28, %v1275_v50  ;;  %v1868_v9 = vmul.f32 %v6666_v45, %v1866_v63  ;;  %v1867_v15 = vmul.f32 %v6673_v48, %v1866_v63 }
  0x9d   : > { %v1283_v7 = vrot.slane %v1277_v59, 2  ;;  %v1874_v20 = vrot.slane %v1868_v9, 2  ;;  %v1873_v27 = vrot.slane %v1867_v15, 2 }
  0x9e   : > { %1116 = vrot.lane.b32.xlu1 %v1113_v6, %s10930_s7  ;;  %1114 = vrot.lane.b32.xlu0 %v1111_v12, %s10930_s7  ;;  %v1046_v6 = vrot.slane %v1040_v60, 1  ;;  %v1640_v12 = vrot.slane %v1633_v3, 1 }
  0xa0   : > { %v1048_v14 = vsel %vm343_vm0, %v1046_v6, %v1047_v62  ;;  %v1641_v19 = vsel %vm343_vm0, %v1638_v11, %v1640_v12  ;;  %v768_v11 = vstv %s5844_s30  ;;  %s5947_s30 = sld [smem:[#allocation3 + $0x20]] }
  0xa1   : > { %v771_v18 = vmul.f32 %v768_v11, %v6531_v21 }
  0xa2   : > { %677 = vrot.lane.b32.xlu1 %v674_v16, %s10932_s27  ;;  %675 = vrot.lane.b32.xlu0 %v672_v22, %s10932_s27  ;;  %v532_v16 = vmul.f32 %v531_v4, %v6501_v0  ;;  %v1126_v22 = vmul.f32 %v6599_v30, %v1123_v13  ;;  %v1276_v4 = vmul.f32 %v6603_v33, %v1275_v50 }
  0xa4   : > { %v1133_v35 = vrot.slane %v1126_v22, 1 }
  0xa6   : > { %1268 = vrot.lane.b32.xlu1 %v1265_v26, %s10932_s27  ;;  %1266 = vrot.lane.b32.xlu0 %v1263_v32, %s10932_s27  ;;  %v538_v26 = vrot.slane %v532_v16, 1  ;;  %v684_v32 = vstv %s5840_s26  ;;  %v1134_v46 = vsel %vm343_vm0, %v1131_v34, %v1133_v35  ;;  %v778_v35 = vrot.slane %v771_v18, 2  ;;  %s5833_s26 = sld [smem:[#allocation3 + $0x71]] }
  0xa7   : > { %v685_v54 = vmul.f32 %v684_v32, %v6501_v0 }
  0xa9   : > { %v691_v3 = vrot.slane %v685_v54, 2 }
  0xaa   : > { %761 = vrot.lane.b32.xlu1 %v758_v36, %s10930_s7  ;;  %759 = vrot.lane.b32.xlu0 %v756_v39, %s10930_s7  ;;  %v1716_v36 = vmul.f32 %v6666_v45, %v1714_v24  ;;  %v540_v39 = vsel %vm343_vm0, %v538_v26, %v539_v17  ;;  %v770_v17 = vmul.f32 %v768_v11, %v6504_v1 }
  0xae   : > { %1352 = vrot.lane.b32.xlu1 %v1349_v41, %s10930_s7  ;;  %1350 = vrot.lane.b32.xlu0 %v1347_v43, %s10930_s7  ;;  %v1715_v41 = vmul.f32 %v6673_v48, %v1714_v24  ;;  %v686_v43 = vmul.f32 %v684_v32, %v6504_v1 }
  0xb0   : > { %v692_v56 = vrot.slane %v686_v43, 2  ;;  %v1875_v43 = vsel %vm580_vm1, %v1873_v27, %v1874_v20 }
  0xb2   : > { %859 = vrot.lane.b32.xlu1 %v854_v44, %s10932_s27  ;;  %857 = vrot.lane.b32.xlu0 %v853_v47, %s10932_s27  ;;  %v687_v44 = vmul.f32 %v684_v32, %v6531_v21  ;;  %v1722_v47 = vrot.slane %v1716_v36, 1  ;;  %v693_v13 = vsel %vm580_vm1, %v691_v3, %v692_v56 }
  0xb6   : > { %1457 = vrot.lane.b32.xlu1 %v1452_v49, %s10932_s27  ;;  %1455 = vrot.lane.b32.xlu0 %v1451_v52, %s10932_s27  ;;  %v1724_v49 = vrot.slane %v1717_v37, 1  ;;  %v1132_v52 = vsel %vm343_vm0, %v1130_v40, %v1131_v34  ;;  %v776_v34 = vrot.slane %v770_v17, 2  ;;  %v1464_v17 = vstv %s5893_s8  ;;  %s5955_s8 = sld [smem:[#allocation3 + $0x22]] }
  0xb8   : > { %v1725_v60 = vsel %vm343_vm0, %v1722_v47, %v1724_v49  ;;  %v779_v49 = vsel %vm580_vm1, %v776_v34, %v778_v35 }
  0xba   : > { %915 = vrot.lane.b32.xlu1 %v910_v53, %s10930_s7  ;;  %913 = vrot.lane.b32.xlu0 %v909_v57, %s10930_s7  ;;  %v1721_v53 = vrot.slane %v1715_v41, 1  ;;  %v694_v57 = vrot.slane %v687_v44, 2  ;;  %v1950_v41 = vstv %s5920_s5  ;;  %s5879_s5 = sld [smem:[#allocation3 + $0x58]] }
  0xbb   : > { %v1953_v54 = vmul.f32 %v6687_v58, %v1950_v41 }
  0xbc   : > { %v1723_v2 = vsel %vm343_vm0, %v1721_v53, %v1722_v47  ;;  %v695_v6 = vsel %vm580_vm1, %v692_v56, %v694_v57  ;;  %v1952_v53 = vmul.f32 %v6666_v45, %v1950_v41 }
  0xbd   : > { %v1960_v3 = vrot.slane %v1953_v54, 2 }
  0xbe   : > { %1513 = vrot.lane.b32.xlu1 %v1508_v61, %s10930_s7  ;;  %1511 = vrot.lane.b32.xlu0 %v1507_v5, %s10930_s7  ;;  %v1278_v61 = vmul.f32 %v6599_v30, %v1275_v50 }
  0xc0   : > { %v1285_v8 = vrot.slane %v1278_v61, 2 }
  0xc2   : > { %1053 = vrot.lane.b32.xlu1 %v1050_v10, %s10932_s27  ;;  %1051 = vrot.lane.b32.xlu0 %v1048_v14, %s10932_s27  ;;  %v1869_v10 = vmul.f32 %v6687_v58, %v1866_v63  ;;  %v1282_v14 = vrot.slane %v1276_v4, 2 }
  0xc4   : > { %v6709_v23 = vpop.permute.xlu1 %243  ;;  %v6713_v29 = vpop.permute.xlu0 %229  ;;  %v1876_v22 = vrot.slane %v1869_v10, 2  ;;  %v1284_v26 = vsel %vm580_vm1, %v1282_v14, %v1283_v7  ;;  %v866_v10 = vstv %s6785_s6  ;;  %s5917_s6 = sld [smem:[#allocation3 + $0x3d]] }
  0xc5   : > { %v868_v15 = vmul.f32 %v6594_v28, %v866_v10 }
  0xc6   : > { %1644 = vrot.lane.b32.xlu1 %v1641_v19, %s10932_s27  ;;  %1642 = vrot.lane.b32.xlu0 %v1639_v25, %s10932_s27  ;;  %v1286_v19 = vsel %vm580_vm1, %v1283_v7, %v1285_v8  ;;  %v1359_v25 = vstv %s5882_s4  ;;  %v1877_v36 = vsel %vm580_vm1, %v1874_v20, %v1876_v22  ;;  %v1466_v22 = vmul.f32 %v6666_v45, %v1464_v17  ;;  %s5841_s4 = sld [smem:[#allocation3 + $0x73]] }
  0xc7   : > { %v1361_v37 = vmul.f32 %v6594_v28, %v1359_v25 }
  0xc8   : > { %v6720_v38 = vpop.permute.xlu1 %245  ;;  %v6724_v42 = vpop.permute.xlu0 %231 }
  0xc9   : > { %v1367_v50 = vrot.slane %v1361_v37, 2  ;;  %v922_v37 = vstv %s6813_s10  ;;  %s5883_s10 = sld [smem:[#allocation3 + $0x59]] }
  0xca   : > { %545 = vrot.lane.b32.xlu1 %v542_v31, %s10930_s7  ;;  %543 = vrot.lane.b32.xlu0 %v540_v39, %s10930_s7  ;;  %v769_v31 = vmul.f32 %v768_v11, %v6501_v0  ;;  %v1362_v39 = vmul.f32 %v6599_v30, %v1359_v25 }
  0xcc   : > { %v6731_v51 = vpop.permute.xlu1 %259  ;;  %v6735_v55 = vpop.permute.xlu0 %257  ;;  %v775_v44 = vrot.slane %v769_v31, 2  ;;  %v1465_v31 = vmul.f32 %v6673_v48, %v1464_v17 }
  0xce   : > { %1137 = vrot.lane.b32.xlu1 %v1134_v46, %s10930_s7  ;;  %1135 = vrot.lane.b32.xlu0 %v1132_v52, %s10930_s7  ;;  %v1360_v46 = vmul.f32 %v6603_v33, %v1359_v25  ;;  %v1369_v52 = vrot.slane %v1362_v39, 2  ;;  %v777_v57 = vsel %vm580_vm1, %v775_v44, %v776_v34  ;;  %v6826_v25 = vld [vmem:[%s6498_s25 + $0x50] sm:$0xff]  ;;  %v6833_v34 = vld [vmem:[%s6498_s25 + $0x48] sm:$0xff]  ;;  %v924_v44 = vmul.f32 %v6594_v28, %v922_v37 }
  0xd0   : > { %v6742_v62 = vpop.permute.xlu1 %273  ;;  %v6746_v5 = vpop.permute.xlu0 %271  ;;  %v1366_v59 = vrot.slane %v1360_v46, 2  ;;  %v1370_v63 = vsel %vm580_vm1, %v1367_v50, %v1369_v52  ;;  %v1520_v46 = vstv %s6823_s11  ;;  %v923_v52 = vmul.f32 %v6603_v33, %v922_v37  ;;  %s5921_s11 = sld [smem:[#allocation3 + $0x3e]] }
  0xd1   : > { %10972 = vst [vmem:[#allocation19_spill] sm:$0xff] %v6746_v5  ;;  %v1522_v54 = vmul.f32 %v6666_v45, %v1520_v46 }
  0xd2   : > { %1728 = vrot.lane.b32.xlu1 %v1725_v60, %s10930_s7  ;;  %1726 = vrot.lane.b32.xlu0 %v1723_v2, %s10930_s7  ;;  %v1951_v60 = vmul.f32 %v6673_v48, %v1950_v41  ;;  %v1958_v2 = vrot.slane %v1952_v53, 2 }
  0xd4   : > { %v6753_v12 = vpop.permute.xlu1 %287  ;;  %v6757_v16 = vpop.permute.xlu0 %285  ;;  %v1957_v7 = vrot.slane %v1951_v60, 2  ;;  %v1961_v9 = vsel %vm580_vm1, %v1958_v2, %v1960_v3  ;;  %v2118_v60 = vstv %s6840_s19  ;;  %v1651_v3 = vstv %s5905_s20  ;;  %s7028_s19 = sld [smem:[#allocation3 + $0x76]] }
  0xd5   : > { %v1654_v17 = vmul.f32 %v6687_v58, %v1651_v3  ;;  %v1652_v37 = vmul.f32 %v6673_v48, %v1651_v3  ;;  %s7039_s20 = sld [smem:[#allocation3 + $0x5b]] }
  0xd6   : > { %698 = vrot.lane.b32.xlu1 %v695_v6, %s10932_s27  ;;  %696 = vrot.lane.b32.xlu0 %v693_v13, %s10932_s27  ;;  %v1368_v6 = vsel %vm580_vm1, %v1366_v59, %v1367_v50  ;;  %v1959_v13 = vsel %vm580_vm1, %v1957_v7, %v1958_v2  ;;  %v1521_v2 = vmul.f32 %v6673_v48, %v1520_v46 }
  0xd8   : > { %v6764_v24 = vpop.permute.xlu1 %301  ;;  %v6768_v32 = vpop.permute.xlu0 %299 }
  0xd9   : > { %10973 = vst [vmem:[#allocation20_spill] sm:$0xff] %v6764_v24  ;;  %10974 = vst [vmem:[#allocation21_spill] sm:$0xff] %v6768_v32 }
  0xda   : > { %1289 = vrot.lane.b32.xlu1 %v1286_v19, %s10932_s27  ;;  %1287 = vrot.lane.b32.xlu0 %v1284_v26, %s10932_s27  ;;  %v867_v19 = vmul.f32 %v6603_v33, %v866_v10  ;;  %v2062_v26 = vstv %s5931_s9  ;;  %s5845_s9 = sld [smem:[#allocation3 + $0x74]] }
  0xdb   : > { %v2063_v41 = vmul.f32 %v6833_v34, %v2062_v26 }
  0xdc   : > { %v6775_v40 = vpop.permute.xlu1 %315  ;;  %v6779_v47 = vpop.permute.xlu0 %313 }
  0xdd   : > { %10975 = vst [vmem:[#allocation22_spill] sm:$0xff] %v6775_v40  ;;  %10976 = vst [vmem:[#allocation23_spill] sm:$0xff] %v6779_v47 }
  0xde   : > { %1880 = vrot.lane.b32.xlu1 %v1877_v36, %s10932_s27  ;;  %1878 = vrot.lane.b32.xlu0 %v1875_v43, %s10932_s27  ;;  %v2064_v36 = vmul.f32 %v6826_v25, %v2062_v26  ;;  %v2119_v26 = vmul.f32 %v6833_v34, %v2118_v60 }
  0xe0   : > { %v6788_v56 = vpop.permute.xlu1 %329  ;;  %v6792_v61 = vpop.permute.xlu0 %327 }
  0xe1   : > { %10977 = vst [vmem:[#allocation24_spill] sm:$0xff] %v6788_v56  ;;  %10978 = vst [vmem:[#allocation25_spill] sm:$0xff] %v6792_v61 }
  0xe2   : > { %782 = vrot.lane.b32.xlu1 %v779_v49, %s10930_s7  ;;  %780 = vrot.lane.b32.xlu0 %v777_v57, %s10930_s7  ;;  %v1060_v49 = vstv %s5867_s17  ;;  %s5959_s17 = sld [smem:[#allocation3 + $0x23]] }
  0xe3   : > { %v1062_v57 = vmul.f32 %v6594_v28, %v1060_v49  ;;  %v1063_v59 = vmul.f32 %v6599_v30, %v1060_v49 }
  0xe4   : > { %v6797_v4 = vpop.permute.xlu1 %419  ;;  %v6800_v8 = vpop.permute.xlu0 %417 }
  0xe5   : > { %v1068_v10 = vrot.slane %v1062_v57, 1  ;;  %v552_v57 = vstv %s5833_s26  ;;  %s7064_s26 = sld [smem:[#allocation3 + $0x77]] }
  0xe6   : > { %1373 = vrot.lane.b32.xlu1 %v1370_v63, %s10930_s7  ;;  %1371 = vrot.lane.b32.xlu0 %v1368_v6, %s10930_s7  ;;  %v1061_v6 = vmul.f32 %v6603_v33, %v1060_v49 }
  0xe8   : > { %v6806_v11 = vpop.permute.xlu1 %440  ;;  %v6809_v14 = vpop.permute.xlu0 %438 }
  0xe9   : > { %10979 = vst [vmem:[#allocation26_spill] sm:$0xff] %v6806_v11  ;;  %10980 = vst [vmem:[#allocation27_spill] sm:$0xff] %v6809_v14 }
  0xea   : > { %1964 = vrot.lane.b32.xlu1 %v1961_v9, %s10930_s7  ;;  %1962 = vrot.lane.b32.xlu0 %v1959_v13, %s10930_s7  ;;  %v2120_v9 = vmul.f32 %v6826_v25, %v2118_v60  ;;  %v1070_v13 = vrot.slane %v1063_v59, 1 }
  0xec   : > { %v6816_v18 = vpop.permute.xlu1 %461  ;;  %v6819_v20 = vpop.permute.xlu0 %459 }
  0xed   : > { %10981 = vst [vmem:[#allocation28_spill] sm:$0xff] %v6816_v18  ;;  %10982 = vst [vmem:[#allocation29_spill] sm:$0xff] %v6819_v20 }
  0xee   : > { %873 = vrot.lane.b32.xlu1 %v868_v15, %s10932_s27  ;;  %871 = vrot.lane.b32.xlu0 %v867_v19, %s10932_s27  ;;  %v1653_v15 = vmul.f32 %v6666_v45, %v1651_v3  ;;  %v2242_v19 = vstv %s5943_s24  ;;  %s7050_s24 = sld [smem:[#allocation3 + $0x40]] }
  0xef   : > { %v2244_v46 = vmul.f32 %v6826_v25, %v2242_v19  ;;  %v2243_v3 = vmul.f32 %v6833_v34, %v2242_v19 }
  0xf0   : > { %v6829_v27 = vpop.permute.xlu1 %482  ;;  %v6835_v35 = vpop.permute.xlu0 %480  ;;  %v1659_v49 = vrot.slane %v1653_v15, 1 }
  0xf1   : > { %10983 = vst [vmem:[#allocation30_spill] sm:$0xff] %v6829_v27  ;;  %10984 = vst [vmem:[#allocation31_spill] sm:$0xff] %v6835_v35  ;;  %v1144_v35 = vstv %s5871_s28  ;;  %v2326_v27 = vstv %s5947_s30  ;;  %s7077_s28 = sld [smem:[#allocation3 + $0x5c]] }
  0xf2   : > { %1471 = vrot.lane.b32.xlu1 %v1466_v22, %s10932_s27  ;;  %1469 = vrot.lane.b32.xlu0 %v1465_v31, %s10932_s27  ;;  %v6878_v31 = vld [vmem:[%s6498_s25 + $0x58] sm:$0x3]  ;;  %s7088_s30 = sld [smem:[#allocation3 + $0x41]] }
  0xf4   : > { %v6843_v39 = vpop.permute.xlu1 %503  ;;  %v6846_v43 = vpop.permute.xlu0 %501 }
  0xf5   : > { %10985 = vst [vmem:[#allocation32_spill] sm:$0xff] %v6846_v43 }
  0xf6   : > { %2069 = vrot.lane.b32.xlu1 %v2064_v36, %s10932_s27  ;;  %2067 = vrot.lane.b32.xlu0 %v2063_v41, %s10932_s27  ;;  %v1067_v36 = vrot.slane %v1061_v6, 1 }
  0xf8   : > { %v6852_v50 = vpop.permute.xlu1 %656  ;;  %v6855_v53 = vpop.permute.xlu0 %654  ;;  %v1069_v60 = vsel %vm343_vm0, %v1067_v36, %v1068_v10  ;;  %v2249_v36 = vrot.slane %v2243_v3, 1 }
  0xf9   : > { %10986 = vst [vmem:[#allocation33_spill] sm:$0xff] %v6852_v50  ;;  %10987 = vst [vmem:[#allocation34_spill] sm:$0xff] %v6855_v53 }
  0xfa   : > { %929 = vrot.lane.b32.xlu1 %v924_v44, %s10930_s7  ;;  %927 = vrot.lane.b32.xlu0 %v923_v52, %s10930_s7  ;;  %v1071_v44 = vsel %vm343_vm0, %v1068_v10, %v1070_v13  ;;  %v1661_v52 = vrot.slane %v1654_v17, 1  ;;  %v555_v13 = vmul.f32 %v552_v57, %v6531_v21  ;;  %v2250_v17 = vrot.slane %v2244_v46, 1 }
  0xfb   : > { %v1146_v46 = vmul.f32 %v6594_v28, %v1144_v35 }
  0xfc   : > { %v6863_v63 = vpop.permute.xlu1 %740  ;;  %v6867_v7 = vpop.permute.xlu0 %738  ;;  %v1662_v15 = vsel %vm343_vm0, %v1659_v49, %v1661_v52  ;;  %v562_v21 = vrot.slane %v555_v13, 1 }
  0xfd   : > { %10988 = vst [vmem:[#allocation35_spill] sm:$0xff] %v6863_v63  ;;  %10989 = vst [vmem:[#allocation36_spill] sm:$0xff] %v6867_v7  ;;  %v1152_v13 = vrot.slane %v1146_v46, 1  ;;  %v2329_v46 = vmul.f32 %v6878_v31, %v2326_v27  ;;  %v7246_v63 = vld [vmem:[%s6498_s25 + $0x30] sm:$0xff] }
  0xfe   : > { %1527 = vrot.lane.b32.xlu1 %v1522_v54, %s10930_s7  ;;  %1525 = vrot.lane.b32.xlu0 %v1521_v2, %s10930_s7  ;;  %v2245_v54 = vmul.f32 %v6878_v31, %v2242_v19  ;;  %v1658_v2 = vrot.slane %v1652_v37, 1  ;;  %v553_v37 = vmul.f32 %v552_v57, %v6501_v0  ;;  %v2251_v0 = vsel %vm343_vm0, %v2249_v36, %v2250_v17 }
 0x100   : > { %v6874_v22 = vpop.permute.xlu1 %845  ;;  %v6881_v41 = vpop.permute.xlu0 %843  ;;  %v1660_v19 = vsel %vm343_vm0, %v1658_v2, %v1659_v49  ;;  %v1735_v49 = vstv %s5909_s29  ;;  %v1145_v2 = vmul.f32 %v6603_v33, %v1144_v35  ;;  %s5868_s29 = sld [smem:[#allocation3 + $0x79]] }
 0x101   : > { %10990 = vst [vmem:[#allocation37_spill] sm:$0xff] %v6874_v22  ;;  %10991 = vst [vmem:[#allocation38_spill] sm:$0xff] %v6881_v41 }
 0x102   : > { %2125 = vrot.lane.b32.xlu1 %v2120_v9, %s10930_s7  ;;  %2123 = vrot.lane.b32.xlu0 %v2119_v26, %s10930_s7  ;;  %v554_v9 = vmul.f32 %v552_v57, %v6504_v1  ;;  %v2252_v26 = vrot.slane %v2245_v54, 1  ;;  %v1147_v54 = vmul.f32 %v6599_v30, %v1144_v35  ;;  %v559_v57 = vrot.slane %v553_v37, 1 }
 0x103   : > { %v1151_v36 = vrot.slane %v1145_v2, 1  ;;  %v1736_v37 = vmul.f32 %v6673_v48, %v1735_v49 }
 0x104   : > { %v6888_v59 = vpop.permute.xlu1 %901  ;;  %v6892_v6 = vpop.permute.xlu0 %899  ;;  %v560_v1 = vrot.slane %v554_v9, 1  ;;  %v2253_v52 = vsel %vm343_vm0, %v2250_v17, %v2252_v26  ;;  %v1737_v26 = vmul.f32 %v6666_v45, %v1735_v49 }
 0x105   : > { %10992 = vst [vmem:[#allocation39_spill] sm:$0xff] %v6888_v59  ;;  %10993 = vst [vmem:[#allocation40_spill] sm:$0xff] %v6892_v6  ;;  %v1742_v2 = vrot.slane %v1736_v37, 1 }
 0x106   : > { %1074 = vrot.lane.b32.xlu1 %v1071_v44, %s10932_s27  ;;  %1072 = vrot.lane.b32.xlu0 %v1069_v60, %s10932_s27  ;;  %v563_v9 = vsel %vm343_vm0, %v560_v1, %v562_v21  ;;  %v561_v35 = vsel %vm343_vm0, %v559_v57, %v560_v1  ;;  %v2328_v21 = vmul.f32 %v6826_v25, %v2326_v27  ;;  %v1743_v20 = vrot.slane %v1737_v26, 1 }
 0x107   : > { %v705_v57 = vstv %s5841_s4  ;;  %v2336_v26 = vrot.slane %v2329_v46, 1  ;;  %v6953_v46 = vld [vmem:[%s6498_s25] sm:$0xff]  ;;  %s5906_s4 = sld [smem:[#allocation3 + $0x5e]] }
 0x108   : > { %v6899_v10 = vpop.permute.xlu1 %1032  ;;  %v6903_v44 = vpop.permute.xlu0 %1030  ;;  %v1744_v37 = vsel %vm343_vm0, %v1742_v2, %v1743_v20  ;;  %v1887_v2 = vstv %s5917_s6  ;;  %s7097_s6 = sld [smem:[#allocation3]] }
 0x109   : > { %10994 = vst [vmem:[#allocation41_spill] sm:$0xff] %v6899_v10  ;;  %10995 = vst [vmem:[#allocation42_spill] sm:$0xff] %v6903_v44 }
 0x10a   : > { %1665 = vrot.lane.b32.xlu1 %v1662_v15, %s10932_s27  ;;  %1663 = vrot.lane.b32.xlu0 %v1660_v19, %s10932_s27  ;;  %v1154_v15 = vrot.slane %v1147_v54, 1  ;;  %v1738_v19 = vmul.f32 %v6687_v58, %v1735_v49  ;;  %v1153_v49 = vsel %vm343_vm0, %v1151_v36, %v1152_v13  ;;  %v1296_v36 = vstv %s5879_s5  ;;  %s7091_s5 = sld [smem:[#allocation3 + $0x24]] }
 0x10c   : > { %v6910_v60 = vpop.permute.xlu1 %524  ;;  %v6914_v3 = vpop.permute.xlu0 %522  ;;  %v1155_v54 = vsel %vm343_vm0, %v1152_v13, %v1154_v15  ;;  %v2334_v15 = vrot.slane %v2328_v21, 1 }
 0x10d   : > { %10996 = vst [vmem:[#allocation43_spill] sm:$0xff] %v6910_v60  ;;  %10997 = vst [vmem:[#allocation44_spill] sm:$0xff] %v6914_v3 }
 0x10e   : > { %2256 = vrot.lane.b32.xlu1 %v2253_v52, %s10932_s27  ;;  %2254 = vrot.lane.b32.xlu0 %v2251_v0, %s10932_s27  ;;  %v1745_v0 = vrot.slane %v1738_v19, 1 }
 0x110   : > { %v6921_v17 = vpop.permute.xlu1 %1116  ;;  %v6925_v52 = vpop.permute.xlu0 %1114  ;;  %v1746_v19 = vsel %vm343_vm0, %v1743_v20, %v1745_v0 }
 0x111   : > { %10998 = vst [vmem:[#allocation45_spill] sm:$0xff] %v6921_v17  ;;  %10999 = vst [vmem:[#allocation46_spill] sm:$0xff] %v6925_v52  ;;  %v6945_v52 = vld [vmem:[%s6498_s25 + $0x10] sm:$0x3]  ;;  %v2337_v17 = vsel %vm343_vm0, %v2334_v15, %v2336_v26 }
 0x112   : > { %566 = vrot.lane.b32.xlu1 %v563_v9, %s10930_s7  ;;  %564 = vrot.lane.b32.xlu0 %v561_v35, %s10930_s7  ;;  %v2327_v9 = vmul.f32 %v6833_v34, %v2326_v27  ;;  %v6941_v35 = vld [vmem:[%s6498_s25 + $0x8] sm:$0xff]  ;;  %v708_v13 = vmul.f32 %v6945_v52, %v705_v57 }
 0x114   : > { %v6932_v1 = vpop.permute.xlu1 %677  ;;  %v6936_v18 = vpop.permute.xlu0 %675  ;;  %v2333_v21 = vrot.slane %v2327_v9, 1  ;;  %v715_v60 = vrot.slane %v708_v13, 2 }
 0x115   : > { %11000 = vst [vmem:[#allocation47_spill] sm:$0xff] %v6932_v1  ;;  %11001 = vst [vmem:[#allocation48_spill] sm:$0xff] %v6936_v18  ;;  %v707_v1 = vmul.f32 %v6941_v35, %v705_v57  ;;  %v1298_v18 = vmul.f32 %v6594_v28, %v1296_v36 }
 0x116   : > { %1158 = vrot.lane.b32.xlu1 %v1155_v54, %s10930_s7  ;;  %1156 = vrot.lane.b32.xlu0 %v1153_v49, %s10930_s7  ;;  %v706_v54 = vmul.f32 %v6953_v46, %v705_v57  ;;  %v1299_v49 = vmul.f32 %v6599_v30, %v1296_v36  ;;  %v2335_v57 = vsel %vm343_vm0, %v2333_v21, %v2334_v15 }
 0x117   : > { %v713_v3 = vrot.slane %v707_v1, 2  ;;  %v1304_v26 = vrot.slane %v1298_v18, 2  ;;  %v2478_v1 = vstv %s5955_s8  ;;  %s7103_s8 = sld [smem:[#allocation3 + $0x3]] }
 0x118   : > { %v6949_v27 = vpop.permute.xlu1 %1268  ;;  %v6956_v0 = vpop.permute.xlu0 %1266  ;;  %v712_v9 = vrot.slane %v706_v54, 2  ;;  %v1888_v54 = vmul.f32 %v6673_v48, %v1887_v2  ;;  %v2480_v18 = vmul.f32 %v6826_v25, %v2478_v1 }
 0x119   : > { %11002 = vst [vmem:[#allocation49_spill] sm:$0xff] %v6949_v27  ;;  %11003 = vst [vmem:[#allocation50_spill] sm:$0xff] %v6956_v0  ;;  %v1297_v0 = vmul.f32 %v6603_v33, %v1296_v36  ;;  %v716_v13 = vsel %vm580_vm1, %v713_v3, %v715_v60  ;;  %v1306_v27 = vrot.slane %v1299_v49, 2  ;;  %v2481_v60 = vmul.f32 %v6878_v31, %v2478_v1 }
 0x11a   : > { %1749 = vrot.lane.b32.xlu1 %v1746_v19, %s10930_s7  ;;  %1747 = vrot.lane.b32.xlu0 %v1744_v37, %s10930_s7  ;;  %v1889_v37 = vmul.f32 %v6666_v45, %v1887_v2  ;;  %v714_v36 = vsel %vm580_vm1, %v712_v9, %v713_v3  ;;  %v789_v3 = vstv %s5845_s9  ;;  %v2479_v9 = vmul.f32 %v6833_v34, %v2478_v1  ;;  %s7110_s9 = sld [smem:[#allocation3 + $0x43]] }
 0x11b   : > { %v1303_v21 = vrot.slane %v1297_v0, 2  ;;  %v1307_v49 = vsel %vm580_vm1, %v1304_v26, %v1306_v27 }
 0x11c   : > { %v6963_v20 = vpop.permute.xlu1 %761  ;;  %v6967_v19 = vpop.permute.xlu0 %759  ;;  %v2485_v1 = vrot.slane %v2479_v9, 2 }
 0x11d   : > { %11004 = vst [vmem:[#allocation51_spill] sm:$0xff] %v6963_v20  ;;  %11005 = vst [vmem:[#allocation52_spill] sm:$0xff] %v6967_v19  ;;  %v1890_v20 = vmul.f32 %v6687_v58, %v1887_v2  ;;  %v1895_v19 = vrot.slane %v1889_v37, 2  ;;  %v1305_v0 = vsel %vm580_vm1, %v1303_v21, %v1304_v26  ;;  %v1894_v2 = vrot.slane %v1888_v54, 2 }
 0x11e   : > { %2340 = vrot.lane.b32.xlu1 %v2337_v17, %s10930_s7  ;;  %2338 = vrot.lane.b32.xlu0 %v2335_v57, %s10930_s7  ;;  %v792_v37 = vmul.f32 %v6945_v52, %v789_v3  ;;  %v790_v21 = vmul.f32 %v6953_v46, %v789_v3 }
 0x11f   : > { %v1897_v44 = vrot.slane %v1890_v20, 2  ;;  %v791_v20 = vmul.f32 %v6941_v35, %v789_v3  ;;  %v1896_v26 = vsel %vm580_vm1, %v1894_v2, %v1895_v19 }
 0x120   : > { %v6974_v15 = vpop.permute.xlu1 %1352  ;;  %v6978_v17 = vpop.permute.xlu0 %1350  ;;  %v796_v3 = vrot.slane %v790_v21, 2 }
 0x121   : > { %11006 = vst [vmem:[#allocation53_spill] sm:$0xff] %v6974_v15  ;;  %11007 = vst [vmem:[#allocation54_spill] sm:$0xff] %v6978_v17  ;;  %v2486_v17 = vrot.slane %v2480_v18, 2  ;;  %v2488_v15 = vrot.slane %v2481_v60, 2  ;;  %v1898_v27 = vsel %vm580_vm1, %v1895_v19, %v1897_v44  ;;  %v1971_v19 = vstv %s5921_s11  ;;  %s7124_s11 = sld [smem:[#allocation3 + $0x7a]] }
 0x122   : > { %719 = vrot.lane.b32.xlu1 %v716_v13, %s10932_s27  ;;  %717 = vrot.lane.b32.xlu0 %v714_v36, %s10932_s27  ;;  %v1380_v36 = vstv %s5883_s10  ;;  %s7112_s10 = sld [smem:[#allocation3 + $0x48]] }
 0x123   : > { %v1382_v44 = vmul.f32 %v6594_v28, %v1380_v36  ;;  %v1383_v18 = vmul.f32 %v6599_v30, %v1380_v36  ;;  %v2489_v60 = vsel %vm580_vm1, %v2486_v17, %v2488_v15  ;;  %v2487_v2 = vsel %vm580_vm1, %v2485_v1, %v2486_v17 }
 0x124   : > { %v6985_v57 = vpop.permute.xlu1 %859  ;;  %v6989_v13 = vpop.permute.xlu0 %857  ;;  %v1381_v9 = vmul.f32 %v6603_v33, %v1380_v36  ;;  %v2562_v17 = vstv %s5959_s17  ;;  %v1972_v36 = vmul.f32 %v6673_v48, %v1971_v19  ;;  %s7126_s17 = sld [smem:[#allocation3 + $0x6c]] }
 0x125   : > { %11008 = vst [vmem:[#allocation55_spill] sm:$0xff] %v6985_v57  ;;  %11009 = vst [vmem:[#allocation56_spill] sm:$0xff] %v6989_v13  ;;  %v1388_v28 = vrot.slane %v1382_v44, 2  ;;  %v1390_v30 = vrot.slane %v1383_v18, 2 }
 0x126   : > { %1310 = vrot.lane.b32.xlu1 %v1307_v49, %s10932_s27  ;;  %1308 = vrot.lane.b32.xlu0 %v1305_v0, %s10932_s27  ;;  %v797_v49 = vrot.slane %v791_v20, 2  ;;  %v799_v0 = vrot.slane %v792_v37, 2  ;;  %v1974_v20 = vmul.f32 %v6687_v58, %v1971_v19  ;;  %v1387_v33 = vrot.slane %v1381_v9, 2 }
 0x127   : > { %v1391_v21 = vsel %vm580_vm1, %v1388_v28, %v1390_v30  ;;  %v1165_v14 = vstv %s7124_s11  ;;  %s7325_s11 = sld [smem:[#allocation3 + $0x62]] }
 0x128   : > { %v6996_v57 = vpop.permute.xlu1 %1457  ;;  %v7000_v54 = vpop.permute.xlu0 %1455  ;;  %v800_v15 = vsel %vm580_vm1, %v797_v49, %v799_v0  ;;  %v1981_v18 = vrot.slane %v1974_v20, 2  ;;  %v2565_v0 = vmul.f32 %v6878_v31, %v2562_v17 }
 0x129   : > { %11010 = vst [vmem:[#allocation57_spill] sm:$0xff] %v6996_v57  ;;  %11011 = vst [vmem:[#allocation58_spill] sm:$0xff] %v7000_v54 }
 0x12a   : > { %1901 = vrot.lane.b32.xlu1 %v1898_v27, %s10932_s27  ;;  %1899 = vrot.lane.b32.xlu0 %v1896_v26, %s10932_s27  ;;  %v1973_v27 = vmul.f32 %v6666_v45, %v1971_v19  ;;  %v798_v26 = vsel %vm580_vm1, %v796_v3, %v797_v49  ;;  %v1389_v19 = vsel %vm580_vm1, %v1387_v33, %v1388_v28  ;;  %v218_v11 = vstv %s7126_s17  ;;  %s7327_s17 = sld [smem:[#allocation3 + $0xf]] }
 0x12b   : > { %v2563_v3 = vmul.f32 %v6833_v34, %v2562_v17 }
 0x12c   : > { %v7007_v57 = vpop.permute.xlu1 %915  ;;  %v7011_v54 = vpop.permute.xlu0 %913  ;;  %v1979_v44 = vrot.slane %v1973_v27, 2  ;;  %v2572_v27 = vrot.slane %v2565_v0, 2 }
 0x12d   : > { %11012 = vst [vmem:[#allocation59_spill] sm:$0xff] %v7007_v57  ;;  %11013 = vst [vmem:[#allocation60_spill] sm:$0xff] %v7011_v54 }
 0x12e   : > { %2492 = vrot.lane.b32.xlu1 %v2489_v60, %s10932_s27  ;;  %2490 = vrot.lane.b32.xlu0 %v2487_v2, %s10932_s27  ;;  %v2564_v60 = vmul.f32 %v6826_v25, %v2562_v17  ;;  %v1978_v2 = vrot.slane %v1972_v36, 2  ;;  %v1982_v30 = vsel %vm580_vm1, %v1979_v44, %v1981_v18  ;;  %v880_v36 = vstv %s7028_s19  ;;  %s7134_s19 = sld [smem:[#allocation3 + $0x27]] }
 0x130   : > { %v7018_v37 = vpop.permute.xlu1 %1513  ;;  %v7022_v1 = vpop.permute.xlu0 %1511  ;;  %v1980_v28 = vsel %vm580_vm1, %v1978_v2, %v1979_v44  ;;  %v7060_v44 = vld [vmem:[%s6498_s25 + $0x20] sm:$0xff] }
 0x131   : > { %11014 = vst [vmem:[#allocation61_spill] sm:$0xff] %v7018_v37  ;;  %11015 = vst [vmem:[#allocation62_spill] sm:$0xff] %v7022_v1  ;;  %v882_v0 = vmul.f32 %v7060_v44, %v880_v36  ;;  %v336_v1 = vstv %s7103_s8  ;;  %s7295_s8 = sld [smem:[#allocation3 + $0x7d]] }
 0x132   : > { %803 = vrot.lane.b32.xlu1 %v800_v15, %s10930_s7  ;;  %801 = vrot.lane.b32.xlu0 %v798_v26, %s10930_s7  ;;  %v2570_v15 = vrot.slane %v2564_v60, 2  ;;  %v2569_v26 = vrot.slane %v2563_v3, 2  ;;  %v7070_v3 = vld [vmem:[%s6498_s25 + $0x18] sm:$0xff]  ;;  %v7163_v57 = vmul.f32 %v6941_v35, %v336_v1 }
 0x134   : > { %v7031_v49 = vpop.permute.xlu1 %1053  ;;  %v7035_v9 = vpop.permute.xlu0 %1051  ;;  %v2573_v33 = vsel %vm580_vm1, %v2570_v15, %v2572_v27  ;;  %v2571_v18 = vsel %vm580_vm1, %v2569_v26, %v2570_v15  ;;  %v345_v61 = vrot.slane %v7163_v57, 1 }
 0x135   : > { %11016 = vst [vmem:[#allocation63_spill] sm:$0xff] %v7031_v49  ;;  %11017 = vst [vmem:[#allocation64_spill] sm:$0xff] %v7035_v9 }
 0x136   : > { %1394 = vrot.lane.b32.xlu1 %v1391_v21, %s10930_s7  ;;  %1392 = vrot.lane.b32.xlu0 %v1389_v19, %s10930_s7  ;;  %v1478_v19 = vstv %s7039_s20  ;;  %s7144_s20 = sld [smem:[#allocation3 + $0x5f]] }
 0x137   : > { %v1480_v27 = vmul.f32 %v6666_v45, %v1478_v19  ;;  %v1401_v24 = vstv %s7295_s8  ;;  %s7514_s8 = sld [smem:[#allocation3 + $0x65]] }
 0x138   : > { %v7042_v20 = vpop.permute.xlu1 %1644  ;;  %v7045_v17 = vpop.permute.xlu0 %1642 }
 0x139   : > { %11018 = vst [vmem:[#allocation65_spill] sm:$0xff] %v7042_v20  ;;  %11019 = vst [vmem:[#allocation66_spill] sm:$0xff] %v7045_v17  ;;  %v200_v17 = vstv %s7097_s6  ;;  %s7286_s6 = sld [smem:[#allocation3 + $0xc]] }
 0x13a   : > { %1985 = vrot.lane.b32.xlu1 %v1982_v30, %s10930_s7  ;;  %1983 = vrot.lane.b32.xlu0 %v1980_v28, %s10930_s7  ;;  %v881_v30 = vmul.f32 %v7070_v3, %v880_v36  ;;  %v2076_v28 = vstv %s7050_s24  ;;  %s7184_s24 = sld [smem:[#allocation3 + $0x44]] }
 0x13b   : > { %v2078_v36 = vmul.f32 %v6826_v25, %v2076_v28 }
 0x13c   : > { %v7053_v21 = vpop.permute.xlu1 %545  ;;  %v7056_v60 = vpop.permute.xlu0 %543 }
 0x13d   : > { %11020 = vst [vmem:[#allocation67_spill] sm:$0xff] %v7053_v21  ;;  %11021 = vst [vmem:[#allocation68_spill] sm:$0xff] %v7056_v60  ;;  %v2077_v60 = vmul.f32 %v6833_v34, %v2076_v28  ;;  %v1534_v21 = vstv %s7077_s28  ;;  %s7192_s28 = sld [smem:[#allocation3 + $0x6f]] }
 0x13e   : > { %2576 = vrot.lane.b32.xlu1 %v2573_v33, %s10930_s7  ;;  %2574 = vrot.lane.b32.xlu0 %v2571_v18, %s10930_s7  ;;  %v1479_v33 = vmul.f32 %v6673_v48, %v1478_v19 }
 0x140   : > { %v7067_v2 = vpop.permute.xlu1 %1137  ;;  %v7073_v15 = vpop.permute.xlu0 %1135 }
 0x141   : > { %11022 = vst [vmem:[#allocation69_spill] sm:$0xff] %v7067_v2  ;;  %11023 = vst [vmem:[#allocation70_spill] sm:$0xff] %v7073_v15  ;;  %v206_v15 = vstv %s7091_s5  ;;  %s7275_s5 = sld [smem:[#allocation3 + $0x46]] }
 0x142   : > { %887 = vrot.lane.b32.xlu1 %v882_v0, %s10932_s27  ;;  %885 = vrot.lane.b32.xlu0 %v881_v30, %s10932_s27  ;;  %v936_v0 = vstv %s7064_s26  ;;  %v7147_v37 = vmul.f32 %v6953_v46, %v206_v15  ;;  %s7187_s26 = sld [smem:[#allocation3 + $0x4b]] }
 0x143   : > { %v937_v28 = vmul.f32 %v7070_v3, %v936_v0 }
 0x144   : > { %v7081_v26 = vpop.permute.xlu1 %1728  ;;  %v7084_v18 = vpop.permute.xlu0 %1726 }
 0x145   : > { %11024 = vst [vmem:[#allocation71_spill] sm:$0xff] %v7081_v26  ;;  %11025 = vst [vmem:[#allocation72_spill] sm:$0xff] %v7084_v18  ;;  %v1081_v18 = vstv %s5868_s29  ;;  %v7120_v26 = vld [vmem:[%s6498_s25 + $0x28] sm:$0x3]  ;;  %s7201_s29 = sld [smem:[#allocation3 + $0x7c]] }
 0x146   : > { %1485 = vrot.lane.b32.xlu1 %v1480_v27, %s10932_s27  ;;  %1483 = vrot.lane.b32.xlu0 %v1479_v33, %s10932_s27  ;;  %v938_v27 = vmul.f32 %v7060_v44, %v936_v0  ;;  %v1672_v0 = vstv %s5906_s4  ;;  %v1082_v20 = vmul.f32 %v7070_v3, %v1081_v18  ;;  %s7237_s4 = sld [smem:[#allocation3 + $0x61]] }
 0x147   : > { %v1673_v54 = vmul.f32 %v6673_v48, %v1672_v0 }
 0x148   : > { %v7094_v30 = vpop.permute.xlu1 %698  ;;  %v7099_v19 = vpop.permute.xlu0 %696 }
 0x149   : > { %11026 = vst [vmem:[#allocation73_spill] sm:$0xff] %v7094_v30  ;;  %11027 = vst [vmem:[#allocation74_spill] sm:$0xff] %v7099_v19  ;;  %v1536_v19 = vmul.f32 %v6666_v45, %v1534_v21  ;;  %v1083_v30 = vmul.f32 %v7060_v44, %v1081_v18 }
 0x14a   : > { %2083 = vrot.lane.b32.xlu1 %v2078_v36, %s10932_s27  ;;  %2081 = vrot.lane.b32.xlu0 %v2077_v60, %s10932_s27  ;;  %v1084_v60 = vmul.f32 %v7120_v26, %v1081_v18  ;;  %v7150_v18 = vmul.f32 %v6941_v35, %v206_v15  ;;  %v339_v15 = vmul.f32 %v6945_v52, %v336_v1 }
 0x14b   : > { %v1089_v49 = vrot.slane %v1083_v30, 1 }
 0x14c   : > { %v7107_v33 = vpop.permute.xlu1 %1289  ;;  %v7114_v36 = vpop.permute.xlu0 %1287  ;;  %v347_v6 = vrot.slane %v339_v15, 1 }
 0x14d   : > { %11028 = vst [vmem:[#allocation75_spill] sm:$0xff] %v7107_v33  ;;  %11029 = vst [vmem:[#allocation76_spill] sm:$0xff] %v7114_v36  ;;  %v2132_v33 = vstv %s7088_s30  ;;  %s7217_s30 = sld [smem:[#allocation3 + $0x6]] }
 0x14e   : > { %943 = vrot.lane.b32.xlu1 %v938_v27, %s10930_s7  ;;  %941 = vrot.lane.b32.xlu0 %v937_v28, %s10930_s7  ;;  %v1535_v27 = vmul.f32 %v6673_v48, %v1534_v21  ;;  %v2134_v9 = vmul.f32 %v6826_v25, %v2132_v33  ;;  %v1091_v28 = vrot.slane %v1084_v60, 1  ;;  %v1675_v21 = vmul.f32 %v6687_v58, %v1672_v0 }
 0x14f   : > { %v2133_v30 = vmul.f32 %v6833_v34, %v2132_v33  ;;  %v2263_v60 = vstv %s7110_s9  ;;  %v212_v58 = vstv %s7112_s10  ;;  %v7174_v48 = vmul.f32 %v6941_v35, %v200_v17  ;;  %s7308_s9 = sld [smem:[#allocation3 + $0x9]] }
 0x150   : > { %v7129_v36 = vpop.permute.xlu1 %1880  ;;  %v7137_v2 = vpop.permute.xlu0 %1878  ;;  %v1092_v33 = vsel %vm343_vm0, %v1089_v49, %v1091_v28  ;;  %v1682_v13 = vrot.slane %v1675_v21, 1  ;;  %v2265_v10 = vmul.f32 %v6826_v25, %v2263_v60  ;;  %v2264_v21 = vmul.f32 %v6833_v34, %v2263_v60  ;;  %s7316_s10 = sld [smem:[#allocation3 + $0x2a]] }
 0x151   : > { %11030 = vst [vmem:[#allocation77_spill] sm:$0xff] %v7129_v36  ;;  %11031 = vst [vmem:[#allocation78_spill] sm:$0xff] %v7137_v2  ;;  %v1674_v36 = vmul.f32 %v6666_v45, %v1672_v0  ;;  %v7158_v45 = vmul.f32 %v6953_v46, %v200_v17  ;;  %v1088_v2 = vrot.slane %v1082_v20, 1  ;;  %v2266_v20 = vmul.f32 %v6878_v31, %v2263_v60 }
 0x152   : > { %1541 = vrot.lane.b32.xlu1 %v1536_v19, %s10930_s7  ;;  %1539 = vrot.lane.b32.xlu0 %v1535_v27, %s10930_s7  ;;  %v7177_v0 = vmul.f32 %v6941_v35, %v212_v58  ;;  %v1679_v17 = vrot.slane %v1673_v54, 1  ;;  %v2271_v41 = vrot.slane %v2265_v10, 1  ;;  %v1756_v54 = vstv %s7144_s20  ;;  %s7389_s20 = sld [smem:[#allocation3 + $0x2d]] }
 0x153   : > { %v1090_v28 = vsel %vm343_vm0, %v1088_v2, %v1089_v49  ;;  %v2273_v49 = vrot.slane %v2266_v20, 1  ;;  %v7204_v57 = vmul.f32 %v6953_v46, %v212_v58  ;;  %v7213_v10 = vmul.f32 %v6941_v35, %v218_v11 }
 0x154   : > { %v7153_v19 = vpop.permute.xlu1 %782  ;;  %v7166_v27 = vpop.permute.xlu0 %780  ;;  %v2270_v20 = vrot.slane %v2264_v21, 1  ;;  %v1166_v58 = vmul.f32 %v7070_v3, %v1165_v14  ;;  %v1757_v53 = vmul.f32 %v7246_v63, %v1756_v54 }
 0x155   : > { %11032 = vst [vmem:[#allocation79_spill] sm:$0xff] %v7153_v19  ;;  %11033 = vst [vmem:[#allocation80_spill] sm:$0xff] %v7166_v27  ;;  %v1680_v19 = vrot.slane %v1674_v36, 1  ;;  %v337_v27 = vmul.f32 %v6953_v46, %v336_v1  ;;  %v354_v36 = vstv %s7134_s19  ;;  %s7351_s19 = sld [smem:[#allocation3 + $0x47]] }
 0x156   : > { %2139 = vrot.lane.b32.xlu1 %v2134_v9, %s10930_s7  ;;  %2137 = vrot.lane.b32.xlu0 %v2133_v30, %s10930_s7  ;;  %v1167_v30 = vmul.f32 %v7060_v44, %v1165_v14  ;;  %v356_v2 = vmul.f32 %v6941_v35, %v354_v36  ;;  %v357_v60 = vmul.f32 %v6945_v52, %v354_v36 }
 0x157   : > { %v1683_v59 = vsel %vm343_vm0, %v1680_v19, %v1682_v13  ;;  %v355_v15 = vmul.f32 %v6953_v46, %v354_v36  ;;  %v1681_v13 = vsel %vm343_vm0, %v1679_v17, %v1680_v19  ;;  %v7227_v19 = vmul.f32 %v6953_v46, %v218_v11  ;;  %v7234_v17 = vld [vmem:[%s6498_s25 + $0x40] sm:$0x3] }
 0x158   : > { %v7182_v9 = vpop.permute.xlu1 %1373  ;;  %v7194_v1 = vpop.permute.xlu0 %1371  ;;  %v1173_v36 = vrot.slane %v1167_v30, 1  ;;  %v364_v21 = vrot.slane %v357_v60, 1  ;;  %v2347_v11 = vstv %s7184_s24  ;;  %v2272_v7 = vsel %vm343_vm0, %v2270_v20, %v2271_v41  ;;  %s7397_s24 = sld [smem:[#allocation3 + $0x12]] }
 0x159   : > { %11034 = vst [vmem:[#allocation81_spill] sm:$0xff] %v7182_v9  ;;  %11035 = vst [vmem:[#allocation82_spill] sm:$0xff] %v7194_v1  ;;  %v1168_v9 = vmul.f32 %v7120_v26, %v1165_v14  ;;  %v344_v1 = vrot.slane %v337_v27, 1  ;;  %v7230_v14 = vsel %vm343_vm0, %v345_v61, %v347_v6  ;;  %v2274_v27 = vsel %vm343_vm0, %v2271_v41, %v2273_v49 }
 0x15a   : > { %1095 = vrot.lane.b32.xlu1 %v1092_v33, %s10932_s27  ;;  %1093 = vrot.lane.b32.xlu0 %v1090_v28, %s10932_s27  ;;  %11038 = vst [vmem:[#allocation85_spill] sm:$0xff] %v7227_v19  ;;  %v361_v30 = vrot.slane %v355_v15, 1  ;;  %v371_v6 = vstv %s7187_s26  ;;  %v1172_v49 = vrot.slane %v1166_v58, 1  ;;  %v2349_v41 = vmul.f32 %v6826_v25, %v2347_v11  ;;  %s7404_s26 = sld [smem:[#allocation3 + $0x30]] }
 0x15b   : > { %v1175_v28 = vrot.slane %v1168_v9, 1  ;;  %v362_v9 = vrot.slane %v356_v2, 1  ;;  %v7250_v47 = vsel %vm343_vm0, %v344_v1, %v345_v61  ;;  %v388_v2 = vstv %s7192_s28  ;;  %s7409_s28 = sld [smem:[#allocation3 + $0x15]] }
 0x15c   : > { %v7210_v33 = vpop.permute.xlu1 %1964  ;;  %v7219_v22 = vpop.permute.xlu0 %1962  ;;  %v2350_v20 = vmul.f32 %v6878_v31, %v2347_v11  ;;  %v1317_v58 = vstv %s7201_s29  ;;  %v7267_v1 = vmul.f32 %v6941_v35, %v371_v6  ;;  %v391_v40 = vmul.f32 %v6945_v52, %v388_v2  ;;  %s7420_s29 = sld [smem:[#allocation3 + $0x7f]] }
 0x15d   : > { %11036 = vst [vmem:[#allocation83_spill] sm:$0xff] %v7210_v33  ;;  %11037 = vst [vmem:[#allocation84_spill] sm:$0xff] %v7219_v22  ;;  %v7223_v33 = vld [vmem:[%s6498_s25 + $0x38] sm:$0xff]  ;;  %v1176_v15 = vsel %vm343_vm0, %v1173_v36, %v1175_v28  ;;  %v7264_v61 = vsel %vm343_vm0, %v361_v30, %v362_v9  ;;  %v7278_v28 = vmul.f32 %v6953_v46, %v371_v6 }
 0x15e   : > { %1686 = vrot.lane.b32.xlu1 %v1683_v59, %s10932_s27  ;;  %v1758_v56 = vmul.f32 %v7223_v33, %v1756_v54  ;;  %v1759_v59 = vmul.f32 %v7234_v17, %v1756_v54  ;;  %1684 = vrot.lane.b32.xlu0 %v1681_v13, %s10932_s27  ;;  %v7261_v54 = vsel %vm343_vm0, %v362_v9, %v364_v21  ;;  %v1763_v9 = vrot.slane %v1757_v53, 1 }
 0x15f   : > { %11041 = vst [vmem:[#allocation88_spill] sm:$0xff] %v7261_v54  ;;  %11042 = vst [vmem:[#allocation89_spill] sm:$0xff] %v7264_v61  ;;  %v2348_v21 = vmul.f32 %v6833_v34, %v2347_v11  ;;  %v7283_v30 = vmul.f32 %v6941_v35, %v388_v2  ;;  %v2357_v53 = vrot.slane %v2350_v20, 1  ;;  %v379_v11 = vrot.slane %v7267_v1, 1 }
 0x160   : > { %v7240_v22 = vpop.permute.xlu1 %873  ;;  %v7253_v60 = vpop.permute.xlu0 %871  ;;  %v1764_v13 = vrot.slane %v1758_v56, 1  ;;  %v1318_v20 = vmul.f32 %v7070_v3, %v1317_v58 }
 0x161   : > { %11039 = vst [vmem:[#allocation86_spill] sm:$0xff] %v7240_v22  ;;  %11040 = vst [vmem:[#allocation87_spill] sm:$0xff] %v7253_v60  ;;  %v1766_v22 = vrot.slane %v1759_v59, 1  ;;  %v1174_v59 = vsel %vm343_vm0, %v1172_v49, %v1173_v36  ;;  %v573_v60 = vstv %s7217_s30  ;;  %v2355_v36 = vrot.slane %v2349_v41, 1  ;;  %s7450_s30 = sld [smem:[#allocation3 + $0x64]] }
 0x162   : > { %2277 = vrot.lane.b32.xlu1 %v2274_v27, %s10932_s27  ;;  %v7270_v27 = vmul.f32 %v6945_v52, %v371_v6  ;;  %2275 = vrot.lane.b32.xlu0 %v2272_v7, %s10932_s27  ;;  %v1320_v6 = vmul.f32 %v7120_v26, %v1317_v58  ;;  %v1908_v49 = vstv %s7237_s4  ;;  %v575_v54 = vmul.f32 %v6941_v35, %v573_v60  ;;  %s7485_s4 = sld [smem:[#allocation3 + $0x80]] }
 0x163   : > { %v1767_v50 = vsel %vm343_vm0, %v1764_v13, %v1766_v22  ;;  %v1765_v22 = vsel %vm343_vm0, %v1763_v9, %v1764_v13  ;;  %v2354_v41 = vrot.slane %v2348_v21, 1  ;;  %v576_v32 = vmul.f32 %v6945_v52, %v573_v60 }
 0x164   : > { %v7273_v56 = vpop.permute.xlu1 %1471  ;;  %v7288_v7 = vpop.permute.xlu0 %1469  ;;  %v381_v61 = vrot.slane %v7270_v27, 1  ;;  %v1327_v27 = vrot.slane %v1320_v6, 2  ;;  %v396_v13 = vrot.slane %v7283_v30, 1  ;;  %v1911_v9 = vmul.f32 %v7234_v17, %v1908_v49 }
 0x165   : > { %11043 = vst [vmem:[#allocation90_spill] sm:$0xff] %v7273_v56  ;;  %11044 = vst [vmem:[#allocation91_spill] sm:$0xff] %v7288_v7  ;;  %v1319_v56 = vmul.f32 %v7060_v44, %v1317_v58  ;;  %v389_v7 = vmul.f32 %v6953_v46, %v388_v2  ;;  %v2358_v58 = vsel %vm343_vm0, %v2355_v36, %v2357_v53  ;;  %v398_v21 = vrot.slane %v391_v40, 1 }
 0x166   : > { %1179 = vrot.lane.b32.xlu1 %v1176_v15, %s10930_s7  ;;  %1177 = vrot.lane.b32.xlu0 %v1174_v59, %s10930_s7  ;;  %v1910_v59 = vmul.f32 %v7223_v33, %v1908_v49  ;;  %v2356_v30 = vsel %vm343_vm0, %v2354_v41, %v2355_v36  ;;  %v1324_v6 = vrot.slane %v1318_v20, 2  ;;  %v1909_v53 = vmul.f32 %v7246_v63, %v1908_v49 }
 0x167   : > { %v1325_v2 = vrot.slane %v1319_v56, 2  ;;  %v395_v5 = vrot.slane %v389_v7, 1  ;;  %v2499_v56 = vstv %s7275_s5  ;;  %v584_v40 = vrot.slane %v576_v32, 2  ;;  %s7497_s5 = sld [smem:[#allocation3 + $0x82]] }
 0x168   : > { %v7302_v15 = vpop.permute.xlu1 %2069  ;;  %v7310_v1 = vpop.permute.xlu0 %2067  ;;  %v950_v7 = vstv %s7286_s6  ;;  %v2502_v43 = vmul.f32 %v6878_v31, %v2499_v56  ;;  %v7340_v36 = vsel %vm343_vm0, %v379_v11, %v381_v61  ;;  %v7346_v49 = vsel %vm343_vm0, %v396_v13, %v398_v21  ;;  %s7502_s6 = sld [smem:[#allocation3 + $0x4e]] }
 0x169   : > { %11045 = vst [vmem:[#allocation92_spill] sm:$0xff] %v7302_v15  ;;  %11046 = vst [vmem:[#allocation93_spill] sm:$0xff] %v7310_v1  ;;  %v378_v15 = vrot.slane %v7278_v28, 1  ;;  %v574_v1 = vmul.f32 %v6953_v46, %v573_v60  ;;  %v582_v28 = vrot.slane %v575_v54, 2  ;;  %v1328_v60 = vsel %vm580_vm1, %v1325_v2, %v1327_v27 }
 0x16a   : > { %1770 = vrot.lane.b32.xlu1 %v1767_v50, %s10930_s7  ;;  %1768 = vrot.lane.b32.xlu0 %v1765_v22, %s10930_s7  ;;  %v1916_v22 = vrot.slane %v1910_v59, 2  ;;  %v2501_v54 = vmul.f32 %v6826_v25, %v2499_v56  ;;  %v7354_v25 = vsel %vm343_vm0, %v395_v5, %v396_v13  ;;  %v1326_v61 = vsel %vm580_vm1, %v1324_v6, %v1325_v2 }
 0x16b   : > { %v7343_v32 = vsel %vm343_vm0, %v378_v15, %v379_v11  ;;  %v581_v41 = vrot.slane %v574_v1, 2  ;;  %11050 = vst [vmem:[#allocation97_spill] sm:$0xff] %v7354_v25  ;;  %v1915_v27 = vrot.slane %v1909_v53, 2  ;;  %v2500_v11 = vmul.f32 %v6833_v34, %v2499_v56 }
 0x16c   : > { %v7322_v50 = vpop.permute.xlu1 %929  ;;  %v7332_v19 = vpop.permute.xlu0 %927  ;;  %v7360_v1 = vmul.f32 %v7060_v44, %v950_v7  ;;  %v1404_v5 = vmul.f32 %v7120_v26, %v1401_v24  ;;  %v7368_v13 = vsel %vm580_vm1, %v582_v28, %v584_v40  ;;  %v2507_v34 = vrot.slane %v2501_v54, 2 }
 0x16d   : > { %11047 = vst [vmem:[#allocation94_spill] sm:$0xff] %v7322_v50  ;;  %11048 = vst [vmem:[#allocation95_spill] sm:$0xff] %v7332_v19  ;;  %v1918_v50 = vrot.slane %v1911_v9, 2  ;;  %v2509_v9 = vrot.slane %v2502_v43, 2  ;;  %v7372_v21 = vsel %vm580_vm1, %v581_v41, %v582_v28  ;;  %v953_v56 = vmul.f32 %v7120_v26, %v950_v7 }
 0x16e   : > { %2361 = vrot.lane.b32.xlu1 %v2358_v58, %s10930_s7  ;;  %2359 = vrot.lane.b32.xlu0 %v2356_v30, %s10930_s7  ;;  %v1403_v58 = vmul.f32 %v7060_v44, %v1401_v24  ;;  %v591_v30 = vstv %s7316_s10  ;;  %v1992_v53 = vstv %s7325_s11  ;;  %v1917_v15 = vsel %vm580_vm1, %v1915_v27, %v1916_v22  ;;  %s7546_s10 = sld [smem:[#allocation3 + $0x83]] }
 0x16f   : > { %v1919_v2 = vsel %vm580_vm1, %v1916_v22, %v1918_v50  ;;  %v2506_v40 = vrot.slane %v2500_v11, 2  ;;  %v1402_v19 = vmul.f32 %v7070_v3, %v1401_v24  ;;  %v958_v50 = vrot.slane %v7360_v1, 1  ;;  %s7566_s11 = sld [smem:[#allocation3 + $0x33]] }
 0x170   : > { %v7349_v20 = vpop.permute.xlu1 %1527  ;;  %v7362_v59 = vpop.permute.xlu0 %1525  ;;  %v951_v43 = vmul.f32 %v7070_v3, %v950_v7  ;;  %v1409_v54 = vrot.slane %v1403_v58, 2  ;;  %v1411_v41 = vrot.slane %v1404_v5, 2  ;;  %v2510_v22 = vsel %vm580_vm1, %v2507_v34, %v2509_v9 }
 0x171   : > { %11049 = vst [vmem:[#allocation96_spill] sm:$0xff] %v7349_v20  ;;  %11051 = vst [vmem:[#allocation98_spill] sm:$0xff] %v7362_v59  ;;  %v1994_v27 = vmul.f32 %v7223_v33, %v1992_v53  ;;  %v1995_v24 = vmul.f32 %v7234_v17, %v1992_v53  ;;  %v594_v11 = vmul.f32 %v6945_v52, %v591_v30  ;;  %v1408_v9 = vrot.slane %v1402_v19, 2 }
 0x172   : > { %1331 = vrot.lane.b32.xlu1 %v1328_v60, %s10932_s27  ;;  %1329 = vrot.lane.b32.xlu0 %v1326_v61, %s10932_s27  ;;  %v1186_v60 = vstv %s7327_s17  ;;  %v593_v61 = vmul.f32 %v6941_v35, %v591_v30  ;;  %v592_v7 = vmul.f32 %v6953_v46, %v591_v30  ;;  %v2583_v35 = vstv %s7351_s19  ;;  %s7592_s17 = sld [smem:[#allocation3 + $0x68]] }
 0x173   : > { %v1188_v1 = vmul.f32 %v7060_v44, %v1186_v60  ;;  %v1189_v5 = vmul.f32 %v7120_v26, %v1186_v60  ;;  %v1993_v52 = vmul.f32 %v7246_v63, %v1992_v53  ;;  %v960_v46 = vrot.slane %v953_v56, 1  ;;  %s7620_s19 = sld [smem:[#allocation3 + $0x85]] }
 0x174   : > { %v7377_v6 = vpop.permute.xlu1 %2125  ;;  %v7385_v28 = vpop.permute.xlu0 %2123  ;;  %v957_v30 = vrot.slane %v951_v43, 1  ;;  %v2002_v59 = vrot.slane %v1995_v24, 2  ;;  %v2586_v56 = vmul.f32 %v6878_v31, %v2583_v35  ;;  %v599_v53 = vrot.slane %v593_v61, 2 }
 0x175   : > { %11052 = vst [vmem:[#allocation99_spill] sm:$0xff] %v7377_v6  ;;  %11053 = vst [vmem:[#allocation100_spill] sm:$0xff] %v7385_v28  ;;  %v1187_v28 = vmul.f32 %v7070_v3, %v1186_v60  ;;  %v2000_v6 = vrot.slane %v1994_v27, 2  ;;  %v601_v60 = vrot.slane %v594_v11, 2  ;;  %v1194_v43 = vrot.slane %v1188_v1, 2 }
 0x176   : > { %1922 = vrot.lane.b32.xlu1 %v1919_v2, %s10932_s27  ;;  %1920 = vrot.lane.b32.xlu0 %v1917_v15, %s10932_s27  ;;  %v2508_v2 = vsel %vm580_vm1, %v2506_v40, %v2507_v34  ;;  %v7416_v34 = vld [vmem:[%s6498_s25 + $0x50] sm:$0xff]  ;;  %v598_v40 = vrot.slane %v592_v7, 2  ;;  %v1410_v27 = vsel %vm580_vm1, %v1408_v9, %v1409_v54  ;;  %v1999_v24 = vrot.slane %v1993_v52, 2 }
 0x177   : > { %v2585_v19 = vmul.f32 %v7416_v34, %v2583_v35  ;;  %v11057_v31 = vstv %s7308_s9  ;;  %v7441_v7 = vsel %vm343_vm0, %v958_v50, %v960_v46  ;;  %v1193_v1 = vrot.slane %v1187_v28, 2  ;;  %s7523_s9 = sld [smem:[#allocation3 + $0x67]] }
 0x178   : > { %v7400_v58 = vpop.permute.xlu1 %1074  ;;  %v7411_v15 = vpop.permute.xlu0 %1072  ;;  %v7433_v25 = vmul.f32 %v7060_v44, %v11057_v31  ;;  %v11058_v61 = vmov %v11057_v31  ;;  %v2593_v9 = vrot.slane %v2586_v56, 2  ;;  %v236_v52 = vadd.f32 %v6724_v42, %v7174_v48 }
 0x179   : > { %11054 = vst [vmem:[#allocation101_spill] sm:$0xff] %v7400_v58  ;;  %11055 = vst [vmem:[#allocation102_spill] sm:$0xff] %v7411_v15  ;;  %v1412_v58 = vsel %vm580_vm1, %v1409_v54, %v1411_v41  ;;  %v7427_v15 = vld [vmem:[%s6498_s25 + $0x48] sm:$0xff]  ;;  %v7438_v11 = vmul.f32 %v7070_v3, %v11058_v61  ;;  %v7455_v46 = vsel %vm580_vm1, %v599_v53, %v601_v60  ;;  %v1562_v60 = vstv %s7409_s28  ;;  %s7705_s28 = sld [smem:[#allocation3 + $0x6b]] }
 0x17a   : > { %2513 = vrot.lane.b32.xlu1 %v2510_v22, %s10932_s27  ;;  %2511 = vrot.lane.b32.xlu0 %v2508_v2, %s10932_s27  ;;  %v1196_v22 = vrot.slane %v1189_v5, 2  ;;  %v2584_v20 = vmul.f32 %v7427_v15, %v2583_v35  ;;  %v7447_v5 = vsel %vm343_vm0, %v957_v30, %v958_v50  ;;  %v2003_v35 = vsel %vm580_vm1, %v2000_v6, %v2002_v59 }
 0x17b   : > { %v2591_v2 = vrot.slane %v2585_v19, 2  ;;  %v7458_v28 = vsel %vm580_vm1, %v598_v40, %v599_v53  ;;  %v967_v30 = vstv %s7404_s26  ;;  %v2001_v19 = vsel %vm580_vm1, %v1999_v24, %v2000_v6  ;;  %s7669_s26 = sld [smem:[#allocation3 + $0x86]] }
 0x17c   : > { %v7423_v41 = vpop.permute.xlu1 %1665  ;;  %v7443_v54 = vpop.permute.xlu0 %1663  ;;  %v7465_v50 = vsel %vm580_vm1, %v1194_v43, %v1196_v22  ;;  %v2590_v42 = vrot.slane %v2584_v20, 2  ;;  %v235_v48 = vadd.f32 %v6713_v29, %v7158_v45  ;;  %v292_v56 = vadd.f32 %v6753_v12, %v236_v52 }
 0x17d   : > { %11056 = vst [vmem:[#allocation103_spill] sm:$0xff] %v7423_v41  ;;  %11059 = vst [vmem:[#allocation104_spill] sm:$0xff] %v7443_v54  ;;  %v7473_v53 = vsel %vm580_vm1, %v1193_v1, %v1194_v43  ;;  %v2594_v6 = vsel %vm580_vm1, %v2591_v2, %v2593_v9  ;;  %v1492_v20 = vstv %s7420_s29  ;;  %v249_v29 = vadd.f32 %v6709_v23, %v7147_v37  ;;  %v11084_v41 = vld [vmem:[#allocation36_spill] sm:$0xff]  ;;  %s7754_s29 = sld [smem:[#allocation3 + $0x51]] }
 0x17e   : > { %1415 = vrot.lane.b32.xlu1 %v1412_v58, %s10930_s7  ;;  %v820_v58 = vstv %s7389_s20  ;;  %1413 = vrot.lane.b32.xlu0 %v1410_v27, %s10930_s7  ;;  %v1426_v27 = vstv %s7397_s24  ;;  %v291_v12 = vadd.f32 %v6757_v16, %v235_v48  ;;  %v969_v43 = vmul.f32 %v7060_v44, %v967_v30  ;;  %s7653_s20 = sld [smem:[#allocation3 + $0x6a]] }
 0x17f   : > { %v7480_v22 = vmul.f32 %v7060_v44, %v820_v58  ;;  %v7491_v45 = vmul.f32 %v7070_v3, %v820_v58  ;;  %v970_v31 = vmul.f32 %v7120_v26, %v967_v30  ;;  %v968_v61 = vmul.f32 %v7070_v3, %v967_v30  ;;  %s7660_s24 = sld [smem:[#allocation3 + $0x18]] }
 0x180   : > { %v7462_v59 = vpop.permute.xlu1 %2256  ;;  %v7476_v40 = vpop.permute.xlu0 %2254  ;;  %v1564_v23 = vmul.f32 %v7223_v33, %v1562_v60  ;;  %v2592_v16 = vsel %vm580_vm1, %v2590_v42, %v2591_v2  ;;  %v352_v37 = vadd.f32 %v7230_v14, %v292_v56  ;;  %v7507_v1 = vmul.f32 %v7223_v33, %v1426_v27 }
 0x181   : > { %11060 = vst [vmem:[#allocation105_spill] sm:$0xff] %v7462_v59  ;;  %11061 = vst [vmem:[#allocation106_spill] sm:$0xff] %v7476_v40  ;;  %v1494_v52 = vmul.f32 %v7223_v33, %v1492_v20  ;;  %v250_v58 = vadd.f32 %v6720_v38, %v7150_v18  ;;  %v7519_v2 = vmul.f32 %v7246_v63, %v1426_v27  ;;  %v2090_v30 = vstv %s7450_s30  ;;  %v7625_v40 = vld [vmem:[%s6498_s25] sm:$0xff]  ;;  %s7774_s30 = sld [smem:[#allocation3 + $0x88]] }
 0x182   : > { %2006 = vrot.lane.b32.xlu1 %v2003_v35, %s10930_s7  ;;  %2004 = vrot.lane.b32.xlu0 %v2001_v19, %s10930_s7  ;;  %v1565_v35 = vmul.f32 %v7234_v17, %v1562_v60  ;;  %v1563_v14 = vmul.f32 %v7246_v63, %v1562_v60  ;;  %v264_v19 = vadd.f32 %v6731_v51, %v7177_v0  ;;  %v975_v18 = vrot.slane %v969_v43, 1 }
 0x183   : > { %v424_v42 = vadd.f32 %v6797_v4, %v352_v37  ;;  %v351_v48 = vadd.f32 %v7250_v47, %v291_v12  ;;  %v1493_v38 = vmul.f32 %v7246_v63, %v1492_v20  ;;  %v977_v27 = vrot.slane %v970_v31, 1 }
 0x184   : > { %v7495_v24 = vpop.permute.xlu1 %566  ;;  %v7510_v9 = vpop.permute.xlu0 %564  ;;  %v974_v60 = vrot.slane %v968_v61, 1  ;;  %v1572_v0 = vrot.slane %v1565_v35, 1  ;;  %v2092_v47 = vmul.f32 %v7416_v34, %v2090_v30  ;;  %v263_v12 = vadd.f32 %v6735_v55, %v7204_v57  ;;  %v11067_v61 = vld [vmem:[#allocation32_spill] sm:$0xff]  ;;  %v11071_v35 = vld [vmem:[#allocation21_spill] sm:$0xff] }
 0x185   : > { %11062 = vst [vmem:[#allocation107_spill] sm:$0xff] %v7495_v24  ;;  %11063 = vst [vmem:[#allocation108_spill] sm:$0xff] %v7510_v9  ;;  %v423_v9 = vadd.f32 %v6800_v8, %v351_v48  ;;  %v508_v51 = vadd.f32 %v6843_v39, %v424_v42  ;;  %v7543_v20 = vadd.f32 %v6742_v62, %v7213_v10  ;;  %v1569_v43 = vrot.slane %v1563_v14, 1  ;;  %v11066_v39 = vld [vmem:[#allocation20_spill] sm:$0xff]  ;;  %v11069_v62 = vld [vmem:[#allocation85_spill] sm:$0xff] }
 0x186   : > { %2597 = vrot.lane.b32.xlu1 %v2594_v6, %s10930_s7  ;;  %2595 = vrot.lane.b32.xlu0 %v2592_v16, %s10930_s7  ;;  %v1570_v6 = vrot.slane %v1564_v23, 1  ;;  %v1548_v8 = vstv %s7485_s4  ;;  %v306_v31 = vadd.f32 %v11066_v39, %v250_v58  ;;  %v2091_v55 = vmul.f32 %v7427_v15, %v2090_v30  ;;  %v11070_v10 = vld [vmem:[#allocation19_spill] sm:$0xff]  ;;  %v11073_v39 = vld [vmem:[#allocation88_spill] sm:$0xff]  ;;  %s7785_s4 = sld [smem:[#allocation3 + $0x8b]] }
 0x187   : > { %v507_v23 = vadd.f32 %v11067_v61, %v423_v9  ;;  %v1693_v57 = vstv %s7497_s5  ;;  %v7557_v37 = vadd.f32 %v11070_v10, %v11069_v62  ;;  %v7561_v14 = vsel %vm343_vm0, %v975_v18, %v977_v27  ;;  %v11075_v62 = vld [vmem:[#allocation22_spill] sm:$0xff]  ;;  %s7788_s5 = sld [smem:[#allocation3 + $0x36]] }
 0x188   : > { %v7530_v56 = vpop.permute.xlu1 %1158  ;;  %v7535_v4 = vpop.permute.xlu0 %1156  ;;  %v7564_v9 = vsel %vm343_vm0, %v974_v60, %v975_v18  ;;  %v589_v58 = vadd.f32 %v7368_v13, %v508_v51  ;;  %v7570_v30 = vsel %vm343_vm0, %v1570_v6, %v1572_v0  ;;  %v608_v42 = vstv %s7502_s6  ;;  %s7798_s6 = sld [smem:[#allocation3 + $0x89]] }
 0x189   : > { %11064 = vst [vmem:[#allocation109_spill] sm:$0xff] %v7530_v56  ;;  %11065 = vst [vmem:[#allocation110_spill] sm:$0xff] %v7535_v4  ;;  %v1695_v18 = vmul.f32 %v7223_v33, %v1693_v57  ;;  %v1696_v27 = vmul.f32 %v7234_v17, %v1693_v57  ;;  %v2284_v60 = vstv %s7523_s9  ;;  %v7582_v13 = vadd.f32 %v11073_v39, %v306_v31  ;;  %v7599_v39 = vld [vmem:[%s6498_s25 + $0x8] sm:$0xff]  ;;  %s7842_s9 = sld [smem:[#allocation3 + $0x54]] }
 0x18a   : > { %1499 = vrot.lane.b32.xlu1 %v1494_v52, %s10932_s27  ;;  %1497 = vrot.lane.b32.xlu0 %v1493_v38, %s10932_s27  ;;  %v305_v52 = vadd.f32 %v11071_v35, %v249_v29  ;;  %v1550_v29 = vmul.f32 %v7223_v33, %v1548_v8  ;;  %v2146_v38 = vstv %s7514_s8  ;;  %v588_v51 = vadd.f32 %v7372_v21, %v507_v23  ;;  %v11076_v35 = vld [vmem:[#allocation89_spill] sm:$0xff]  ;;  %s7803_s8 = sld [smem:[#allocation3 + $0x8c]] }
 0x18b   : > { %v7586_v0 = vsel %vm343_vm0, %v1569_v43, %v1570_v6  ;;  %v1549_v61 = vmul.f32 %v7246_v63, %v1548_v8  ;;  %v320_v10 = vadd.f32 %v11075_v62, %v264_v19  ;;  %v7602_v21 = vmul.f32 %v7599_v39, %v608_v42  ;;  %v7606_v43 = vld [vmem:[%s6498_s25 + $0x10] sm:$0x3] }
 0x18c   : > { %v7551_v16 = vpop.permute.xlu1 %1749  ;;  %v7573_v48 = vpop.permute.xlu0 %1747  ;;  %v7596_v31 = vadd.f32 %v11076_v35, %v305_v52  ;;  %v1694_v6 = vmul.f32 %v7246_v63, %v1693_v57  ;;  %11077 = vst [vmem:[#allocation19_spill] sm:$0xff] %v7606_v43  ;;  %v611_v8 = vmul.f32 %v7606_v43, %v608_v42  ;;  %v2148_v19 = vmul.f32 %v7416_v34, %v2146_v38  ;;  %v7615_v52 = vld [vmem:[%s6498_s25 + $0x58] sm:$0x3]  ;;  %v11079_v35 = vld [vmem:[#allocation33_spill] sm:$0xff] }
 0x18d   : > { %11068 = vst [vmem:[#allocation20_spill] sm:$0xff] %v7551_v16  ;;  %11072 = vst [vmem:[#allocation32_spill] sm:$0xff] %v7573_v48  ;;  %v2287_v62 = vmul.f32 %v7615_v52, %v2284_v60  ;;  %v661_v57 = vadd.f32 %v11079_v35, %v589_v58  ;;  %v1701_v4 = vrot.slane %v1695_v18, 1  ;;  %v1703_v56 = vrot.slane %v1696_v27, 1  ;;  %v11081_v48 = vld [vmem:[#allocation34_spill] sm:$0xff]  ;;  %v11083_v58 = vld [vmem:[#allocation35_spill] sm:$0xff] }
 0x18e   : > { %2097 = vrot.lane.b32.xlu1 %v2092_v47, %s10932_s27  ;;  %2095 = vrot.lane.b32.xlu0 %v2091_v55, %s10932_s27  ;;  %v2286_v55 = vmul.f32 %v7416_v34, %v2284_v60  ;;  %v1777_v24 = vstv %s7546_s10  ;;  %v609_v59 = vmul.f32 %v7625_v40, %v608_v42  ;;  %v2147_v54 = vmul.f32 %v7427_v15, %v2146_v38  ;;  %s7861_s10 = sld [smem:[#allocation3 + $0x8e]] }
 0x18f   : > { %v745_v18 = vadd.f32 %v11083_v58, %v661_v57  ;;  %v1203_v27 = vstv %s7566_s11  ;;  %v1700_v35 = vrot.slane %v1694_v6, 1  ;;  %v2285_v43 = vmul.f32 %v7427_v15, %v2284_v60  ;;  %s7869_s11 = sld [smem:[#allocation3 + $0x1b]] }
 0x190   : > { %v7589_v47 = vpop.permute.xlu1 %2340  ;;  %v7609_v23 = vpop.permute.xlu0 %2338  ;;  %v2292_v42 = vrot.slane %v2286_v55, 1  ;;  %v616_v38 = vrot.slane %v7602_v21, 2  ;;  %v1704_v6 = vsel %vm343_vm0, %v1701_v4, %v1703_v56  ;;  %v1780_v60 = vmul.f32 %v7234_v17, %v1777_v24 }
 0x191   : > { %11074 = vst [vmem:[#allocation85_spill] sm:$0xff] %v7589_v47  ;;  %11078 = vst [vmem:[#allocation21_spill] sm:$0xff] %v7609_v23  ;;  %v11080_v47 = vld [vmem:[#allocation23_spill] sm:$0xff]  ;;  %v618_v57 = vrot.slane %v611_v8, 2  ;;  %v615_v58 = vrot.slane %v609_v59, 2  ;;  %v2368_v55 = vstv %s7592_s17  ;;  %v2291_v56 = vrot.slane %v2285_v43, 1 }
 0x192   : > { %1555 = vrot.lane.b32.xlu1 %v1550_v29, %s10930_s7  ;;  %v319_v23 = vadd.f32 %v11080_v47, %v263_v12  ;;  %v660_v29 = vadd.f32 %v11081_v48, %v588_v51  ;;  %1553 = vrot.lane.b32.xlu0 %v1549_v61, %s10930_s7  ;;  %v2294_v51 = vrot.slane %v2287_v62, 1  ;;  %v1779_v47 = vmul.f32 %v7223_v33, %v1777_v24  ;;  %s7894_s17 = sld [smem:[#allocation3 + $0x8f]] }
 0x193   : > { %v7641_v61 = vadd.f32 %v7340_v36, %v320_v10  ;;  %v1206_v36 = vmul.f32 %v7120_v26, %v1203_v27  ;;  %v1702_v10 = vsel %vm343_vm0, %v1700_v35, %v1701_v4  ;;  %v1778_v21 = vmul.f32 %v7246_v63, %v1777_v24 }
 0x194   : > { %v7629_v16 = vpop.permute.xlu1 %719  ;;  %v744_v12 = vadd.f32 %v11084_v41, %v660_v29  ;;  %v7636_v48 = vpop.permute.xlu0 %717  ;;  %v7647_v41 = vmul.f32 %v7060_v44, %v1203_v27  ;;  %v818_v59 = vadd.f32 %v7433_v25, %v745_v18  ;;  %v2295_v8 = vsel %vm343_vm0, %v2292_v42, %v2294_v51  ;;  %v11088_v25 = vld [vmem:[#allocation24_spill] sm:$0xff] }
 0x195   : > { %11082 = vst [vmem:[#allocation88_spill] sm:$0xff] %v7629_v16  ;;  %11085 = vst [vmem:[#allocation22_spill] sm:$0xff] %v7636_v48  ;;  %v1785_v62 = vrot.slane %v1779_v47, 1  ;;  %v1787_v29 = vrot.slane %v1780_v60, 1  ;;  %v2370_v26 = vmul.f32 %v7416_v34, %v2368_v55  ;;  %v2371_v4 = vmul.f32 %v7615_v52, %v2368_v55  ;;  %v11090_v60 = vld [vmem:[#allocation38_spill] sm:$0xff]  ;;  %v11103_v48 = vld [vmem:[#allocation44_spill] sm:$0xff] }
 0x196   : > { %2153 = vrot.lane.b32.xlu1 %v2148_v19, %s10930_s7  ;;  %2151 = vrot.lane.b32.xlu0 %v2147_v54, %s10930_s7  ;;  %v817_v44 = vadd.f32 %v7438_v11, %v744_v12  ;;  %v1929_v43 = vstv %s7620_s19  ;;  %v334_v11 = vadd.f32 %v11088_v25, %v7543_v20  ;;  %v7674_v24 = vadd.f32 %v7343_v32, %v319_v23  ;;  %v11089_v32 = vld [vmem:[#allocation37_spill] sm:$0xff]  ;;  %s7923_s19 = sld [smem:[#allocation3 + $0x39]] }
 0x197   : > { %v7677_v18 = vsel %vm580_vm1, %v616_v38, %v618_v57  ;;  %v7680_v35 = vmul.f32 %v7070_v3, %v1203_v27  ;;  %v7686_v51 = vsel %vm580_vm1, %v615_v58, %v616_v38  ;;  %v2293_v47 = vsel %vm343_vm0, %v2291_v56, %v2292_v42 }
 0x198   : > { %v7650_v19 = vpop.permute.xlu1 %1310  ;;  %v7662_v54 = vpop.permute.xlu0 %1308  ;;  %v2369_v20 = vmul.f32 %v7427_v15, %v2368_v55  ;;  %v850_v23 = vadd.f32 %v11089_v32, %v818_v59  ;;  %v849_v57 = vadd.f32 %v11090_v60, %v817_v44  ;;  %v1931_v3 = vmul.f32 %v7223_v33, %v1929_v43  ;;  %v11093_v60 = vld [vmem:[#allocation25_spill] sm:$0xff] }
 0x199   : > { %11086 = vst [vmem:[#allocation89_spill] sm:$0xff] %v7650_v19  ;;  %11087 = vst [vmem:[#allocation33_spill] sm:$0xff] %v7662_v54  ;;  %v1932_v27 = vmul.f32 %v7234_v17, %v1929_v43  ;;  %v1788_v42 = vsel %vm343_vm0, %v1785_v62, %v1787_v29  ;;  %v2376_v58 = vrot.slane %v2370_v26, 1  ;;  %v2378_v55 = vrot.slane %v2371_v4, 1 }
 0x19a   : > { %1707 = vrot.lane.b32.xlu1 %v1704_v6, %s10932_s27  ;;  %1705 = vrot.lane.b32.xlu0 %v1702_v10, %s10932_s27  ;;  %v1784_v6 = vrot.slane %v1778_v21, 1  ;;  %v11091_v10 = vld [vmem:[#allocation39_spill] sm:$0xff]  ;;  %v11092_v21 = vld [vmem:[#allocation40_spill] sm:$0xff]  ;;  %v1213_v44 = vrot.slane %v1206_v36, 2  ;;  %v333_v38 = vadd.f32 %v11093_v60, %v7557_v37  ;;  %v2375_v26 = vrot.slane %v2369_v20, 1  ;;  %v11100_v20 = vld [vmem:[#allocation42_spill] sm:$0xff] }
 0x19b   : > { %v906_v56 = vadd.f32 %v11091_v10, %v850_v23  ;;  %v905_v59 = vadd.f32 %v11092_v21, %v849_v57  ;;  %v1930_v4 = vmul.f32 %v7246_v63, %v1929_v43  ;;  %v7712_v23 = vadd.f32 %v7346_v49, %v334_v11 }
 0x19c   : > { %v7683_v12 = vpop.permute.xlu1 %1901  ;;  %v7692_v25 = vpop.permute.xlu0 %1899  ;;  %v1786_v29 = vsel %vm343_vm0, %v1784_v6, %v1785_v62  ;;  %v1798_v36 = vstv %s7660_s24  ;;  %v1939_v10 = vrot.slane %v1932_v27, 2  ;;  %v2379_v21 = vsel %vm343_vm0, %v2376_v58, %v2378_v55  ;;  %s7973_s24 = sld [smem:[#allocation3 + $0x3c]] }
 0x19d   : > { %v2013_v62 = vstv %s7669_s26  ;;  %v965_v6 = vadd.f32 %v7441_v7, %v906_v56  ;;  %v964_v43 = vadd.f32 %v7447_v5, %v905_v59  ;;  %v11094_v49 = vrot.slane %v7647_v41, 2  ;;  %v11096_v5 = vld [vmem:[#allocation26_spill] sm:$0xff]  ;;  %v11097_v59 = vld [vmem:[#allocation27_spill] sm:$0xff]  ;;  %s7995_s26 = sld [smem:[#allocation3 + $0x72]] }
 0x19e   : > { %2298 = vrot.lane.b32.xlu1 %v2295_v8, %s10932_s27  ;;  %2296 = vrot.lane.b32.xlu0 %v2293_v47, %s10932_s27  ;;  %v2520_v8 = vstv %s7653_s20  ;;  %v1937_v47 = vrot.slane %v1931_v3, 2  ;;  %v7734_v27 = vmul.f32 %v7223_v33, %v1798_v36  ;;  %v1936_v55 = vrot.slane %v1930_v4, 2  ;;  %s7931_s20 = sld [smem:[#allocation3 + $0x1e]] }
 0x19f   : > { %v2522_v54 = vmul.f32 %v7416_v34, %v2520_v8  ;;  %v2523_v37 = vmul.f32 %v7615_v52, %v2520_v8  ;;  %v7727_v11 = vsel %vm580_vm1, %v11094_v49, %v1213_v44  ;;  %v2521_v7 = vmul.f32 %v7427_v15, %v2520_v8 }
 0x1a0   : > { %v7702_v32 = vpop.permute.xlu1 %2492  ;;  %v7715_v57 = vpop.permute.xlu0 %2490  ;;  %v445_v56 = vadd.f32 %v11096_v5, %v7582_v13  ;;  %v444_v44 = vadd.f32 %v11097_v59, %v7596_v31  ;;  %v7743_v60 = vmul.f32 %v7234_v17, %v1798_v36  ;;  %v2015_v49 = vmul.f32 %v7223_v33, %v2013_v62  ;;  %v11099_v13 = vld [vmem:[#allocation41_spill] sm:$0xff]  ;;  %v11101_v31 = vld [vmem:[#allocation43_spill] sm:$0xff] }
 0x1a1   : > { %v2530_v8 = vrot.slane %v2523_v37, 2  ;;  %v2016_v4 = vmul.f32 %v7234_v17, %v2013_v62  ;;  %v1037_v5 = vadd.f32 %v11099_v13, %v965_v6  ;;  %v2014_v17 = vmul.f32 %v7246_v63, %v2013_v62  ;;  %v11104_v37 = vld [vmem:[#allocation45_spill] sm:$0xff]  ;;  %v11105_v13 = vld [vmem:[#allocation46_spill] sm:$0xff] }
 0x1a2   : > { %1791 = vrot.lane.b32.xlu1 %v1788_v42, %s10930_s7  ;;  %1789 = vrot.lane.b32.xlu0 %v1786_v29, %s10930_s7  ;;  %v2377_v42 = vsel %vm343_vm0, %v2375_v26, %v2376_v58  ;;  %v1940_v58 = vsel %vm580_vm1, %v1937_v47, %v1939_v10  ;;  %v2528_v26 = vrot.slane %v2522_v54, 2  ;;  %v529_v59 = vadd.f32 %v11101_v31, %v445_v56  ;;  %v11107_v62 = vld [vmem:[#allocation97_spill] sm:$0xff] }
 0x1a3   : > { %v528_v19 = vadd.f32 %v11103_v48, %v444_v44  ;;  %v1938_v54 = vsel %vm580_vm1, %v1936_v55, %v1937_v47  ;;  %v2527_v10 = vrot.slane %v2521_v7, 2  ;;  %v1121_v6 = vadd.f32 %v11104_v37, %v1037_v5  ;;  %v11112_v37 = vld [vmem:[#allocation51_spill] sm:$0xff] }
 0x1a4   : > { %v7731_v3 = vpop.permute.xlu1 %803  ;;  %v7745_v29 = vpop.permute.xlu0 %801  ;;  %v2531_v31 = vsel %vm580_vm1, %v2528_v26, %v2530_v8  ;;  %v7777_v55 = vadd.f32 %v11107_v62, %v333_v38  ;;  %v1808_v7 = vrot.slane %v7743_v60, 2  ;;  %v2020_v38 = vrot.slane %v2014_v17, 2  ;;  %v11111_v17 = vld [vmem:[#allocation50_spill] sm:$0xff] }
 0x1a5   : > { %11095 = vst [vmem:[#allocation23_spill] sm:$0xff] %v7731_v3  ;;  %11098 = vst [vmem:[#allocation34_spill] sm:$0xff] %v7745_v29  ;;  %v1036_v3 = vadd.f32 %v11100_v20, %v964_v43  ;;  %v1799_v20 = vmul.f32 %v7246_v63, %v1798_v36  ;;  %v606_v36 = vadd.f32 %v7455_v46, %v529_v59  ;;  %v11108_v46 = vld [vmem:[#allocation47_spill] sm:$0xff] }
 0x1a6   : > { %2382 = vrot.lane.b32.xlu1 %v2379_v21, %s10930_s7  ;;  %2380 = vrot.lane.b32.xlu0 %v2377_v42, %s10930_s7  ;;  %v2604_v21 = vstv %s7705_s28  ;;  %v2021_v42 = vrot.slane %v2015_v49, 2  ;;  %v605_v49 = vadd.f32 %v7458_v28, %v528_v19  ;;  %v1201_v60 = vadd.f32 %v7465_v50, %v1121_v6  ;;  %v11109_v28 = vld [vmem:[#allocation48_spill] sm:$0xff]  ;;  %s8022_s28 = sld [smem:[#allocation3 + $0x21]] }
 0x1a7   : > { %v1120_v43 = vadd.f32 %v11105_v13, %v1036_v3  ;;  %v7771_v48 = vmul.f32 %v7416_v34, %v2604_v21  ;;  %v2607_v47 = vmul.f32 %v7615_v52, %v2604_v21  ;;  %v1806_v3 = vrot.slane %v7734_v27, 2 }
 0x1a8   : > { %v7757_v29 = vpop.permute.xlu1 %1394  ;;  %v7766_v56 = vpop.permute.xlu0 %1392  ;;  %v2605_v8 = vmul.f32 %v7427_v15, %v2604_v21  ;;  %v682_v27 = vadd.f32 %v11108_v46, %v606_v36  ;;  %v1805_v5 = vrot.slane %v1799_v20, 2  ;;  %v681_v19 = vadd.f32 %v11109_v28, %v605_v49  ;;  %v11113_v20 = vld [vmem:[#allocation52_spill] sm:$0xff]  ;;  %v11116_v49 = vld [vmem:[#allocation53_spill] sm:$0xff] }
 0x1a9   : > { %11102 = vst [vmem:[#allocation35_spill] sm:$0xff] %v7757_v29  ;;  %11106 = vst [vmem:[#allocation36_spill] sm:$0xff] %v7766_v56  ;;  %v2023_v29 = vrot.slane %v2016_v4, 2  ;;  %v1200_v4 = vadd.f32 %v7473_v53, %v1120_v43  ;;  %v2612_v21 = vrot.slane %v7771_v48, 2  ;;  %v826_v13 = vstv %s7754_s29  ;;  %s8069_s29 = sld [smem:[#allocation3 + $0x57]] }
 0x1aa   : > { %1943 = vrot.lane.b32.xlu1 %v1940_v58, %s10932_s27  ;;  %1941 = vrot.lane.b32.xlu0 %v1938_v54, %s10932_s27  ;;  %v2529_v58 = vsel %vm580_vm1, %v2527_v10, %v2528_v26  ;;  %v2614_v54 = vrot.slane %v2607_v47, 2  ;;  %v11110_v10 = vld [vmem:[#allocation49_spill] sm:$0xff]  ;;  %v766_v6 = vadd.f32 %v11112_v37, %v682_v27  ;;  %v11115_v48 = vrot.slane %v7680_v35, 2  ;;  %v11117_v27 = vld [vmem:[#allocation54_spill] sm:$0xff]  ;;  %v11118_v35 = vld [vmem:[#allocation28_spill] sm:$0xff] }
 0x1ab   : > { %v2024_v26 = vsel %vm580_vm1, %v2021_v42, %v2023_v29  ;;  %v1273_v50 = vadd.f32 %v11110_v10, %v1201_v60  ;;  %v1272_v53 = vadd.f32 %v11111_v17, %v1200_v4  ;;  %v765_v29 = vadd.f32 %v11113_v20, %v681_v19  ;;  %v11123_v37 = vld [vmem:[#allocation55_spill] sm:$0xff] }
 0x1ac   : > { %v7783_v44 = vpop.permute.xlu1 %1985  ;;  %v7795_v59 = vpop.permute.xlu0 %1983  ;;  %v2022_v62 = vsel %vm580_vm1, %v2020_v38, %v2021_v42  ;;  %v2611_v36 = vrot.slane %v2605_v8, 2  ;;  %v7824_v60 = vsel %vm580_vm1, %v1806_v3, %v1808_v7  ;;  %v7827_v4 = vsel %vm580_vm1, %v1805_v5, %v1806_v3  ;;  %v7837_v38 = vld [vmem:[%s6498_s25 + $0x20] sm:$0xff]  ;;  %v11119_v5 = vld [vmem:[#allocation29_spill] sm:$0xff] }
 0x1ad   : > { %v1357_v46 = vadd.f32 %v11116_v49, %v1273_v50  ;;  %v7834_v42 = vadd.f32 %v11118_v35, %v7641_v61  ;;  %v7840_v8 = vmul.f32 %v7837_v38, %v826_v13  ;;  %v2615_v7 = vsel %vm580_vm1, %v2612_v21, %v2614_v54  ;;  %v11121_v54 = vld [vmem:[#allocation30_spill] sm:$0xff]  ;;  %v11125_v49 = vld [vmem:[#allocation56_spill] sm:$0xff] }
 0x1ae   : > { %2534 = vrot.lane.b32.xlu1 %v2531_v31, %s10932_s27  ;;  %2532 = vrot.lane.b32.xlu0 %v2529_v58, %s10932_s27  ;;  %v11114_v31 = vrot.slane %v7647_v41, 2  ;;  %v1356_v58 = vadd.f32 %v11117_v27, %v1272_v53  ;;  %v2104_v3 = vstv %s7774_s30  ;;  %v7848_v28 = vadd.f32 %v11119_v5, %v7674_v24  ;;  %v11127_v27 = vld [vmem:[#allocation57_spill] sm:$0xff]  ;;  %v11128_v35 = vld [vmem:[#allocation58_spill] sm:$0xff]  ;;  %v11129_v5 = vld [vmem:[#allocation59_spill] sm:$0xff]  ;;  %s8076_s30 = sld [smem:[#allocation3 + $0x3f]] }
 0x1af   : > { %v824_v19 = vadd.f32 %v7480_v22, %v766_v6  ;;  %v2305_v50 = vstv %s7785_s4  ;;  %v7865_v24 = vadd.f32 %v11121_v54, %v7712_v23  ;;  %v823_v22 = vadd.f32 %v7491_v45, %v765_v29  ;;  %v11130_v54 = vld [vmem:[#allocation60_spill] sm:$0xff]  ;;  %s8083_s4 = sld [smem:[#allocation3 + $0x42]] }
 0x1b0   : > { %v7810_v43 = vpop.permute.xlu1 %2576  ;;  %v7818_v47 = vsel %vm580_vm1, %v11115_v48, %v11114_v31  ;;  %v7829_v41 = vpop.permute.xlu0 %2574  ;;  %v1432_v17 = vstv %s7788_s5  ;;  %v2613_v53 = vsel %vm580_vm1, %v2611_v36, %v2612_v21  ;;  %v1429_v20 = vadd.f32 %v7519_v2, %v1356_v58  ;;  %s8123_s5 = sld [smem:[#allocation3 + $0x45]] }
 0x1b1   : > { %11122 = vst [vmem:[#allocation37_spill] sm:$0xff] %v7865_v24  ;;  %v864_v6 = vadd.f32 %v11123_v37, %v824_v19  ;;  %v2106_v23 = vmul.f32 %v7416_v34, %v2104_v3  ;;  %v2160_v48 = vstv %s7798_s6  ;;  %v2307_v45 = vmul.f32 %v7416_v34, %v2305_v50  ;;  %v11132_v37 = vld [vmem:[#allocation31_spill] sm:$0xff]  ;;  %s8164_s6 = sld [smem:[#allocation3 + $0x78]] }
 0x1b2   : > { %2027 = vrot.lane.b32.xlu1 %v2024_v26, %s10930_s7  ;;  %v7852_v26 = vld [vmem:[%s6498_s25 + $0x18] sm:$0xff]  ;;  %2025 = vrot.lane.b32.xlu0 %v2022_v62, %s10930_s7  ;;  %v2308_v29 = vmul.f32 %v7615_v52, %v2305_v50  ;;  %v2389_v62 = vstv %s7803_s8  ;;  %v863_v21 = vadd.f32 %v11125_v49, %v823_v22  ;;  %v7885_v36 = vmul.f32 %v7223_v33, %v1432_v17  ;;  %v11134_v49 = vld [vmem:[#allocation61_spill] sm:$0xff]  ;;  %s8178_s8 = sld [smem:[#allocation3 + $0x75]] }
 0x1b3   : > { %v7855_v61 = vmul.f32 %v7852_v26, %v826_v13  ;;  %v1430_v13 = vadd.f32 %v7507_v1, %v1357_v46  ;;  %v7888_v1 = vmul.f32 %v7246_v63, %v1432_v17  ;;  %v2105_v46 = vmul.f32 %v7427_v15, %v2104_v3 }
 0x1b4   : > { %v7858_v10 = vpop.permute.xlu1 %887  ;;  %v7875_v31 = vpop.permute.xlu0 %885  ;;  %v920_v19 = vadd.f32 %v11129_v5, %v864_v6  ;;  %v2306_v33 = vmul.f32 %v7427_v15, %v2305_v50  ;;  %v919_v63 = vadd.f32 %v11130_v54, %v863_v21  ;;  %v2162_v3 = vmul.f32 %v7416_v34, %v2160_v48 }
 0x1b5   : > { %11120 = vst [vmem:[#allocation24_spill] sm:$0xff] %v7858_v10  ;;  %11124 = vst [vmem:[#allocation38_spill] sm:$0xff] %v7875_v31  ;;  %v1462_v58 = vadd.f32 %v11127_v27, %v1430_v13  ;;  %v2391_v17 = vmul.f32 %v7416_v34, %v2389_v62  ;;  %v7909_v13 = vadd.f32 %v11132_v37, %v7777_v55  ;;  %v7912_v6 = vstv %s7842_s9  ;;  %v11135_v27 = vld [vmem:[#allocation62_spill] sm:$0xff]  ;;  %s8182_s9 = sld [smem:[#allocation3 + $0x5a]] }
 0x1b6   : > { %2618 = vrot.lane.b32.xlu1 %v2615_v7, %s10930_s7  ;;  %2616 = vrot.lane.b32.xlu0 %v2613_v53, %s10930_s7  ;;  %v1461_v7 = vadd.f32 %v11128_v35, %v1429_v20  ;;  %v2392_v53 = vmul.f32 %v7615_v52, %v2389_v62  ;;  %v2313_v50 = vrot.slane %v2307_v45, 1  ;;  %v2315_v20 = vrot.slane %v2308_v29, 1 }
 0x1b7   : > { %11133 = vst [vmem:[#allocation25_spill] sm:$0xff] %v7909_v13  ;;  %v1518_v21 = vadd.f32 %v11134_v49, %v1462_v58  ;;  %v2161_v5 = vmul.f32 %v7427_v15, %v2160_v48  ;;  %v2541_v54 = vstv %s7861_s10  ;;  %v2312_v55 = vrot.slane %v2306_v33, 1  ;;  %s8221_s10 = sld [smem:[#allocation3 + $0x5d]] }
 0x1b8   : > { %v7891_v2 = vpop.permute.xlu1 %1485  ;;  %v7901_v22 = vpop.permute.xlu0 %1483  ;;  %v1517_v35 = vadd.f32 %v11135_v27, %v1461_v7  ;;  %v2390_v45 = vmul.f32 %v7427_v15, %v2389_v62  ;;  %v981_v29 = vadd.f32 %v7564_v9, %v919_v63  ;;  %v7929_v58 = vmul.f32 %v7837_v38, %v7912_v6  ;;  %v11136_v7 = vld [vmem:[#allocation63_spill] sm:$0xff]  ;;  %v11137_v63 = vld [vmem:[#allocation64_spill] sm:$0xff] }
 0x1b9   : > { %11126 = vst [vmem:[#allocation39_spill] sm:$0xff] %v7891_v2  ;;  %11131 = vst [vmem:[#allocation40_spill] sm:$0xff] %v7901_v22  ;;  %v982_v22 = vadd.f32 %v7561_v14, %v920_v19  ;;  %v2397_v14 = vrot.slane %v2391_v17, 1  ;;  %v2399_v48 = vrot.slane %v2392_v53, 1  ;;  %v2316_v33 = vsel %vm343_vm0, %v2313_v50, %v2315_v20  ;;  %v11139_v17 = vld [vmem:[#allocation69_spill] sm:$0xff] }
 0x1ba   : > { %2111 = vrot.lane.b32.xlu1 %v2106_v23, %s10932_s27  ;;  %2109 = vrot.lane.b32.xlu0 %v2105_v46, %s10932_s27  ;;  %v2543_v62 = vmul.f32 %v7416_v34, %v2541_v54  ;;  %v2544_v9 = vmul.f32 %v7615_v52, %v2541_v54  ;;  %v1057_v37 = vadd.f32 %v11137_v63, %v981_v29  ;;  %v2396_v20 = vrot.slane %v2390_v45, 1  ;;  %v11140_v2 = vld [vmem:[#allocation65_spill] sm:$0xff]  ;;  %v11141_v63 = vld [vmem:[#allocation66_spill] sm:$0xff]  ;;  %v11145_v45 = vld [vmem:[#allocation72_spill] sm:$0xff] }
 0x1bb   : > { %v1058_v19 = vadd.f32 %v11136_v7, %v982_v22  ;;  %v1577_v49 = vadd.f32 %v7570_v30, %v1518_v21  ;;  %v1576_v27 = vadd.f32 %v7586_v0, %v1517_v35  ;;  %v2314_v22 = vsel %vm343_vm0, %v2312_v55, %v2313_v50  ;;  %v11142_v21 = vld [vmem:[#allocation70_spill] sm:$0xff] }
 0x1bc   : > { %v7917_v23 = vpop.permute.xlu1 %2083  ;;  %v7933_v46 = vpop.permute.xlu0 %2081  ;;  %v2542_v7 = vmul.f32 %v7427_v15, %v2541_v54  ;;  %v1141_v0 = vadd.f32 %v11142_v21, %v1057_v37  ;;  %v11144_v54 = vld [vmem:[#allocation71_spill] sm:$0xff]  ;;  %v1815_v56 = vstv %s7973_s24  ;;  %s8337_s24 = sld [smem:[#allocation3 + $0x63]] }
 0x1bd   : > { %v1142_v53 = vadd.f32 %v11139_v17, %v1058_v19  ;;  %v1649_v29 = vadd.f32 %v11140_v2, %v1577_v49  ;;  %v1648_v30 = vadd.f32 %v11141_v63, %v1576_v27  ;;  %v2549_v19 = vrot.slane %v2543_v62, 2  ;;  %v7967_v63 = vld [vmem:[%s6498_s25 + $0x28] sm:$0x3] }
 0x1be   : > { %2167 = vrot.lane.b32.xlu1 %v2162_v3, %s10930_s7  ;;  %2165 = vrot.lane.b32.xlu0 %v2161_v5, %s10930_s7  ;;  %v2625_v3 = vstv %s7894_s17  ;;  %v2400_v5 = vsel %vm343_vm0, %v2397_v14, %v2399_v48  ;;  %v2551_v17 = vrot.slane %v2544_v9, 2  ;;  %v11146_v27 = vstv %s7869_s11  ;;  %s8269_s17 = sld [smem:[#allocation3 + $0x60]] }
 0x1bf   : > { %v2627_v50 = vmul.f32 %v7416_v34, %v2625_v3  ;;  %v2628_v55 = vmul.f32 %v7615_v52, %v2625_v3  ;;  %v1733_v2 = vadd.f32 %v11144_v54, %v1649_v29  ;;  %v1732_v49 = vadd.f32 %v11145_v45, %v1648_v30 }
 0x1c0   : > { %v7944_v31 = vpop.permute.xlu1 %943  ;;  %v7953_v35 = vpop.permute.xlu0 %941  ;;  %v7964_v37 = vmul.f32 %v7416_v34, %v11146_v27  ;;  %v7971_v48 = vmul.f32 %v7967_v63, %v7912_v6  ;;  %v1218_v62 = vadd.f32 %v7727_v11, %v1142_v53  ;;  %v2398_v9 = vsel %vm343_vm0, %v2396_v20, %v2397_v14 }
 0x1c1   : > { %11138 = vst [vmem:[#allocation26_spill] sm:$0xff] %v7944_v31  ;;  %11143 = vst [vmem:[#allocation27_spill] sm:$0xff] %v7953_v35  ;;  %v2548_v29 = vrot.slane %v2542_v7, 2  ;;  %v2626_v30 = vmul.f32 %v7427_v15, %v2625_v3  ;;  %v1217_v21 = vadd.f32 %v7818_v47, %v1141_v0  ;;  %v1579_v45 = vstv %s7923_s19  ;;  %s8323_s19 = sld [smem:[#allocation3 + $0x7e]] }
 0x1c2   : > { %2319 = vrot.lane.b32.xlu1 %v2316_v33, %s10932_s27  ;;  %2317 = vrot.lane.b32.xlu0 %v2314_v22, %s10932_s27  ;;  %v2174_v27 = vstv %s7931_s20  ;;  %v11149_v22 = vld [vmem:[#allocation75_spill] sm:$0xff]  ;;  %v2552_v11 = vsel %vm580_vm1, %v2549_v19, %v2551_v17  ;;  %v2633_v14 = vrot.slane %v2627_v50, 2  ;;  %v2635_v53 = vrot.slane %v2628_v55, 2  ;;  %v11151_v50 = vld [vmem:[#allocation81_spill] sm:$0xff]  ;;  %s8329_s20 = sld [smem:[#allocation3 + $0x81]] }
 0x1c3   : > { %v1813_v3 = vadd.f32 %v7824_v60, %v1733_v2  ;;  %v1812_v47 = vadd.f32 %v7827_v4, %v1732_v49  ;;  %v994_v20 = vrot.slane %v7971_v48, 1  ;;  %v985_v7 = vmul.f32 %v7852_v26, %v7912_v6  ;;  %v8004_v4 = vld [vmem:[%s6498_s25 + $0x38] sm:$0xff]  ;;  %v8008_v6 = vld [vmem:[%s6498_s25 + $0x40] sm:$0x3]  ;;  %v8012_v48 = vld [vmem:[%s6498_s25 + $0x30] sm:$0xff] }
 0x1c4   : > { %v7976_v33 = vpop.permute.xlu1 %1541  ;;  %v7985_v35 = vpop.permute.xlu0 %1539  ;;  %v2632_v60 = vrot.slane %v2626_v30, 2  ;;  %v1581_v2 = vmul.f32 %v8004_v4, %v1579_v45  ;;  %v1582_v49 = vmul.f32 %v8008_v6, %v1579_v45  ;;  %v11153_v30 = vld [vmem:[#allocation78_spill] sm:$0xff]  ;;  %v2636_v54 = vsel %vm580_vm1, %v2633_v14, %v2635_v53 }
 0x1c5   : > { %11147 = vst [vmem:[#allocation41_spill] sm:$0xff] %v7976_v33  ;;  %11148 = vst [vmem:[#allocation42_spill] sm:$0xff] %v7985_v35  ;;  %v1294_v33 = vadd.f32 %v11149_v22, %v1218_v62  ;;  %v2550_v62 = vsel %vm580_vm1, %v2548_v29, %v2549_v19  ;;  %v11152_v19 = vld [vmem:[#allocation77_spill] sm:$0xff]  ;;  %v1884_v22 = vadd.f32 %v11153_v30, %v1812_v47  ;;  %v11155_v35 = vstv %s7869_s11  ;;  %s8262_s11 = sld [smem:[#allocation3 + $0x7b]] }
 0x1c6   : > { %2403 = vrot.lane.b32.xlu1 %v2400_v5, %s10930_s7  ;;  %2401 = vrot.lane.b32.xlu0 %v2398_v9, %s10930_s7  ;;  %v11150_v5 = vld [vmem:[#allocation76_spill] sm:$0xff]  ;;  %v1580_v9 = vmul.f32 %v8012_v48, %v1579_v45  ;;  %v1885_v29 = vadd.f32 %v11152_v19, %v1813_v3  ;;  %v2039_v31 = vmul.f32 %v7427_v15, %v11155_v35  ;;  %v991_v45 = vrot.slane %v985_v7, 1  ;;  %v11157_v3 = vld [vmem:[#allocation83_spill] sm:$0xff] }
 0x1c7   : > { %v1293_v17 = vadd.f32 %v11150_v5, %v1217_v21  ;;  %v1378_v55 = vadd.f32 %v11151_v50, %v1294_v33  ;;  %v2176_v21 = vmul.f32 %v7416_v34, %v2174_v27  ;;  %v11154_v5 = vld [vmem:[#allocation82_spill] sm:$0xff]  ;;  %v2177_v10 = vmul.f32 %v7615_v52, %v2174_v27  ;;  %v11158_v19 = vld [vmem:[#allocation84_spill] sm:$0xff] }
 0x1c8   : > { %v7998_v0 = vpop.permute.xlu1 %2139  ;;  %v8016_v33 = vpop.permute.xlu0 %2137  ;;  %v1969_v47 = vadd.f32 %v11157_v3, %v1885_v29  ;;  %v2634_v53 = vsel %vm580_vm1, %v2632_v60, %v2633_v14  ;;  %v1589_v16 = vrot.slane %v1582_v49, 1  ;;  %v1586_v35 = vrot.slane %v1580_v9, 1 }
 0x1c9   : > { %v1377_v50 = vadd.f32 %v11154_v5, %v1293_v17  ;;  %v1968_v17 = vadd.f32 %v11158_v19, %v1884_v22  ;;  %v1436_v30 = vadd.f32 %v7885_v36, %v1378_v55  ;;  %v1587_v5 = vrot.slane %v1581_v2, 1  ;;  %v11161_v2 = vld [vmem:[#allocation91_spill] sm:$0xff] }
 0x1ca   : > { %2555 = vrot.lane.b32.xlu1 %v2552_v11, %s10932_s27  ;;  %2553 = vrot.lane.b32.xlu0 %v2550_v62, %s10932_s27  ;;  %v2175_v7 = vmul.f32 %v7427_v15, %v2174_v27  ;;  %v11159_v62 = vld [vmem:[#allocation90_spill] sm:$0xff]  ;;  %v11160_v29 = vrot.slane %v7929_v58, 1  ;;  %v2182_v36 = vrot.slane %v2176_v21, 1  ;;  %v2184_v14 = vrot.slane %v2177_v10, 1 }
 0x1cb   : > { %v1435_v24 = vadd.f32 %v7888_v1, %v1377_v50  ;;  %v625_v55 = vstv %s7995_s26  ;;  %v1817_v60 = vmul.f32 %v8004_v4, %v1815_v56  ;;  %v1818_v27 = vmul.f32 %v8008_v6, %v1815_v56  ;;  %v11162_v50 = vld [vmem:[#allocation96_spill] sm:$0xff]  ;;  %s8341_s26 = sld [smem:[#allocation3 + $0x66]] }
 0x1cc   : > { %v8031_v11 = vpop.permute.xlu1 %1095  ;;  %v8038_v13 = vpop.permute.xlu0 %1093  ;;  %v8046_v22 = vsel %vm343_vm0, %v11160_v29, %v994_v20  ;;  %v2042_v1 = vadd.f32 %v7964_v37, %v1969_v47  ;;  %v2041_v9 = vadd.f32 %v2039_v31, %v1968_v17  ;;  %v11163_v21 = vmov %v11160_v29  ;;  %v11166_v37 = vld [vmem:[#allocation98_spill] sm:$0xff] }
 0x1cd   : > { %11156 = vst [vmem:[#allocation43_spill] sm:$0xff] %v8031_v11  ;;  %v1476_v11 = vadd.f32 %v11159_v62, %v1436_v30  ;;  %v1475_v49 = vadd.f32 %v11161_v2, %v1435_v24  ;;  %v8060_v10 = vsel %vm343_vm0, %v991_v45, %v11163_v21  ;;  %v1590_v3 = vsel %vm343_vm0, %v1587_v5, %v1589_v16  ;;  %v11164_v62 = vld [vmem:[#allocation92_spill] sm:$0xff]  ;;  %v11165_v24 = vld [vmem:[#allocation93_spill] sm:$0xff]  ;;  %v11169_v21 = vld [vmem:[#allocation103_spill] sm:$0xff] }
 0x1ce   : > { %2639 = vrot.lane.b32.xlu1 %v2636_v54, %s10930_s7  ;;  %2637 = vrot.lane.b32.xlu0 %v2634_v53, %s10930_s7  ;;  %v1588_v19 = vsel %vm343_vm0, %v1586_v35, %v1587_v5  ;;  %v2181_v30 = vrot.slane %v2175_v7, 1  ;;  %v2074_v29 = vadd.f32 %v11164_v62, %v2042_v1  ;;  %v2073_v2 = vadd.f32 %v11165_v24, %v2041_v9  ;;  %v11167_v5 = vld [vmem:[#allocation99_spill] sm:$0xff]  ;;  %v11168_v7 = vld [vmem:[#allocation100_spill] sm:$0xff] }
 0x1cf   : > { %v1532_v20 = vadd.f32 %v11162_v50, %v1476_v11  ;;  %v1531_v31 = vadd.f32 %v11166_v37, %v1475_v49  ;;  %v2410_v11 = vstv %s8022_s28  ;;  %v8073_v58 = vmul.f32 %v7599_v39, %v625_v55  ;;  %v11170_v24 = vld [vmem:[#allocation19_spill] sm:$0xff]  ;;  %v11173_v37 = vld [vmem:[#allocation104_spill] sm:$0xff]  ;;  %s8367_s28 = sld [smem:[#allocation3 + $0x84]] }
 0x1d0   : > { %v8052_v54 = vpop.permute.xlu1 %1686  ;;  %v8064_v53 = vpop.permute.xlu0 %1684  ;;  %v1823_v45 = vrot.slane %v1817_v60, 2  ;;  %v1825_v47 = vrot.slane %v1818_v27, 2  ;;  %v1816_v16 = vmul.f32 %v8012_v48, %v1815_v56  ;;  %v2130_v35 = vadd.f32 %v11167_v5, %v2074_v29  ;;  %v11174_v5 = vld [vmem:[#allocation20_spill] sm:$0xff] }
 0x1d1   : > { %v2129_v1 = vadd.f32 %v11168_v7, %v2073_v2  ;;  %v1594_v9 = vadd.f32 %v1590_v3, %v1532_v20  ;;  %v2185_v49 = vsel %vm343_vm0, %v2182_v36, %v2184_v14  ;;  %v2183_v39 = vsel %vm343_vm0, %v2181_v30, %v2182_v36  ;;  %v11171_v20 = vld [vmem:[#allocation67_spill] sm:$0xff] }
 0x1d2   : > { %v2412_v60 = vmul.f32 %v7416_v34, %v2410_v11  ;;  %v2413_v27 = vmul.f32 %v7615_v52, %v2410_v11  ;;  %v2411_v56 = vmul.f32 %v7427_v15, %v2410_v11  ;;  %v1593_v29 = vadd.f32 %v1588_v19, %v1531_v31 }
 0x1d3   : > { %v1670_v62 = vadd.f32 %v11169_v21, %v1594_v9  ;;  %v8093_v2 = vmul.f32 %v11170_v24, %v625_v55  ;;  %v8096_v14 = vmul.f32 %v7625_v40, %v625_v55  ;;  %v550_v36 = vadd.f32 %v11171_v20, %v7834_v42  ;;  %v11175_v40 = vld [vmem:[#allocation68_spill] sm:$0xff]  ;;  %v11177_v20 = vld [vmem:[#allocation106_spill] sm:$0xff] }
 0x1d4   : > { %v8078_v17 = vpop.permute.xlu1 %2277  ;;  %v8089_v50 = vpop.permute.xlu0 %2275  ;;  %v1826_v3 = vsel %vm580_vm1, %v1823_v45, %v1825_v47  ;;  %v1822_v30 = vrot.slane %v1816_v16, 2  ;;  %v1669_v11 = vadd.f32 %v11173_v37, %v1593_v29  ;;  %v2189_v19 = vadd.f32 %v2185_v49, %v2130_v35  ;;  %v11176_v47 = vld [vmem:[#allocation105_spill] sm:$0xff] }
 0x1d5   : > { %v2188_v31 = vadd.f32 %v2183_v39, %v2129_v1  ;;  %v1754_v7 = vadd.f32 %v11174_v5, %v1670_v62  ;;  %v549_v55 = vadd.f32 %v11175_v40, %v7848_v28  ;;  %v2418_v9 = vrot.slane %v2412_v60, 2  ;;  %v11180_v62 = vld [vmem:[#allocation21_spill] sm:$0xff] }
 0x1d6   : > { %v2420_v42 = vrot.slane %v2413_v27, 2  ;;  %v2417_v21 = vrot.slane %v2411_v56, 2  ;;  %v2261_v16 = vadd.f32 %v11176_v47, %v2189_v19  ;;  %v635_v35 = vrot.slane %v8093_v2, 2  ;;  %v11179_v27 = vld [vmem:[#allocation85_spill] sm:$0xff]  ;;  %v11182_v47 = vld [vmem:[#allocation74_spill] sm:$0xff] }
 0x1d7   : > { %v2260_v34 = vadd.f32 %v11177_v20, %v2188_v31  ;;  %v623_v1 = vadd.f32 %v7677_v18, %v550_v36  ;;  %v1220_v49 = vstv %s8069_s29  ;;  %v1824_v39 = vsel %vm580_vm1, %v1822_v30, %v1823_v45  ;;  %v11183_v20 = vld [vmem:[#allocation79_spill] sm:$0xff]  ;;  %s8373_s29 = sld [smem:[#allocation3 + $0x69]] }
 0x1d8   : > { %v8102_v15 = vpop.permute.xlu1 %1179  ;;  %v8108_v24 = vpop.permute.xlu0 %1177  ;;  %v2044_v28 = vstv %s8076_s30  ;;  %v2345_v56 = vadd.f32 %v11179_v27, %v2261_v16  ;;  %v1830_v19 = vadd.f32 %v1826_v3, %v1754_v7  ;;  %v2191_v5 = vstv %s8083_s4  ;;  %v8134_v3 = vld [vmem:[%s6498_s25 + $0x50] sm:$0xff]  ;;  %s8414_s30 = sld [smem:[#allocation3 + $0x87]] }
 0x1d9   : > { %11172 = vst [vmem:[#allocation44_spill] sm:$0xff] %v8102_v15  ;;  %v11178_v15 = vld [vmem:[#allocation32_spill] sm:$0xff]  ;;  %v2344_v37 = vadd.f32 %v11180_v62, %v2260_v34  ;;  %v622_v31 = vadd.f32 %v7686_v51, %v549_v55  ;;  %v2421_v18 = vsel %vm580_vm1, %v2418_v9, %v2420_v42  ;;  %v2419_v45 = vsel %vm580_vm1, %v2417_v21, %v2418_v9  ;;  %s5942_s4 = sld [smem:[#allocation3 + $0x8a]] }
 0x1da   : > { %v1753_v29 = vadd.f32 %v11178_v15, %v1669_v11  ;;  %v11181_v15 = vld [vmem:[#allocation73_spill] sm:$0xff]  ;;  %v632_v30 = vrot.slane %v8096_v14, 2  ;;  %v1906_v40 = vadd.f32 %v7683_v12, %v1830_v19  ;;  %v2046_v7 = vmul.f32 %v8134_v3, %v2044_v28 }
 0x1db   : > { %v703_v11 = vadd.f32 %v11181_v15, %v623_v1  ;;  %v702_v16 = vadd.f32 %v11182_v47, %v622_v31  ;;  %v2193_v55 = vmul.f32 %v8134_v3, %v2191_v5  ;;  %v2194_v9 = vmul.f32 %v7615_v52, %v2191_v5  ;;  %v8151_v15 = vld [vmem:[%s6498_s25 + $0x48] sm:$0xff] }
 0x1dc   : > { %v8118_v60 = vpop.permute.xlu1 %1770  ;;  %v8129_v36 = vpop.permute.xlu0 %1768  ;;  %v1829_v34 = vadd.f32 %v1824_v39, %v1753_v29  ;;  %v2425_v1 = vadd.f32 %v2421_v18, %v2345_v56  ;;  %v2424_v12 = vadd.f32 %v2419_v45, %v2344_v37  ;;  %v1990_v29 = vadd.f32 %v7783_v44, %v1906_v40  ;;  %v11184_v39 = vld [vmem:[#allocation80_spill] sm:$0xff] }
 0x1dd   : > { %v787_v51 = vadd.f32 %v11183_v20, %v703_v11  ;;  %v786_v27 = vadd.f32 %v11184_v39, %v702_v16  ;;  %v8147_v62 = vmul.f32 %v7837_v38, %v1220_v49  ;;  %v1223_v19 = vmul.f32 %v7967_v63, %v1220_v49 }
 0x1de   : > { %v1905_v21 = vadd.f32 %v7692_v25, %v1829_v34  ;;  %v2045_v11 = vmul.f32 %v8151_v15, %v2044_v28  ;;  %v2497_v25 = vadd.f32 %v7702_v32, %v2425_v1  ;;  %v2496_v56 = vadd.f32 %v7715_v57, %v2424_v12 }
 0x1df   : > { %v2192_v37 = vmul.f32 %v8151_v15, %v2191_v5  ;;  %v830_v18 = vadd.f32 %v7840_v8, %v787_v51  ;;  %v8162_v45 = vmul.f32 %v7852_v26, %v1220_v49  ;;  %v2199_v40 = vrot.slane %v2193_v55, 1  ;;  %v11185_v5 = vld [vmem:[#allocation86_spill] sm:$0xff] }
 0x1e0   : > { %v8141_v42 = vpop.permute.xlu1 %2361  ;;  %v8154_v31 = vpop.permute.xlu0 %2359  ;;  %v1989_v44 = vadd.f32 %v7795_v59, %v1905_v21  ;;  %v2201_v34 = vrot.slane %v2194_v9, 1  ;;  %v8169_v47 = vadd.f32 %v7810_v43, %v2497_v25  ;;  %v8172_v32 = vadd.f32 %v7829_v41, %v2496_v56  ;;  %v11187_v21 = vld [vmem:[#allocation94_spill] sm:$0xff] }
 0x1e1   : > { %v2048_v57 = vadd.f32 %v2046_v7, %v1990_v29  ;;  %v2427_v59 = vstv %s8123_s5  ;;  %v878_v16 = vadd.f32 %v11185_v5, %v830_v18  ;;  %v829_v8 = vadd.f32 %v7855_v61, %v786_v27  ;;  %v11186_v7 = vld [vmem:[#allocation87_spill] sm:$0xff]  ;;  %s5954_s5 = sld [smem:[#allocation3 + $0x8d]] }
 0x1e2   : > { %v1228_v49 = vrot.slane %v8147_v62, 2  ;;  %v1230_v20 = vrot.slane %v1223_v19, 2  ;;  %v2047_v55 = vadd.f32 %v2045_v11, %v1989_v44  ;;  %v2198_v41 = vrot.slane %v2192_v37, 1  ;;  %v11188_v11 = vld [vmem:[#allocation95_spill] sm:$0xff] }
 0x1e3   : > { %v2088_v43 = vadd.f32 %v7917_v23, %v2048_v57  ;;  %v877_v9 = vadd.f32 %v11186_v7, %v829_v8  ;;  %v934_v1 = vadd.f32 %v11187_v21, %v878_v16  ;;  %v2202_v61 = vsel %vm343_vm0, %v2199_v40, %v2201_v34 }
 0x1e4   : > { %v8166_v28 = vpop.permute.xlu1 %1331  ;;  %v8180_v51 = vpop.permute.xlu0 %1329  ;;  %v2429_v29 = vmul.f32 %v8134_v3, %v2427_v59  ;;  %v2660_v39 = vmul.f32 %v8169_v47, %v8169_v47  ;;  %v2659_v23 = vmul.f32 %v8172_v32, %v8172_v32  ;;  %v2087_v27 = vadd.f32 %v7933_v46, %v2047_v55 }
 0x1e5   : > { %v2144_v19 = vadd.f32 %v7998_v0, %v2088_v43  ;;  %v933_v25 = vadd.f32 %v11188_v11, %v877_v9  ;;  %v2430_v44 = vmul.f32 %v7615_v52, %v2427_v59  ;;  %v2646_v37 = vsel %vm2645_vm2, %v8172_v32, 0.0  ;;  %v11191_v11 = vld [vmem:[#allocation102_spill] sm:$0xff] }
 0x1e6   : > { %v2647_v18 = vsel %vm2645_vm2, %v8169_v47, 0.0  ;;  %v11189_v34 = vrot.slane %v8073_v58, 2  ;;  %v1231_v0 = vsel %vm580_vm1, %v1228_v49, %v1230_v20  ;;  %v1227_v57 = vrot.slane %v8162_v45, 2 }
 0x1e7   : > { %v2143_v52 = vadd.f32 %v8016_v33, %v2087_v27  ;;  %v999_v5 = vadd.f32 %v8046_v22, %v934_v1  ;;  %v8217_v16 = vstv %s8164_s6  ;;  %v2200_v2 = vsel %vm343_vm0, %v2198_v41, %v2199_v40  ;;  %v11190_v1 = vld [vmem:[#allocation101_spill] sm:$0xff] }
 0x1e8   : > { %v8188_v12 = vpop.permute.xlu1 %1922  ;;  %v8198_v56 = vpop.permute.xlu0 %1920  ;;  %v636_v46 = vsel %vm580_vm1, %v11189_v34, %v635_v35  ;;  %v2428_v43 = vmul.f32 %v8151_v15, %v2427_v59  ;;  %v2206_v35 = vadd.f32 %v2202_v61, %v2144_v19  ;;  %v2648_v55 = vadd.f32 %v2647_v18, %v2646_v37  ;;  %v11194_v37 = vld [vmem:[#allocation109_spill] sm:$0xff] }
 0x1e9   : > { %v2661_v20 = vsel %vm2645_vm2, %v2659_v23, 0.0  ;;  %v2662_v45 = vsel %vm2645_vm2, %v2660_v39, 0.0  ;;  %v998_v33 = vadd.f32 %v8060_v10, %v933_v25  ;;  %v832_v7 = vstv %s8178_s8  ;;  %v11193_v25 = vld [vmem:[#allocation107_spill] sm:$0xff] }
 0x1ea   : > { %v2435_v22 = vrot.slane %v2429_v29, 2  ;;  %v2437_v9 = vrot.slane %v2430_v44, 2  ;;  %v1079_v27 = vadd.f32 %v11190_v1, %v999_v5  ;;  %v1438_v40 = vstv %s8182_s9  ;;  %v11192_v29 = vld [vmem:[#allocation37_spill] sm:$0xff]  ;;  %v11196_v5 = vld [vmem:[#allocation108_spill] sm:$0xff] }
 0x1eb   : > { %v2282_v41 = vadd.f32 %v8078_v17, %v2206_v35  ;;  %v2205_v59 = vadd.f32 %v2200_v2, %v2143_v52  ;;  %v1078_v61 = vadd.f32 %v11191_v11, %v998_v33  ;;  %v8233_v23 = vmul.f32 %v7837_v38, %v8217_v16  ;;  %v11195_v52 = vld [vmem:[#allocation25_spill] sm:$0xff]  ;;  %v11197_v35 = vld [vmem:[#allocation110_spill] sm:$0xff] }
 0x1ec   : > { %v2514_v8 = vpop.permute.xlu1 %2513  ;;  %v2512_v21 = vpop.permute.xlu0 %2511  ;;  %v2434_v39 = vrot.slane %v2428_v43, 2  ;;  %v2663_v10 = vadd.f32 %v2662_v45, %v2661_v20  ;;  %v571_v44 = vadd.f32 %v11193_v25, %v11192_v29  ;;  %v1163_v18 = vadd.f32 %v11194_v37, %v1079_v27  ;;  %v11200_v25 = vld [vmem:[#allocation89_spill] sm:$0xff] }
 0x1ed   : > { %2649 = vadd.xlane.f32.xlu0 %v2648_v55  ;;  %v2281_v34 = vadd.f32 %v8089_v50, %v2205_v59  ;;  %v2366_v17 = vadd.f32 %v8141_v42, %v2282_v41  ;;  %v570_v2 = vadd.f32 %v11196_v5, %v11195_v52  ;;  %v1162_v55 = vadd.f32 %v11197_v35, %v1078_v61  ;;  %v11203_v5 = vld [vmem:[#allocation23_spill] sm:$0xff] }
 0x1ee   : > { %v1004_v43 = vmul.f32 %v7967_v63, %v8217_v16  ;;  %v2438_v20 = vsel %vm580_vm1, %v2435_v22, %v2437_v9  ;;  %v11198_v33 = vrot.slane %v8073_v58, 2  ;;  %v1229_v42 = vsel %vm580_vm1, %v1227_v57, %v1228_v49  ;;  %v11204_v35 = vld [vmem:[#allocation35_spill] sm:$0xff] }
 0x1ef   : > { %v2365_v1 = vadd.f32 %v8154_v31, %v2281_v34  ;;  %v834_v27 = vmul.f32 %v7837_v38, %v832_v7  ;;  %v833_v41 = vmul.f32 %v7852_v26, %v832_v7  ;;  %v1440_v9 = vmul.f32 %v8004_v4, %v1438_v40  ;;  %v11201_v34 = vld [vmem:[#allocation22_spill] sm:$0xff] }
 0x1f0   : > { %v8235_v19 = vpop.permute.xlu1 %1415  ;;  %v8248_v45 = vpop.permute.xlu0 %1413  ;;  %v634_v50 = vsel %vm580_vm1, %v632_v30, %v11198_v33  ;;  %v2436_v58 = vsel %vm580_vm1, %v2434_v39, %v2435_v22  ;;  %v640_v14 = vadd.f32 %v636_v46, %v571_v44  ;;  %v1235_v30 = vadd.f32 %v1231_v0, %v1163_v18  ;;  %v11202_v0 = vld [vmem:[#allocation33_spill] sm:$0xff]  ;;  %v11205_v33 = vld [vmem:[#allocation34_spill] sm:$0xff] }
 0x1f1   : > { %v1596_v11 = vstv %s8221_s10  ;;  %v2442_v62 = vadd.f32 %v2438_v20, %v2366_v17  ;;  %v639_v61 = vadd.f32 %v634_v50, %v570_v2  ;;  %v1234_v49 = vadd.f32 %v1229_v42, %v1162_v55  ;;  %v11206_v50 = vld [vmem:[#allocation36_spill] sm:$0xff] }
 0x1f2   : > { %2664 = vadd.xlane.f32.xlu1 %v2663_v10  ;;  %v1009_v31 = vrot.slane %v8233_v23, 1  ;;  %v1011_v57 = vrot.slane %v1004_v43, 1  ;;  %v11199_v10 = vld [vmem:[#allocation88_spill] sm:$0xff]  ;;  %v1315_v37 = vadd.f32 %v11200_v25, %v1235_v30  ;;  %v2441_v39 = vadd.f32 %v2436_v58, %v2365_v1 }
 0x1f3   : > { %v724_v29 = vadd.f32 %v11199_v10, %v640_v14  ;;  %v2518_v22 = vadd.f32 %v2514_v8, %v2442_v62  ;;  %v723_v46 = vadd.f32 %v11201_v34, %v639_v61  ;;  %v1314_v44 = vadd.f32 %v11202_v0, %v1234_v49 }
 0x1f4   : > { %v8265_v59 = vpop.permute.xlu1 %2006  ;;  %v8271_v7 = vpop.permute.xlu0 %2004  ;;  %v1598_v18 = vmul.f32 %v8004_v4, %v1596_v11  ;;  %v1599_v17 = vmul.f32 %v8008_v6, %v1596_v11  ;;  %v1399_v55 = vadd.f32 %v11204_v35, %v1315_v37  ;;  %v2517_v43 = vadd.f32 %v2512_v21, %v2441_v39 }
 0x1f5   : > { %v808_v2 = vadd.f32 %v11203_v5, %v724_v29  ;;  %v807_v8 = vadd.f32 %v11205_v33, %v723_v46  ;;  %v1398_v42 = vadd.f32 %v11206_v50, %v1314_v44  ;;  %v1439_v1 = vmul.f32 %v8012_v48, %v1438_v40 }
 0x1f6   : > { %v1002_v58 = vmul.f32 %v7852_v26, %v8217_v16  ;;  %v1012_v30 = vsel %vm343_vm0, %v1009_v31, %v1011_v57  ;;  %v1604_v49 = vrot.slane %v1598_v18, 1  ;;  %v1606_v10 = vrot.slane %v1599_v17, 1  ;;  %v11207_v18 = vld [vmem:[#allocation24_spill] sm:$0xff] }
 0x1f7   : > { %v1597_v40 = vmul.f32 %v8012_v48, %v1596_v11  ;;  %v1237_v29 = vstv %s8262_s11  ;;  %v836_v25 = vadd.f32 %v834_v27, %v808_v2  ;;  %v1442_v37 = vadd.f32 %v1440_v9, %v1399_v55  ;;  %v11208_v11 = vld [vmem:[#allocation39_spill] sm:$0xff]  ;;  %s10928_s11 = smov 1  }
 0x1f8   : > { %v2598_v52 = vpop.permute.xlu1 %2597  ;;  %v2596_v14 = vpop.permute.xlu0 %2595  ;;  %v835_v39 = vadd.f32 %v833_v41, %v807_v8  ;;  %v1441_v34 = vadd.f32 %v1439_v1, %v1398_v42  ;;  %v1832_v46 = vstv %s8269_s17  ;;  %v1008_v9 = vrot.slane %v1002_v58, 1  ;;  %v11210_v8 = vld [vmem:[#allocation40_spill] sm:$0xff]  ;;  %v11211_v42 = vld [vmem:[#allocation26_spill] sm:$0xff] }
 0x1f9   : > { %v8281_v20 = vadd.f32 %v2598_v52, %v2518_v22  ;;  %v8293_v62 = vadd.f32 %v2596_v14, %v2517_v43  ;;  %v892_v17 = vadd.f32 %v11207_v18, %v836_v25  ;;  %v1490_v52 = vadd.f32 %v11208_v11, %v1442_v37  ;;  %v11209_v43 = vld [vmem:[#allocation38_spill] sm:$0xff]  ;;  %v11212_v14 = vld [vmem:[#allocation41_spill] sm:$0xff] }
 0x1fa   : > { %v1607_v2 = vsel %vm343_vm0, %v1604_v49, %v1606_v10  ;;  %v1603_v35 = vrot.slane %v1597_v40, 1  ;;  %v1239_v55 = vmul.f32 %v7837_v38, %v1237_v29  ;;  %v891_v33 = vadd.f32 %v11209_v43, %v835_v39  ;;  %v11213_v40 = vld [vmem:[#allocation27_spill] sm:$0xff] }
 0x1fb   : > { %v2701_v21 = vmul.f32 %v8281_v20, %v8281_v20  ;;  %v2688_v61 = vsel %vm2645_vm2, %v8281_v20, 0.0  ;;  %v2700_v57 = vmul.f32 %v8293_v62, %v8293_v62  ;;  %v2687_v22 = vsel %vm2645_vm2, %v8293_v62, 0.0 }
 0x1fc   : > { %v8299_v16 = vpop.permute.xlu1 %1499  ;;  %v8306_v0 = vpop.permute.xlu0 %1497  ;;  %v2689_v44 = vadd.f32 %v2688_v61, %v2687_v22  ;;  %v1489_v50 = vadd.f32 %v11210_v8, %v1441_v34  ;;  %v948_v1 = vadd.f32 %v11211_v42, %v892_v17  ;;  %v1546_v61 = vadd.f32 %v11212_v14, %v1490_v52 }
 0x1fd   : > { %v2702_v5 = vsel %vm2645_vm2, %v2700_v57, 0.0  ;;  %v2703_v27 = vsel %vm2645_vm2, %v2701_v21, 0.0  ;;  %v1240_v25 = vmul.f32 %v7967_v63, %v1237_v29  ;;  %v1834_v58 = vmul.f32 %v8004_v4, %v1832_v46  ;;  %v11214_v57 = vld [vmem:[#allocation42_spill] sm:$0xff] }
 0x1fe   : > { %2690 = vadd.xlane.f32.xlu0 %v2689_v44  ;;  %v1835_v21 = vmul.f32 %v8008_v6, %v1832_v46  ;;  %v2704_v10 = vadd.f32 %v2703_v27, %v2702_v5  ;;  %v947_v37 = vadd.f32 %v11213_v40, %v891_v33  ;;  %v1545_v22 = vadd.f32 %v11214_v57, %v1489_v50  ;;  %v11216_v33 = vld [vmem:[#allocation44_spill] sm:$0xff] }
 0x1ff   : > { %v1010_v39 = vsel %vm343_vm0, %v1008_v9, %v1009_v31  ;;  %v1605_v63 = vsel %vm343_vm0, %v1603_v35, %v1604_v49  ;;  %v1238_v34 = vmul.f32 %v7852_v26, %v1237_v29  ;;  %v1833_v44 = vmul.f32 %v8012_v48, %v1832_v46  ;;  %v11215_v49 = vld [vmem:[#allocation43_spill] sm:$0xff] }
 0x200   : > { %v8314_v41 = vpop.permute.xlu1 %2097  ;;  %v8325_v38 = vpop.permute.xlu0 %2095  ;;  %v1016_v17 = vadd.f32 %v1012_v30, %v948_v1  ;;  %v1611_v11 = vadd.f32 %v1607_v2, %v1546_v61  ;;  %v1245_v52 = vrot.slane %v1239_v55, 2  ;;  %v1247_v5 = vrot.slane %v1240_v25, 2 }
 0x201   : > { %v1840_v23 = vrot.slane %v1834_v58, 2  ;;  %v1842_v27 = vrot.slane %v1835_v21, 2  ;;  %v1015_v26 = vadd.f32 %v1010_v39, %v947_v37  ;;  %v1610_v46 = vadd.f32 %v1605_v63, %v1545_v22 }
 0x202   : > { %2705 = vadd.xlane.f32.xlu0 %v2704_v10  ;;  %v1100_v9 = vadd.f32 %v11215_v49, %v1016_v17  ;;  %v1691_v29 = vadd.f32 %v8052_v54, %v1611_v11  ;;  %v1244_v35 = vrot.slane %v1238_v34, 2  ;;  %v1839_v43 = vrot.slane %v1833_v44, 2 }
 0x203   : > { %v1099_v2 = vadd.f32 %v8038_v13, %v1015_v26  ;;  %v1690_v55 = vadd.f32 %v8064_v53, %v1610_v46  ;;  %v1248_v42 = vsel %vm580_vm1, %v1245_v52, %v1247_v5  ;;  %v1843_v1 = vsel %vm580_vm1, %v1840_v23, %v1842_v27 }
 0x204   : > { %v8339_v18 = vpop.permute.xlu1 %1555  ;;  %v8343_v31 = vpop.permute.xlu0 %1553  ;;  %v1184_v8 = vadd.f32 %v11216_v33, %v1100_v9  ;;  %v1775_v50 = vadd.f32 %v8118_v60, %v1691_v29  ;;  %v1444_v25 = vstv %s8323_s19  ;;  %v1613_v13 = vstv %s8329_s20 }
 0x205   : > { %v1183_v14 = vadd.f32 %v8108_v24, %v1099_v2  ;;  %v1774_v61 = vadd.f32 %v8129_v36, %v1690_v55  ;;  %v1246_v58 = vsel %vm580_vm1, %v1244_v35, %v1245_v52  ;;  %v1841_v53 = vsel %vm580_vm1, %v1839_v43, %v1840_v23  ;;  %v8381_v52 = vld [vmem:[%s6498_s25 + $0x58] sm:$0x3] }
 0x206   : > { %v1252_v10 = vadd.f32 %v1248_v42, %v1184_v8  ;;  %v1847_v60 = vadd.f32 %v1843_v1, %v1775_v50  ;;  %v2050_v40 = vstv %s8337_s24  ;;  %v2208_v37 = vstv %s8341_s26  ;;  %s6386_s26 = smov 2  }
 0x207   : > { %v1446_v57 = vmul.f32 %v8004_v4, %v1444_v25  ;;  %v1615_v24 = vmul.f32 %v8004_v4, %v1613_v13  ;;  %v1251_v39 = vadd.f32 %v1246_v58, %v1183_v14  ;;  %v1846_v34 = vadd.f32 %v1841_v53, %v1774_v61 }
 0x208   : > { %v8347_v30 = vpop.permute.xlu1 %2153  ;;  %v8355_v54 = vpop.permute.xlu0 %2151  ;;  %v1336_v22 = vadd.f32 %v8166_v28, %v1252_v10  ;;  %v1927_v63 = vadd.f32 %v8188_v12, %v1847_v60  ;;  %v2052_v44 = vmul.f32 %v8134_v3, %v2050_v40  ;;  %v1616_v17 = vmul.f32 %v8008_v6, %v1613_v13 }
 0x209   : > { %v2210_v11 = vmul.f32 %v8134_v3, %v2208_v37  ;;  %v2211_v5 = vmul.f32 %v8381_v52, %v2208_v37  ;;  %v1335_v27 = vadd.f32 %v8180_v51, %v1251_v39  ;;  %v1926_v49 = vadd.f32 %v8198_v56, %v1846_v34 }
 0x20a   : > { %v1420_v28 = vadd.f32 %v8235_v19, %v1336_v22  ;;  %v2011_v12 = vadd.f32 %v8265_v59, %v1927_v63  ;;  %v1445_v9 = vmul.f32 %v8012_v48, %v1444_v25  ;;  %v2051_v26 = vmul.f32 %v8151_v15, %v2050_v40 }
 0x20b   : > { %v1419_v46 = vadd.f32 %v8248_v45, %v1335_v27  ;;  %v2010_v35 = vadd.f32 %v8271_v7, %v1926_v49  ;;  %v1621_v43 = vrot.slane %v1615_v24, 1  ;;  %v1614_v51 = vmul.f32 %v8012_v48, %v1613_v13 }
 0x20c   : > { %v8363_v21 = vpop.permute.xlu1 %1707  ;;  %v8371_v36 = vpop.permute.xlu0 %1705  ;;  %v1623_v2 = vrot.slane %v1616_v17, 1  ;;  %v2216_v56 = vrot.slane %v2210_v11, 1  ;;  %v2218_v55 = vrot.slane %v2211_v5, 1  ;;  %v2209_v19 = vmul.f32 %v8151_v15, %v2208_v37 }
 0x20d   : > { %v1448_v33 = vadd.f32 %v1446_v57, %v1420_v28  ;;  %v2054_v8 = vadd.f32 %v2052_v44, %v2011_v12  ;;  %v1849_v42 = vstv %s8367_s28  ;;  %v2444_v1 = vstv %s8373_s29  ;;  %s5966_s28 = sld [smem:[#allocation6 + $0x1]] }
 0x20e   : > { %v1447_v61 = vadd.f32 %v1445_v9, %v1419_v46  ;;  %v2053_v7 = vadd.f32 %v2051_v26, %v2010_v35  ;;  %v1624_v25 = vsel %vm343_vm0, %v1621_v43, %v1623_v2  ;;  %v1620_v13 = vrot.slane %v1614_v51, 1  ;;  %s5967_s29 = sld [smem:[#allocation6 + $0x25]] }
 0x20f   : > { %v1504_v14 = vadd.f32 %v8299_v16, %v1448_v33  ;;  %v2102_v45 = vadd.f32 %v8314_v41, %v2054_v8  ;;  %v2219_v58 = vsel %vm343_vm0, %v2216_v56, %v2218_v55  ;;  %v2215_v53 = vrot.slane %v2209_v19, 1 }
 0x210   : > { %v2299_v23 = vpop.permute.xlu1 %2298  ;;  %v2297_v29 = vpop.permute.xlu0 %2296  ;;  %v1503_v60 = vadd.f32 %v8306_v0, %v1447_v61  ;;  %v2101_v40 = vadd.f32 %v8325_v38, %v2053_v7  ;;  %v1851_v24 = vmul.f32 %v8004_v4, %v1849_v42  ;;  %v1852_v41 = vmul.f32 %v8008_v6, %v1849_v42 }
 0x211   : > { %v1560_v37 = vadd.f32 %v8339_v18, %v1504_v14  ;;  %v2158_v57 = vadd.f32 %v8347_v30, %v2102_v45  ;;  %v2446_v22 = vmul.f32 %v8134_v3, %v2444_v1  ;;  %v2447_v39 = vmul.f32 %v8381_v52, %v2444_v1 }
 0x212   : > { %v1559_v63 = vadd.f32 %v8343_v31, %v1503_v60  ;;  %v2157_v34 = vadd.f32 %v8355_v54, %v2101_v40  ;;  %v1622_v0 = vsel %vm343_vm0, %v1620_v13, %v1621_v43  ;;  %v2217_v38 = vsel %vm343_vm0, %v2215_v53, %v2216_v56 }
 0x213   : > { %v1850_v30 = vmul.f32 %v8012_v48, %v1849_v42  ;;  %v2445_v44 = vmul.f32 %v8151_v15, %v2444_v1  ;;  %v1628_v4 = vadd.f32 %v1624_v25, %v1560_v37  ;;  %v2223_v6 = vadd.f32 %v2219_v58, %v2158_v57 }
 0x214   : > { %v1792_v59 = vpop.permute.xlu1 %1791  ;;  %v1790_v50 = vpop.permute.xlu0 %1789  ;;  %v1857_v17 = vrot.slane %v1851_v24, 2  ;;  %v1859_v11 = vrot.slane %v1852_v41, 2  ;;  %v2452_v31 = vrot.slane %v2446_v22, 2  ;;  %v2454_v27 = vrot.slane %v2447_v39, 2 }
 0x215   : > { %v1712_v54 = vadd.f32 %v8363_v21, %v1628_v4  ;;  %v1627_v49 = vadd.f32 %v1622_v0, %v1559_v63  ;;  %v2303_v28 = vadd.f32 %v2299_v23, %v2223_v6  ;;  %v2222_v12 = vadd.f32 %v2217_v38, %v2157_v34 }
 0x216   : > { %v1856_v9 = vrot.slane %v1850_v30, 2  ;;  %v2451_v48 = vrot.slane %v2445_v44, 2  ;;  %v1860_v2 = vsel %vm580_vm1, %v1857_v17, %v1859_v11  ;;  %v2455_v56 = vsel %vm580_vm1, %v2452_v31, %v2454_v27 }
 0x217   : > { %v1711_v46 = vadd.f32 %v8371_v36, %v1627_v49  ;;  %v2302_v35 = vadd.f32 %v2297_v29, %v2222_v12  ;;  %v1796_v43 = vadd.f32 %v1792_v59, %v1712_v54  ;;  %v2056_v14 = vstv %s8414_s30  ;;  %s5968_s30 = sld [smem:[#allocation6 + $0x49]] }
 0x218   : > { %v2383_v10 = vpop.permute.xlu1 %2382  ;;  %v2381_v16 = vpop.permute.xlu0 %2380  ;;  %v1858_v21 = vsel %vm580_vm1, %v1856_v9, %v1857_v17  ;;  %v2453_v23 = vsel %vm580_vm1, %v2451_v48, %v2452_v31  ;;  %v2225_v36 = vstv %s5942_s4  ;;  %v2058_v13 = vmul.f32 %v8134_v3, %v2056_v14  ;;  %s5969_s4 = sld [smem:[#allocation6 + $0x6d]] }
 0x219   : > { %v2387_v51 = vadd.f32 %v2383_v10, %v2303_v28  ;;  %v1795_v19 = vadd.f32 %v1790_v50, %v1711_v46  ;;  %v2386_v33 = vadd.f32 %v2381_v16, %v2302_v35  ;;  %v1864_v42 = vadd.f32 %v1860_v2, %v1796_v43 }
 0x21a   : > { %v2227_v50 = vmul.f32 %v8134_v3, %v2225_v36  ;;  %v2228_v58 = vmul.f32 %v8381_v52, %v2225_v36  ;;  %v2057_v57 = vmul.f32 %v8151_v15, %v2056_v14  ;;  %v2226_v16 = vmul.f32 %v8151_v15, %v2225_v36 }
 0x21b   : > { %v2459_v1 = vadd.f32 %v2455_v56, %v2387_v51  ;;  %v1863_v61 = vadd.f32 %v1858_v21, %v1795_v19  ;;  %v2458_v7 = vadd.f32 %v2453_v23, %v2386_v33  ;;  %v2461_v38 = vstv %s5954_s5  ;;  %s5970_s5 = sld [smem:[#allocation6 + $0x2]] }
 0x21c   : > { %v1944_v18 = vpop.permute.xlu1 %1943  ;;  %v1942_v5 = vpop.permute.xlu0 %1941  ;;  %v2233_v34 = vrot.slane %v2227_v50, 1  ;;  %v2235_v0 = vrot.slane %v2228_v58, 1  ;;  %v2232_v11 = vrot.slane %v2226_v16, 1  ;;  %v2463_v12 = vmul.f32 %v8134_v3, %v2461_v38 }
 0x21d   : > { %v1948_v59 = vadd.f32 %v1944_v18, %v1864_v42  ;;  %v1947_v53 = vadd.f32 %v1942_v5, %v1863_v61  ;;  %v2464_v9 = vmul.f32 %v8381_v52, %v2461_v38  ;;  %v2462_v43 = vmul.f32 %v8151_v15, %v2461_v38 }
 0x21e   : > { %v2236_v28 = vsel %vm343_vm0, %v2233_v34, %v2235_v0  ;;  %v2234_v35 = vsel %vm343_vm0, %v2232_v11, %v2233_v34 }
 0x21f   : > { %v2471_v19 = vrot.slane %v2464_v9, 2  ;;  %v2468_v23 = vrot.slane %v2462_v43, 2 }
 0x220   : > { %v2535_v26 = vpop.permute.xlu1 %2534  ;;  %v2533_v55 = vpop.permute.xlu0 %2532 }
 0x221   : > { %v2539_v45 = vadd.f32 %v2535_v26, %v2459_v1  ;;  %v2538_v10 = vadd.f32 %v2533_v55, %v2458_v7  ;;  %v2469_v55 = vrot.slane %v2463_v12, 2 }
 0x223   : > { %v2472_v52 = vsel %vm580_vm1, %v2469_v55, %v2471_v19  ;;  %v2470_v36 = vsel %vm580_vm1, %v2468_v23, %v2469_v55 }
 0x224   : > { %v2028_v8 = vpop.permute.xlu1 %2027  ;;  %v2026_v29 = vpop.permute.xlu0 %2025 }
 0x225   : > { %v2032_v60 = vadd.f32 %v2028_v8, %v1948_v59  ;;  %v2031_v24 = vadd.f32 %v2026_v29, %v1947_v53 }
 0x227   : > { %v2060_v30 = vadd.f32 %v2058_v13, %v2032_v60  ;;  %v2059_v31 = vadd.f32 %v2057_v57, %v2031_v24 }
 0x228   : > { %v2619_v25 = vpop.permute.xlu1 %2618  ;;  %v2617_v37 = vpop.permute.xlu0 %2616 }
 0x229   : > { %v8426_v40 = vadd.f32 %v2619_v25, %v2539_v45  ;;  %v8432_v22 = vadd.f32 %v2617_v37, %v2538_v10 }
 0x22b   : > { %v2742_v41 = vmul.f32 %v8426_v40, %v8426_v40  ;;  %v2729_v39 = vsel %vm2645_vm2, %v8426_v40, 0.0  ;;  %v2741_v18 = vmul.f32 %v8432_v22, %v8432_v22  ;;  %v2728_v44 = vsel %vm2645_vm2, %v8432_v22, 0.0 }
 0x22c   : > { %v2112_v63 = vpop.permute.xlu1 %2111  ;;  %v2110_v6 = vpop.permute.xlu0 %2109  ;;  %v2730_v17 = vadd.f32 %v2729_v39, %v2728_v44 }
 0x22d   : > { %v2744_v4 = vsel %vm2645_vm2, %v2742_v41, 0.0  ;;  %v2116_v5 = vadd.f32 %v2112_v63, %v2060_v30  ;;  %v2743_v27 = vsel %vm2645_vm2, %v2741_v18, 0.0  ;;  %v2115_v26 = vadd.f32 %v2110_v6, %v2059_v31 }
 0x22e   : > { %2731 = vadd.xlane.f32.xlu1 %v2730_v17  ;;  %v2745_v49 = vadd.f32 %v2744_v4, %v2743_v27 }
 0x230   : > { %v2168_v54 = vpop.permute.xlu1 %2167  ;;  %v2166_v46 = vpop.permute.xlu0 %2165  ;;  %2746 = vadd.xlane.f32.xlu0 %v2745_v49 }
 0x231   : > { %v2172_v48 = vadd.f32 %v2168_v54, %v2116_v5  ;;  %v2171_v51 = vadd.f32 %v2166_v46, %v2115_v26 }
 0x233   : > { %v2240_v2 = vadd.f32 %v2236_v28, %v2172_v48  ;;  %v2239_v33 = vadd.f32 %v2234_v35, %v2171_v51 }
 0x234   : > { %v2320_v56 = vpop.permute.xlu1 %2319  ;;  %v2318_v21 = vpop.permute.xlu0 %2317 }
 0x235   : > { %v2324_v8 = vadd.f32 %v2320_v56, %v2240_v2  ;;  %v2323_v42 = vadd.f32 %v2318_v21, %v2239_v33 }
 0x238   : > { %v2404_v3 = vpop.permute.xlu1 %2403  ;;  %v2402_v14 = vpop.permute.xlu0 %2401 }
 0x239   : > { %v2408_v1 = vadd.f32 %v2404_v3, %v2324_v8  ;;  %v2407_v29 = vadd.f32 %v2402_v14, %v2323_v42 }
 0x23b   : > { %v2476_v59 = vadd.f32 %v2472_v52, %v2408_v1  ;;  %v2475_v61 = vadd.f32 %v2470_v36, %v2407_v29 }
 0x23c   : > { %v2556_v15 = vpop.permute.xlu1 %2555  ;;  %v2554_v45 = vpop.permute.xlu0 %2553 }
 0x23d   : > { %v2560_v7 = vadd.f32 %v2556_v15, %v2476_v59  ;;  %v2559_v13 = vadd.f32 %v2554_v45, %v2475_v61 }
 0x240   : > { %v2640_v25 = vpop.permute.xlu1 %2639  ;;  %v2638_v58 = vpop.permute.xlu0 %2637 }
 0x241   : > { %v8449_v50 = vadd.f32 %v2640_v25, %v2560_v7  ;;  %v8453_v10 = vadd.f32 %v2638_v58, %v2559_v13 }
 0x243   : > { %v2783_v53 = vmul.f32 %v8449_v50, %v8449_v50  ;;  %v2770_v60 = vsel %vm2645_vm2, %v8449_v50, 0.0  ;;  %v2782_v37 = vmul.f32 %v8453_v10, %v8453_v10  ;;  %v2769_v57 = vsel %vm2645_vm2, %v8453_v10, 0.0 }
 0x244   : > { %v2771_v24 = vadd.f32 %v2770_v60, %v2769_v57 }
 0x245   : > { %v2785_v16 = vsel %vm2645_vm2, %v2783_v53, 0.0  ;;  %v2784_v41 = vsel %vm2645_vm2, %v2782_v37, 0.0 }
 0x246   : > { %2772 = vadd.xlane.f32.xlu1 %v2771_v24  ;;  %v2786_v39 = vadd.f32 %v2785_v16, %v2784_v41 }
 0x248   : > { %2787 = vadd.xlane.f32.xlu0 %v2786_v39 }
 0x276   : > { %v2650_v63 = vpop.xlane.xlu0 %2649 }
 0x277   : > { %v2651_v34 = vrot.slane %v2650_v63, 4 }
 0x279   : > { %v2652_v0 = vadd.f32 %v2651_v34, %v2650_v63 }
 0x27b   : > { %v2665_v38 = vpop.xlane.xlu1 %2664  ;;  %v2653_v30 = vrot.slane %v2652_v0, 2 }
 0x27c   : > { %v2666_v18 = vrot.slane %v2665_v38, 4 }
 0x27d   : > { %v2654_v4 = vadd.f32 %v2653_v30, %v2652_v0 }
 0x27e   : > { %v2667_v44 = vadd.f32 %v2666_v18, %v2665_v38 }
 0x27f   : > { %v2655_v17 = vrot.slane %v2654_v4, 1 }
 0x280   : > { %v2668_v6 = vrot.slane %v2667_v44, 2 }
 0x281   : > { %v2656_v5 = vadd.f32 %v2655_v17, %v2654_v4 }
 0x282   : > { %v2669_v11 = vadd.f32 %v2668_v6, %v2667_v44 }
 0x283   : > { %6125 = vpush %v2656_v5 }
 0x284   : > { %v2670_v31 = vrot.slane %v2669_v11, 1 }
 0x286   : > { %v2671_v27 = vadd.f32 %v2670_v31, %v2669_v11 }
 0x287   : > { %v2691_v54 = vpop.xlane.xlu0 %2690 }
 0x288   : > { %6127 = vpush %v2671_v27  ;;  %v2692_v49 = vrot.slane %v2691_v54, 4 }
 0x28a   : > { %v2693_v28 = vadd.f32 %v2692_v49, %v2691_v54 }
 0x28b   : > { %v2706_v12 = vpop.xlane.xlu0 %2705 }
 0x28c   : > { %v2707_v9 = vrot.slane %v2706_v12, 4  ;;  %v2694_v26 = vrot.slane %v2693_v28, 2 }
 0x28e   : > { %v2708_v48 = vadd.f32 %v2707_v9, %v2706_v12  ;;  %v2695_v46 = vadd.f32 %v2694_v26, %v2693_v28 }
 0x290   : > { %v2696_v35 = vrot.slane %v2695_v46, 1  ;;  %v2709_v43 = vrot.slane %v2708_v48, 2 }
 0x292   : > { %v2697_v51 = vadd.f32 %v2696_v35, %v2695_v46  ;;  %v2710_v2 = vadd.f32 %v2709_v43, %v2708_v48 }
 0x294   : > { %6129 = vpush %v2697_v51  ;;  %v2711_v56 = vrot.slane %v2710_v2, 1 }
 0x296   : > { %v2712_v55 = vadd.f32 %v2711_v56, %v2710_v2 }
 0x298   : > { %6131 = vpush %v2712_v55 }
 0x2b4   : > { %s6126_s6 = spop %6125 }
 0x2b5   : > { %v2658_v19 = vstv %s6126_s6  ;;  %s5971_s6 = sld [smem:[#allocation6 + $0x26]] }
 0x2b6   : > { %v2674_v33 = vmul.f32 0.00390625, %v2658_v19 }
 0x2b7   : > { %v2732_v21 = vpop.xlane.xlu1 %2731 }
 0x2b8   : > { %v2733_v23 = vrot.slane %v2732_v21, 4  ;;  %v2676_v52 = vmul.f32 %v2674_v33, %v2674_v33  ;;  %v2679_v39 = vsub.f32 %v8172_v32, %v2674_v33  ;;  %v2680_v63 = vsub.f32 %v8169_v47, %v2674_v33 }
 0x2b9   : > { %s6128_s8 = spop %6127  ;;  %v2747_v42 = vpop.xlane.xlu0 %2746 }
 0x2ba   : > { %v2673_v8 = vstv %s6128_s8  ;;  %v2734_v1 = vadd.f32 %v2733_v23, %v2732_v21  ;;  %v2748_v14 = vrot.slane %v2747_v42, 4  ;;  %s5972_s8 = sld [smem:[#allocation6 + $0x4a]] }
 0x2bb   : > { %v2675_v3 = vmul.f32 0.00390625, %v2673_v8 }
 0x2bc   : > { %v2749_v29 = vadd.f32 %v2748_v14, %v2747_v42  ;;  %v2735_v59 = vrot.slane %v2734_v1, 2 }
 0x2bd   : > { %v2677_v36 = vsub.f32 %v2675_v3, %v2676_v52 }
 0x2be   : > { %v2736_v61 = vadd.f32 %v2735_v59, %v2734_v1  ;;  %v2750_v45 = vrot.slane %v2749_v29, 2 }
 0x2bf   : > { %v2678_v15 = vmax.f32 %v2677_v36, 0.0 }
 0x2c0   : > { %v2737_v25 = vrot.slane %v2736_v61, 1  ;;  %v2751_v13 = vadd.f32 %v2750_v45, %v2749_v29 }
 0x2c1   : > { %v2681_v7 = vadd.f32 1e-05, %v2678_v15 }
 0x2c2   : > { %v2738_v58 = vadd.f32 %v2737_v25, %v2736_v61  ;;  %v2752_v53 = vrot.slane %v2751_v13, 1 }
 0x2c3   : > { %6223 = vrsqrt.f32 %v2681_v7 }
 0x2c4   : > { %6133 = vpush %v2738_v58  ;;  %v2753_v60 = vadd.f32 %v2752_v53, %v2751_v13 }
 0x2c5   : > { %s6130_s9 = spop %6129 }
 0x2c6   : > { %v2699_v37 = vstv %s6130_s9  ;;  %6135 = vpush %v2753_v60  ;;  %s5973_s9 = sld [smem:[#allocation6 + $0x6e]] }
 0x2c7   : > { %v2715_v57 = vmul.f32 0.00390625, %v2699_v37 }
 0x2c9   : > { %s6132_s10 = spop %6131  ;;  %v2717_v41 = vmul.f32 %v2715_v57, %v2715_v57  ;;  %v2720_v46 = vsub.f32 %v8293_v62, %v2715_v57  ;;  %v2721_v43 = vsub.f32 %v8281_v20, %v2715_v57 }
 0x2ca   : > { %v2714_v16 = vstv %s6132_s10  ;;  %s6002_s10 = sld [smem:[#allocation6 + $0xa]] }
 0x2cb   : > { %v2716_v24 = vmul.f32 0.00390625, %v2714_v16 }
 0x2cd   : > { %v2718_v34 = vsub.f32 %v2716_v24, %v2717_v41 }
 0x2cf   : > { %v2719_v38 = vmax.f32 %v2718_v34, 0.0  ;;  %v2773_v18 = vpop.xlane.xlu1 %2772 }
 0x2d0   : > { %v6224_v0 = vpop.eup %6223  ;;  %v2774_v4 = vrot.slane %v2773_v18, 4 }
 0x2d1   : > { %v2684_v30 = vmul.f32 %v6224_v0, %v2680_v63  ;;  %v2683_v44 = vmul.f32 %v6224_v0, %v2679_v39  ;;  %v2722_v6 = vadd.f32 1e-05, %v2719_v38  ;;  %v2788_v17 = vpop.xlane.xlu0 %2787 }
 0x2d2   : > { %v2775_v31 = vadd.f32 %v2774_v4, %v2773_v18  ;;  %v2789_v27 = vrot.slane %v2788_v17, 4 }
 0x2d3   : > { %v2686_v11 = vmax.f32 %v2684_v30, 0.0  ;;  %v2685_v5 = vmax.f32 %v2683_v44, 0.0  ;;  %6225 = vrsqrt.f32 %v2722_v6 }
 0x2d4   : > { %v2790_v47 = vadd.f32 %v2789_v27, %v2788_v17  ;;  %v2776_v32 = vrot.slane %v2775_v31, 2 }
 0x2d5   : > { %2814 = vrot.lane.b32.xlu0 %v2686_v11, %s10928_s11  ;;  %2812 = vrot.lane.b32.xlu1 %v2685_v5, %s10928_s11 }
 0x2d6   : > { %v2777_v54 = vadd.f32 %v2776_v32, %v2775_v31  ;;  %v2791_v49 = vrot.slane %v2790_v47, 2 }
 0x2d8   : > { %v2778_v28 = vrot.slane %v2777_v54, 1  ;;  %v2792_v12 = vadd.f32 %v2791_v49, %v2790_v47 }
 0x2da   : > { %v2779_v9 = vadd.f32 %v2778_v28, %v2777_v54  ;;  %v2793_v26 = vrot.slane %v2792_v12, 1 }
 0x2dc   : > { %6137 = vpush %v2779_v9  ;;  %v2794_v48 = vadd.f32 %v2793_v26, %v2792_v12 }
 0x2de   : > { %6139 = vpush %v2794_v48 }
 0x2e0   : > { %v6226_v35 = vpop.eup %6225 }
 0x2e1   : > { %v2724_v51 = vmul.f32 %v6226_v35, %v2720_v46  ;;  %v2725_v56 = vmul.f32 %v6226_v35, %v2721_v43 }
 0x2e3   : > { %v2726_v2 = vmax.f32 %v2724_v51, 0.0  ;;  %v2727_v55 = vmax.f32 %v2725_v56, 0.0 }
 0x2e5   : > { %2827 = vrot.lane.b32.xlu1 %v2726_v2, %s10928_s11 }
 0x2e9   : > { %2829 = vrot.lane.b32.xlu1 %v2727_v55, %s10928_s11 }
 0x2f5   : > { %s6134_s17 = spop %6133 }
 0x2f6   : > { %v2740_v19 = vstv %s6134_s17  ;;  %s6003_s17 = sld [smem:[#allocation6 + $0x2e]] }
 0x2f7   : > { %v2756_v33 = vmul.f32 0.00390625, %v2740_v19  ;;  %s6136_s19 = spop %6135 }
 0x2f8   : > { %v2755_v21 = vstv %s6136_s19  ;;  %s6004_s19 = sld [smem:[#allocation6 + $0x52]] }
 0x2f9   : > { %v2757_v23 = vmul.f32 0.00390625, %v2755_v21  ;;  %v2758_v8 = vmul.f32 %v2756_v33, %v2756_v33  ;;  %v2761_v20 = vsub.f32 %v8432_v22, %v2756_v33  ;;  %v2762_v42 = vsub.f32 %v8426_v40, %v2756_v33 }
 0x2fb   : > { %v2759_v3 = vsub.f32 %v2757_v23, %v2758_v8 }
 0x2fd   : > { %v2760_v62 = vmax.f32 %v2759_v3, 0.0 }
 0x2ff   : > { %v2763_v52 = vadd.f32 1e-05, %v2760_v62 }
 0x301   : > { %6227 = vrsqrt.f32 %v2763_v52 }
 0x30d   : > { %s6138_s20 = spop %6137 }
 0x30e   : > { %v6228_v1 = vpop.eup %6227  ;;  %v2781_v14 = vstv %s6138_s20  ;;  %s6005_s20 = sld [smem:[#allocation6 + $0x76]] }
 0x30f   : > { %v2797_v36 = vmul.f32 0.00390625, %v2781_v14  ;;  %s6140_s24 = spop %6139  ;;  %v2766_v29 = vmul.f32 %v6228_v1, %v2762_v42  ;;  %v2765_v59 = vmul.f32 %v6228_v1, %v2761_v20 }
 0x310   : > { %v2796_v15 = vstv %s6140_s24  ;;  %s6006_s24 = sld [smem:[#allocation6 + $0xb]] }
 0x311   : > { %v2798_v61 = vmul.f32 0.00390625, %v2796_v15  ;;  %v2799_v45 = vmul.f32 %v2797_v36, %v2797_v36  ;;  %v2768_v7 = vmax.f32 %v2766_v29, 0.0  ;;  %v2767_v25 = vmax.f32 %v2765_v59, 0.0 }
 0x312   : > { %v2802_v40 = vsub.f32 %v8453_v10, %v2797_v36  ;;  %v2803_v53 = vsub.f32 %v8449_v50, %v2797_v36  ;;  %v3040_v29 = vstv %s5966_s28  ;;  %s6008_s28 = sld [smem:[#allocation6 + $0x53]] }
 0x313   : > { %v2800_v13 = vsub.f32 %v2798_v61, %v2799_v45  ;;  %2842 = vrot.lane.b32.xlu1 %v2768_v7, %s10928_s11  ;;  %2840 = vrot.lane.b32.xlu0 %v2767_v25, %s10928_s11  ;;  %v3054_v7 = vstv %s5967_s29  ;;  %s6009_s29 = sld [smem:[#allocation6 + $0x77]] }
 0x315   : > { %v2801_v22 = vmax.f32 %v2800_v13, 0.0 }
 0x317   : > { %v2804_v58 = vadd.f32 1e-05, %v2801_v22  ;;  %v3068_v22 = vstv %s5968_s30  ;;  %s6038_s30 = sld [smem:[#allocation6 + $0x13]] }
 0x319   : > { %6229 = vrsqrt.f32 %v2804_v58 }
 0x326   : > { %v6230_v60 = vpop.eup %6229 }
 0x327   : > { %v2807_v37 = vmul.f32 %v6230_v60, %v2803_v53  ;;  %v2806_v57 = vmul.f32 %v6230_v60, %v2802_v40  ;;  %v3082_v60 = vstv %s5969_s4  ;;  %s6039_s4 = sld [smem:[#allocation6 + $0x37]] }
 0x329   : > { %v2809_v16 = vmax.f32 %v2807_v37, 0.0  ;;  %v2808_v24 = vmax.f32 %v2806_v57, 0.0 }
 0x32b   : > { %2855 = vrot.lane.b32.xlu1 %v2809_v16, %s10928_s11  ;;  %2853 = vrot.lane.b32.xlu0 %v2808_v24, %s10928_s11  ;;  %s8791_s11 = sld [smem:[#allocation6 + $0x7a]] }
 0x347   : > { %v2813_v41 = vpop.permute.xlu1 %2812  ;;  %v2815_v39 = vpop.permute.xlu0 %2814 }
 0x348   : > { %2819 = vst.msk [vmem:[#allocation2 + $0x1] sm:$0xff] %vm2818_vm3, %v2813_v41  ;;  %2820 = vst.msk [vmem:[#allocation2 + $0x9] sm:$0xff] %vm2818_vm3, %v2815_v39 }
 0x349   : > { %2822 = vst.msk [vmem:[#allocation2 - $0x1] sm:$0x2] %vm2821_vm4, %v2813_v41  ;;  %v3096_v41 = vstv %s5970_s5  ;;  %s6040_s5 = sld [smem:[#allocation6 + $0x5b]] }
 0x34a   : > { %2824 = vst.msk [vmem:[#allocation2 + $0xb] sm:$0x40] %vm2823_vm5, %v2815_v39 }
 0x34f   : > { %v2865_v10 = vld [vmem:[#allocation2 + $0x8] sm:$0xff] }
 0x350   : > { %v2864_v50 = vld [vmem:[#allocation2] sm:$0xff]  ;;  %2872 = vrot.lane.b32.xlu1 %v2865_v10, %s10930_s7  ;;  %v3110_v10 = vstv %s5971_s6  ;;  %s6041_s6 = sld [smem:[#allocation6 + $0x7f]] }
 0x351   : > { %2870 = vrot.lane.b32.xlu0 %v2864_v50, %s10930_s7  ;;  %v2866_v63 = vld [vmem:[#allocation2 + $0x10] sm:$0x3] }
 0x355   : > { %2874 = vrot.lane.b32.xlu0 %v2866_v63, %s10930_s7 }
 0x357   : > { %v2828_v34 = vpop.permute.xlu1 %2827 }
 0x358   : > { %2834 = vst.msk [vmem:[#allocation2 + $0x19] sm:$0xff] %vm2818_vm3, %v2828_v34 }
 0x359   : > { %2836 = vst.msk [vmem:[#allocation2 + $0x17] sm:$0x2] %vm2821_vm4, %v2828_v34 }
 0x35b   : > { %v2830_v0 = vpop.permute.xlu1 %2829 }
 0x35c   : > { %2835 = vst.msk [vmem:[#allocation2 + $0x21] sm:$0xff] %vm2818_vm3, %v2830_v0 }
 0x35d   : > { %2837 = vst.msk [vmem:[#allocation2 + $0x23] sm:$0x40] %vm2823_vm5, %v2830_v0  ;;  %v3124_v0 = vstv %s5972_s8  ;;  %s6042_s8 = sld [smem:[#allocation6 + $0x14]] }
 0x360   : > { %v2904_v38 = vld [vmem:[#allocation2 + $0x18] sm:$0xff] }
 0x361   : > { %2910 = vrot.lane.b32.xlu1 %v2904_v38, %s10930_s7 }
 0x363   : > { %v2905_v18 = vld [vmem:[#allocation2 + $0x20] sm:$0xff] }
 0x364   : > { %v2906_v30 = vld [vmem:[#allocation2 + $0x28] sm:$0x3]  ;;  %2912 = vrot.lane.b32.xlu0 %v2905_v18, %s10930_s7 }
 0x365   : > { %2914 = vrot.lane.b32.xlu1 %v2906_v30, %s10930_s7  ;;  %v3138_v30 = vstv %s5973_s9  ;;  %s6043_s9 = sld [smem:[#allocation6 + $0x38]] }
 0x385   : > { %v2843_v44 = vpop.permute.xlu1 %2842  ;;  %v2841_v4 = vpop.permute.xlu0 %2840 }
 0x386   : > { %2848 = vst.msk [vmem:[#allocation2 + $0x39] sm:$0xff] %vm2818_vm3, %v2843_v44  ;;  %2847 = vst.msk [vmem:[#allocation2 + $0x31] sm:$0xff] %vm2818_vm3, %v2841_v4 }
 0x387   : > { %2850 = vst.msk [vmem:[#allocation2 + $0x3b] sm:$0x40] %vm2823_vm5, %v2843_v44 }
 0x388   : > { %2849 = vst.msk [vmem:[#allocation2 + $0x2f] sm:$0x2] %vm2821_vm4, %v2841_v4 }
 0x38d   : > { %v2941_v6 = vld [vmem:[#allocation2 + $0x38] sm:$0xff] }
 0x38e   : > { %2948 = vrot.lane.b32.xlu1 %v2941_v6, %s10930_s7  ;;  %v2942_v11 = vld [vmem:[#allocation2 + $0x40] sm:$0x3] }
 0x38f   : > { %v2940_v17 = vld [vmem:[#allocation2 + $0x30] sm:$0xff] }
 0x390   : > { %2946 = vrot.lane.b32.xlu0 %v2940_v17, %s10930_s7 }
 0x394   : > { %2950 = vrot.lane.b32.xlu0 %v2942_v11, %s10930_s7  ;;  %v3651_v11 = vstv %s6002_s10  ;;  %s6044_s10 = sld [smem:[#allocation6 + $0x5c]] }
 0x39d   : > { %v2856_v5 = vpop.permute.xlu1 %2855  ;;  %v2854_v31 = vpop.permute.xlu0 %2853 }
 0x39e   : > { %2861 = vst.msk [vmem:[#allocation2 + $0x51] sm:$0xff] %vm2818_vm3, %v2856_v5  ;;  %2860 = vst.msk [vmem:[#allocation2 + $0x49] sm:$0xff] %vm2818_vm3, %v2854_v31 }
 0x39f   : > { %2863 = vst.msk [vmem:[#allocation2 + $0x53] sm:$0x40] %vm2823_vm5, %v2856_v5 }
 0x3a0   : > { %2862 = vst.msk [vmem:[#allocation2 + $0x47] sm:$0x2] %vm2821_vm4, %v2854_v31 }
 0x3a5   : > { %v2977_v27 = vld [vmem:[#allocation2 + $0x50] sm:$0xff] }
 0x3a6   : > { %2984 = vrot.lane.b32.xlu0 %v2977_v27, %s10930_s7  ;;  %v2978_v32 = vld [vmem:[#allocation2 + $0x58] sm:$0x3]  ;;  %v3665_v27 = vstv %s6003_s17  ;;  %s6045_s17 = sld [smem:[#allocation6 + $0x80]] }
 0x3a7   : > { %v2976_v47 = vld [vmem:[#allocation2 + $0x48] sm:$0xff] }
 0x3a8   : > { %2982 = vrot.lane.b32.xlu1 %v2976_v47, %s10930_s7 }
 0x3ac   : > { %2986 = vrot.lane.b32.xlu1 %v2978_v32, %s10930_s7 }
 0x3c2   : > { %v2873_v54 = vpop.permute.xlu1 %2872 }
 0x3c3   : > { %v2871_v49 = vpop.permute.xlu0 %2870  ;;  %2881 = vst.msk [vmem:[#allocation2 + $0x8] sm:$0xff] %vm2879_vm6, %v2873_v54  ;;  %v3679_v54 = vstv %s6004_s19  ;;  %s6074_s19 = sld [smem:[#allocation6 + $0x1c]] }
 0x3c4   : > { %2880 = vst.msk [vmem:[#allocation2] sm:$0xff] %vm2879_vm6, %v2871_v49 }
 0x3c7   : > { %v2875_v28 = vpop.permute.xlu0 %2874 }
 0x3c8   : > { %2883 = vst.msk [vmem:[#allocation2 + $0x10] sm:$0x3] %vm2882_vm7, %v2875_v28 }
 0x3ca   : > { %v2885_v12 = vld [vmem:[#allocation2 + $0x8] sm:$0xff] }
 0x3cb   : > { %v2884_v9 = vld [vmem:[#allocation2] sm:$0xff]  ;;  %2892 = vrot.lane.b32.xlu1 %v2885_v12, %s6386_s26  ;;  %v3693_v12 = vstv %s6005_s20  ;;  %s5978_s20 = sld [smem:[#allocation6 + $0x4]] }
 0x3cc   : > { %2890 = vrot.lane.b32.xlu0 %v2884_v9, %s6386_s26 }
 0x3cf   : > { %v2886_v26 = vld [vmem:[#allocation2 + $0x10] sm:$0x3] }
 0x3d0   : > { %2894 = vrot.lane.b32.xlu0 %v2886_v26, %s6386_s26 }
 0x3d3   : > { %v2911_v48 = vpop.permute.xlu1 %2910 }
 0x3d4   : > { %2919 = vst.msk [vmem:[#allocation2 + $0x18] sm:$0xff] %vm2879_vm6, %v2911_v48  ;;  %v3707_v48 = vstv %s6006_s24  ;;  %s5979_s24 = sld [smem:[#allocation6 + $0x28]] }
 0x3d6   : > { %v2913_v35 = vpop.permute.xlu0 %2912 }
 0x3d7   : > { %v2915_v46 = vpop.permute.xlu1 %2914  ;;  %2920 = vst.msk [vmem:[#allocation2 + $0x20] sm:$0xff] %vm2879_vm6, %v2913_v35 }
 0x3d8   : > { %2921 = vst.msk [vmem:[#allocation2 + $0x28] sm:$0x3] %vm2882_vm7, %v2915_v46 }
 0x3db   : > { %v2922_v43 = vld [vmem:[#allocation2 + $0x18] sm:$0xff] }
 0x3dc   : > { %2928 = vrot.lane.b32.xlu1 %v2922_v43, %s6386_s26 }
 0x3de   : > { %v2923_v2 = vld [vmem:[#allocation2 + $0x20] sm:$0xff] }
 0x3df   : > { %v2924_v51 = vld [vmem:[#allocation2 + $0x28] sm:$0x3]  ;;  %2930 = vrot.lane.b32.xlu0 %v2923_v2, %s6386_s26 }
 0x3e0   : > { %2932 = vrot.lane.b32.xlu1 %v2924_v51, %s6386_s26 }
 0x400   : > { %v2949_v56 = vpop.permute.xlu1 %2948 }
 0x401   : > { %2956 = vst.msk [vmem:[#allocation2 + $0x38] sm:$0xff] %vm2879_vm6, %v2949_v56  ;;  %v3735_v56 = vstv %s6008_s28  ;;  %s5980_s28 = sld [smem:[#allocation6 + $0x4c]] }
 0x402   : > { %v2947_v55 = vpop.permute.xlu0 %2946 }
 0x403   : > { %2955 = vst.msk [vmem:[#allocation2 + $0x30] sm:$0xff] %vm2879_vm6, %v2947_v55 }
 0x406   : > { %v2951_v19 = vpop.permute.xlu0 %2950 }
 0x407   : > { %2957 = vst.msk [vmem:[#allocation2 + $0x40] sm:$0x3] %vm2882_vm7, %v2951_v19 }
 0x408   : > { %v2959_v33 = vld [vmem:[#allocation2 + $0x38] sm:$0xff] }
 0x409   : > { %2966 = vrot.lane.b32.xlu1 %v2959_v33, %s6386_s26 }
 0x40a   : > { %v2958_v21 = vld [vmem:[#allocation2 + $0x30] sm:$0xff] }
 0x40b   : > { %2964 = vrot.lane.b32.xlu0 %v2958_v21, %s6386_s26 }
 0x40e   : > { %v2960_v23 = vld [vmem:[#allocation2 + $0x40] sm:$0x3] }
 0x40f   : > { %2968 = vrot.lane.b32.xlu0 %v2960_v23, %s6386_s26  ;;  %v3749_v23 = vstv %s6009_s29  ;;  %s5981_s29 = sld [smem:[#allocation6 + $0x70]] }
 0x418   : > { %v2985_v3 = vpop.permute.xlu0 %2984 }
 0x419   : > { %2992 = vst.msk [vmem:[#allocation2 + $0x50] sm:$0xff] %vm2879_vm6, %v2985_v3 }
 0x41a   : > { %v2983_v8 = vpop.permute.xlu1 %2982 }
 0x41b   : > { %2991 = vst.msk [vmem:[#allocation2 + $0x48] sm:$0xff] %vm2879_vm6, %v2983_v8 }
 0x41e   : > { %v2987_v62 = vpop.permute.xlu1 %2986 }
 0x41f   : > { %2993 = vst.msk [vmem:[#allocation2 + $0x58] sm:$0x3] %vm2882_vm7, %v2987_v62 }
 0x420   : > { %v2995_v20 = vld [vmem:[#allocation2 + $0x50] sm:$0xff] }
 0x421   : > { %3002 = vrot.lane.b32.xlu0 %v2995_v20, %s6386_s26 }
 0x422   : > { %v2994_v52 = vld [vmem:[#allocation2 + $0x48] sm:$0xff] }
 0x423   : > { %3000 = vrot.lane.b32.xlu1 %v2994_v52, %s6386_s26  ;;  %v4262_v52 = vstv %s6038_s30  ;;  %s5982_s30 = sld [smem:[#allocation6 + $0x5]] }
 0x426   : > { %v2996_v42 = vld [vmem:[#allocation2 + $0x58] sm:$0x3] }
 0x427   : > { %3004 = vrot.lane.b32.xlu1 %v2996_v42, %s6386_s26  ;;  %s6007_s26 = sld [smem:[#allocation6 + $0x2f]] }
 0x42d   : > { %v3721_v43 = vstv %s6007_s26  ;;  %s6075_s26 = sld [smem:[#allocation6 + $0x40]] }
 0x43d   : > { %v2893_v1 = vpop.permute.xlu1 %2892 }
 0x43e   : > { %v2891_v14 = vpop.permute.xlu0 %2890  ;;  %2901 = vst.msk [vmem:[#allocation2 + $0x8] sm:$0xff] %vm2899_vm8, %v2893_v1 }
 0x43f   : > { %2900 = vst.msk [vmem:[#allocation2] sm:$0xff] %vm2899_vm8, %v2891_v14 }
 0x442   : > { %v2895_v36 = vpop.permute.xlu0 %2894 }
 0x443   : > { %2903 = vst.msk [vmem:[#allocation2 + $0x10] sm:$0x3] %vm2902_vm9, %v2895_v36  ;;  %v4276_v36 = vstv %s6039_s4  ;;  %s5983_s4 = sld [smem:[#allocation6 + $0x29]] }
 0x445   : > { %v8534_v59 = vld [vmem:[#allocation2 + $0x8] sm:$0xff] }
 0x446   : > { %v8536_v15 = vld [vmem:[#allocation2] sm:$0xff]  ;;  %v3042_v61 = vmul.f32 %v3040_v29, %v8534_v59  ;;  %v3056_v25 = vmul.f32 %v3054_v7, %v8534_v59  ;;  %v3070_v58 = vmul.f32 %v3068_v22, %v8534_v59  ;;  %v3084_v37 = vmul.f32 %v3082_v60, %v8534_v59 }
 0x447   : > { %v3041_v45 = vmul.f32 %v3040_v29, %v8536_v15  ;;  %v3055_v13 = vmul.f32 %v3054_v7, %v8536_v15  ;;  %v3069_v40 = vmul.f32 %v3068_v22, %v8536_v15  ;;  %v3083_v57 = vmul.f32 %v3082_v60, %v8536_v15 }
 0x448   : > { %3047 = vrot.lane.b32.xlu1 %v3042_v61, %s10932_s27  ;;  %v3098_v39 = vmul.f32 %v3096_v41, %v8534_v59  ;;  %v3097_v50 = vmul.f32 %v3096_v41, %v8536_v15  ;;  %v3112_v63 = vmul.f32 %v3110_v10, %v8534_v59  ;;  %v3111_v34 = vmul.f32 %v3110_v10, %v8536_v15 }
 0x449   : > { %3045 = vrot.lane.b32.xlu0 %v3041_v45, %s10932_s27  ;;  %v3126_v38 = vmul.f32 %v3124_v0, %v8534_v59  ;;  %v3125_v18 = vmul.f32 %v3124_v0, %v8536_v15  ;;  %v3140_v44 = vmul.f32 %v3138_v30, %v8534_v59  ;;  %v3139_v4 = vmul.f32 %v3138_v30, %v8536_v15 }
 0x44a   : > { %v4290_v45 = vstv %s6040_s5  ;;  %s5984_s5 = sld [smem:[#allocation6 + $0x4d]] }
 0x44c   : > { %3061 = vrot.lane.b32.xlu1 %v3056_v25, %s10932_s27 }
 0x44d   : > { %3059 = vrot.lane.b32.xlu0 %v3055_v13, %s10932_s27  ;;  %v4304_v13 = vstv %s6041_s6  ;;  %s5985_s6 = sld [smem:[#allocation6 + $0x71]] }
 0x44e   : > { %v2929_v53 = vpop.permute.xlu1 %2928 }
 0x44f   : > { %2937 = vst.msk [vmem:[#allocation2 + $0x18] sm:$0xff] %vm2899_vm8, %v2929_v53 }
 0x450   : > { %3075 = vrot.lane.b32.xlu1 %v3070_v58, %s10932_s27 }
 0x451   : > { %3073 = vrot.lane.b32.xlu0 %v3069_v40, %s10932_s27  ;;  %v2931_v24 = vpop.permute.xlu0 %2930  ;;  %v4318_v40 = vstv %s6042_s8  ;;  %s5990_s8 = sld [smem:[#allocation6 + $0x7]] }
 0x452   : > { %v2933_v16 = vpop.permute.xlu1 %2932  ;;  %2938 = vst.msk [vmem:[#allocation2 + $0x20] sm:$0xff] %vm2899_vm8, %v2931_v24 }
 0x453   : > { %2939 = vst.msk [vmem:[#allocation2 + $0x28] sm:$0x3] %vm2902_vm9, %v2933_v16  ;;  %v4332_v16 = vstv %s6043_s9  ;;  %s5991_s9 = sld [smem:[#allocation6 + $0x2b]] }
 0x454   : > { %3089 = vrot.lane.b32.xlu1 %v3084_v37, %s10932_s27 }
 0x455   : > { %3087 = vrot.lane.b32.xlu0 %v3083_v57, %s10932_s27 }
 0x456   : > { %v8571_v6 = vld [vmem:[#allocation2 + $0x18] sm:$0xff] }
 0x457   : > { %v3652_v5 = vmul.f32 %v3651_v11, %v8571_v6  ;;  %v3666_v47 = vmul.f32 %v3665_v27, %v8571_v6  ;;  %v3680_v49 = vmul.f32 %v3679_v54, %v8571_v6  ;;  %v3694_v9 = vmul.f32 %v3693_v12, %v8571_v6 }
 0x458   : > { %3103 = vrot.lane.b32.xlu1 %v3098_v39, %s10930_s7  ;;  %v3708_v46 = vmul.f32 %v3707_v48, %v8571_v6  ;;  %v3722_v51 = vmul.f32 %v3721_v43, %v8571_v6  ;;  %v3736_v33 = vmul.f32 %v3735_v56, %v8571_v6  ;;  %v3750_v3 = vmul.f32 %v3749_v23, %v8571_v6 }
 0x459   : > { %3101 = vrot.lane.b32.xlu0 %v3097_v50, %s10930_s7  ;;  %v8573_v17 = vld [vmem:[#allocation2 + $0x20] sm:$0xff]  ;;  %v4346_v50 = vstv %s6044_s10  ;;  %s5992_s10 = sld [smem:[#allocation6 + $0x4f]] }
 0x45a   : > { %v3653_v31 = vmul.f32 %v3651_v11, %v8573_v17  ;;  %v3667_v32 = vmul.f32 %v3665_v27, %v8573_v17  ;;  %v3681_v28 = vmul.f32 %v3679_v54, %v8573_v17  ;;  %v3695_v26 = vmul.f32 %v3693_v12, %v8573_v17 }
 0x45b   : > { %v3709_v35 = vmul.f32 %v3707_v48, %v8573_v17  ;;  %v3723_v2 = vmul.f32 %v3721_v43, %v8573_v17  ;;  %v3737_v21 = vmul.f32 %v3735_v56, %v8573_v17  ;;  %v3751_v62 = vmul.f32 %v3749_v23, %v8573_v17 }
 0x45c   : > { %3117 = vrot.lane.b32.xlu1 %v3112_v63, %s10930_s7  ;;  %v3220_v11 = vstv %s5978_s20  ;;  %v3241_v27 = vstv %s5979_s24  ;;  %s8714_s20 = sld [smem:[#allocation6]] }
 0x45d   : > { %3115 = vrot.lane.b32.xlu0 %v3111_v34, %s10930_s7  ;;  %v4360_v34 = vstv %s6045_s17  ;;  %v3222_v54 = vmul.f32 %v3220_v11, %v8534_v59  ;;  %v3243_v48 = vmul.f32 %v3241_v27, %v8534_v59  ;;  %s5993_s17 = sld [smem:[#allocation6 + $0x73]] }
 0x45e   : > { %s8718_s24 = sld [smem:[#allocation6 + $0x24]] }
 0x460   : > { %3131 = vrot.lane.b32.xlu1 %v3126_v38, %s10930_s7 }
 0x461   : > { %3129 = vrot.lane.b32.xlu0 %v3125_v18, %s10930_s7 }
 0x464   : > { %3145 = vrot.lane.b32.xlu1 %v3140_v44, %s10930_s7  ;;  %v4873_v44 = vstv %s6074_s19  ;;  %s8712_s19 = sld [smem:[#allocation6 + $0x8]] }
 0x465   : > { %3143 = vrot.lane.b32.xlu0 %v3139_v4, %s10930_s7  ;;  %v8629_v4 = vld [vmem:[#allocation2 + $0x10] sm:$0x3] }
 0x468   : > { %3658 = vrot.lane.b32.xlu1 %v3653_v31, %s10932_s27 }
 0x469   : > { %3656 = vrot.lane.b32.xlu0 %v3652_v5, %s10932_s27 }
 0x46c   : > { %3672 = vrot.lane.b32.xlu1 %v3667_v32, %s10932_s27  ;;  %v3221_v32 = vmul.f32 %v3220_v11, %v8536_v15 }
 0x46d   : > { %3670 = vrot.lane.b32.xlu0 %v3666_v47, %s10932_s27  ;;  %v4887_v47 = vstv %s6075_s26  ;;  %s8723_s26 = sld [smem:[#allocation6 + $0x48]] }
 0x470   : > { %3686 = vrot.lane.b32.xlu1 %v3681_v28, %s10932_s27  ;;  %v3262_v28 = vstv %s5980_s28  ;;  %s8731_s28 = sld [smem:[#allocation6 + $0x2c]] }
 0x471   : > { %3684 = vrot.lane.b32.xlu0 %v3680_v49, %s10932_s27  ;;  %v3223_v49 = vmul.f32 %v3220_v11, %v8629_v4 }
 0x473   : > { %v3230_v43 = vrot.slane %v3223_v49, 1 }
 0x474   : > { %3700 = vrot.lane.b32.xlu1 %v3695_v26, %s10932_s27  ;;  %v3242_v26 = vmul.f32 %v3241_v27, %v8536_v15 }
 0x475   : > { %3698 = vrot.lane.b32.xlu0 %v3694_v9, %s10932_s27 }
 0x476   : > { %v3248_v56 = vrot.slane %v3242_v26, 1 }
 0x478   : > { %3714 = vrot.lane.b32.xlu1 %v3709_v35, %s10930_s7  ;;  %v3228_v35 = vrot.slane %v3222_v54, 1 }
 0x479   : > { %3712 = vrot.lane.b32.xlu0 %v3708_v46, %s10930_s7  ;;  %v3227_v46 = vrot.slane %v3221_v32, 1 }
 0x47a   : > { %v3231_v23 = vsel %vm343_vm0, %v3228_v35, %v3230_v43 }
 0x47b   : > { %v2967_v55 = vpop.permute.xlu1 %2966 }
 0x47c   : > { %3728 = vrot.lane.b32.xlu1 %v3723_v2, %s10930_s7  ;;  %2974 = vst.msk [vmem:[#allocation2 + $0x38] sm:$0xff] %vm2899_vm8, %v2967_v55  ;;  %v3263_v2 = vmul.f32 %v3262_v28, %v8536_v15  ;;  %v3249_v55 = vrot.slane %v3243_v48, 1 }
 0x47d   : > { %3726 = vrot.lane.b32.xlu0 %v3722_v51, %s10930_s7  ;;  %v2965_v19 = vpop.permute.xlu0 %2964  ;;  %v3244_v51 = vmul.f32 %v3241_v27, %v8629_v4 }
 0x47e   : > { %2973 = vst.msk [vmem:[#allocation2 + $0x30] sm:$0xff] %vm2899_vm8, %v2965_v19  ;;  %v3264_v19 = vmul.f32 %v3262_v28, %v8534_v59 }
 0x480   : > { %3742 = vrot.lane.b32.xlu1 %v3737_v21, %s10930_s7  ;;  %v3229_v21 = vsel %vm343_vm0, %v3227_v46, %v3228_v35 }
 0x481   : > { %3740 = vrot.lane.b32.xlu0 %v3736_v33, %s10930_s7  ;;  %v2969_v8 = vpop.permute.xlu0 %2968  ;;  %v3265_v33 = vmul.f32 %v3262_v28, %v8629_v4 }
 0x482   : > { %2975 = vst.msk [vmem:[#allocation2 + $0x40] sm:$0x3] %vm2902_vm9, %v2969_v8  ;;  %v3251_v8 = vrot.slane %v3244_v51, 1 }
 0x483   : > { %v4235_v20 = vld [vmem:[#allocation2 + $0x38] sm:$0xff] }
 0x484   : > { %3756 = vrot.lane.b32.xlu1 %v3751_v62, %s10930_s7  ;;  %v4264_v1 = vmul.f32 %v4262_v52, %v4235_v20  ;;  %v4278_v29 = vmul.f32 %v4276_v36, %v4235_v20  ;;  %v4292_v7 = vmul.f32 %v4290_v45, %v4235_v20  ;;  %v4306_v22 = vmul.f32 %v4304_v13, %v4235_v20 }
 0x485   : > { %3754 = vrot.lane.b32.xlu0 %v3750_v3, %s10930_s7  ;;  %v4234_v42 = vld [vmem:[#allocation2 + $0x30] sm:$0xff]  ;;  %v4320_v37 = vmul.f32 %v4318_v40, %v4235_v20  ;;  %v4334_v41 = vmul.f32 %v4332_v16, %v4235_v20  ;;  %v4348_v10 = vmul.f32 %v4346_v50, %v4235_v20  ;;  %v4362_v0 = vmul.f32 %v4360_v34, %v4235_v20 }
 0x486   : > { %v4263_v14 = vmul.f32 %v4262_v52, %v4234_v42  ;;  %v4277_v61 = vmul.f32 %v4276_v36, %v4234_v42  ;;  %v4291_v25 = vmul.f32 %v4290_v45, %v4234_v42  ;;  %v4305_v58 = vmul.f32 %v4304_v13, %v4234_v42 }
 0x487   : > { %v4319_v57 = vmul.f32 %v4318_v40, %v4234_v42  ;;  %v4333_v39 = vmul.f32 %v4332_v16, %v4234_v42  ;;  %v4347_v63 = vmul.f32 %v4346_v50, %v4234_v42  ;;  %v4361_v38 = vmul.f32 %v4360_v34, %v4234_v42 }
 0x488   : > { %4269 = vrot.lane.b32.xlu1 %v4264_v1, %s10932_s27  ;;  %v3283_v3 = vstv %s5981_s29  ;;  %v3304_v62 = vstv %s5982_s30  ;;  %v3250_v52 = vsel %vm343_vm0, %v3248_v56, %v3249_v55  ;;  %v3269_v20 = vrot.slane %v3263_v2, 1  ;;  %s8733_s29 = sld [smem:[#allocation6 + $0x6c]] }
 0x489   : > { %4267 = vrot.lane.b32.xlu0 %v4263_v14, %s10932_s27  ;;  %v3270_v42 = vrot.slane %v3264_v19, 1  ;;  %v3272_v1 = vrot.slane %v3265_v33, 1  ;;  %v3252_v14 = vsel %vm343_vm0, %v3249_v55, %v3251_v8  ;;  %v3284_v36 = vmul.f32 %v3283_v3, %v8536_v15  ;;  %s8740_s30 = sld [smem:[#allocation6 + $0x50]] }
 0x48a   : > { %v3305_v45 = vmul.f32 %v3304_v62, %v8536_v15  ;;  %v3306_v13 = vmul.f32 %v3304_v62, %v8534_v59  ;;  %v3477_v19 = vstv %s5991_s9  ;;  %s8764_s9 = sld [smem:[#allocation6 + $0x55]] }
 0x48c   : > { %4283 = vrot.lane.b32.xlu1 %v4278_v29, %s10932_s27  ;;  %v3285_v29 = vmul.f32 %v3283_v3, %v8534_v59  ;;  %v3311_v16 = vrot.slane %v3305_v45, 1  ;;  %v3478_v45 = vmul.f32 %v3477_v19, %v8536_v15 }
 0x48d   : > { %4281 = vrot.lane.b32.xlu0 %v4277_v61, %s10932_s27  ;;  %v3286_v61 = vmul.f32 %v3283_v3, %v8629_v4 }
 0x48e   : > { %v3291_v40 = vrot.slane %v3285_v29, 1 }
 0x490   : > { %4297 = vrot.lane.b32.xlu1 %v4292_v7, %s10932_s27  ;;  %v3271_v7 = vsel %vm343_vm0, %v3269_v20, %v3270_v42 }
 0x491   : > { %4295 = vrot.lane.b32.xlu0 %v4291_v25, %s10932_s27  ;;  %v3273_v25 = vsel %vm343_vm0, %v3270_v42, %v3272_v1 }
 0x493   : > { %v3003_v60 = vpop.permute.xlu0 %3002 }
 0x494   : > { %4311 = vrot.lane.b32.xlu1 %v4306_v22, %s10932_s27  ;;  %3010 = vst.msk [vmem:[#allocation2 + $0x50] sm:$0xff] %vm2899_vm8, %v3003_v60  ;;  %v3325_v22 = vstv %s5983_s4  ;;  %v3307_v60 = vmul.f32 %v3304_v62, %v8629_v4  ;;  %s8744_s4 = sld [smem:[#allocation6 + $0x74]] }
 0x495   : > { %v3001_v53 = vpop.permute.xlu1 %3000  ;;  %4309 = vrot.lane.b32.xlu0 %v4305_v58, %s10932_s27  ;;  %v3290_v58 = vrot.slane %v3284_v36, 1  ;;  %v3328_v50 = vmul.f32 %v3325_v22, %v8629_v4 }
 0x496   : > { %3009 = vst.msk [vmem:[#allocation2 + $0x48] sm:$0xff] %vm2899_vm8, %v3001_v53  ;;  %v3293_v53 = vrot.slane %v3286_v61, 1  ;;  %v3314_v34 = vrot.slane %v3307_v60, 1 }
 0x498   : > { %4325 = vrot.lane.b32.xlu1 %v4320_v37, %s10930_s7 }
 0x499   : > { %v3005_v24 = vpop.permute.xlu1 %3004  ;;  %4323 = vrot.lane.b32.xlu0 %v4319_v57, %s10930_s7 }
 0x49a   : > { %3011 = vst.msk [vmem:[#allocation2 + $0x58] sm:$0x3] %vm2902_vm9, %v3005_v24  ;;  %v3312_v24 = vrot.slane %v3306_v13, 1  ;;  %v3479_v13 = vmul.f32 %v3477_v19, %v8534_v59 }
 0x49b   : > { %v4846_v30 = vld [vmem:[#allocation2 + $0x50] sm:$0xff] }
 0x49c   : > { %4339 = vrot.lane.b32.xlu1 %v4334_v41, %s10930_s7  ;;  %v4875_v31 = vmul.f32 %v4873_v44, %v4846_v30  ;;  %v4889_v9 = vmul.f32 %v4887_v47, %v4846_v30  ;;  %v3326_v41 = vmul.f32 %v3325_v22, %v8536_v15  ;;  %v3367_v30 = vstv %s5985_s6  ;;  %s8755_s6 = sld [smem:[#allocation6 + $0xd]] }
 0x49d   : > { %4337 = vrot.lane.b32.xlu0 %v4333_v39, %s10930_s7  ;;  %v4845_v18 = vld [vmem:[#allocation2 + $0x48] sm:$0xff]  ;;  %v3327_v39 = vmul.f32 %v3325_v22, %v8534_v59  ;;  %v3315_v27 = vsel %vm343_vm0, %v3312_v24, %v3314_v34  ;;  %v3368_v48 = vmul.f32 %v3367_v30, %v8536_v15  ;;  %v3369_v46 = vmul.f32 %v3367_v30, %v8534_v59 }
 0x49e   : > { %v4874_v5 = vmul.f32 %v4873_v44, %v4845_v18  ;;  %v4888_v12 = vmul.f32 %v4887_v47, %v4845_v18  ;;  %v3313_v44 = vsel %vm343_vm0, %v3311_v16, %v3312_v24  ;;  %v3332_v11 = vrot.slane %v3326_v41, 1 }
 0x49f   : > { %v3370_v2 = vmul.f32 %v3367_v30, %v8629_v4  ;;  %v3374_v33 = vrot.slane %v3368_v48, 1  ;;  %v3480_v22 = vmul.f32 %v3477_v19, %v8629_v4  ;;  %v3484_v16 = vrot.slane %v3478_v45, 2 }
 0x4a0   : > { %4353 = vrot.lane.b32.xlu1 %v4348_v10, %s10930_s7  ;;  %v3292_v10 = vsel %vm343_vm0, %v3290_v58, %v3291_v40  ;;  %v3540_v30 = vstv %s8712_s19  ;;  %s8780_s19 = sld [smem:[#allocation6 + $0x32]] }
 0x4a1   : > { %4351 = vrot.lane.b32.xlu0 %v4347_v63, %s10930_s7  ;;  %v3294_v63 = vsel %vm343_vm0, %v3291_v40, %v3293_v53  ;;  %v3519_v53 = vstv %s5993_s17  ;;  %s8775_s17 = sld [smem:[#allocation6 + $0xe]]  ;;  %v3542_v19 = vmul.f32 %v3540_v30, %v8534_v59 }
 0x4a4   : > { %4367 = vrot.lane.b32.xlu1 %v4362_v0, %s10930_s7  ;;  %v3346_v0 = vstv %s5984_s5  ;;  %s8751_s5 = sld [smem:[#allocation6 + $0x3]] }
 0x4a5   : > { %4365 = vrot.lane.b32.xlu0 %v4361_v38, %s10930_s7  ;;  %v3347_v47 = vmul.f32 %v3346_v0, %v8536_v15  ;;  %v3348_v32 = vmul.f32 %v3346_v0, %v8534_v59  ;;  %v3349_v54 = vmul.f32 %v3346_v0, %v8629_v4 }
 0x4a7   : > { %v3353_v35 = vrot.slane %v3347_v47, 1  ;;  %v3354_v43 = vrot.slane %v3348_v32, 1  ;;  %v3356_v51 = vrot.slane %v3349_v54, 1  ;;  %v3522_v54 = vmul.f32 %v3519_v53, %v8629_v4 }
 0x4a8   : > { %4880 = vrot.lane.b32.xlu1 %v4875_v31, %s10932_s27  ;;  %v3335_v31 = vrot.slane %v3328_v50, 1  ;;  %v3485_v50 = vrot.slane %v3479_v13, 2 }
 0x4a9   : > { %4878 = vrot.lane.b32.xlu0 %v4874_v5, %s10932_s27  ;;  %v3333_v5 = vrot.slane %v3327_v39, 1  ;;  %v3355_v3 = vsel %vm343_vm0, %v3353_v35, %v3354_v43  ;;  %v3357_v62 = vsel %vm343_vm0, %v3354_v43, %v3356_v51  ;;  %v3541_v43 = vmul.f32 %v3540_v30, %v8536_v15 }
 0x4ab   : > { %v3336_v26 = vsel %vm343_vm0, %v3333_v5, %v3335_v31  ;;  %v3521_v31 = vmul.f32 %v3519_v53, %v8534_v59 }
 0x4ac   : > { %4894 = vrot.lane.b32.xlu1 %v4889_v9, %s10932_s27  ;;  %v3334_v9 = vsel %vm343_vm0, %v3332_v11, %v3333_v5  ;;  %v3520_v5 = vmul.f32 %v3519_v53, %v8536_v15 }
 0x4ad   : > { %4892 = vrot.lane.b32.xlu0 %v4888_v12, %s10932_s27  ;;  %v3456_v12 = vstv %s5990_s8  ;;  %s8760_s8 = sld [smem:[#allocation6 + $0x31]]  ;;  %v3527_v35 = vrot.slane %v3521_v31, 2 }
 0x4ae   : > { %v3458_v8 = vmul.f32 %v3456_v12, %v8534_v59  ;;  %v3459_v20 = vmul.f32 %v3456_v12, %v8629_v4 }
 0x4b0   : > { %3234 = vrot.lane.b32.xlu1 %v3231_v23, %s10932_s27  ;;  %v3457_v23 = vmul.f32 %v3456_v12, %v8536_v15  ;;  %v3464_v61 = vrot.slane %v3458_v8, 2  ;;  %v3582_v8 = vstv %s8740_s30  ;;  %s11228_s30 = smov 127  }
 0x4b1   : > { %3232 = vrot.lane.b32.xlu0 %v3229_v21, %s10932_s27  ;;  %v3375_v21 = vrot.slane %v3369_v46, 1  ;;  %v3526_v46 = vrot.slane %v3520_v5, 2  ;;  %v3583_v53 = vmul.f32 %v3582_v8, %v8536_v15 }
 0x4b2   : > { %v3463_v29 = vrot.slane %v3457_v23, 2 }
 0x4b3   : > { %v3376_v36 = vsel %vm343_vm0, %v3374_v33, %v3375_v21  ;;  %v3543_v33 = vmul.f32 %v3540_v30, %v8629_v4 }
 0x4b4   : > { %3255 = vrot.lane.b32.xlu1 %v3252_v14, %s10932_s27  ;;  %v3498_v14 = vstv %s5992_s10  ;;  %v3465_v60 = vsel %vm580_vm1, %v3463_v29, %v3464_v61  ;;  %s8771_s10 = sld [smem:[#allocation6 + $0x79]] }
 0x4b5   : > { %3253 = vrot.lane.b32.xlu0 %v3250_v52, %s10932_s27  ;;  %v3377_v52 = vrot.slane %v3370_v2, 1  ;;  %v3499_v24 = vmul.f32 %v3498_v14, %v8536_v15  ;;  %v3500_v41 = vmul.f32 %v3498_v14, %v8534_v59  ;;  %v3529_v2 = vrot.slane %v3522_v54, 2  ;;  %v8842_v54 = vld [vmem:[#allocation2 + $0x28] sm:$0x3] }
 0x4b6   : > { %v3550_v29 = vrot.slane %v3543_v33, 2 }
 0x4b7   : > { %v3506_v11 = vrot.slane %v3500_v41, 2 }
 0x4b8   : > { %3276 = vrot.lane.b32.xlu1 %v3273_v25, %s10932_s27  ;;  %v3466_v25 = vrot.slane %v3459_v20, 2 }
 0x4b9   : > { %3274 = vrot.lane.b32.xlu0 %v3271_v7, %s10932_s27  ;;  %v3378_v7 = vsel %vm343_vm0, %v3375_v21, %v3377_v52 }
 0x4ba   : > { %v8664_v37 = vpop.permute.xlu1 %3047  ;;  %v3467_v39 = vsel %vm580_vm1, %v3464_v61, %v3466_v25  ;;  %v3603_v25 = vstv %s8744_s4  ;;  %s11231_s4 = smov 126  }
 0x4bb   : > { %v8666_v57 = vpop.permute.xlu0 %3045  ;;  %v3604_v5 = vmul.f32 %v3603_v25, %v8536_v15 }
 0x4bc   : > { %3297 = vrot.lane.b32.xlu1 %v3294_v63, %s10932_s27  ;;  %v3501_v63 = vmul.f32 %v3498_v14, %v8629_v4  ;;  %v3530_v14 = vsel %vm580_vm1, %v3527_v35, %v3529_v2  ;;  %v3852_v2 = vstv %s8760_s8  ;;  %s8896_s8 = sld [smem:[#allocation6 + $0x9]] }
 0x4bd   : > { %3295 = vrot.lane.b32.xlu0 %v3292_v10, %s10932_s27  ;;  %v3487_v10 = vrot.slane %v3480_v22, 2 }
 0x4be   : > { %v8675_v38 = vpop.permute.xlu1 %3061  ;;  %v3508_v32 = vrot.slane %v3501_v63, 2 }
 0x4bf   : > { %v8677_v18 = vpop.permute.xlu0 %3059  ;;  %v3488_v47 = vsel %vm580_vm1, %v3485_v50, %v3487_v10 }
 0x4c0   : > { %3318 = vrot.lane.b32.xlu1 %v3315_v27, %s10930_s7  ;;  %v3486_v27 = vsel %vm580_vm1, %v3484_v16, %v3485_v50  ;;  %v3509_v51 = vsel %vm580_vm1, %v3506_v11, %v3508_v32  ;;  %v3606_v32 = vmul.f32 %v3603_v25, %v8629_v4 }
 0x4c1   : > { %3316 = vrot.lane.b32.xlu0 %v3313_v44, %s10930_s7  ;;  %v3505_v44 = vrot.slane %v3499_v24, 2 }
 0x4c2   : > { %v8686_v49 = vpop.permute.xlu1 %3075 }
 0x4c3   : > { %v8688_v28 = vpop.permute.xlu0 %3073  ;;  %v3507_v48 = vsel %vm580_vm1, %v3505_v44, %v3506_v11  ;;  %v3589_v44 = vrot.slane %v3583_v53, 2  ;;  %v8885_v53 = vstv %s8780_s19  ;;  %s9645_s19 = sld [smem:[#allocation6 + $0x86]] }
 0x4c4   : > { %3339 = vrot.lane.b32.xlu1 %v3336_v26, %s10930_s7  ;;  %v3561_v26 = vstv %s8731_s28  ;;  %s8784_s28 = sld [smem:[#allocation6 + $0x56]] }
 0x4c5   : > { %3337 = vrot.lane.b32.xlu0 %v3334_v9, %s10930_s7  ;;  %v3562_v52 = vmul.f32 %v3561_v26, %v8536_v15  ;;  %v3563_v20 = vmul.f32 %v3561_v26, %v8534_v59  ;;  %v3564_v61 = vmul.f32 %v3561_v26, %v8629_v4 }
 0x4c6   : > { %v8697_v56 = vpop.permute.xlu1 %3089 }
 0x4c7   : > { %v8699_v55 = vpop.permute.xlu0 %3087  ;;  %v3568_v13 = vrot.slane %v3562_v52, 2  ;;  %v3569_v22 = vrot.slane %v3563_v20, 2  ;;  %v3571_v41 = vrot.slane %v3564_v61, 2  ;;  %v3894_v61 = vstv %s8771_s10  ;;  %s9595_s10 = sld [smem:[#allocation6 + $0x62]] }
 0x4c8   : > { %11217 = vst [vmem:[#allocation45_spill] sm:$0xff] %v8699_v55  ;;  %3360 = vrot.lane.b32.xlu1 %v3357_v62, %s10930_s7  ;;  %v3547_v62 = vrot.slane %v3541_v43, 2 }
 0x4c9   : > { %3358 = vrot.lane.b32.xlu0 %v3355_v3, %s10930_s7  ;;  %v3528_v3 = vsel %vm580_vm1, %v3526_v46, %v3527_v35  ;;  %v3570_v30 = vsel %vm580_vm1, %v3568_v13, %v3569_v22  ;;  %v3572_v31 = vsel %vm580_vm1, %v3569_v22, %v3571_v41 }
 0x4ca   : > { %v8708_v42 = vpop.permute.xlu1 %3103 }
 0x4cb   : > { %11218 = vst [vmem:[#allocation46_spill] sm:$0xff] %v8708_v42  ;;  %v8710_v1 = vpop.permute.xlu0 %3101 }
 0x4cc   : > { %11219 = vst [vmem:[#allocation97_spill] sm:$0xff] %v8710_v1  ;;  %3381 = vrot.lane.b32.xlu1 %v3378_v7, %s10930_s7 }
 0x4cd   : > { %3379 = vrot.lane.b32.xlu0 %v3376_v36, %s10930_s7  ;;  %s8796_s7 = sld [smem:[#allocation6 + $0x10]]  ;;  %v3548_v36 = vrot.slane %v3542_v19, 2  ;;  %v8858_v19 = vstv %s8751_s5 }
 0x4ce   : > { %v8727_v58 = vpop.permute.xlu1 %3117  ;;  %s8869_s5 = sld [smem:[#allocation6 + $0x4e]] }
 0x4cf   : > { %11220 = vst [vmem:[#allocation47_spill] sm:$0xff] %v8727_v58  ;;  %v8729_v40 = vpop.permute.xlu0 %3115  ;;  %v3549_v16 = vsel %vm580_vm1, %v3547_v62, %v3548_v36  ;;  %v3551_v24 = vsel %vm580_vm1, %v3548_v36, %v3550_v29  ;;  %v3873_v62 = vstv %s8764_s9  ;;  %s8905_s9 = sld [smem:[#allocation6 + $0x2d]] }
 0x4d0   : > { %11221 = vst [vmem:[#allocation48_spill] sm:$0xff] %v8729_v40  ;;  %3470 = vrot.lane.b32.xlu1 %v3467_v39, %s10932_s27  ;;  %v3585_v39 = vmul.f32 %v3582_v8, %v8629_v4  ;;  %v3875_v26 = vmul.f32 %v3873_v62, %v8573_v17  ;;  %v3876_v50 = vmul.f32 %v3873_v62, %v8842_v54 }
 0x4d1   : > { %3468 = vrot.lane.b32.xlu0 %v3465_v60, %s10932_s27  ;;  %v3584_v60 = vmul.f32 %v3582_v8, %v8534_v59  ;;  %v3610_v8 = vrot.slane %v3604_v5, 2 }
 0x4d2   : > { %v8746_v34 = vpop.permute.xlu1 %3131 }
 0x4d3   : > { %11222 = vst [vmem:[#allocation49_spill] sm:$0xff] %v8746_v34  ;;  %v8748_v0 = vpop.permute.xlu0 %3129  ;;  %v3590_v11 = vrot.slane %v3584_v60, 2  ;;  %v8888_v60 = vstv %s8784_s28  ;;  %s9673_s28 = sld [smem:[#allocation6 + $0x78]] }
 0x4d4   : > { %11223 = vst [vmem:[#allocation50_spill] sm:$0xff] %v8748_v0  ;;  %3491 = vrot.lane.b32.xlu1 %v3488_v47, %s10932_s27  ;;  %v3605_v47 = vmul.f32 %v3603_v25, %v8534_v59  ;;  %v8876_v25 = vstv %s8775_s17  ;;  %s9636_s17 = sld [smem:[#allocation6 + $0x54]] }
 0x4d5   : > { %3489 = vrot.lane.b32.xlu0 %v3486_v27, %s10932_s27  ;;  %v3592_v27 = vrot.slane %v3585_v39, 2  ;;  %v3591_v33 = vsel %vm580_vm1, %v3589_v44, %v3590_v11  ;;  %v3854_v39 = vmul.f32 %v3852_v2, %v8573_v17  ;;  %v8903_v44 = vstv %s8804_s0  ;;  %s8951_s0 = sld [smem:[#allocation6 + $0x16]] }
 0x4d6   : > { %v8766_v12 = vpop.permute.xlu1 %3145  ;;  %v3611_v20 = vrot.slane %v3605_v47, 2 }
 0x4d7   : > { %11224 = vst [vmem:[#allocation51_spill] sm:$0xff] %v8766_v12  ;;  %v8768_v9 = vpop.permute.xlu0 %3143  ;;  %v3593_v52 = vsel %vm580_vm1, %v3590_v11, %v3592_v27  ;;  %v3855_v27 = vmul.f32 %v3852_v2, %v8842_v54 }
 0x4d8   : > { %11225 = vst [vmem:[#allocation52_spill] sm:$0xff] %v8768_v9  ;;  %3512 = vrot.lane.b32.xlu1 %v3509_v51, %s10932_s27  ;;  %v3831_v51 = vstv %s8755_s6  ;;  %s8878_s6 = sld [smem:[#allocation6 + $0x72]]  ;;  %v3612_v11 = vsel %vm580_vm1, %v3610_v8, %v3611_v20  ;;  %v11250_v9 = vstv %s8733_s29 }
 0x4d9   : > { %3510 = vrot.lane.b32.xlu0 %v3507_v48, %s10932_s27  ;;  %s8800_s27 = sld [smem:[#allocation6 + $0x34]]  ;;  %v3834_v36 = vmul.f32 %v3831_v51, %v8842_v54  ;;  %v3832_v29 = vmul.f32 %v3831_v51, %v8571_v6  ;;  %v3862_v48 = vrot.slane %v3855_v27, 1  ;;  %v11251_v12 = vmov %v11250_v9 }
 0x4da   : > { %v8786_v21 = vpop.permute.xlu1 %3658  ;;  %s9566_s29 = sld [smem:[#allocation6 + $0x30]] }
 0x4db   : > { %11226 = vst [vmem:[#allocation53_spill] sm:$0xff] %v8786_v21  ;;  %v8788_v23 = vpop.permute.xlu0 %3656  ;;  %v3838_v47 = vrot.slane %v3832_v29, 1  ;;  %v3860_v29 = vrot.slane %v3854_v39, 1 }
 0x4dc   : > { %11227 = vst [vmem:[#allocation54_spill] sm:$0xff] %v8788_v23  ;;  %3533 = vrot.lane.b32.xlu1 %v3530_v14, %s11228_s30  ;;  %v3613_v14 = vrot.slane %v3606_v32, 2  ;;  %v3853_v32 = vmul.f32 %v3852_v2, %v8571_v6 }
 0x4dd   : > { %3531 = vrot.lane.b32.xlu0 %v3528_v3, %s11228_s30  ;;  %v3833_v3 = vmul.f32 %v3831_v51, %v8573_v17  ;;  %v8914_v51 = vstv %s8811_s1  ;;  %s9083_s1 = sld [smem:[#allocation6 + $0x3a]] }
 0x4de   : > { %v8806_v45 = vpop.permute.xlu1 %3672  ;;  %v3614_v5 = vsel %vm580_vm1, %v3611_v20, %v3613_v14  ;;  %v8927_v20 = vstv %s8824_s14  ;;  %v8930_v14 = vstv %s8831_s18  ;;  %v3859_v39 = vrot.slane %v3853_v32, 1  ;;  %s9278_s14 = sld [smem:[#allocation6 + $0x3b]] }
 0x4df   : > { %11229 = vst [vmem:[#allocation28_spill] sm:$0xff] %v8806_v45  ;;  %v8808_v7 = vpop.permute.xlu0 %3670  ;;  %v3839_v41 = vrot.slane %v3833_v3, 1  ;;  %v11242_v32 = vstv %s8714_s20  ;;  %s9335_s18 = sld [smem:[#allocation6 + $0x83]] }
 0x4e0   : > { %11230 = vst [vmem:[#allocation29_spill] sm:$0xff] %v8808_v7  ;;  %3554 = vrot.lane.b32.xlu1 %v3551_v24, %s11231_s4  ;;  %v8894_v24 = vstv %s8796_s7  ;;  %v11243_v23 = vmov %v11242_v32  ;;  %s9461_s7 = sld [smem:[#allocation6 + $0x51]] }
 0x4e1   : > { %3552 = vrot.lane.b32.xlu0 %v3549_v16, %s11231_s4  ;;  %v8891_v16 = vstv %s8791_s11  ;;  %v3840_v2 = vsel %vm343_vm0, %v3838_v47, %v3839_v41  ;;  %v3874_v47 = vmul.f32 %v3873_v62, %v8571_v6  ;;  %v8981_v62 = vmul.f32 %v11243_v23, %v8536_v15  ;;  %s9481_s11 = sld [smem:[#allocation6 + $0x1a]] }
 0x4e2   : > { %v8827_v10 = vpop.permute.xlu1 %3686  ;;  %v4068_v1 = vmul.f32 %v8894_v24, %v8571_v6  ;;  %s9513_s20 = sld [smem:[#allocation6 + $0x75]] }
 0x4e3   : > { %11232 = vst [vmem:[#allocation30_spill] sm:$0xff] %v8827_v10  ;;  %v8829_v63 = vpop.permute.xlu0 %3684  ;;  %v3895_v10 = vmul.f32 %v3894_v61, %v8571_v6 }
 0x4e4   : > { %11233 = vst [vmem:[#allocation55_spill] sm:$0xff] %v8829_v63  ;;  %3575 = vrot.lane.b32.xlu1 %v3572_v31, %s11231_s4  ;;  %v3841_v31 = vrot.slane %v3834_v36, 1  ;;  %v8933_v36 = vstv %s8835_s23  ;;  %v3883_v63 = vrot.slane %v3876_v50, 1  ;;  %v3880_v50 = vrot.slane %v3874_v47, 1  ;;  %s9421_s23 = sld [smem:[#allocation6 + $0x61]] }
 0x4e5   : > { %3573 = vrot.lane.b32.xlu0 %v3570_v30, %s11231_s4  ;;  %v8900_v30 = vstv %s8800_s27  ;;  %v3901_v45 = vrot.slane %v3895_v10, 1  ;;  %s9439_s27 = sld [smem:[#allocation6 + $0x85]] }
 0x4e6   : > { %v8851_v35 = vpop.permute.xlu1 %3700  ;;  %v3842_v46 = vsel %vm343_vm0, %v3839_v41, %v3841_v31  ;;  %v8954_v41 = vstv %s8865_s22  ;;  %s9396_s22 = sld [smem:[#allocation6 + $0x3d]] }
 0x4e7   : > { %11234 = vst [vmem:[#allocation56_spill] sm:$0xff] %v8851_v35  ;;  %v8853_v43 = vpop.permute.xlu0 %3698  ;;  %v8962_v35 = vstv %s8869_s5  ;;  %s9708_s5 = sld [smem:[#allocation6 + $0xf]] }
 0x4e8   : > { %11235 = vst [vmem:[#allocation57_spill] sm:$0xff] %v8853_v43  ;;  %3596 = vrot.lane.b32.xlu1 %v3593_v52, %s11231_s4  ;;  %v8924_v52 = vstv %s8820_s21  ;;  %v8949_v43 = vstv %s8860_s3  ;;  %s9228_s3 = sld [smem:[#allocation6 + $0x82]] }
 0x4e9   : > { %3594 = vrot.lane.b32.xlu0 %v3591_v33, %s11231_s4  ;;  %v8917_v33 = vstv %s8815_s2  ;;  %s9114_s2 = sld [smem:[#allocation6 + $0x5e]] }
 0x4ea   : > { %v8880_v13 = vpop.permute.xlu1 %3714  ;;  %s9380_s21 = sld [smem:[#allocation6 + $0x19]] }
 0x4eb   : > { %11236 = vst [vmem:[#allocation58_spill] sm:$0xff] %v8880_v13  ;;  %v8882_v22 = vpop.permute.xlu0 %3712  ;;  %v3861_v13 = vsel %vm343_vm0, %v3859_v39, %v3860_v29 }
 0x4ec   : > { %11237 = vst [vmem:[#allocation59_spill] sm:$0xff] %v8882_v22  ;;  %3617 = vrot.lane.b32.xlu1 %v3614_v5, %s11231_s4  ;;  %v8940_v5 = vstv %s8848_s15  ;;  %v8971_v22 = vmul.f32 %v11242_v32, %v8534_v59  ;;  %v11244_v32 = vstv %s8718_s24  ;;  %s9317_s15 = sld [smem:[#allocation6 + $0x5f]] }
 0x4ed   : > { %3615 = vrot.lane.b32.xlu0 %v3612_v11, %s11231_s4  ;;  %v8937_v11 = vstv %s8840_s12  ;;  %v8986_v21 = vmul.f32 %v11244_v32, %v8534_v59  ;;  %v11245_v39 = vmov %v11244_v32  ;;  %s9234_s12 = sld [smem:[#allocation6 + $0x17]] }
 0x4ee   : > { %v8919_v3 = vpop.permute.xlu1 %3728  ;;  %v8991_v7 = vmul.f32 %v11245_v39, %v8536_v15  ;;  %s9519_s24 = sld [smem:[#allocation6 + $0xc]] }
 0x4ef   : > { %11238 = vst [vmem:[#allocation60_spill] sm:$0xff] %v8919_v3  ;;  %v8921_v8 = vpop.permute.xlu0 %3726 }
 0x4f0   : > { %11239 = vst [vmem:[#allocation31_spill] sm:$0xff] %v8921_v8  ;;  %3845 = vrot.lane.b32.xlu1 %v3842_v46, %s11228_s30  ;;  %v8965_v46 = vstv %s8878_s6  ;;  %v3897_v8 = vmul.f32 %v3894_v61, %v8842_v54  ;;  %s9719_s6 = sld [smem:[#allocation6 + $0x64]] }
 0x4f1   : > { %3843 = vrot.lane.b32.xlu0 %v3840_v2, %s11228_s30  ;;  %v3896_v2 = vmul.f32 %v3894_v61, %v8573_v17  ;;  %v3916_v61 = vmul.f32 %v8876_v25, %v8571_v6 }
 0x4f2   : > { %v8956_v31 = vpop.permute.xlu1 %3742  ;;  %v3904_v3 = vrot.slane %v3897_v8, 1  ;;  %v3937_v8 = vmul.f32 %v8885_v53, %v8571_v6 }
 0x4f3   : > { %11240 = vst [vmem:[#allocation61_spill] sm:$0xff] %v8956_v31  ;;  %v8958_v27 = vpop.permute.xlu0 %3740  ;;  %v3863_v31 = vsel %vm343_vm0, %v3860_v29, %v3862_v48  ;;  %v3902_v23 = vrot.slane %v3896_v2, 1  ;;  %v3917_v29 = vmul.f32 %v8876_v25, %v8573_v17  ;;  %v3938_v2 = vmul.f32 %v8885_v53, %v8573_v17 }
 0x4f4   : > { %11241 = vst [vmem:[#allocation62_spill] sm:$0xff] %v8958_v27  ;;  %v3881_v27 = vrot.slane %v3875_v26, 1  ;;  %3866 = vrot.lane.b32.xlu1 %v3863_v31, %s11228_s30  ;;  %v11248_v31 = vstv %s8723_s26  ;;  %s9539_s26 = sld [smem:[#allocation6 + $0x3e]] }
 0x4f5   : > { %3864 = vrot.lane.b32.xlu0 %v3861_v13, %s11228_s30  ;;  %v3918_v13 = vmul.f32 %v8876_v25, %v8842_v54  ;;  %v9008_v32 = vmul.f32 %v11248_v31, %v8534_v59  ;;  %v11249_v47 = vmov %v11248_v31  ;;  %v3939_v25 = vmul.f32 %v8885_v53, %v8842_v54 }
 0x4f6   : > { %v8995_v26 = vpop.permute.xlu1 %3756  ;;  %v9013_v39 = vmul.f32 %v11249_v47, %v8536_v15  ;;  %v9024_v31 = vmul.f32 %v11250_v9, %v8534_v59  ;;  %v9029_v47 = vmul.f32 %v11251_v12, %v8536_v15  ;;  %v3903_v10 = vsel %vm343_vm0, %v3901_v45, %v3902_v23 }
 0x4f7   : > { %11246 = vst [vmem:[#allocation63_spill] sm:$0xff] %v8995_v26  ;;  %v8997_v48 = vpop.permute.xlu0 %3754  ;;  %v3884_v26 = vsel %vm343_vm0, %v3881_v27, %v3883_v63  ;;  %v9036_v63 = vstv %s8951_s0  ;;  %v3925_v0 = vrot.slane %v3918_v13, 1  ;;  %v3905_v15 = vsel %vm343_vm0, %v3902_v23, %v3904_v3  ;;  %s9748_s0 = sld [smem:[#allocation6 + $0x41]] }
 0x4f8   : > { %11247 = vst [vmem:[#allocation64_spill] sm:$0xff] %v8997_v48  ;;  %v3882_v48 = vsel %vm343_vm0, %v3880_v50, %v3881_v27  ;;  %11252 = vst [vmem:[#allocation69_spill] sm:$0xff] %v9029_v47  ;;  %3887 = vrot.lane.b32.xlu1 %v3884_v26, %s11228_s30  ;;  %v3922_v27 = vrot.slane %v3916_v61, 1  ;;  %v3923_v50 = vrot.slane %v3917_v29, 1  ;;  %v3944_v12 = vrot.slane %v3938_v2, 1 }
 0x4f9   : > { %3885 = vrot.lane.b32.xlu0 %v3882_v48, %s11228_s30  ;;  %v3959_v26 = vmul.f32 %v8888_v60, %v8573_v17  ;;  %v3960_v53 = vmul.f32 %v8888_v60, %v8842_v54  ;;  %v3946_v48 = vrot.slane %v3939_v25, 1  ;;  %v3980_v45 = vmul.f32 %v8891_v16, %v8573_v17 }
 0x4fa   : > { %v9039_v59 = vpop.permute.xlu1 %4269  ;;  %v3981_v61 = vmul.f32 %v8891_v16, %v8842_v54  ;;  %v4069_v29 = vmul.f32 %v8894_v24, %v8573_v17  ;;  %v3943_v3 = vrot.slane %v3937_v8, 1  ;;  %v4070_v23 = vmul.f32 %v8894_v24, %v8842_v54 }
 0x4fb   : > { %11253 = vst [vmem:[#allocation65_spill] sm:$0xff] %v9039_v59  ;;  %v9041_v9 = vpop.permute.xlu0 %4267  ;;  %v9060_v13 = vmul.f32 %v8900_v30, %v8573_v17  ;;  %v4091_v2 = vmul.f32 %v8900_v30, %v8842_v54  ;;  %v3924_v25 = vsel %vm343_vm0, %v3922_v27, %v3923_v50  ;;  %v3979_v8 = vmul.f32 %v8891_v16, %v8571_v6 }
 0x4fc   : > { %11254 = vst [vmem:[#allocation66_spill] sm:$0xff] %v9041_v9  ;;  %3908 = vrot.lane.b32.xlu1 %v3905_v15, %s11228_s30  ;;  %v3926_v9 = vsel %vm343_vm0, %v3923_v50, %v3925_v0  ;;  %v3945_v34 = vsel %vm343_vm0, %v3943_v3, %v3944_v12  ;;  %v3965_v40 = vrot.slane %v3959_v26, 1  ;;  %v3967_v58 = vrot.slane %v3960_v53, 1  ;;  %v9094_v3 = vld [vmem:[#allocation2 + $0x20] sm:$0xff] }
 0x4fd   : > { %3906 = vrot.lane.b32.xlu0 %v3903_v10, %s11228_s30  ;;  %v3958_v10 = vmul.f32 %v8888_v60, %v8571_v6  ;;  %v3947_v27 = vsel %vm343_vm0, %v3944_v12, %v3946_v48  ;;  %v3986_v0 = vrot.slane %v3980_v45, 1  ;;  %v3988_v50 = vrot.slane %v3981_v61, 1 }
 0x4fe   : > { %v9070_v15 = vpop.permute.xlu1 %4283  ;;  %v4075_v42 = vrot.slane %v4069_v29, 2  ;;  %v4077_v60 = vrot.slane %v4070_v23, 2  ;;  %v4096_v16 = vrot.slane %v9060_v13, 2  ;;  %v4089_v26 = vmul.f32 %v8900_v30, %v8571_v6 }
 0x4ff   : > { %11255 = vst [vmem:[#allocation70_spill] sm:$0xff] %v9070_v15  ;;  %v9072_v59 = vpop.permute.xlu0 %4281  ;;  %v3964_v53 = vrot.slane %v3958_v10, 1  ;;  %v3985_v24 = vrot.slane %v3979_v8, 1  ;;  %v4111_v12 = vmul.f32 %v8903_v44, %v8573_v17  ;;  %v4112_v48 = vmul.f32 %v8903_v44, %v8842_v54 }
 0x500   : > { %11256 = vst [vmem:[#allocation71_spill] sm:$0xff] %v9072_v59  ;;  %3929 = vrot.lane.b32.xlu1 %v3926_v9, %s11231_s4  ;;  %v4098_v59 = vrot.slane %v4091_v2, 2  ;;  %v3968_v61 = vsel %vm343_vm0, %v3965_v40, %v3967_v58  ;;  %v4074_v29 = vrot.slane %v4068_v1, 2  ;;  %v4132_v6 = vmul.f32 %v9094_v3, %v8914_v51  ;;  %v9103_v2 = vld [vmem:[#allocation2 + $0x18] sm:$0xff] }
 0x501   : > { %3927 = vrot.lane.b32.xlu0 %v3924_v25, %s11231_s4  ;;  %v4133_v30 = vmul.f32 %v8914_v51, %v8842_v54  ;;  %v3966_v17 = vsel %vm343_vm0, %v3964_v53, %v3965_v40  ;;  %v3989_v23 = vsel %vm343_vm0, %v3986_v0, %v3988_v50  ;;  %v3987_v13 = vsel %vm343_vm0, %v3985_v24, %v3986_v0 }
 0x502   : > { %v9089_v45 = vpop.permute.xlu1 %4297  ;;  %v4110_v58 = vmul.f32 %v9103_v2, %v8903_v44  ;;  %v4078_v1 = vsel %vm580_vm1, %v4075_v42, %v4077_v60  ;;  %v4076_v25 = vsel %vm580_vm1, %v4074_v29, %v4075_v42  ;;  %v9112_v10 = vsel %vm580_vm1, %v4096_v16, %v4098_v59  ;;  %v9134_v29 = vld [vmem:[#allocation2] sm:$0xff] }
 0x503   : > { %11257 = vst [vmem:[#allocation72_spill] sm:$0xff] %v9089_v45  ;;  %v9091_v9 = vpop.permute.xlu0 %4295  ;;  %v4095_v40 = vrot.slane %v4089_v26, 2  ;;  %v4117_v8 = vrot.slane %v4111_v12, 2  ;;  %v4119_v0 = vrot.slane %v4112_v48, 2  ;;  %v4153_v50 = vmul.f32 %v9094_v3, %v8917_v33  ;;  %v9130_v12 = vld [vmem:[#allocation2 + $0x8] sm:$0xff] }
 0x504   : > { %11258 = vst [vmem:[#allocation75_spill] sm:$0xff] %v9091_v9  ;;  %3950 = vrot.lane.b32.xlu1 %v3947_v27, %s11231_s4  ;;  %v4138_v42 = vrot.slane %v4132_v6, 2  ;;  %v4140_v60 = vrot.slane %v4133_v30, 2  ;;  %v4131_v59 = vmul.f32 %v9103_v2, %v8914_v51  ;;  %v3155_v26 = vmul.f32 %v8858_v19, %v8629_v4 }
 0x505   : > { %3948 = vrot.lane.b32.xlu0 %v3945_v34, %s11231_s4  ;;  %v4154_v34 = vmul.f32 %v8917_v33, %v8842_v54  ;;  %v4116_v53 = vrot.slane %v4110_v58, 2  ;;  %v4152_v24 = vmul.f32 %v9103_v2, %v8917_v33  ;;  %v3154_v48 = vmul.f32 %v9130_v12, %v8858_v19 }
 0x506   : > { %v9120_v44 = vpop.permute.xlu1 %4311  ;;  %v3153_v6 = vmul.f32 %v9134_v29, %v8858_v19  ;;  %v4097_v51 = vsel %vm580_vm1, %v4095_v40, %v4096_v16  ;;  %v4174_v30 = vmul.f32 %v9094_v3, %v8937_v11  ;;  %v4175_v33 = vmul.f32 %v8937_v11, %v8842_v54 }
 0x507   : > { %11259 = vst [vmem:[#allocation76_spill] sm:$0xff] %v9120_v44  ;;  %v9122_v27 = vpop.permute.xlu0 %4309  ;;  %v9146_v58 = vstv %s9083_s1  ;;  %v9152_v44 = vsel %vm580_vm1, %v4116_v53, %v4117_v8  ;;  %v4159_v19 = vrot.slane %v4153_v50, 2  ;;  %v9159_v40 = vsel %vm580_vm1, %v4138_v42, %v4140_v60  ;;  %s9763_s1 = sld [smem:[#allocation6 + $0x65]] }
 0x508   : > { %11260 = vst [vmem:[#allocation81_spill] sm:$0xff] %v9122_v27  ;;  %3971 = vrot.lane.b32.xlu1 %v3968_v61, %s11231_s4  ;;  %v9149_v27 = vsel %vm580_vm1, %v4117_v8, %v4119_v0  ;;  %v4161_v61 = vrot.slane %v4154_v34, 2  ;;  %v4137_v9 = vrot.slane %v4131_v59, 2  ;;  %v3162_v45 = vrot.slane %v3155_v26, 1 }
 0x509   : > { %3969 = vrot.lane.b32.xlu0 %v3966_v17, %s11231_s4  ;;  %v3172_v15 = vmul.f32 %v8924_v52, %v8629_v4  ;;  %v4158_v0 = vrot.slane %v4152_v24, 2  ;;  %v3160_v55 = vrot.slane %v3154_v48, 1  ;;  %v3159_v47 = vrot.slane %v3153_v6, 1 }
 0x50a   : > { %v9154_v17 = vpop.permute.xlu1 %4325  ;;  %v4173_v8 = vmul.f32 %v9103_v2, %v8937_v11  ;;  %v4180_v50 = vrot.slane %v4174_v30, 2  ;;  %v4182_v34 = vrot.slane %v4175_v33, 2  ;;  %v3171_v60 = vmul.f32 %v9130_v12, %v8924_v52 }
 0x50b   : > { %11261 = vst [vmem:[#allocation77_spill] sm:$0xff] %v9154_v17  ;;  %v9156_v16 = vpop.permute.xlu0 %4323  ;;  %v9170_v59 = vstv %s9114_s2  ;;  %v9173_v26 = vsel %vm580_vm1, %v4137_v9, %v4138_v42  ;;  %v9176_v53 = vsel %vm580_vm1, %v4159_v19, %v4161_v61  ;;  %v9179_v24 = vsel %vm580_vm1, %v4158_v0, %v4159_v19  ;;  %s9766_s2 = sld [smem:[#allocation6 + $0x33]] }
 0x50c   : > { %11262 = vst [vmem:[#allocation78_spill] sm:$0xff] %v9156_v16  ;;  %3992 = vrot.lane.b32.xlu1 %v3989_v23, %s11231_s4  ;;  %v3170_v11 = vmul.f32 %v9134_v29, %v8924_v52  ;;  %v9188_v48 = vsel %vm343_vm0, %v3160_v55, %v3162_v45  ;;  %v3179_v6 = vrot.slane %v3172_v15, 1  ;;  %v4195_v9 = vmul.f32 %v9094_v3, %v8940_v5 }
 0x50d   : > { %3990 = vrot.lane.b32.xlu0 %v3987_v13, %s11231_s4  ;;  %v4196_v42 = vmul.f32 %v8940_v5, %v8842_v54  ;;  %v9195_v30 = vsel %vm343_vm0, %v3159_v47, %v3160_v55  ;;  %v4179_v33 = vrot.slane %v4173_v8, 2  ;;  %v4194_v52 = vmul.f32 %v9103_v2, %v8940_v5  ;;  %v9210_v47 = vld [vmem:[#allocation2 + $0x40] sm:$0x3] }
 0x50e   : > { %v9183_v23 = vpop.permute.xlu1 %4339  ;;  %v3189_v19 = vmul.f32 %v8927_v20, %v8629_v4  ;;  %v9204_v15 = vsel %vm580_vm1, %v4180_v50, %v4182_v34  ;;  %v3177_v45 = vrot.slane %v3171_v60, 1  ;;  %v3188_v61 = vmul.f32 %v9130_v12, %v8927_v20 }
 0x50f   : > { %11263 = vst [vmem:[#allocation82_spill] sm:$0xff] %v9183_v23  ;;  %v9185_v13 = vpop.permute.xlu0 %4337  ;;  %v3187_v55 = vmul.f32 %v9134_v29, %v8927_v20  ;;  %v3176_v5 = vrot.slane %v3170_v11, 1  ;;  %v4216_v0 = vmul.f32 %v9094_v3, %v8949_v43  ;;  %v9223_v60 = vsel %vm580_vm1, %v4179_v33, %v4180_v50 }
 0x510   : > { %11264 = vst [vmem:[#allocation83_spill] sm:$0xff] %v9185_v13  ;;  %4081 = vrot.lane.b32.xlu1 %v4078_v1, %s11228_s30  ;;  %v4217_v1 = vmul.f32 %v8949_v43, %v8842_v54  ;;  %v9226_v20 = vsel %vm343_vm0, %v3177_v45, %v3179_v6  ;;  %v4201_v11 = vrot.slane %v4195_v9, 2  ;;  %v4203_v16 = vrot.slane %v4196_v42, 2 }
 0x511   : > { %4079 = vrot.lane.b32.xlu0 %v4076_v25, %s11228_s30  ;;  %v3206_v25 = vmul.f32 %v8930_v14, %v8629_v4  ;;  %v4200_v17 = vrot.slane %v4194_v52, 2  ;;  %v3196_v13 = vrot.slane %v3189_v19, 1  ;;  %v4215_v23 = vmul.f32 %v9103_v2, %v8949_v43 }
 0x512   : > { %v9218_v8 = vpop.permute.xlu1 %4353  ;;  %v3205_v4 = vmul.f32 %v9130_v12, %v8930_v14  ;;  %v3194_v50 = vrot.slane %v3188_v61, 1  ;;  %v3193_v6 = vrot.slane %v3187_v55, 1  ;;  %v3204_v9 = vmul.f32 %v9134_v29, %v8930_v14  ;;  %v9256_v14 = vld [vmem:[#allocation2 + $0x38] sm:$0xff] }
 0x513   : > { %11265 = vst [vmem:[#allocation84_spill] sm:$0xff] %v9218_v8  ;;  %v9220_v34 = vpop.permute.xlu0 %4351  ;;  %v4445_v42 = vmul.f32 %v9036_v63, %v9210_v47  ;;  %v9244_v43 = vsel %vm343_vm0, %v3176_v5, %v3177_v45  ;;  %v4222_v33 = vrot.slane %v4216_v0, 2  ;;  %v4224_v52 = vrot.slane %v4217_v1, 2  ;;  %v9260_v45 = vld [vmem:[#allocation2 + $0x30] sm:$0xff] }
 0x514   : > { %11266 = vst [vmem:[#allocation90_spill] sm:$0xff] %v9220_v34  ;;  %4102 = vrot.lane.b32.xlu1 %v9112_v10, %s11228_s30  ;;  %11267 = vst [vmem:[#allocation91_spill] sm:$0xff] %v9244_v43  ;;  %v3213_v19 = vrot.slane %v3206_v25, 1  ;;  %v9251_v10 = vsel %vm580_vm1, %v4201_v11, %v4203_v16  ;;  %v4444_v61 = vmul.f32 %v9256_v14, %v9036_v63  ;;  %v4221_v0 = vrot.slane %v4215_v23, 2 }
 0x515   : > { %4100 = vrot.lane.b32.xlu0 %v4097_v51, %s11228_s30  ;;  %v9254_v51 = vsel %vm580_vm1, %v4200_v17, %v4201_v11  ;;  %v4443_v55 = vmul.f32 %v9260_v45, %v9036_v63  ;;  %v9265_v5 = vsel %vm343_vm0, %v3194_v50, %v3196_v13  ;;  %v3211_v1 = vrot.slane %v3205_v4, 1 }
 0x516   : > { %v9246_v34 = vpop.permute.xlu1 %4367  ;;  %11270 = vst [vmem:[#allocation93_spill] sm:$0xff] %v9265_v5  ;;  %v4466_v16 = vmul.f32 %v9146_v58, %v9210_v47  ;;  %v9274_v17 = vsel %vm343_vm0, %v3193_v6, %v3194_v50  ;;  %v3210_v25 = vrot.slane %v3204_v9, 1  ;;  %v4452_v63 = vrot.slane %v4445_v42, 1 }
 0x517   : > { %11268 = vst [vmem:[#allocation96_spill] sm:$0xff] %v9246_v34  ;;  %v9248_v8 = vpop.permute.xlu0 %4365  ;;  %11271 = vst [vmem:[#allocation98_spill] sm:$0xff] %v9274_v17  ;;  %v4465_v23 = vmul.f32 %v9256_v14, %v9146_v58  ;;  %v9281_v13 = vsel %vm580_vm1, %v4222_v33, %v4224_v52  ;;  %v9287_v11 = vsel %vm343_vm0, %v3211_v1, %v3213_v19  ;;  %v4450_v6 = vrot.slane %v4444_v61, 1 }
 0x518   : > { %11269 = vst [vmem:[#allocation92_spill] sm:$0xff] %v9248_v8  ;;  %4123 = vrot.lane.b32.xlu1 %v9149_v27, %s11228_s30  ;;  %v9284_v27 = vsel %vm580_vm1, %v4221_v0, %v4222_v33  ;;  %11272 = vst [vmem:[#allocation99_spill] sm:$0xff] %v9287_v11  ;;  %v4449_v9 = vrot.slane %v4443_v55, 1  ;;  %v4487_v42 = vmul.f32 %v9170_v59, %v9210_v47  ;;  %v4505_v52 = vstv %s9228_s3  ;;  %v9331_v11 = vld [vmem:[#allocation2 + $0x10] sm:$0x3]  ;;  %s9784_s3 = sld [smem:[#allocation6 + $0x1f]] }
 0x519   : > { %4121 = vrot.lane.b32.xlu0 %v9152_v44, %s11228_s30  ;;  %v4464_v44 = vmul.f32 %v9260_v45, %v9146_v58  ;;  %v4473_v8 = vrot.slane %v4466_v16, 1  ;;  %v4486_v33 = vmul.f32 %v9256_v14, %v9170_v59  ;;  %v4485_v19 = vmul.f32 %v9260_v45, %v9170_v59 }
 0x51a   : > { %v9291_v4 = vpop.permute.xlu1 %4880  ;;  %v4526_v0 = vstv %s9234_s12  ;;  %v9308_v58 = vsel %vm343_vm0, %v3210_v25, %v3211_v1  ;;  %v9311_v61 = vsel %vm343_vm0, %v4450_v6, %v4452_v63  ;;  %v4471_v55 = vrot.slane %v4465_v23, 1  ;;  %s9792_s12 = sld [smem:[#allocation6 + $0x89]] }
 0x51b   : > { %11273 = vst [vmem:[#allocation100_spill] sm:$0xff] %v9291_v4  ;;  %v9293_v50 = vpop.permute.xlu0 %4878  ;;  %11275 = vst [vmem:[#allocation19_spill] sm:$0xff] %v9308_v58  ;;  %v4508_v16 = vmul.f32 %v4505_v52, %v9210_v47  ;;  %v4507_v4 = vmul.f32 %v9256_v14, %v4505_v52  ;;  %v4506_v59 = vmul.f32 %v9260_v45, %v4505_v52  ;;  %v4494_v25 = vrot.slane %v4487_v42, 1 }
 0x51c   : > { %11274 = vst [vmem:[#allocation103_spill] sm:$0xff] %v9293_v50  ;;  %4144 = vrot.lane.b32.xlu1 %v9159_v40, %s11228_s30  ;;  %v4470_v50 = vrot.slane %v4464_v44, 1  ;;  %v4529_v34 = vmul.f32 %v4526_v0, %v9210_v47  ;;  %v9324_v1 = vsel %vm343_vm0, %v4449_v9, %v4450_v6  ;;  %v4528_v63 = vmul.f32 %v9256_v14, %v4526_v0 }
 0x51d   : > { %4142 = vrot.lane.b32.xlu0 %v9173_v26, %s11228_s30  ;;  %v4527_v23 = vmul.f32 %v9260_v45, %v4526_v0  ;;  %v9329_v44 = vsel %vm343_vm0, %v4471_v55, %v4473_v8  ;;  %v4492_v52 = vrot.slane %v4486_v33, 1  ;;  %v4491_v58 = vrot.slane %v4485_v19, 1 }
 0x51e   : > { %v9319_v40 = vpop.permute.xlu1 %4894  ;;  %v4515_v6 = vrot.slane %v4508_v16, 1  ;;  %v3390_v8 = vmul.f32 %v9130_v12, %v8933_v36  ;;  %v3389_v9 = vmul.f32 %v9134_v29, %v8933_v36  ;;  %v4547_v42 = vstv %s9278_s14  ;;  %s9808_s14 = sld [smem:[#allocation6 + $0x57]] }
 0x51f   : > { %11276 = vst [vmem:[#allocation67_spill] sm:$0xff] %v9319_v40  ;;  %v9321_v26 = vpop.permute.xlu0 %4892  ;;  %v3391_v40 = vmul.f32 %v9331_v11, %v8933_v36  ;;  %v9347_v33 = vsel %vm343_vm0, %v4470_v50, %v4471_v55  ;;  %v4513_v19 = vrot.slane %v4507_v4, 1  ;;  %v4512_v0 = vrot.slane %v4506_v59, 1 }
 0x520   : > { %11277 = vst [vmem:[#allocation104_spill] sm:$0xff] %v9321_v26  ;;  %4165 = vrot.lane.b32.xlu1 %v9176_v53, %s11231_s4  ;;  %v4536_v26 = vrot.slane %v4529_v34, 1  ;;  %v4534_v16 = vrot.slane %v4528_v63, 1  ;;  %v4533_v5 = vrot.slane %v4527_v23, 1  ;;  %v4550_v43 = vmul.f32 %v4547_v42, %v9210_v47 }
 0x521   : > { %4163 = vrot.lane.b32.xlu0 %v9179_v24, %s11231_s4  ;;  %v9354_v24 = vsel %vm343_vm0, %v4492_v52, %v4494_v25  ;;  %v9358_v36 = vsel %vm343_vm0, %v4491_v58, %v4492_v52  ;;  %v3398_v50 = vrot.slane %v3391_v40, 2  ;;  %v4549_v4 = vmul.f32 %v9256_v14, %v4547_v42 }
 0x522   : > { %v9349_v17 = vpop.permute.xlu1 %3234  ;;  %v4548_v34 = vmul.f32 %v9260_v45, %v4547_v42  ;;  %v9367_v55 = vsel %vm343_vm0, %v4513_v19, %v4515_v6  ;;  %v3396_v59 = vrot.slane %v3390_v8, 2  ;;  %v3395_v25 = vrot.slane %v3389_v9, 2 }
 0x523   : > { %11278 = vst [vmem:[#allocation20_spill] sm:$0xff] %v9349_v17  ;;  %v9351_v53 = vpop.permute.xlu0 %3232  ;;  %v3407_v58 = vmul.f32 %v9130_v12, %v8954_v41  ;;  %v9372_v40 = vsel %vm343_vm0, %v4512_v0, %v4513_v19  ;;  %v9375_v63 = vsel %vm343_vm0, %v4534_v16, %v4536_v26  ;;  %v4568_v23 = vstv %s9317_s15  ;;  %s9815_s15 = sld [smem:[#allocation6 + $0x43]] }
 0x524   : > { %11279 = vst [vmem:[#allocation68_spill] sm:$0xff] %v9351_v53  ;;  %4186 = vrot.lane.b32.xlu1 %v9204_v15, %s11231_s4  ;;  %v3408_v15 = vmul.f32 %v9331_v11, %v8954_v41  ;;  %v9387_v6 = vsel %vm343_vm0, %v4533_v5, %v4534_v16  ;;  %v4557_v8 = vrot.slane %v4550_v43, 1  ;;  %v3406_v9 = vmul.f32 %v9134_v29, %v8954_v41 }
 0x525   : > { %4184 = vrot.lane.b32.xlu0 %v9223_v60, %s11231_s4  ;;  %v4571_v26 = vmul.f32 %v4568_v23, %v9210_v47  ;;  %v9393_v42 = vsel %vm580_vm1, %v3396_v59, %v3398_v50  ;;  %v4555_v19 = vrot.slane %v4549_v4, 1  ;;  %v4554_v0 = vrot.slane %v4548_v34, 1 }
 0x526   : > { %v9382_v60 = vpop.permute.xlu1 %3255  ;;  %11280 = vst [vmem:[#allocation105_spill] sm:$0xff] %v9393_v42  ;;  %v4589_v53 = vstv %s9335_s18  ;;  %v9403_v43 = vsel %vm580_vm1, %v3395_v25, %v3396_v59  ;;  %v3413_v41 = vrot.slane %v3407_v58, 2  ;;  %v4570_v5 = vmul.f32 %v9256_v14, %v4568_v23  ;;  %s9865_s18 = sld [smem:[#allocation6 + $0x7b]] }
 0x527   : > { %v9384_v52 = vpop.permute.xlu0 %3253  ;;  %11281 = vst [vmem:[#allocation106_spill] sm:$0xff] %v9403_v43  ;;  %v3424_v16 = vmul.f32 %v9130_v12, %v8962_v35  ;;  %v3415_v50 = vrot.slane %v3408_v15, 2  ;;  %v4569_v4 = vmul.f32 %v9260_v45, %v4568_v23  ;;  %v3425_v34 = vmul.f32 %v9331_v11, %v8962_v35 }
 0x528   : > { %4207 = vrot.lane.b32.xlu1 %v9251_v10, %s11231_s4  ;;  %v3423_v10 = vmul.f32 %v9134_v29, %v8962_v35  ;;  %v9418_v59 = vsel %vm343_vm0, %v4555_v19, %v4557_v8  ;;  %v3412_v25 = vrot.slane %v3406_v9, 2  ;;  %v4578_v58 = vrot.slane %v4571_v26, 1 }
 0x529   : > { %4205 = vrot.lane.b32.xlu0 %v9254_v51, %s11231_s4  ;;  %v4591_v15 = vmul.f32 %v9256_v14, %v4589_v53  ;;  %v9424_v23 = vsel %vm343_vm0, %v4554_v0, %v4555_v19  ;;  %v4592_v43 = vmul.f32 %v4589_v53, %v9210_v47  ;;  %v4590_v35 = vmul.f32 %v9260_v45, %v4589_v53 }
 0x52a   : > { %v9413_v42 = vpop.permute.xlu1 %3276  ;;  %v4576_v8 = vrot.slane %v4570_v5, 1  ;;  %v3430_v9 = vrot.slane %v3424_v16, 2  ;;  %v3441_v26 = vmul.f32 %v9130_v12, %v8965_v46  ;;  %v3440_v19 = vmul.f32 %v9134_v29, %v8965_v46 }
 0x52b   : > { %11282 = vst [vmem:[#allocation32_spill] sm:$0xff] %v9413_v42  ;;  %v9415_v51 = vpop.permute.xlu0 %3274  ;;  %v4575_v0 = vrot.slane %v4569_v4, 1  ;;  %v3432_v53 = vrot.slane %v3425_v34, 2  ;;  %v3429_v42 = vrot.slane %v3423_v10, 2  ;;  %v4678_v17 = vstv %s9380_s21  ;;  %s9875_s21 = sld [smem:[#allocation6 + $0x67]] }
 0x52c   : > { %11283 = vst [vmem:[#allocation85_spill] sm:$0xff] %v9415_v51  ;;  %v3442_v51 = vmul.f32 %v9331_v11, %v8965_v46  ;;  %4228 = vrot.lane.b32.xlu1 %v9281_v13, %s11231_s4  ;;  %v9449_v5 = vsel %vm580_vm1, %v3412_v25, %v3413_v41  ;;  %v9452_v12 = vsel %vm343_vm0, %v4576_v8, %v4578_v58  ;;  %v4597_v46 = vrot.slane %v4591_v15, 1 }
 0x52d   : > { %4226 = vrot.lane.b32.xlu0 %v9284_v27, %s11231_s4  ;;  %v9446_v27 = vsel %vm580_vm1, %v3413_v41, %v3415_v50  ;;  %v4599_v29 = vrot.slane %v4592_v43, 1  ;;  %v4596_v16 = vrot.slane %v4590_v35, 1  ;;  %v4699_v34 = vstv %s9396_s22  ;;  %s9896_s22 = sld [smem:[#allocation6 + $0x8b]] }
 0x52e   : > { %v9441_v11 = vpop.permute.xlu1 %3297  ;;  %v3449_v4 = vrot.slane %v3442_v51, 2  ;;  %v3447_v50 = vrot.slane %v3441_v26, 2  ;;  %v3446_v10 = vrot.slane %v3440_v19, 2  ;;  %v4680_v41 = vmul.f32 %v9256_v14, %v4678_v17 }
 0x52f   : > { %11284 = vst [vmem:[#allocation21_spill] sm:$0xff] %v9441_v11  ;;  %v9443_v13 = vpop.permute.xlu0 %3295  ;;  %v4681_v25 = vmul.f32 %v4678_v17, %v9210_v47  ;;  %v9464_v43 = vsel %vm343_vm0, %v4575_v0, %v4576_v8  ;;  %v9467_v51 = vsel %vm580_vm1, %v3430_v9, %v3432_v53  ;;  %v4701_v35 = vmul.f32 %v9256_v14, %v4699_v34 }
 0x530   : > { %11285 = vst [vmem:[#allocation73_spill] sm:$0xff] %v9443_v13  ;;  %4456 = vrot.lane.b32.xlu1 %v9311_v61, %s11228_s30  ;;  %11286 = vst [vmem:[#allocation74_spill] sm:$0xff] %v9467_v51  ;;  %v9470_v61 = vsel %vm580_vm1, %v3429_v42, %v3430_v9  ;;  %v4702_v26 = vmul.f32 %v4699_v34, %v9210_v47  ;;  %v4700_v8 = vmul.f32 %v9260_v45, %v4699_v34 }
 0x531   : > { %4454 = vrot.lane.b32.xlu0 %v9324_v1, %s11228_s30  ;;  %11287 = vst [vmem:[#allocation79_spill] sm:$0xff] %v9470_v61  ;;  %v4679_v1 = vmul.f32 %v9260_v45, %v4678_v17  ;;  %v4720_v19 = vstv %s9421_s23  ;;  %v9484_v42 = vsel %vm343_vm0, %v4597_v46, %v4599_v29  ;;  %v9487_v17 = vsel %vm343_vm0, %v4596_v16, %v4597_v46  ;;  %s9923_s23 = sld [smem:[#allocation6 + $0x20]] }
 0x532   : > { %v9473_v58 = vpop.permute.xlu1 %3318  ;;  %v9490_v9 = vsel %vm580_vm1, %v3447_v50, %v3449_v4  ;;  %v11289_v0 = vstv %s8896_s8  ;;  %v9502_v34 = vsel %vm580_vm1, %v3446_v10, %v3447_v50  ;;  %v4686_v29 = vrot.slane %v4680_v41, 2  ;;  %s9732_s8 = sld [smem:[#allocation6 + $0x88]] }
 0x533   : > { %v9475_v15 = vpop.permute.xlu0 %3316  ;;  %11288 = vst [vmem:[#allocation80_spill] sm:$0xff] %v9490_v9  ;;  %v9495_v53 = vmul.f32 %v9094_v3, %v11289_v0  ;;  %11291 = vst [vmem:[#allocation87_spill] sm:$0xff] %v9502_v34  ;;  %v4688_v61 = vrot.slane %v4681_v25, 2  ;;  %v11292_v46 = vmov %v11289_v0  ;;  %v4722_v4 = vmul.f32 %v9256_v14, %v4720_v19 }
 0x534   : > { %4477 = vrot.lane.b32.xlu1 %v9329_v44, %s11228_s30  ;;  %v9507_v16 = vmul.f32 %v9103_v2, %v11292_v46  ;;  %v4723_v0 = vmul.f32 %v4720_v19, %v9210_v47  ;;  %v4721_v44 = vmul.f32 %v9260_v45, %v4720_v19  ;;  %v4685_v10 = vrot.slane %v4679_v1, 2 }
 0x535   : > { %11290 = vst [vmem:[#allocation86_spill] sm:$0xff] %v9495_v53  ;;  %4475 = vrot.lane.b32.xlu0 %v9347_v33, %s11228_s30  ;;  %v4741_v53 = vstv %s9439_s27  ;;  %v4707_v41 = vrot.slane %v4701_v35, 2  ;;  %v4709_v25 = vrot.slane %v4702_v26, 2  ;;  %v4706_v46 = vrot.slane %v4700_v8, 2  ;;  %s9926_s27 = sld [smem:[#allocation6 + $0x12]] }
 0x536   : > { %11293 = vst [vmem:[#allocation94_spill] sm:$0xff] %v9507_v16  ;;  %v9515_v33 = vpop.permute.xlu1 %3339  ;;  %v9523_v16 = vadd.f32 %v8664_v37, %v8971_v22  ;;  %v9527_v19 = vadd.f32 %v8666_v57, %v8981_v62  ;;  %v11294_v34 = vstv %s8905_s9  ;;  %v3639_v37 = vstv %s9461_s7  ;;  %s9737_s9 = sld [smem:[#allocation6 + $0x1d]] }
 0x537   : > { %v9517_v50 = vpop.permute.xlu0 %3337  ;;  %v9532_v9 = vmul.f32 %v9094_v3, %v11294_v34  ;;  %v11296_v51 = vmov %v11294_v34  ;;  %v4743_v57 = vmul.f32 %v9256_v14, %v4741_v53  ;;  %v4744_v22 = vmul.f32 %v4741_v53, %v9210_v47  ;;  %s9941_s7 = sld [smem:[#allocation6 + $0x36]] }
 0x538   : > { %v9537_v1 = vmul.f32 %v9103_v2, %v11296_v51  ;;  %4498 = vrot.lane.b32.xlu1 %v9354_v24, %s11228_s30  ;;  %v4742_v62 = vmul.f32 %v9260_v45, %v4741_v53  ;;  %v9550_v35 = vsel %vm580_vm1, %v4686_v29, %v4688_v61  ;;  %v4728_v51 = vrot.slane %v4722_v4, 2 }
 0x539   : > { %11295 = vst [vmem:[#allocation95_spill] sm:$0xff] %v9532_v9  ;;  %4496 = vrot.lane.b32.xlu0 %v9358_v36, %s11228_s30  ;;  %v4730_v26 = vrot.slane %v4723_v0, 2  ;;  %v4727_v8 = vrot.slane %v4721_v44, 2  ;;  %v9557_v24 = vsel %vm580_vm1, %v4685_v10, %v4686_v29  ;;  %v9560_v36 = vsel %vm580_vm1, %v4707_v41, %v4709_v25 }
 0x53a   : > { %11297 = vst [vmem:[#allocation101_spill] sm:$0xff] %v9537_v1  ;;  %v9552_v34 = vpop.permute.xlu1 %3360  ;;  %v9563_v9 = vsel %vm580_vm1, %v4706_v46, %v4707_v41  ;;  %v4762_v53 = vstv %s9481_s11  ;;  %v9570_v61 = vadd.f32 %v8675_v38, %v8986_v21  ;;  %v9574_v4 = vadd.f32 %v8677_v18, %v8991_v7  ;;  %s9954_s11 = sld [smem:[#allocation6 + $0x5a]] }
 0x53b   : > { %v9554_v1 = vpop.permute.xlu0 %3358  ;;  %v9577_v29 = vmul.f32 %v9094_v3, %v3639_v37  ;;  %v9580_v0 = vmul.f32 %v9103_v2, %v3639_v37  ;;  %v4749_v44 = vrot.slane %v4743_v57, 2  ;;  %v4751_v38 = vrot.slane %v4744_v22, 2 }
 0x53c   : > { %4519 = vrot.lane.b32.xlu1 %v9367_v55, %s11228_s30  ;;  %v4748_v21 = vrot.slane %v4742_v62, 2  ;;  %v4765_v18 = vmul.f32 %v4762_v53, %v9210_v47  ;;  %v9588_v7 = vsel %vm580_vm1, %v4728_v51, %v4730_v26  ;;  %v9591_v10 = vsel %vm580_vm1, %v4727_v8, %v4728_v51 }
 0x53d   : > { %11298 = vst [vmem:[#allocation102_spill] sm:$0xff] %v9577_v29  ;;  %11299 = vst [vmem:[#allocation37_spill] sm:$0xff] %v9580_v0  ;;  %4517 = vrot.lane.b32.xlu0 %v9372_v40, %s11228_s30  ;;  %v3645_v41 = vstv %s9513_s20  ;;  %v4764_v25 = vmul.f32 %v9256_v14, %v4762_v53  ;;  %v9599_v55 = vadd.f32 %v8686_v49, %v9008_v32  ;;  %v3763_v22 = vstv %s9519_s24  ;;  %v11307_v29 = vld [vmem:[#allocation45_spill] sm:$0xff]  ;;  %s9960_s20 = sld [smem:[#allocation6 + $0x44]] }
 0x53e   : > { %v9603_v40 = vadd.f32 %v8688_v28, %v9013_v39  ;;  %v9605_v46 = vpop.permute.xlu1 %3381  ;;  %v4763_v57 = vmul.f32 %v9260_v45, %v4762_v53  ;;  %v9612_v62 = vmul.f32 %v9094_v3, %v3645_v41  ;;  %v3765_v51 = vmul.f32 %v9094_v3, %v3763_v22  ;;  %s9972_s24 = sld [smem:[#allocation6 + $0x68]] }
 0x53f   : > { %11300 = vst [vmem:[#allocation107_spill] sm:$0xff] %v9605_v46  ;;  %v9607_v37 = vpop.permute.xlu0 %3379  ;;  %v3766_v26 = vmul.f32 %v3763_v22, %v8842_v54  ;;  %v4783_v49 = vstv %s9539_s26  ;;  %v9622_v28 = vsel %vm580_vm1, %v4749_v44, %v4751_v38  ;;  %v9625_v32 = vsel %vm580_vm1, %v4748_v21, %v4749_v44  ;;  %s9984_s26 = sld [smem:[#allocation6 + $0x7e]] }
 0x540   : > { %11301 = vst [vmem:[#allocation109_spill] sm:$0xff] %v9607_v37  ;;  %11302 = vst [vmem:[#allocation25_spill] sm:$0xff] %v9612_v62  ;;  %4540 = vrot.lane.b32.xlu1 %v9375_v63, %s11231_s4  ;;  %v9628_v39 = vmul.f32 %v9103_v2, %v3645_v41  ;;  %v4772_v8 = vrot.slane %v4765_v18, 2  ;;  %v9632_v53 = vadd.f32 %v8697_v56, %v9024_v31  ;;  %v4770_v62 = vrot.slane %v4764_v25, 2 }
 0x541   : > { %4538 = vrot.lane.b32.xlu0 %v9387_v6, %s11231_s4  ;;  %v3764_v63 = vmul.f32 %v9103_v2, %v3763_v22  ;;  %v4786_v0 = vmul.f32 %v4783_v49, %v9210_v47  ;;  %v4769_v44 = vrot.slane %v4763_v57, 2  ;;  %v4785_v21 = vmul.f32 %v9256_v14, %v4783_v49  ;;  %v11308_v57 = vld [vmem:[#allocation46_spill] sm:$0xff] }
 0x542   : > { %11303 = vst [vmem:[#allocation108_spill] sm:$0xff] %v9628_v39  ;;  %v9638_v6 = vpop.permute.xlu1 %3470  ;;  %v4784_v18 = vmul.f32 %v9260_v45, %v4783_v49  ;;  %v3780_v41 = vstv %s9566_s29  ;;  %v3771_v56 = vrot.slane %v3765_v51, 1  ;;  %v3773_v31 = vrot.slane %v3766_v26, 1  ;;  %v11306_v39 = vld [vmem:[#allocation69_spill] sm:$0xff]  ;;  %s9987_s29 = sld [smem:[#allocation6 + $0x15]] }
 0x543   : > { %11304 = vst [vmem:[#allocation110_spill] sm:$0xff] %v9638_v6  ;;  %v9640_v38 = vpop.permute.xlu0 %3468  ;;  %v3782_v25 = vmul.f32 %v9094_v3, %v3780_v41  ;;  %v3783_v22 = vmul.f32 %v3780_v41, %v8842_v54  ;;  %v9651_v6 = vadd.f32 %v11307_v29, %v11306_v39  ;;  %v9660_v51 = vsel %vm580_vm1, %v4770_v62, %v4772_v8  ;;  %v11309_v26 = vld [vmem:[#allocation97_spill] sm:$0xff] }
 0x544   : > { %11305 = vst [vmem:[#allocation88_spill] sm:$0xff] %v9640_v38  ;;  %v3108_v38 = vadd.f32 %v11308_v57, %v9523_v16  ;;  %4561 = vrot.lane.b32.xlu1 %v9418_v59, %s11231_s4  ;;  %v3107_v49 = vadd.f32 %v11309_v26, %v9527_v19  ;;  %v3770_v54 = vrot.slane %v3764_v63, 1  ;;  %v4793_v37 = vrot.slane %v4786_v0, 2  ;;  %v11314_v26 = vld [vmem:[#allocation47_spill] sm:$0xff] }
 0x545   : > { %4559 = vrot.lane.b32.xlu0 %v9424_v23, %s11231_s4  ;;  %v4804_v46 = vstv %s9595_s10  ;;  %v9670_v16 = vsel %vm580_vm1, %v4769_v44, %v4770_v62  ;;  %v4791_v59 = vrot.slane %v4785_v21, 2  ;;  %v4790_v57 = vrot.slane %v4784_v18, 2  ;;  %s10000_s10 = sld [smem:[#allocation6 + $0x8c]] }
 0x546   : > { %v9665_v29 = vpop.permute.xlu1 %3491  ;;  %v3781_v23 = vmul.f32 %v9103_v2, %v3780_v41  ;;  %v9676_v8 = vsel %vm343_vm0, %v3771_v56, %v3773_v31  ;;  %v9679_v19 = vsel %vm343_vm0, %v3770_v54, %v3771_v56  ;;  %v3788_v0 = vrot.slane %v3782_v25, 1  ;;  %v9716_v54 = vld [vmem:[#allocation2 + $0x28] sm:$0x3] }
 0x547   : > { %11310 = vst [vmem:[#allocation89_spill] sm:$0xff] %v9665_v29  ;;  %v9667_v39 = vpop.permute.xlu0 %3489  ;;  %11312 = vst [vmem:[#allocation33_spill] sm:$0xff] %v9676_v8  ;;  %v3790_v63 = vrot.slane %v3783_v22, 1  ;;  %v3122_v62 = vadd.f32 %v11314_v26, %v9570_v61  ;;  %v9684_v44 = vadd.f32 %v9188_v48, %v3108_v38  ;;  %v4806_v21 = vmul.f32 %v9256_v14, %v4804_v46 }
 0x548   : > { %11311 = vst [vmem:[#allocation22_spill] sm:$0xff] %v9667_v39  ;;  %11313 = vst [vmem:[#allocation23_spill] sm:$0xff] %v9679_v19  ;;  %4582 = vrot.lane.b32.xlu1 %v9452_v12, %s11231_s4  ;;  %v9692_v18 = vadd.f32 %v9195_v30, %v3107_v49  ;;  %v9695_v41 = vsel %vm580_vm1, %v4791_v59, %v4793_v37  ;;  %v4807_v56 = vmul.f32 %v4804_v46, %v9210_v47  ;;  %v11317_v30 = vld [vmem:[#allocation48_spill] sm:$0xff] }
 0x549   : > { %4580 = vrot.lane.b32.xlu0 %v9464_v43, %s11231_s4  ;;  %v3797_v61 = vstv %s9636_s17  ;;  %v9704_v12 = vsel %vm580_vm1, %v4790_v57, %v4791_v59  ;;  %v3787_v38 = vrot.slane %v3781_v23, 1  ;;  %v4805_v43 = vmul.f32 %v9260_v45, %v4804_v46  ;;  %s10025_s17 = sld [smem:[#allocation6 + $0x39]] }
 0x54a   : > { %v9699_v31 = vpop.permute.xlu1 %3512  ;;  %v4825_v25 = vstv %s9645_s19  ;;  %v3121_v37 = vadd.f32 %v11317_v30, %v9574_v4  ;;  %v9713_v22 = vsel %vm343_vm0, %v3788_v0, %v3790_v63  ;;  %v3799_v49 = vmul.f32 %v9094_v3, %v3797_v61  ;;  %s10042_s19 = sld [smem:[#allocation6 + $0x22]] }
 0x54b   : > { %11315 = vst [vmem:[#allocation35_spill] sm:$0xff] %v9699_v31  ;;  %v9701_v48 = vpop.permute.xlu0 %3510  ;;  %11318 = vst [vmem:[#allocation36_spill] sm:$0xff] %v9713_v22  ;;  %v3800_v26 = vmul.f32 %v9716_v54, %v3797_v61  ;;  %v9722_v59 = vadd.f32 %v9226_v20, %v3122_v62  ;;  %v9729_v4 = vsel %vm343_vm0, %v3787_v38, %v3788_v0  ;;  %v4812_v46 = vrot.slane %v4806_v21, 2  ;;  %v11321_v0 = vld [vmem:[#allocation50_spill] sm:$0xff] }
 0x54c   : > { %11316 = vst [vmem:[#allocation34_spill] sm:$0xff] %v9701_v48  ;;  %4603 = vrot.lane.b32.xlu1 %v9484_v42, %s11231_s4  ;;  %11319 = vst [vmem:[#allocation24_spill] sm:$0xff] %v9729_v4  ;;  %v4828_v57 = vmul.f32 %v4825_v25, %v9210_v47  ;;  %v4814_v23 = vrot.slane %v4807_v56, 2  ;;  %v3798_v63 = vmul.f32 %v9103_v2, %v3797_v61  ;;  %v11320_v42 = vld [vmem:[#allocation49_spill] sm:$0xff]  ;;  %v4811_v30 = vrot.slane %v4805_v43, 2  ;;  %v11324_v4 = vld [vmem:[#allocation51_spill] sm:$0xff] }
 0x54d   : > { %4601 = vrot.lane.b32.xlu0 %v9487_v17, %s11231_s4  ;;  %v4827_v20 = vmul.f32 %v9256_v14, %v4825_v25  ;;  %v4826_v62 = vmul.f32 %v9260_v45, %v4825_v25  ;;  %v3136_v17 = vadd.f32 %v11320_v42, %v9599_v55  ;;  %v3135_v38 = vadd.f32 %v11321_v0, %v9603_v40  ;;  %v11325_v42 = vld [vmem:[#allocation52_spill] sm:$0xff]  ;;  %v11326_v0 = vld [vmem:[#allocation91_spill] sm:$0xff] }
 0x54e   : > { %v9743_v21 = vpop.permute.xlu1 %3533  ;;  %v3814_v56 = vstv %s9673_s28  ;;  %v3805_v61 = vrot.slane %v3799_v49, 1  ;;  %v3807_v19 = vrot.slane %v3800_v26, 1  ;;  %v3150_v55 = vadd.f32 %v11324_v4, %v9632_v53  ;;  %s10088_s28 = sld [smem:[#allocation6 + $0x5d]] }
 0x54f   : > { %11322 = vst [vmem:[#allocation39_spill] sm:$0xff] %v9743_v21  ;;  %v9745_v47 = vpop.permute.xlu0 %3531  ;;  %v3816_v25 = vmul.f32 %v9094_v3, %v3814_v56  ;;  %v3817_v8 = vmul.f32 %v9716_v54, %v3814_v56  ;;  %v3149_v40 = vadd.f32 %v11325_v42, %v9651_v6  ;;  %v9757_v22 = vadd.f32 %v11326_v0, %v3121_v37  ;;  %v11327_v6 = vld [vmem:[#allocation93_spill] sm:$0xff]  ;;  %v11328_v37 = vld [vmem:[#allocation98_spill] sm:$0xff] }
 0x550   : > { %11323 = vst [vmem:[#allocation38_spill] sm:$0xff] %v9745_v47  ;;  %4692 = vrot.lane.b32.xlu1 %v9550_v35, %s11228_s30  ;;  %v4835_v43 = vrot.slane %v4828_v57, 2  ;;  %v3804_v49 = vrot.slane %v3798_v63, 1  ;;  %v4833_v26 = vrot.slane %v4827_v20, 2  ;;  %v4832_v47 = vrot.slane %v4826_v62, 2 }
 0x551   : > { %4690 = vrot.lane.b32.xlu0 %v9557_v24, %s11228_s30  ;;  %v3815_v53 = vmul.f32 %v9103_v2, %v3814_v56  ;;  %v9769_v4 = vadd.f32 %v11327_v6, %v3136_v17  ;;  %v9772_v42 = vadd.f32 %v11328_v37, %v3135_v38  ;;  %v9779_v57 = vsel %vm580_vm1, %v4812_v46, %v4814_v23  ;;  %v11333_v23 = vld [vmem:[#allocation99_spill] sm:$0xff] }
 0x552   : > { %v9774_v35 = vpop.permute.xlu1 %3554  ;;  %v9782_v63 = vsel %vm580_vm1, %v4811_v30, %v4812_v46  ;;  %v9787_v20 = vsel %vm343_vm0, %v3805_v61, %v3807_v19  ;;  %v9790_v62 = vsel %vm343_vm0, %v3804_v49, %v3805_v61  ;;  %v3822_v17 = vrot.slane %v3816_v25, 1  ;;  %v11334_v46 = vld [vmem:[#allocation19_spill] sm:$0xff] }
 0x553   : > { %11329 = vst [vmem:[#allocation40_spill] sm:$0xff] %v9774_v35  ;;  %v9776_v24 = vpop.permute.xlu0 %3552  ;;  %11331 = vst [vmem:[#allocation41_spill] sm:$0xff] %v9787_v20  ;;  %v3824_v38 = vrot.slane %v3817_v8, 1  ;;  %v9795_v56 = vadd.f32 %v11333_v23, %v3150_v55  ;;  %v9798_v30 = vadd.f32 %v11334_v46, %v3149_v40  ;;  %v9805_v19 = vsel %vm580_vm1, %v4833_v26, %v4835_v43  ;;  %v9836_v23 = vld [vmem:[#allocation2 + $0x48] sm:$0xff] }
 0x554   : > { %11330 = vst [vmem:[#allocation26_spill] sm:$0xff] %v9776_v24  ;;  %11332 = vst [vmem:[#allocation27_spill] sm:$0xff] %v9790_v62  ;;  %4713 = vrot.lane.b32.xlu1 %v9560_v36, %s11228_s30  ;;  %v4901_v8 = vstv %s9719_s6  ;;  %v9811_v61 = vsel %vm580_vm1, %v4832_v47, %v4833_v26  ;;  %v3821_v25 = vrot.slane %v3815_v53, 1  ;;  %v4915_v55 = vstv %s9732_s8  ;;  %v9831_v26 = vld [vmem:[#allocation2 + $0x50] sm:$0xff]  ;;  %s10145_s6 = sld [smem:[#allocation6 + $0x81]] }
 0x555   : > { %11335 = vst [vmem:[#allocation42_spill] sm:$0xff] %v9798_v30  ;;  %4711 = vrot.lane.b32.xlu0 %v9563_v9, %s11228_s30  ;;  %v3999_v0 = vstv %s9708_s5  ;;  %v4929_v9 = vstv %s9737_s9  ;;  %v4943_v49 = vstv %s9748_s0  ;;  %v9826_v37 = vsel %vm343_vm0, %v3822_v17, %v3824_v38  ;;  %s10134_s5 = sld [smem:[#allocation6 + $0x46]] }
 0x556   : > { %v9817_v40 = vpop.permute.xlu1 %3575  ;;  %v4001_v43 = vmul.f32 %v9094_v3, %v3999_v0  ;;  %v4002_v6 = vmul.f32 %v9716_v54, %v3999_v0  ;;  %11338 = vst [vmem:[#allocation69_spill] sm:$0xff] %v9826_v37  ;;  %v9829_v47 = vsel %vm343_vm0, %v3821_v25, %v3822_v17  ;;  %v9834_v53 = vmul.f32 %v9831_v26, %v4901_v8  ;;  %v9853_v37 = vld [vmem:[#allocation2 + $0x58] sm:$0x3]  ;;  %s10237_s8 = sld [smem:[#allocation6 + $0x6a]] }
 0x557   : > { %11336 = vst [vmem:[#allocation43_spill] sm:$0xff] %v9817_v40  ;;  %v9819_v36 = vpop.permute.xlu0 %3573  ;;  %11339 = vst [vmem:[#allocation45_spill] sm:$0xff] %v9829_v47  ;;  %v9839_v46 = vmul.f32 %v9836_v23, %v4901_v8  ;;  %v9846_v17 = vmul.f32 %v9831_v26, %v4915_v55  ;;  %v9849_v38 = vmul.f32 %v9836_v23, %v4915_v55  ;;  %v4957_v25 = vstv %s9763_s1  ;;  %s10243_s9 = sld [smem:[#allocation6 + $0x8e]] }
 0x558   : > { %11337 = vst [vmem:[#allocation44_spill] sm:$0xff] %v9819_v36  ;;  %4734 = vrot.lane.b32.xlu1 %v9588_v7, %s11228_s30  ;;  %v4000_v47 = vmul.f32 %v9103_v2, %v3999_v0  ;;  %v9856_v8 = vmul.f32 %v9831_v26, %v4929_v9  ;;  %v9859_v7 = vmul.f32 %v9836_v23, %v4929_v9  ;;  %v4016_v62 = vstv %s9766_s2  ;;  %s10293_s0 = sld [smem:[#allocation6 + $0x23]] }
 0x559   : > { %4732 = vrot.lane.b32.xlu0 %v9591_v10, %s11228_s30  ;;  %v9862_v10 = vmul.f32 %v9831_v26, %v4943_v49  ;;  %v9872_v0 = vmul.f32 %v9836_v23, %v4943_v49  ;;  %v4007_v21 = vrot.slane %v4001_v43, 2  ;;  %v4009_v24 = vrot.slane %v4002_v6, 2  ;;  %s10326_s1 = sld [smem:[#allocation6 + $0x47]] }
 0x55a   : > { %v9867_v55 = vpop.permute.xlu1 %3596  ;;  %v5053_v35 = vstv %s9784_s3  ;;  %v9878_v9 = vmul.f32 %v9831_v26, %v4957_v25  ;;  %v4971_v48 = vstv %s9792_s12  ;;  %v4018_v31 = vmul.f32 %v9094_v3, %v4016_v62  ;;  %s10413_s2 = sld [smem:[#allocation6 + $0x6b]] }
 0x55b   : > { %11340 = vst [vmem:[#allocation46_spill] sm:$0xff] %v9867_v55  ;;  %v9869_v20 = vpop.permute.xlu0 %3594  ;;  %v4019_v55 = vmul.f32 %v9716_v54, %v4016_v62  ;;  %v9888_v49 = vmul.f32 %v9836_v23, %v4957_v25  ;;  %v4006_v43 = vrot.slane %v4000_v47, 2  ;;  %v4017_v6 = vmul.f32 %v9103_v2, %v4016_v62  ;;  %s10426_s3 = sld [smem:[#allocation6 + $0x18]] }
 0x55c   : > { %11341 = vst [vmem:[#allocation97_spill] sm:$0xff] %v9869_v20  ;;  %4755 = vrot.lane.b32.xlu1 %v9622_v28, %s11228_s30  ;;  %v5056_v20 = vmul.f32 %v5053_v35, %v9853_v37  ;;  %v5055_v36 = vmul.f32 %v9831_v26, %v5053_v35  ;;  %v5054_v40 = vmul.f32 %v9836_v23, %v5053_v35  ;;  %v4033_v39 = vstv %s9808_s14  ;;  %s10454_s12 = sld [smem:[#allocation6 + $0x8f]] }
 0x55d   : > { %4753 = vrot.lane.b32.xlu0 %v9625_v32, %s11228_s30  ;;  %v5074_v29 = vstv %s9815_s15  ;;  %v9903_v32 = vsel %vm580_vm1, %v4007_v21, %v4009_v24  ;;  %v9906_v47 = vsel %vm580_vm1, %v4006_v43, %v4007_v21  ;;  %v9909_v62 = vmul.f32 %v9831_v26, %v4971_v48  ;;  %s10459_s14 = sld [smem:[#allocation6 + $0x3c]] }
 0x55e   : > { %v9898_v28 = vpop.permute.xlu1 %3617  ;;  %11344 = vst [vmem:[#allocation49_spill] sm:$0xff] %v9903_v32  ;;  %11345 = vst [vmem:[#allocation50_spill] sm:$0xff] %v9906_v47  ;;  %v9912_v35 = vmul.f32 %v9836_v23, %v4971_v48  ;;  %v4024_v25 = vrot.slane %v4018_v31, 2  ;;  %v4026_v30 = vrot.slane %v4019_v55, 2  ;;  %v4035_v11 = vmul.f32 %v9094_v3, %v4033_v39  ;;  %s10517_s15 = sld [smem:[#allocation6 + $0x60]] }
 0x55f   : > { %11342 = vst [vmem:[#allocation47_spill] sm:$0xff] %v9898_v28  ;;  %v9900_v13 = vpop.permute.xlu0 %3615  ;;  %v4036_v28 = vmul.f32 %v9716_v54, %v4033_v39  ;;  %v5063_v21 = vrot.slane %v5056_v20, 1  ;;  %v4034_v24 = vmul.f32 %v9103_v2, %v4033_v39  ;;  %v5076_v43 = vmul.f32 %v9831_v26, %v5074_v29  ;;  %v6273_v20 = vld [vmem:[#allocation2 + $0x20] sm:$0xff] }
 0x560   : > { %11343 = vst [vmem:[#allocation48_spill] sm:$0xff] %v9900_v13  ;;  %11346 = vst [vmem:[#allocation51_spill] sm:$0xff] %v9912_v35  ;;  %4776 = vrot.lane.b32.xlu1 %v9660_v51, %s11231_s4  ;;  %v5077_v48 = vmul.f32 %v5074_v29, %v9853_v37  ;;  %v4023_v31 = vrot.slane %v4017_v6, 2  ;;  %v5061_v3 = vrot.slane %v5055_v36, 1  ;;  %v5060_v55 = vrot.slane %v5054_v40, 1 }
 0x561   : > { %4774 = vrot.lane.b32.xlu0 %v9670_v16, %s11231_s4  ;;  %v4050_v47 = vstv %s9865_s18  ;;  %v5075_v16 = vmul.f32 %v9836_v23, %v5074_v29  ;;  %v5095_v13 = vstv %s9875_s21  ;;  %v9936_v35 = vsel %vm580_vm1, %v4024_v25, %v4026_v30  ;;  %s10556_s18 = sld [smem:[#allocation6 + $0x84]] }
 0x562   : > { %v9928_v51 = vpop.permute.xlu1 %3845  ;;  %v4052_v2 = vmul.f32 %v6273_v20, %v4050_v47  ;;  %v4053_v39 = vmul.f32 %v9716_v54, %v4050_v47  ;;  %11349 = vst [vmem:[#allocation93_spill] sm:$0xff] %v9936_v35  ;;  %v9939_v40 = vsel %vm580_vm1, %v4023_v31, %v4024_v25  ;;  %v4041_v36 = vrot.slane %v4035_v11, 2  ;;  %s6073_s21 = sld [smem:[#allocation6 + $0x87]] }
 0x563   : > { %11347 = vst [vmem:[#allocation52_spill] sm:$0xff] %v9928_v51  ;;  %v9930_v32 = vpop.permute.xlu0 %3843  ;;  %11350 = vst [vmem:[#allocation98_spill] sm:$0xff] %v9939_v40  ;;  %v4043_v6 = vrot.slane %v4036_v28, 2  ;;  %v9948_v29 = vsel %vm343_vm0, %v5061_v3, %v5063_v21  ;;  %v4040_v54 = vrot.slane %v4034_v24, 2  ;;  %v5082_v20 = vrot.slane %v5076_v43, 1  ;;  %v6274_v24 = vld [vmem:[#allocation2 + $0x18] sm:$0xff] }
 0x564   : > { %11348 = vst [vmem:[#allocation91_spill] sm:$0xff] %v9930_v32  ;;  %4797 = vrot.lane.b32.xlu1 %v9695_v41, %s11231_s4  ;;  %v5084_v30 = vrot.slane %v5077_v48, 1  ;;  %v5097_v35 = vmul.f32 %v9831_v26, %v5095_v13  ;;  %v5098_v25 = vmul.f32 %v5095_v13, %v9853_v37  ;;  %v5096_v11 = vmul.f32 %v9836_v23, %v5095_v13 }
 0x565   : > { %4795 = vrot.lane.b32.xlu0 %v9704_v12, %s11231_s4  ;;  %v5116_v28 = vstv %s9896_s22  ;;  %v5081_v12 = vrot.slane %v5075_v16, 1  ;;  %v4058_v21 = vrot.slane %v4052_v2, 2  ;;  %v4060_v40 = vrot.slane %v4053_v39, 2  ;;  %s6082_s22 = sld [smem:[#allocation6 + $0x1e]] }
 0x566   : > { %v9956_v31 = vpop.permute.xlu1 %3866  ;;  %v4051_v43 = vmul.f32 %v6274_v24, %v4050_v47  ;;  %v9963_v48 = vsel %vm343_vm0, %v5060_v55, %v5061_v3  ;;  %v9966_v13 = vsel %vm580_vm1, %v4041_v36, %v4043_v6  ;;  %v9969_v32 = vsel %vm580_vm1, %v4040_v54, %v4041_v36 }
 0x567   : > { %11351 = vst [vmem:[#allocation99_spill] sm:$0xff] %v9956_v31  ;;  %v9958_v41 = vpop.permute.xlu0 %3864  ;;  %11353 = vst [vmem:[#allocation111_spill] sm:$0xff] %v9966_v13  ;;  %v5119_v51 = vmul.f32 %v5116_v28, %v9853_v37  ;;  %v9979_v47 = vsel %vm343_vm0, %v5082_v20, %v5084_v30  ;;  %v5118_v3 = vmul.f32 %v9831_v26, %v5116_v28  ;;  %v5137_v16 = vstv %s9923_s23  ;;  %v10076_v13 = vld [vmem:[#allocation2 + $0x40] sm:$0x3]  ;;  %s6083_s23 = sld [smem:[#allocation6 + $0x42]] }
 0x568   : > { %11352 = vst [vmem:[#allocation19_spill] sm:$0xff] %v9958_v41  ;;  %11354 = vst [vmem:[#allocation112_spill] sm:$0xff] %v9969_v32  ;;  %4818 = vrot.lane.b32.xlu1 %v9779_v57, %s11231_s4  ;;  %v5117_v55 = vmul.f32 %v9836_v23, %v5116_v28  ;;  %v5103_v2 = vrot.slane %v5097_v35, 1  ;;  %v5105_v39 = vrot.slane %v5098_v25, 1  ;;  %v5102_v36 = vrot.slane %v5096_v11, 1 }
 0x569   : > { %4816 = vrot.lane.b32.xlu0 %v9782_v63, %s11231_s4  ;;  %v4238_v6 = vstv %s9926_s27  ;;  %v9994_v54 = vsel %vm343_vm0, %v5081_v12, %v5082_v20  ;;  %v9997_v30 = vsel %vm580_vm1, %v4058_v21, %v4060_v40  ;;  %v4057_v28 = vrot.slane %v4051_v43, 2  ;;  %11369 = vst [vmem:[#allocation127_spill] sm:$0xff] %v10076_v13  ;;  %s6070_s27 = sld [smem:[#allocation6 + $0x1b]] }
 0x56a   : > { %v9989_v57 = vpop.permute.xlu1 %3887  ;;  %11357 = vst [vmem:[#allocation115_spill] sm:$0xff] %v9997_v30  ;;  %v5140_v24 = vmul.f32 %v5137_v16, %v9853_v37  ;;  %v5126_v35 = vrot.slane %v5119_v51, 1  ;;  %v4244_v25 = vstv %s9941_s7  ;;  %v5139_v11 = vmul.f32 %v9831_v26, %v5137_v16  ;;  %s10650_s7 = sld [smem:[#allocation6 + $0x3f]] }
 0x56b   : > { %11355 = vst [vmem:[#allocation113_spill] sm:$0xff] %v9989_v57  ;;  %v9991_v63 = vpop.permute.xlu0 %3885  ;;  %v5138_v32 = vmul.f32 %v9836_v23, %v5137_v16  ;;  %v10010_v40 = vsel %vm580_vm1, %v4057_v28, %v4058_v21  ;;  %v10013_v20 = vmul.f32 %v9256_v14, %v4238_v6  ;;  %v5124_v12 = vrot.slane %v5118_v3, 1 }
 0x56c   : > { %11356 = vst [vmem:[#allocation114_spill] sm:$0xff] %v9991_v63  ;;  %4839 = vrot.lane.b32.xlu1 %v9805_v19, %s11231_s4  ;;  %11358 = vst [vmem:[#allocation116_spill] sm:$0xff] %v10010_v40  ;;  %v5123_v51 = vrot.slane %v5117_v55, 1  ;;  %v10016_v43 = vsel %vm343_vm0, %v5103_v2, %v5105_v39  ;;  %v10019_v16 = vsel %vm343_vm0, %v5102_v36, %v5103_v2  ;;  %v4250_v30 = vstv %s9954_s11  ;;  %s6084_s11 = sld [smem:[#allocation6 + $0x66]] }
 0x56d   : > { %4837 = vrot.lane.b32.xlu0 %v9811_v61, %s11231_s4  ;;  %11359 = vst [vmem:[#allocation117_spill] sm:$0xff] %v10013_v20  ;;  %v10022_v19 = vmul.f32 %v9260_v45, %v4238_v6  ;;  %v10032_v3 = vmul.f32 %v9256_v14, %v4244_v25  ;;  %v10035_v55 = vmul.f32 %v9260_v45, %v4244_v25  ;;  %v5147_v2 = vrot.slane %v5140_v24, 1 }
 0x56e   : > { %v10027_v61 = vpop.permute.xlu1 %3908  ;;  %v5158_v39 = vstv %s9960_s20  ;;  %v10039_v36 = vsel %vm343_vm0, %v5124_v12, %v5126_v35  ;;  %v5145_v6 = vrot.slane %v5139_v11, 1  ;;  %v5144_v28 = vrot.slane %v5138_v32, 1  ;;  %s6085_s20 = sld [smem:[#allocation6 + $0x8a]] }
 0x56f   : > { %11360 = vst [vmem:[#allocation118_spill] sm:$0xff] %v10022_v19  ;;  %11361 = vst [vmem:[#allocation119_spill] sm:$0xff] %v10027_v61  ;;  %v10029_v21 = vpop.permute.xlu0 %3906  ;;  %v5179_v19 = vstv %s9972_s24  ;;  %v10049_v25 = vsel %vm343_vm0, %v5123_v51, %v5124_v12  ;;  %v10052_v24 = vmul.f32 %v9256_v14, %v4250_v30  ;;  %v10055_v35 = vmul.f32 %v9260_v45, %v4250_v30  ;;  %s10661_s24 = sld [smem:[#allocation6 + $0x21]] }
 0x570   : > { %11362 = vst [vmem:[#allocation120_spill] sm:$0xff] %v10029_v21  ;;  %11363 = vst [vmem:[#allocation121_spill] sm:$0xff] %v10032_v3  ;;  %4908 = vrot.lane.b32.xlu1 %v9834_v53, %s11228_s30  ;;  %v5160_v32 = vmul.f32 %v9831_v26, %v5158_v39  ;;  %v5161_v11 = vmul.f32 %v5158_v39, %v9853_v37  ;;  %v4256_v20 = vstv %s9984_s26  ;;  %v5200_v30 = vstv %s10000_s10  ;;  %s10670_s26 = sld [smem:[#allocation6 + $0x45]] }
 0x571   : > { %11364 = vst [vmem:[#allocation122_spill] sm:$0xff] %v10035_v55  ;;  %4906 = vrot.lane.b32.xlu0 %v9839_v46, %s11228_s30  ;;  %11365 = vst [vmem:[#allocation123_spill] sm:$0xff] %v10052_v24  ;;  %v4374_v55 = vstv %s9987_s29  ;;  %v10066_v46 = vsel %vm343_vm0, %v5145_v6, %v5147_v2  ;;  %v5159_v12 = vmul.f32 %v9836_v23, %v5158_v39  ;;  %s10682_s29 = sld [smem:[#allocation6 + $0x69]] }
 0x572   : > { %11366 = vst [vmem:[#allocation124_spill] sm:$0xff] %v10055_v35  ;;  %v10061_v3 = vpop.permute.xlu1 %3929  ;;  %v5181_v51 = vmul.f32 %v9831_v26, %v5179_v19  ;;  %v10072_v35 = vsel %vm343_vm0, %v5144_v28, %v5145_v6  ;;  %v5182_v24 = vmul.f32 %v5179_v19, %v9853_v37  ;;  %v5180_v40 = vmul.f32 %v9836_v23, %v5179_v19  ;;  %s10714_s10 = sld [smem:[#allocation6 + $0x8d]] }
 0x573   : > { %11367 = vst [vmem:[#allocation125_spill] sm:$0xff] %v10061_v3  ;;  %v10063_v53 = vpop.permute.xlu0 %3927  ;;  %v4377_v21 = vmul.f32 %v10076_v13, %v4374_v55  ;;  %v10084_v2 = vmul.f32 %v9256_v14, %v4256_v20  ;;  %v4376_v39 = vmul.f32 %v9256_v14, %v4374_v55  ;;  %v4375_v6 = vmul.f32 %v9260_v45, %v4374_v55 }
 0x574   : > { %11368 = vst [vmem:[#allocation126_spill] sm:$0xff] %v10063_v53  ;;  %4922 = vrot.lane.b32.xlu1 %v9846_v17, %s11228_s30  ;;  %v5166_v19 = vrot.slane %v5160_v32, 1  ;;  %v5168_v28 = vrot.slane %v5161_v11, 1  ;;  %v5202_v61 = vmul.f32 %v9831_v26, %v5200_v30  ;;  %v4391_v53 = vstv %s10025_s17  ;;  %v10103_v32 = vld [vmem:[#allocation2 + $0x30] sm:$0xff] }
 0x575   : > { %4920 = vrot.lane.b32.xlu0 %v9849_v38, %s11228_s30  ;;  %11370 = vst [vmem:[#allocation128_spill] sm:$0xff] %v10084_v2  ;;  %v5165_v38 = vrot.slane %v5159_v12, 1  ;;  %v5187_v63 = vrot.slane %v5181_v51, 1  ;;  %v5203_v2 = vmul.f32 %v5200_v30, %v9853_v37  ;;  %v5201_v14 = vmul.f32 %v9836_v23, %v5200_v30  ;;  %11373 = vst [vmem:[#allocation131_spill] sm:$0xff] %v10103_v32 }
 0x576   : > { %v10092_v3 = vpop.permute.xlu1 %3950  ;;  %v5189_v57 = vrot.slane %v5182_v24, 1  ;;  %v5186_v41 = vrot.slane %v5180_v40, 1  ;;  %v4384_v45 = vrot.slane %v4377_v21, 1  ;;  %v5289_v55 = vstv %s10042_s19 }
 0x577   : > { %11371 = vst [vmem:[#allocation129_spill] sm:$0xff] %v10092_v3  ;;  %v10094_v17 = vpop.permute.xlu0 %3948  ;;  %v10106_v11 = vmul.f32 %v10103_v32, %v4256_v20  ;;  %v4382_v12 = vrot.slane %v4376_v39, 1  ;;  %v4381_v51 = vrot.slane %v4375_v6, 1  ;;  %v10112_v40 = vsel %vm343_vm0, %v5166_v19, %v5168_v28 }
 0x578   : > { %11372 = vst [vmem:[#allocation130_spill] sm:$0xff] %v10094_v17  ;;  %4936 = vrot.lane.b32.xlu1 %v9856_v8, %s11231_s4  ;;  %v10108_v17 = vld [vmem:[#allocation2 + $0x38] sm:$0xff]  ;;  %v5208_v21 = vrot.slane %v5202_v61, 1  ;;  %v4394_v8 = vmul.f32 %v10076_v13, %v4391_v53  ;;  %v4392_v30 = vmul.f32 %v10103_v32, %v4391_v53  ;;  %v5210_v20 = vrot.slane %v5203_v2, 1 }
 0x579   : > { %4934 = vrot.lane.b32.xlu0 %v9859_v7, %s11231_s4  ;;  %11374 = vst [vmem:[#allocation132_spill] sm:$0xff] %v10106_v11  ;;  %11375 = vst [vmem:[#allocation133_spill] sm:$0xff] %v10108_v17  ;;  %v4393_v24 = vmul.f32 %v10108_v17, %v4391_v53  ;;  %v5207_v39 = vrot.slane %v5201_v14, 1  ;;  %v5291_v6 = vmul.f32 %v9831_v26, %v5289_v55 }
 0x57a   : > { %v10116_v7 = vpop.permute.xlu1 %3971  ;;  %v5292_v11 = vmul.f32 %v5289_v55, %v9853_v37  ;;  %v10123_v31 = vsel %vm343_vm0, %v5165_v38, %v5166_v19  ;;  %v10126_v61 = vsel %vm343_vm0, %v5187_v63, %v5189_v57  ;;  %v10129_v28 = vsel %vm343_vm0, %v5186_v41, %v5187_v63 }
 0x57b   : > { %v10118_v3 = vpop.permute.xlu0 %3969  ;;  %v10132_v53 = vsel %vm343_vm0, %v4382_v12, %v4384_v45  ;;  %v10141_v2 = vsel %vm343_vm0, %v4381_v51, %v4382_v12  ;;  %v4399_v19 = vrot.slane %v4393_v24, 1  ;;  %v5290_v57 = vmul.f32 %v9836_v23, %v5289_v55 }
 0x57c   : > { %11376 = vst [vmem:[#allocation134_spill] sm:$0xff] %v10132_v53  ;;  %4950 = vrot.lane.b32.xlu1 %v9862_v10, %s11231_s4  ;;  %11377 = vst [vmem:[#allocation135_spill] sm:$0xff] %v10141_v2  ;;  %v4408_v38 = vstv %s10088_s28  ;;  %v3260_v41 = vadd.f32 %v9382_v60, %v9722_v59  ;;  %v3259_v63 = vadd.f32 %v9384_v52, %v9757_v22  ;;  %v4401_v14 = vrot.slane %v4394_v8, 1  ;;  %v11378_v2 = vld [vmem:[#allocation20_spill] sm:$0xff] }
 0x57d   : > { %4948 = vrot.lane.b32.xlu0 %v9872_v0, %s11231_s4  ;;  %v4398_v10 = vrot.slane %v4392_v30, 1  ;;  %v10156_v12 = vsel %vm343_vm0, %v5208_v21, %v5210_v20  ;;  %v10159_v55 = vsel %vm343_vm0, %v5207_v39, %v5208_v21  ;;  %v5297_v51 = vrot.slane %v5291_v6, 2  ;;  %v11379_v8 = vld [vmem:[#allocation68_spill] sm:$0xff]  ;;  %v11381_v21 = vld [vmem:[#allocation85_spill] sm:$0xff] }
 0x57e   : > { %v10151_v45 = vpop.permute.xlu1 %3992  ;;  %v5299_v24 = vrot.slane %v5292_v11, 2  ;;  %v3239_v60 = vadd.f32 %v11378_v2, %v9684_v44  ;;  %v3344_v59 = vadd.f32 %v9515_v33, %v3260_v41  ;;  %v3343_v52 = vadd.f32 %v9517_v50, %v3259_v63  ;;  %v11380_v20 = vld [vmem:[#allocation32_spill] sm:$0xff]  ;;  %v11387_v63 = vld [vmem:[#allocation73_spill] sm:$0xff] }
 0x57f   : > { %v10153_v0 = vpop.permute.xlu0 %3990  ;;  %v10166_v22 = vmul.f32 %v10108_v17, %v4408_v38  ;;  %v3238_v30 = vadd.f32 %v11379_v8, %v9692_v18  ;;  %v3281_v53 = vadd.f32 %v11380_v20, %v9769_v4  ;;  %v3280_v39 = vadd.f32 %v11381_v21, %v9772_v42  ;;  %v11391_v8 = vld [vmem:[#allocation107_spill] sm:$0xff]  ;;  %v11393_v21 = vld [vmem:[#allocation74_spill] sm:$0xff] }
 0x580   : > { %4964 = vrot.lane.b32.xlu1 %v9878_v9, %s11231_s4  ;;  %v5296_v33 = vrot.slane %v5290_v57, 2  ;;  %v3323_v50 = vadd.f32 %v9473_v58, %v3239_v60  ;;  %v10180_v44 = vsel %vm343_vm0, %v4399_v19, %v4401_v14  ;;  %v10183_v18 = vsel %vm343_vm0, %v4398_v10, %v4399_v19  ;;  %v11388_v10 = vld [vmem:[#allocation105_spill] sm:$0xff] }
 0x581   : > { %4962 = vrot.lane.b32.xlu0 %v9888_v49, %s11231_s4  ;;  %11382 = vst [vmem:[#allocation20_spill] sm:$0xff] %v10180_v44  ;;  %11383 = vst [vmem:[#allocation68_spill] sm:$0xff] %v10183_v18  ;;  %v4411_v4 = vmul.f32 %v10076_v13, %v4408_v38  ;;  %v3322_v42 = vadd.f32 %v9475_v15, %v3238_v30  ;;  %v3365_v9 = vadd.f32 %v9552_v34, %v3281_v53  ;;  %v11384_v15 = vld [vmem:[#allocation21_spill] sm:$0xff]  ;;  %v11392_v30 = vld [vmem:[#allocation106_spill] sm:$0xff] }
 0x582   : > { %v3364_v11 = vadd.f32 %v9554_v1, %v3280_v39  ;;  %v10189_v6 = vpop.permute.xlu1 %4081  ;;  %v10194_v58 = vmul.f32 %v10103_v32, %v4408_v38  ;;  %v3420_v2 = vadd.f32 %v9446_v27, %v3344_v59  ;;  %v3419_v19 = vadd.f32 %v9449_v5, %v3343_v52  ;;  %v11385_v1 = vld [vmem:[#allocation51_spill] sm:$0xff]  ;;  %v11386_v5 = vld [vmem:[#allocation42_spill] sm:$0xff]  ;;  %v11389_v60 = vld [vmem:[#allocation89_spill] sm:$0xff] }
 0x583   : > { %v10191_v49 = vpop.permute.xlu0 %4079  ;;  %v10199_v57 = vsel %vm580_vm1, %v5297_v51, %v5299_v24  ;;  %v5310_v41 = vstv %s10134_s5  ;;  %v3302_v34 = vadd.f32 %v11384_v15, %v9795_v56  ;;  %v10209_v53 = vsel %vm580_vm1, %v5296_v33, %v5297_v51  ;;  %v11390_v56 = vld [vmem:[#allocation22_spill] sm:$0xff]  ;;  %v11394_v51 = vld [vmem:[#allocation79_spill] sm:$0xff]  ;;  %v11409_v18 = vld [vmem:[#allocation101_spill] sm:$0xff] }
 0x584   : > { %4978 = vrot.lane.b32.xlu1 %v9909_v62, %s11231_s4  ;;  %v4416_v27 = vrot.slane %v10166_v22, 1  ;;  %v4425_v38 = vstv %s10145_s6  ;;  %v3301_v14 = vadd.f32 %v11387_v63, %v11386_v5  ;;  %v3403_v24 = vadd.f32 %v11388_v10, %v3323_v50  ;;  %v11396_v63 = vld [vmem:[#allocation110_spill] sm:$0xff]  ;;  %v11397_v10 = vld [vmem:[#allocation43_spill] sm:$0xff] }
 0x585   : > { %4976 = vrot.lane.b32.xlu0 %v11385_v1, %s11231_s4  ;;  %v3496_v59 = vadd.f32 %v11389_v60, %v3420_v2  ;;  %v3495_v52 = vadd.f32 %v11390_v56, %v3419_v19  ;;  %v3386_v62 = vadd.f32 %v11391_v8, %v3302_v34  ;;  %v3402_v20 = vadd.f32 %v11392_v30, %v3322_v42  ;;  %v11395_v1 = vld [vmem:[#allocation109_spill] sm:$0xff]  ;;  %v11398_v60 = vld [vmem:[#allocation44_spill] sm:$0xff]  ;;  %v11400_v8 = vld [vmem:[#allocation35_spill] sm:$0xff] }
 0x586   : > { %v3437_v39 = vadd.f32 %v11393_v21, %v3365_v9  ;;  %v3436_v33 = vadd.f32 %v11394_v51, %v3364_v11  ;;  %v10222_v15 = vpop.permute.xlu1 %4102  ;;  %v3385_v5 = vadd.f32 %v11395_v1, %v3301_v14  ;;  %v3475_v50 = vadd.f32 %v11396_v63, %v3403_v24  ;;  %v11399_v56 = vld [vmem:[#allocation88_spill] sm:$0xff]  ;;  %v11401_v30 = vld [vmem:[#allocation34_spill] sm:$0xff] }
 0x587   : > { %v10224_v22 = vpop.permute.xlu0 %4100  ;;  %v3580_v2 = vadd.f32 %v11397_v10, %v3496_v59  ;;  %v3579_v19 = vadd.f32 %v11398_v60, %v3495_v52  ;;  %v3474_v34 = vadd.f32 %v11399_v56, %v3402_v20  ;;  %v4418_v11 = vrot.slane %v4411_v4, 1  ;;  %v11402_v20 = vld [vmem:[#allocation40_spill] sm:$0xff]  ;;  %v11404_v51 = vld [vmem:[#allocation46_spill] sm:$0xff]  ;;  %v11407_v56 = vld [vmem:[#allocation87_spill] sm:$0xff] }
 0x588   : > { %v3517_v42 = vadd.f32 %v11400_v8, %v3437_v39  ;;  %v3516_v9 = vadd.f32 %v11401_v30, %v3436_v33  ;;  %5067 = vrot.lane.b32.xlu1 %v9948_v29, %s11228_s30  ;;  %v5312_v14 = vmul.f32 %v9831_v26, %v5310_v41  ;;  %v5313_v24 = vmul.f32 %v5310_v41, %v9853_v37  ;;  %v11403_v39 = vld [vmem:[#allocation26_spill] sm:$0xff]  ;;  %v11406_v10 = vld [vmem:[#allocation80_spill] sm:$0xff]  ;;  %v11408_v8 = vld [vmem:[#allocation95_spill] sm:$0xff] }
 0x589   : > { %5065 = vrot.lane.b32.xlu0 %v9963_v48, %s11228_s30  ;;  %v5311_v59 = vmul.f32 %v9836_v23, %v5310_v41  ;;  %v4427_v52 = vmul.f32 %v10108_v17, %v4425_v38  ;;  %v3559_v21 = vadd.f32 %v11402_v20, %v3475_v50  ;;  %v3558_v29 = vadd.f32 %v11403_v39, %v3474_v34  ;;  %v11405_v48 = vld [vmem:[#allocation97_spill] sm:$0xff]  ;;  %v11413_v39 = vld [vmem:[#allocation86_spill] sm:$0xff] }
 0x58a   : > { %v3601_v33 = vadd.f32 %v11404_v51, %v3517_v42  ;;  %v3600_v4 = vadd.f32 %v11405_v48, %v3516_v9  ;;  %v10249_v1 = vpop.permute.xlu1 %4123  ;;  %v3454_v60 = vadd.f32 %v11406_v10, %v3386_v62  ;;  %v3453_v41 = vadd.f32 %v11407_v56, %v3385_v5  ;;  %v11411_v5 = vld [vmem:[#allocation39_spill] sm:$0xff]  ;;  %v11414_v51 = vld [vmem:[#allocation94_spill] sm:$0xff] }
 0x58b   : > { %v10251_v63 = vpop.permute.xlu0 %4121  ;;  %v3637_v30 = vadd.f32 %v11408_v8, %v3580_v2  ;;  %v3636_v44 = vadd.f32 %v11409_v18, %v3579_v19  ;;  %v10262_v50 = vsel %vm343_vm0, %v4416_v27, %v4418_v11  ;;  %v4415_v34 = vrot.slane %v10194_v58, 1  ;;  %v11412_v2 = vld [vmem:[#allocation38_spill] sm:$0xff]  ;;  %v11416_v11 = vld [vmem:[#allocation37_spill] sm:$0xff] }
 0x58c   : > { %5088 = vrot.lane.b32.xlu1 %v9979_v47, %s11228_s30  ;;  %11410 = vst [vmem:[#allocation32_spill] sm:$0xff] %v10262_v50  ;;  %v4428_v42 = vmul.f32 %v10076_v13, %v4425_v38  ;;  %v4426_v62 = vmul.f32 %v10103_v32, %v4425_v38  ;;  %v3538_v9 = vadd.f32 %v11411_v5, %v3454_v60  ;;  %v5318_v18 = vrot.slane %v5312_v14, 2  ;;  %v11417_v38 = vld [vmem:[#allocation28_spill] sm:$0xff]  ;;  %v11418_v5 = vld [vmem:[#allocation29_spill] sm:$0xff]  ;;  %v11419_v14 = vld [vmem:[#allocation47_spill] sm:$0xff] }
 0x58d   : > { %5086 = vrot.lane.b32.xlu0 %v9994_v54, %s11228_s30  ;;  %v3537_v20 = vadd.f32 %v11412_v2, %v3453_v41  ;;  %v5320_v19 = vrot.slane %v5313_v24, 2  ;;  %v3631_v47 = vadd.f32 %v11413_v39, %v3559_v21  ;;  %v3630_v48 = vadd.f32 %v11414_v51, %v3558_v29  ;;  %v11415_v54 = vld [vmem:[#allocation102_spill] sm:$0xff]  ;;  %v11420_v2 = vld [vmem:[#allocation48_spill] sm:$0xff] }
 0x58e   : > { %v3643_v10 = vadd.f32 %v11415_v54, %v3601_v33  ;;  %v3642_v56 = vadd.f32 %v11416_v11, %v3600_v4  ;;  %v10273_v58 = vpop.permute.xlu1 %4144  ;;  %v3677_v60 = vadd.f32 %v11417_v38, %v3637_v30  ;;  %v3676_v41 = vadd.f32 %v11418_v5, %v3636_v44  ;;  %v11424_v38 = vld [vmem:[#allocation30_spill] sm:$0xff]  ;;  %v11425_v5 = vld [vmem:[#allocation55_spill] sm:$0xff]  ;;  %v11447_v32 = vld [vmem:[#allocation64_spill] sm:$0xff] }
 0x58f   : > { %v10275_v8 = vpop.permute.xlu0 %4142  ;;  %v3622_v24 = vadd.f32 %v11419_v14, %v3538_v9  ;;  %v3621_v21 = vadd.f32 %v11420_v2, %v3537_v20  ;;  %v10286_v29 = vsel %vm343_vm0, %v4415_v34, %v4416_v27  ;;  %v5317_v33 = vrot.slane %v5311_v59, 2  ;;  %v11422_v20 = vld [vmem:[#allocation53_spill] sm:$0xff]  ;;  %v11428_v14 = vld [vmem:[#allocation60_spill] sm:$0xff] }
 0x590   : > { %5109 = vrot.lane.b32.xlu1 %v10016_v43, %s11228_s30  ;;  %11421 = vst [vmem:[#allocation85_spill] sm:$0xff] %v10286_v29  ;;  %v4433_v4 = vrot.slane %v4427_v52, 1  ;;  %v4435_v39 = vrot.slane %v4428_v42, 1  ;;  %v10289_v30 = vsel %vm580_vm1, %v5318_v18, %v5320_v19  ;;  %v4432_v44 = vrot.slane %v4426_v62, 1  ;;  %v11423_v43 = vld [vmem:[#allocation54_spill] sm:$0xff]  ;;  %v11426_v52 = vld [vmem:[#allocation25_spill] sm:$0xff] }
 0x591   : > { %5107 = vrot.lane.b32.xlu0 %v10019_v16, %s11228_s30  ;;  %v5331_v51 = vstv %s10237_s8  ;;  %v5352_v9 = vstv %s10243_s9  ;;  %v3663_v54 = vadd.f32 %v11422_v20, %v3631_v47  ;;  %v3662_v11 = vadd.f32 %v11423_v43, %v3630_v48  ;;  %v11427_v19 = vld [vmem:[#allocation108_spill] sm:$0xff]  ;;  %v11429_v29 = vld [vmem:[#allocation31_spill] sm:$0xff]  ;;  %v11435_v20 = vld [vmem:[#allocation62_spill] sm:$0xff] }
 0x592   : > { %v3691_v16 = vadd.f32 %v11424_v38, %v3643_v10  ;;  %v3690_v27 = vadd.f32 %v11425_v5, %v3642_v56  ;;  %v10299_v34 = vpop.permute.xlu1 %4165  ;;  %v3649_v42 = vadd.f32 %v11426_v52, %v3622_v24  ;;  %v3648_v62 = vadd.f32 %v11427_v19, %v3621_v21  ;;  %v11433_v24 = vld [vmem:[#allocation59_spill] sm:$0xff]  ;;  %v11437_v38 = vld [vmem:[#allocation57_spill] sm:$0xff]  ;;  %v11438_v52 = vld [vmem:[#allocation36_spill] sm:$0xff] }
 0x593   : > { %v10301_v59 = vpop.permute.xlu0 %4163  ;;  %v3733_v2 = vadd.f32 %v11428_v14, %v3677_v60  ;;  %v3732_v50 = vadd.f32 %v11429_v29, %v3676_v41  ;;  %v10312_v47 = vsel %vm580_vm1, %v5317_v33, %v5318_v18  ;;  %v5333_v48 = vmul.f32 %v9831_v26, %v5331_v51  ;;  %v11434_v29 = vld [vmem:[#allocation61_spill] sm:$0xff]  ;;  %v11439_v14 = vld [vmem:[#allocation24_spill] sm:$0xff] }
 0x594   : > { %5130 = vrot.lane.b32.xlu1 %v10039_v36, %s11228_s30  ;;  %v5334_v10 = vmul.f32 %v5331_v51, %v9853_v37  ;;  %v10317_v56 = vsel %vm343_vm0, %v4433_v4, %v4435_v39  ;;  %v10320_v60 = vsel %vm343_vm0, %v4432_v44, %v4433_v4  ;;  %v5332_v41 = vmul.f32 %v9836_v23, %v5331_v51  ;;  %v11436_v44 = vld [vmem:[#allocation56_spill] sm:$0xff] }
 0x595   : > { %5128 = vrot.lane.b32.xlu0 %v10049_v25, %s11228_s30  ;;  %11430 = vst [vmem:[#allocation21_spill] sm:$0xff] %v10317_v56  ;;  %11431 = vst [vmem:[#allocation51_spill] sm:$0xff] %v10320_v60  ;;  %v10324_v36 = vmul.f32 %v9831_v26, %v5352_v9  ;;  %v11432_v25 = vld [vmem:[#allocation58_spill] sm:$0xff]  ;;  %v3718_v21 = vadd.f32 %v11433_v24, %v3662_v11  ;;  %v3747_v33 = vadd.f32 %v11434_v29, %v3691_v16  ;;  %v11442_v29 = vld [vmem:[#allocation33_spill] sm:$0xff] }
 0x596   : > { %v3719_v18 = vadd.f32 %v11432_v25, %v3663_v54  ;;  %v3746_v43 = vadd.f32 %v11435_v20, %v3690_v27  ;;  %v10332_v39 = vpop.permute.xlu1 %4186  ;;  %v3705_v51 = vadd.f32 %v11436_v44, %v3649_v42  ;;  %v3704_v5 = vadd.f32 %v11437_v38, %v3648_v62  ;;  %v11440_v42 = vld [vmem:[#allocation99_spill] sm:$0xff]  ;;  %v11444_v38 = vld [vmem:[#allocation41_spill] sm:$0xff] }
 0x597   : > { %v10334_v4 = vpop.permute.xlu0 %4184  ;;  %v3795_v19 = vadd.f32 %v11438_v52, %v3733_v2  ;;  %v3794_v60 = vadd.f32 %v11439_v14, %v3732_v50  ;;  %v5339_v54 = vrot.slane %v5333_v48, 2  ;;  %v5341_v11 = vrot.slane %v5334_v10, 2  ;;  %v11441_v25 = vld [vmem:[#allocation19_spill] sm:$0xff] }
 0x598   : > { %5151 = vrot.lane.b32.xlu1 %v10066_v46, %s11231_s4  ;;  %v10345_v16 = vmul.f32 %v5352_v9, %v9853_v37  ;;  %v10348_v27 = vmul.f32 %v9836_v23, %v5352_v9  ;;  %v5338_v24 = vrot.slane %v5332_v41, 2  ;;  %v5373_v50 = vstv %s10293_s0  ;;  %v11443_v46 = vld [vmem:[#allocation23_spill] sm:$0xff] }
 0x599   : > { %5149 = vrot.lane.b32.xlu0 %v10072_v35, %s11231_s4  ;;  %v3871_v62 = vadd.f32 %v11440_v42, %v3795_v19  ;;  %v3870_v2 = vadd.f32 %v11441_v25, %v3794_v60  ;;  %v3778_v20 = vadd.f32 %v11442_v29, %v3719_v18  ;;  %v3777_v44 = vadd.f32 %v11443_v46, %v3718_v21  ;;  %v11445_v48 = vld [vmem:[#allocation27_spill] sm:$0xff]  ;;  %v11448_v19 = vld [vmem:[#allocation129_spill] sm:$0xff]  ;;  %v11449_v60 = vld [vmem:[#allocation130_spill] sm:$0xff] }
 0x59a   : > { %v3812_v35 = vadd.f32 %v11444_v38, %v3747_v33  ;;  %v3811_v10 = vadd.f32 %v11445_v48, %v3746_v43  ;;  %v4208_v52 = vpop.permute.xlu1 %4207  ;;  %v11446_v56 = vld [vmem:[#allocation63_spill] sm:$0xff]  ;;  %v3760_v13 = vadd.f32 %v11447_v32, %v3704_v5  ;;  %v11450_v25 = vld [vmem:[#allocation52_spill] sm:$0xff]  ;;  %v11451_v18 = vld [vmem:[#allocation113_spill] sm:$0xff]  ;;  %v10370_v32 = vsel %vm580_vm1, %v5339_v54, %v5341_v11 }
 0x59b   : > { %v4206_v14 = vpop.permute.xlu0 %4205  ;;  %v3761_v9 = vadd.f32 %v11446_v56, %v3705_v51  ;;  %v3955_v42 = vadd.f32 %v11448_v19, %v3871_v62  ;;  %v3954_v41 = vadd.f32 %v11449_v60, %v3870_v2  ;;  %v3850_v17 = vadd.f32 %v11450_v25, %v3778_v20  ;;  %v11452_v21 = vld [vmem:[#allocation114_spill] sm:$0xff]  ;;  %v11453_v5 = vld [vmem:[#allocation91_spill] sm:$0xff]  ;;  %v11454_v2 = vld [vmem:[#allocation125_spill] sm:$0xff] }
 0x59c   : > { %v3892_v29 = vadd.f32 %v11451_v18, %v3812_v35  ;;  %v3891_v46 = vadd.f32 %v11452_v21, %v3811_v10  ;;  %5172 = vrot.lane.b32.xlu1 %v10112_v40, %s11231_s4  ;;  %v5360_v56 = vrot.slane %v10324_v36, 2  ;;  %v5362_v33 = vrot.slane %v10345_v16, 2  ;;  %v11455_v11 = vld [vmem:[#allocation69_spill] sm:$0xff]  ;;  %v11458_v60 = vld [vmem:[#allocation98_spill] sm:$0xff] }
 0x59d   : > { %5170 = vrot.lane.b32.xlu0 %v10123_v31, %s11231_s4  ;;  %v10374_v43 = vmul.f32 %v9831_v26, %v5373_v50  ;;  %v5394_v51 = vstv %s10326_s1  ;;  %v3849_v62 = vadd.f32 %v11453_v5, %v3777_v44  ;;  %v3934_v20 = vadd.f32 %v11454_v2, %v3850_v17  ;;  %v11456_v48 = vld [vmem:[#allocation45_spill] sm:$0xff]  ;;  %v11459_v18 = vld [vmem:[#allocation126_spill] sm:$0xff]  ;;  %v11463_v5 = vld [vmem:[#allocation111_spill] sm:$0xff]  ;;  %s11511_s1 = smov 1  }
 0x59e   : > { %v3976_v40 = vadd.f32 %v10116_v7, %v3892_v29  ;;  %v3975_v38 = vadd.f32 %v10118_v3, %v3891_v46  ;;  %v10381_v31 = vpop.permute.xlu1 %4228  ;;  %v3829_v35 = vadd.f32 %v11455_v11, %v3761_v9  ;;  %v3828_v16 = vadd.f32 %v11456_v48, %v3760_v13  ;;  %v11457_v10 = vld [vmem:[#allocation93_spill] sm:$0xff]  ;;  %v11460_v13 = vld [vmem:[#allocation119_spill] sm:$0xff] }
 0x59f   : > { %v10383_v36 = vpop.permute.xlu0 %4226  ;;  %v4031_v19 = vadd.f32 %v11457_v10, %v3955_v42  ;;  %v4030_v25 = vadd.f32 %v11458_v60, %v3954_v41  ;;  %v3933_v44 = vadd.f32 %v11459_v18, %v3849_v62  ;;  %v10395_v3 = vsel %vm580_vm1, %v5338_v24, %v5339_v54  ;;  %v11461_v42 = vld [vmem:[#allocation120_spill] sm:$0xff]  ;;  %v11466_v10 = vld [vmem:[#allocation115_spill] sm:$0xff]  ;;  %v11469_v18 = vld [vmem:[#allocation122_spill] sm:$0xff] }
 0x5a0   : > { %5193 = vrot.lane.b32.xlu1 %v10126_v61, %s11231_s4  ;;  %v5359_v17 = vrot.slane %v10348_v27, 2  ;;  %v10399_v7 = vmul.f32 %v5373_v50, %v9853_v37  ;;  %v3913_v9 = vadd.f32 %v11460_v13, %v3829_v35  ;;  %v3912_v41 = vadd.f32 %v11461_v42, %v3828_v16  ;;  %v11462_v61 = vld [vmem:[#allocation49_spill] sm:$0xff]  ;;  %v11464_v62 = vld [vmem:[#allocation112_spill] sm:$0xff]  ;;  %v11465_v35 = vld [vmem:[#allocation50_spill] sm:$0xff] }
 0x5a1   : > { %5191 = vrot.lane.b32.xlu0 %v10129_v28, %s11231_s4  ;;  %v4107_v29 = vadd.f32 %v10222_v15, %v4031_v19  ;;  %v4106_v21 = vadd.f32 %v10224_v22, %v4030_v25  ;;  %v4014_v46 = vadd.f32 %v11462_v61, %v3934_v20  ;;  %v4048_v28 = vadd.f32 %v11463_v5, %v3976_v40  ;;  %v11467_v19 = vld [vmem:[#allocation116_spill] sm:$0xff]  ;;  %v11473_v61 = vld [vmem:[#allocation71_spill] sm:$0xff]  ;;  %v11474_v5 = vld [vmem:[#allocation117_spill] sm:$0xff] }
 0x5a2   : > { %v4047_v54 = vadd.f32 %v11464_v62, %v3975_v38  ;;  %v10408_v24 = vpop.permute.xlu1 %4456  ;;  %v5374_v2 = vmul.f32 %v9836_v23, %v5373_v50  ;;  %v3997_v11 = vadd.f32 %v10151_v45, %v3913_v9  ;;  %v3996_v15 = vadd.f32 %v10153_v0, %v3912_v41  ;;  %v11470_v9 = vld [vmem:[#allocation123_spill] sm:$0xff]  ;;  %v11471_v42 = vld [vmem:[#allocation124_spill] sm:$0xff]  ;;  %v11475_v62 = vld [vmem:[#allocation118_spill] sm:$0xff] }
 0x5a3   : > { %v10410_v27 = vpop.permute.xlu0 %4454  ;;  %v4191_v22 = vadd.f32 %v10332_v39, %v4107_v29  ;;  %v4190_v20 = vadd.f32 %v10334_v4, %v4106_v21  ;;  %v4013_v40 = vadd.f32 %v11465_v35, %v3933_v44  ;;  %v4128_v38 = vadd.f32 %v10249_v1, %v4048_v28  ;;  %v11472_v21 = vld [vmem:[#allocation70_spill] sm:$0xff] }
 0x5a4   : > { %v4127_v48 = vadd.f32 %v10251_v63, %v4047_v54  ;;  %5214 = vrot.lane.b32.xlu1 %v10156_v12, %s11231_s4  ;;  %v10429_v45 = vsel %vm580_vm1, %v5360_v56, %v5362_v33  ;;  %v10432_v0 = vsel %vm580_vm1, %v5359_v17, %v5360_v56  ;;  %v5396_v39 = vmul.f32 %v9831_v26, %v5394_v51  ;;  %v11468_v56 = vld [vmem:[#allocation121_spill] sm:$0xff] }
 0x5a5   : > { %5212 = vrot.lane.b32.xlu0 %v10159_v55, %s11231_s4  ;;  %v5397_v1 = vmul.f32 %v5394_v51, %v9853_v37  ;;  %v4086_v63 = vadd.f32 %v10189_v6, %v4014_v46  ;;  %v4085_v4 = vadd.f32 %v10191_v49, %v4013_v40  ;;  %v4212_v12 = vadd.f32 %v4208_v52, %v4128_v38  ;;  %v11477_v40 = vld [vmem:[#allocation75_spill] sm:$0xff] }
 0x5a6   : > { %v4211_v50 = vadd.f32 %v4206_v14, %v4127_v48  ;;  %v10438_v16 = vpop.permute.xlu1 %4477  ;;  %v4065_v33 = vadd.f32 %v11466_v10, %v3997_v11  ;;  %v4064_v60 = vadd.f32 %v11467_v19, %v3996_v15  ;;  %v4248_v25 = vadd.f32 %v11468_v56, %v4191_v22 }
 0x5a7   : > { %v10440_v55 = vpop.permute.xlu0 %4475  ;;  %v4247_v44 = vadd.f32 %v11469_v18, %v4190_v20  ;;  %v4170_v17 = vadd.f32 %v10299_v34, %v4086_v63  ;;  %v4169_v6 = vadd.f32 %v10301_v59, %v4085_v4  ;;  %v5381_v49 = vrot.slane %v10374_v43, 2  ;;  %v11479_v4 = vld [vmem:[#allocation132_spill] sm:$0xff] }
 0x5a8   : > { %5303 = vrot.lane.b32.xlu1 %v10199_v57, %s11228_s30  ;;  %v5383_v52 = vrot.slane %v10399_v7, 2  ;;  %v4149_v14 = vadd.f32 %v10273_v58, %v4065_v33  ;;  %v4148_v13 = vadd.f32 %v10275_v8, %v4064_v60  ;;  %v5380_v34 = vrot.slane %v5374_v2, 2  ;;  %v11481_v33 = vld [vmem:[#allocation83_spill] sm:$0xff]  ;;  %v11482_v60 = vld [vmem:[#allocation65_spill] sm:$0xff] }
 0x5a9   : > { %5301 = vrot.lane.b32.xlu0 %v10209_v53, %s11228_s30  ;;  %v5395_v59 = vmul.f32 %v9836_v23, %v5394_v51  ;;  %v4254_v57 = vadd.f32 %v11470_v9, %v4212_v12  ;;  %v4253_v53 = vadd.f32 %v11471_v42, %v4211_v50  ;;  %v5404_v7 = vrot.slane %v5397_v1, 2  ;;  %v11478_v1 = vld [vmem:[#allocation128_spill] sm:$0xff]  ;;  %v11480_v50 = vld [vmem:[#allocation82_spill] sm:$0xff] }
 0x5aa   : > { %v10463_v41 = vpop.permute.xlu1 %4498  ;;  %v5415_v29 = vstv %s10413_s2  ;;  %v4288_v58 = vadd.f32 %v11472_v21, %v4248_v25  ;;  %v4287_v8 = vadd.f32 %v11473_v61, %v4247_v44  ;;  %v4233_v46 = vadd.f32 %v10381_v31, %v4149_v14  ;;  %v11483_v25 = vld [vmem:[#allocation66_spill] sm:$0xff]  ;;  %s188_s2 = sand.u32 1, %s6371_s13  }
 0x5ab   : > { %v10465_v43 = vpop.permute.xlu0 %4496  ;;  %v4232_v51 = vadd.f32 %v10383_v36, %v4148_v13  ;;  %v4242_v28 = vadd.f32 %v11474_v5, %v4170_v17  ;;  %v4241_v54 = vadd.f32 %v11475_v62, %v4169_v6  ;;  %v5402_v2 = vrot.slane %v5396_v39, 2  ;;  %v11476_v36 = vld [vmem:[#allocation72_spill] sm:$0xff]  ;;  %v11486_v9 = vld [vmem:[#allocation90_spill] sm:$0xff] }
 0x5ac   : > { %5324 = vrot.lane.b32.xlu1 %v10289_v30, %s11228_s30  ;;  %v4610_v11 = vstv %s10426_s3  ;;  %v5384_v15 = vsel %vm580_vm1, %v5381_v49, %v5383_v52  ;;  %v5382_v22 = vsel %vm580_vm1, %v5380_v34, %v5381_v49  ;;  %v5401_v20 = vrot.slane %v5395_v59, 2  ;;  %v11484_v52 = vld [vmem:[#allocation133_spill] sm:$0xff]  ;;  %v11485_v34 = vld [vmem:[#allocation84_spill] sm:$0xff]  ;;  %s5809_s3 = sshll.u32 %s188_s2, 6 }
 0x5ad   : > { %5322 = vrot.lane.b32.xlu0 %v10312_v47, %s11228_s30  ;;  %v10482_v31 = vmul.f32 %v9831_v26, %v5415_v29  ;;  %v4302_v35 = vadd.f32 %v11476_v36, %v4254_v57  ;;  %v4301_v38 = vadd.f32 %v11477_v40, %v4253_v53  ;;  %v10491_v47 = vsel %vm580_vm1, %v5402_v2, %v5404_v7  ;;  %v11487_v7 = vld [vmem:[#allocation127_spill] sm:$0xff] }
 0x5ae   : > { %v10486_v48 = vpop.permute.xlu1 %4519  ;;  %v5418_v39 = vmul.f32 %v5415_v29, %v9853_v37  ;;  %v4260_v63 = vadd.f32 %v11478_v1, %v4233_v46  ;;  %v4259_v12 = vadd.f32 %v11479_v4, %v4232_v51  ;;  %v4344_v10 = vadd.f32 %v11480_v50, %v4288_v58  ;;  %v11489_v58 = vld [vmem:[#allocation81_spill] sm:$0xff]  ;;  %v11491_v51 = vld [vmem:[#allocation68_spill] sm:$0xff] }
 0x5af   : > { %v10488_v30 = vpop.permute.xlu0 %4517  ;;  %v4343_v19 = vadd.f32 %v11481_v33, %v4287_v8  ;;  %v4274_v56 = vadd.f32 %v11482_v60, %v4242_v28  ;;  %v4273_v18 = vadd.f32 %v11483_v25, %v4241_v54  ;;  %v5416_v44 = vmul.f32 %v9836_v23, %v5415_v29  ;;  %v11488_v29 = vld [vmem:[#allocation76_spill] sm:$0xff]  ;;  %v11492_v28 = vld [vmem:[#allocation77_spill] sm:$0xff]  ;;  %v11493_v54 = vld [vmem:[#allocation78_spill] sm:$0xff] }
 0x5b0   : > { %5345 = vrot.lane.b32.xlu1 %v10370_v32, %s11228_s30  ;;  %v5436_v17 = vstv %s10454_s12  ;;  %v5403_v6 = vsel %vm580_vm1, %v5401_v20, %v5402_v2  ;;  %v5423_v49 = vrot.slane %v10482_v31, 2  ;;  %v10509_v14 = vmul.f32 %v11484_v52, %v4610_v11  ;;  %v11490_v8 = vld [vmem:[#allocation20_spill] sm:$0xff]  ;;  %v11494_v31 = vld [vmem:[#allocation131_spill] sm:$0xff]  ;;  %v11496_v4 = vld [vmem:[#allocation85_spill] sm:$0xff]  ;;  %s190_s12 = scalar_lea.vmem [#allocation8], %s5809_s3 }
 0x5b1   : > { %5343 = vrot.lane.b32.xlu0 %v10395_v3, %s11228_s30  ;;  %v4627_v13 = vstv %s10459_s14  ;;  %v4358_v59 = vadd.f32 %v11485_v34, %v4302_v35  ;;  %v4357_v57 = vadd.f32 %v11486_v9, %v4301_v38  ;;  %v5425_v53 = vrot.slane %v5418_v39, 2  ;;  %v11495_v1 = vld [vmem:[#allocation32_spill] sm:$0xff]  ;;  %v11500_v25 = vld [vmem:[#allocation135_spill] sm:$0xff]  ;;  %s5717_s14 = sshll.u32 %s190_s12, 4  ;;  %s10877_s14 = int_to_ptr.vmem [resolvable:$true] %s5717_s14 }
 0x5b2   : > { %v4541_v42 = vpop.permute.xlu1 %4540  ;;  %v10515_v3 = vmul.f32 %v11487_v7, %v4610_v11  ;;  %v4316_v21 = vadd.f32 %v11488_v29, %v4260_v63  ;;  %v4315_v61 = vadd.f32 %v11489_v58, %v4259_v12  ;;  %v4406_v46 = vadd.f32 %v11490_v8, %v4344_v10 }
 0x5b3   : > { %v4539_v32 = vpop.permute.xlu0 %4538  ;;  %v4405_v5 = vadd.f32 %v11491_v51, %v4343_v19  ;;  %v4330_v62 = vadd.f32 %v11492_v28, %v4274_v56  ;;  %v4329_v2 = vadd.f32 %v11493_v54, %v4273_v18  ;;  %v5422_v20 = vrot.slane %v5416_v44, 2 }
 0x5b4   : > { %5366 = vrot.lane.b32.xlu1 %v10429_v45, %s11228_s30  ;;  %v4611_v36 = vmul.f32 %v11494_v31, %v4610_v11  ;;  %v4482_v35 = vadd.f32 %v10438_v16, %v4406_v46  ;;  %v4618_v38 = vrot.slane %v10509_v14, 2  ;;  %v10534_v39 = vmul.f32 %v9831_v26, %v5436_v17  ;;  %v11497_v11 = vld [vmem:[#allocation96_spill] sm:$0xff]  ;;  %v11499_v26 = vld [vmem:[#allocation134_spill] sm:$0xff] }
 0x5b5   : > { %5364 = vrot.lane.b32.xlu0 %v10432_v0, %s11228_s30  ;;  %v4481_v40 = vadd.f32 %v10440_v55, %v4405_v5  ;;  %v4423_v63 = vadd.f32 %v11495_v1, %v4358_v59  ;;  %v4422_v12 = vadd.f32 %v11496_v4, %v4357_v57  ;;  %v5439_v0 = vmul.f32 %v5436_v17, %v9853_v37  ;;  %v11498_v16 = vld [vmem:[#allocation92_spill] sm:$0xff] }
 0x5b6   : > { %v4562_v45 = vpop.permute.xlu1 %4561  ;;  %v5437_v10 = vmul.f32 %v9836_v23, %v5436_v17  ;;  %v4372_v33 = vadd.f32 %v11497_v11, %v4316_v21  ;;  %v4371_v19 = vadd.f32 %v11498_v16, %v4315_v61  ;;  %v4389_v56 = vadd.f32 %v11499_v26, %v4330_v62 }
 0x5b7   : > { %v4560_v50 = vpop.permute.xlu0 %4559  ;;  %v10542_v55 = vadd.f32 %v4562_v45, %v4482_v35  ;;  %v4388_v18 = vadd.f32 %v11500_v25, %v4329_v2  ;;  %v5426_v37 = vsel %vm580_vm1, %v5423_v49, %v5425_v53  ;;  %v4620_v23 = vrot.slane %v10515_v3, 2  ;;  %v11501_v3 = vld [vmem:[#allocation21_spill] sm:$0xff] }
 0x5b8   : > { %v10544_v60 = vadd.f32 %v4560_v50, %v4481_v40  ;;  %5387 = vrot.lane.b32.xlu1 %v5384_v15, %s11231_s4  ;;  %v4503_v44 = vadd.f32 %v10463_v41, %v4423_v63  ;;  %v4502_v17 = vadd.f32 %v10465_v43, %v4422_v12  ;;  %v4629_v14 = vmul.f32 %v11484_v52, %v4627_v13  ;;  %v11502_v41 = vld [vmem:[#allocation51_spill] sm:$0xff] }
 0x5b9   : > { %5385 = vrot.lane.b32.xlu0 %v5382_v22, %s11231_s4  ;;  %v4630_v34 = vmul.f32 %v11487_v7, %v4627_v13  ;;  %v4461_v59 = vadd.f32 %v10408_v24, %v4389_v56  ;;  %v4460_v15 = vadd.f32 %v10410_v27, %v4388_v18  ;;  %v4628_v57 = vmul.f32 %v11494_v31, %v4627_v13 }
 0x5ba   : > { %v4583_v9 = vpop.permute.xlu1 %4582  ;;  %v4644_v53 = vstv %s10517_s15  ;;  %v4440_v29 = vadd.f32 %v11501_v3, %v4372_v33  ;;  %v4439_v21 = vadd.f32 %v11502_v41, %v4371_v19  ;;  %v5424_v24 = vsel %vm580_vm1, %v5422_v20, %v5423_v49 }
 0x5bb   : > { %v4581_v22 = vpop.permute.xlu0 %4580  ;;  %v4587_v43 = vadd.f32 %v4583_v9, %v4503_v44  ;;  %v4617_v61 = vrot.slane %v4611_v36, 2  ;;  %v5444_v27 = vrot.slane %v10534_v39, 2  ;;  %v5446_v8 = vrot.slane %v5439_v0, 2 }
 0x5bc   : > { %v4586_v58 = vadd.f32 %v4581_v22, %v4502_v17  ;;  %5408 = vrot.lane.b32.xlu1 %v10491_v47, %s11231_s4  ;;  %v4524_v13 = vadd.f32 %v10486_v48, %v4440_v29  ;;  %v4523_v46 = vadd.f32 %v10488_v30, %v4439_v21  ;;  %v4545_v51 = vadd.f32 %v4541_v42, %v4461_v59 }
 0x5bd   : > { %5406 = vrot.lane.b32.xlu0 %v5403_v6, %s11231_s4  ;;  %v4544_v5 = vadd.f32 %v4539_v32, %v4460_v15  ;;  %v5443_v54 = vrot.slane %v5437_v10, 2  ;;  %v4635_v2 = vrot.slane %v4629_v14, 2  ;;  %v4637_v47 = vrot.slane %v4630_v34, 2 }
 0x5be   : > { %v4604_v28 = vpop.permute.xlu1 %4603  ;;  %v4646_v6 = vmul.f32 %v11484_v52, %v4644_v53  ;;  %v4634_v20 = vrot.slane %v4628_v57, 2  ;;  %v4647_v36 = vmul.f32 %v11487_v7, %v4644_v53  ;;  %v4621_v48 = vsel %vm580_vm1, %v4618_v38, %v4620_v23 }
 0x5bf   : > { %v4602_v62 = vpop.permute.xlu0 %4601  ;;  %v4608_v35 = vadd.f32 %v4604_v28, %v4524_v13  ;;  %v4619_v30 = vsel %vm580_vm1, %v4617_v61, %v4618_v38  ;;  %v4645_v42 = vmul.f32 %v11494_v31, %v4644_v53  ;;  %v4625_v32 = vadd.f32 %v4621_v48, %v4545_v51  ;;  %v10605_v48 = vld [vmem:[#allocation2 + $0x48] sm:$0xff] }
 0x5c0   : > { %v4607_v49 = vadd.f32 %v4602_v62, %v4523_v46  ;;  %5429 = vrot.lane.b32.xlu1 %v5426_v37, %s11231_s4  ;;  %v4624_v40 = vadd.f32 %v4619_v30, %v4544_v5  ;;  %v4661_v39 = vstv %s10556_s18  ;;  %v5447_v4 = vsel %vm580_vm1, %v5444_v27, %v5446_v8 }
 0x5c1   : > { %5427 = vrot.lane.b32.xlu0 %v5424_v24, %s11231_s4  ;;  %v5445_v12 = vsel %vm580_vm1, %v5443_v54, %v5444_v27  ;;  %v4638_v45 = vsel %vm580_vm1, %v4635_v2, %v4637_v47  ;;  %v4652_v50 = vrot.slane %v4646_v6, 2  ;;  %v4636_v11 = vsel %vm580_vm1, %v4634_v20, %v4635_v2  ;;  %v10602_v20 = vld [vmem:[#allocation2 + $0x50] sm:$0xff] }
 0x5c2   : > { %v4693_v1 = vpop.permute.xlu1 %4692  ;;  %v4654_v33 = vrot.slane %v4647_v36, 2  ;;  %v4651_v38 = vrot.slane %v4645_v42, 2  ;;  %v4663_v16 = vmul.f32 %v11484_v52, %v4661_v39  ;;  %v4664_v19 = vmul.f32 %v11487_v7, %v4661_v39 }
 0x5c3   : > { %v4691_v63 = vpop.permute.xlu0 %4690  ;;  %v4697_v0 = vadd.f32 %v4693_v1, %v4625_v32  ;;  %v4662_v26 = vmul.f32 %v11494_v31, %v4661_v39  ;;  %v4642_v56 = vadd.f32 %v4638_v45, %v10542_v55  ;;  %v4641_v25 = vadd.f32 %v4636_v11, %v10544_v60 }
 0x5c4   : > { %v4696_v10 = vadd.f32 %v4691_v63, %v4624_v40  ;;  %5450 = vrot.lane.b32.xlu1 %v5447_v4, %s11231_s4  ;;  %v4655_v17 = vsel %vm580_vm1, %v4652_v50, %v4654_v33  ;;  %v4653_v14 = vsel %vm580_vm1, %v4651_v38, %v4652_v50  ;;  %v4669_v34 = vrot.slane %v4663_v16, 2 }
 0x5c5   : > { %5448 = vrot.lane.b32.xlu0 %v5445_v12, %s11231_s4  ;;  %v4671_v59 = vrot.slane %v4664_v19, 2  ;;  %v4668_v15 = vrot.slane %v4662_v26, 2  ;;  %v4659_v52 = vadd.f32 %v4655_v17, %v4587_v43  ;;  %v4658_v9 = vadd.f32 %v4653_v14, %v4586_v58  ;;  %s6072_s4 = sld [smem:[#allocation6 + $0x63]] }
 0x5c6   : > { %v4714_v18 = vpop.permute.xlu1 %4713  ;;  %v4867_v42 = vstv %s6073_s21 }
 0x5c7   : > { %v4712_v37 = vpop.permute.xlu0 %4711  ;;  %v4718_v23 = vadd.f32 %v4714_v18, %v4642_v56  ;;  %v4672_v55 = vsel %vm580_vm1, %v4669_v34, %v4671_v59  ;;  %v4670_v60 = vsel %vm580_vm1, %v4668_v15, %v4669_v34  ;;  %v4869_v12 = vmul.f32 %v10602_v20, %v4867_v42 }
 0x5c8   : > { %v4717_v44 = vadd.f32 %v4712_v37, %v4641_v25  ;;  %v4676_v53 = vadd.f32 %v4672_v55, %v4608_v35  ;;  %v4675_v3 = vadd.f32 %v4670_v60, %v4607_v49  ;;  %v4868_v45 = vmul.f32 %v10605_v48, %v4867_v42 }
 0x5c9   : > { %v5002_v60 = vstv %s6083_s23  ;;  %s6387_s23 = smov [#allocation8]  }
 0x5ca   : > { %v4735_v7 = vpop.permute.xlu1 %4734 }
 0x5cb   : > { %v4733_v22 = vpop.permute.xlu0 %4732  ;;  %v4739_v31 = vadd.f32 %v4735_v7, %v4659_v52  ;;  %v4861_v2 = vstv %s6072_s4  ;;  %v4985_v7 = vstv %s6082_s22  ;;  %s11513_s4 = sld [smem:[#allocation139_spill]]  ;;  %s6311_s22 = scalar_lea.vmem %s10877_s14, 1024 }
 0x5cc   : > { %v4738_v57 = vadd.f32 %v4733_v22, %v4658_v9  ;;  %v4863_v36 = vmul.f32 %v10602_v20, %v4861_v2  ;;  %v4862_v30 = vmul.f32 %v10605_v48, %v4861_v2  ;;  %p6312_p10 = scmp.ne.s32.totalorder %s10877_s14, %s6311_s22 }
 0x5ce   : > { %v4756_v29 = vpop.permute.xlu1 %4755 }
 0x5cf   : > { %v4754_v41 = vpop.permute.xlu0 %4753  ;;  %v4760_v21 = vadd.f32 %v4756_v29, %v4676_v53  ;;  %v4987_v53 = vmul.f32 %v10602_v20, %v4985_v7 }
 0x5d0   : > { %v4759_v24 = vadd.f32 %v4754_v41, %v4675_v3  ;;  %v4986_v3 = vmul.f32 %v10605_v48, %v4985_v7 }
 0x5d2   : > { %v4777_v61 = vpop.permute.xlu1 %4776 }
 0x5d3   : > { %v4775_v27 = vpop.permute.xlu0 %4774  ;;  %v10594_v8 = vadd.f32 %v4777_v61, %v4697_v0  ;;  %v5004_v61 = vmul.f32 %v10602_v20, %v5002_v60 }
 0x5d4   : > { %v10596_v43 = vadd.f32 %v4775_v27, %v4696_v10  ;;  %v5003_v27 = vmul.f32 %v10605_v48, %v5002_v60 }
 0x5d6   : > { %v4798_v58 = vpop.permute.xlu1 %4797  ;;  %v5009_v42 = vrot.slane %v5003_v27, 1  ;;  %v5238_v27 = vstv %s10670_s26 }
 0x5d7   : > { %v4796_v13 = vpop.permute.xlu0 %4795  ;;  %v10598_v46 = vadd.f32 %v4798_v58, %v4718_v23 }
 0x5d8   : > { %v10600_v51 = vadd.f32 %v4796_v13, %v4717_v44  ;;  %v5019_v13 = vstv %s6084_s11 }
 0x5da   : > { %v4819_v5 = vpop.permute.xlu1 %4818 }
 0x5db   : > { %v4817_v28 = vpop.permute.xlu0 %4816  ;;  %v4823_v62 = vadd.f32 %v4819_v5, %v4739_v31  ;;  %v4855_v5 = vstv %s10650_s7 }
 0x5dc   : > { %v4822_v54 = vadd.f32 %v4817_v28, %v4738_v57  ;;  %v10656_v57 = vld [vmem:[#allocation2 + $0x58] sm:$0x3]  ;;  %v4993_v28 = vrot.slane %v4987_v53, 1 }
 0x5dd   : > { %v4865_v32 = vadd.f32 %v4863_v36, %v4823_v62  ;;  %v4988_v55 = vmul.f32 %v10656_v57, %v4985_v7  ;;  %v5005_v29 = vmul.f32 %v10656_v57, %v5002_v60  ;;  %v4992_v62 = vrot.slane %v4986_v3, 1 }
 0x5de   : > { %v4840_v47 = vpop.permute.xlu1 %4839  ;;  %v4864_v40 = vadd.f32 %v4862_v30, %v4822_v54  ;;  %v5036_v54 = vstv %s6085_s20  ;;  %v5010_v30 = vrot.slane %v5004_v61, 1 }
 0x5df   : > { %v4838_v6 = vpop.permute.xlu0 %4837  ;;  %v4844_v35 = vadd.f32 %v4840_v47, %v4760_v21  ;;  %v4995_v58 = vrot.slane %v4988_v55, 1  ;;  %v5039_v60 = vmul.f32 %v10656_v57, %v5036_v54  ;;  %v5037_v53 = vmul.f32 %v10605_v48, %v5036_v54 }
 0x5e0   : > { %v4843_v49 = vadd.f32 %v4838_v6, %v4759_v24  ;;  %v4849_v24 = vstv %s6070_s27  ;;  %v5012_v6 = vrot.slane %v5005_v29, 1  ;;  %s6315_s27 = sshll.u32 %s6387_s23, 4  ;;  %s6316_s27 = int_to_ptr.vmem [resolvable:$false] %s6315_s27 }
 0x5e1   : > { %v4871_v50 = vadd.f32 %v4869_v12, %v4844_v35  ;;  %v4851_v2 = vmul.f32 %v10602_v20, %v4849_v24  ;;  %v4850_v47 = vmul.f32 %v10605_v48, %v4849_v24  ;;  %v5022_v35 = vmul.f32 %v10656_v57, %v5019_v13  ;;  %s6317_s7 = scalar_lea.vmem %s6316_s27, 2048  ;;  %p6318_p8 = scmp.lt.s32.totalorder %s10877_s14, %s6316_s27 }
 0x5e2   : > { %v4909_v39 = vpop.permute.xlu1 %4908  ;;  %v4870_v0 = vadd.f32 %v4868_v45, %v4843_v49  ;;  %v4996_v12 = vsel %vm343_vm0, %v4993_v28, %v4995_v58  ;;  %v5038_v45 = vmul.f32 %v10602_v20, %v5036_v54  ;;  %v5013_v7 = vsel %vm343_vm0, %v5010_v30, %v5012_v6  ;;  %v11505_v54 = vld [vmem:[#allocation100_spill] sm:$0xff]  ;;  %p6319_p11 = scmp.lt.s32.totalorder %s6317_s7, %s6311_s22 }
 0x5e3   : > { %v4907_v1 = vpop.permute.xlu0 %4906  ;;  %v10608_v63 = vadd.f32 %v4909_v39, %v4865_v32  ;;  %v5021_v32 = vmul.f32 %v10602_v20, %v5019_v13  ;;  %v4857_v39 = vmul.f32 %v10602_v20, %v4855_v5  ;;  %v5029_v55 = vrot.slane %v5022_v35, 1 }
 0x5e4   : > { %v10610_v4 = vadd.f32 %v4907_v1, %v4864_v40  ;;  %v5020_v40 = vmul.f32 %v10605_v48, %v5019_v13  ;;  %v4856_v1 = vmul.f32 %v10605_v48, %v4855_v5  ;;  %v5011_v24 = vsel %vm343_vm0, %v5009_v42, %v5010_v30  ;;  %p6320_p13 = por %p6319_p11, %p6318_p8 }
 0x5e5   : > { %v5027_v61 = vrot.slane %v5021_v32, 1  ;;  %v5046_v30 = vrot.slane %v5039_v60, 1  ;;  %v5043_v42 = vrot.slane %v5037_v53, 1  ;;  %v11507_v60 = vld [vmem:[#allocation67_spill] sm:$0xff] }
 0x5e6   : > { %v4923_v10 = vpop.permute.xlu1 %4922 }
 0x5e7   : > { %v4921_v11 = vpop.permute.xlu0 %4920  ;;  %v10614_v33 = vadd.f32 %v4923_v10, %v4871_v50  ;;  %v4853_v50 = vadd.f32 %v4851_v2, %v10594_v8  ;;  %v4994_v10 = vsel %vm343_vm0, %v4992_v62, %v4993_v28  ;;  %v5026_v8 = vrot.slane %v5020_v40, 1 }
 0x5e8   : > { %v10616_v38 = vadd.f32 %v4921_v11, %v4870_v0  ;;  %v4852_v0 = vadd.f32 %v4850_v47, %v10596_v43  ;;  %v5221_v11 = vstv %s10661_s24  ;;  %v5044_v43 = vrot.slane %v5038_v45, 1  ;;  %v11506_v47 = vld [vmem:[#allocation103_spill] sm:$0xff] }
 0x5e9   : > { %v5223_v58 = vmul.f32 %v10602_v20, %v5221_v11  ;;  %v5224_v13 = vmul.f32 %v10656_v57, %v5221_v11  ;;  %v5222_v5 = vmul.f32 %v10605_v48, %v5221_v11  ;;  %v4859_v28 = vadd.f32 %v4857_v39, %v10598_v46 }
 0x5ea   : > { %v10618_v16 = vpop.permute.xlu1 %4936  ;;  %v4858_v62 = vadd.f32 %v4856_v1, %v10600_v51  ;;  %v4885_v2 = vadd.f32 %v11505_v54, %v4853_v50  ;;  %v4884_v6 = vadd.f32 %v11506_v47, %v4852_v0  ;;  %v5030_v35 = vsel %vm343_vm0, %v5027_v61, %v5029_v55  ;;  %v11508_v54 = vld [vmem:[#allocation104_spill] sm:$0xff] }
 0x5eb   : > { %v10620_v19 = vpop.permute.xlu0 %4934  ;;  %v5240_v45 = vmul.f32 %v10602_v20, %v5238_v27  ;;  %v5028_v39 = vsel %vm343_vm0, %v5026_v8, %v5027_v61  ;;  %v5255_v1 = vstv %s10682_s29  ;;  %v5229_v50 = vrot.slane %v5223_v58, 2 }
 0x5ec   : > { %v4941_v46 = vadd.f32 %v10618_v16, %v4885_v2  ;;  %v4940_v51 = vadd.f32 %v10620_v19, %v4884_v6  ;;  %v5231_v0 = vrot.slane %v5224_v13, 2  ;;  %v5241_v11 = vmul.f32 %v10656_v57, %v5238_v27 }
 0x5ed   : > { %v5239_v55 = vmul.f32 %v10605_v48, %v5238_v27  ;;  %v4899_v53 = vadd.f32 %v11507_v60, %v4859_v28  ;;  %v4898_v47 = vadd.f32 %v11508_v54, %v4858_v62  ;;  %v5047_v16 = vsel %vm343_vm0, %v5044_v43, %v5046_v30 }
 0x5ee   : > { %v10622_v26 = vpop.permute.xlu1 %4950  ;;  %v5045_v19 = vsel %vm343_vm0, %v5043_v42, %v5044_v43  ;;  %v5246_v2 = vrot.slane %v5240_v45, 2  ;;  %v5257_v58 = vmul.f32 %v10602_v20, %v5255_v1  ;;  %v5000_v28 = vadd.f32 %v4996_v12, %v4941_v46 }
 0x5ef   : > { %v10624_v56 = vpop.permute.xlu0 %4948  ;;  %v4955_v27 = vadd.f32 %v10622_v26, %v4899_v53  ;;  %v5232_v62 = vsel %vm580_vm1, %v5229_v50, %v5231_v0  ;;  %v5248_v6 = vrot.slane %v5241_v11, 2  ;;  %v5245_v30 = vrot.slane %v5239_v55, 2 }
 0x5f0   : > { %v4954_v13 = vadd.f32 %v10624_v56, %v4898_v47  ;;  %v5256_v43 = vmul.f32 %v10605_v48, %v5255_v1  ;;  %v5263_v12 = vrot.slane %v5257_v58, 2 }
 0x5f1   : > { %v5017_v0 = vadd.f32 %v5013_v7, %v4955_v27 }
 0x5f2   : > { %v10626_v25 = vpop.permute.xlu1 %4964  ;;  %v5016_v11 = vadd.f32 %v5011_v24, %v4954_v13 }
 0x5f3   : > { %v10628_v18 = vpop.permute.xlu0 %4962  ;;  %v4969_v26 = vadd.f32 %v10626_v25, %v10608_v63  ;;  %v5247_v63 = vsel %vm580_vm1, %v5245_v30, %v5246_v2  ;;  %v5262_v25 = vrot.slane %v5256_v43, 2 }
 0x5f4   : > { %v4968_v56 = vadd.f32 %v10628_v18, %v10610_v4 }
 0x5f6   : > { %v10630_v37 = vpop.permute.xlu1 %4978  ;;  %v5033_v24 = vadd.f32 %v5028_v39, %v4968_v56 }
 0x5f7   : > { %v10632_v23 = vpop.permute.xlu0 %4976 }
 0x5fa   : > { %v10634_v44 = vpop.permute.xlu1 %5067 }
 0x5fb   : > { %v10636_v17 = vpop.permute.xlu0 %5065  ;;  %v5072_v42 = vadd.f32 %v10634_v44, %v5000_v28 }
 0x5fe   : > { %v10638_v14 = vpop.permute.xlu1 %5088 }
 0x5ff   : > { %v10640_v34 = vpop.permute.xlu0 %5086  ;;  %v5093_v4 = vadd.f32 %v10638_v14, %v5017_v0 }
 0x600   : > { %v5092_v18 = vadd.f32 %v10640_v34, %v5016_v11 }
 0x602   : > { %v10642_v59 = vpop.permute.xlu1 %5109 }
 0x603   : > { %v10644_v15 = vpop.permute.xlu0 %5107 }
 0x606   : > { %v10646_v52 = vpop.permute.xlu1 %5130 }
 0x607   : > { %v10648_v9 = vpop.permute.xlu0 %5128 }
 0x60a   : > { %v10652_v22 = vpop.permute.xlu1 %5151 }
 0x60b   : > { %v10654_v31 = vpop.permute.xlu0 %5149 }
 0x60e   : > { %v10664_v41 = vpop.permute.xlu1 %5172 }
 0x60f   : > { %v10666_v21 = vpop.permute.xlu0 %5170  ;;  %v5177_v55 = vadd.f32 %v10664_v41, %v5093_v4 }
 0x610   : > { %v5176_v53 = vadd.f32 %v10666_v21, %v5092_v18 }
 0x612   : > { %v10676_v49 = vpop.permute.xlu1 %5193 }
 0x613   : > { %v10678_v36 = vpop.permute.xlu0 %5191 }
 0x616   : > { %v10695_v3 = vpop.permute.xlu1 %5214 }
 0x617   : > { %11503 = vst [vmem:[#allocation42_spill] sm:$0xff] %v10695_v3  ;;  %v10697_v29 = vpop.permute.xlu0 %5212  ;;  %v5258_v3 = vmul.f32 %v10656_v57, %v5255_v1  ;;  %v5156_v1 = vadd.f32 %v10652_v22, %v5072_v42  ;;  %v4982_v22 = vadd.f32 %v10632_v23, %v10616_v38 }
 0x618   : > { %11504 = vst [vmem:[#allocation73_spill] sm:$0xff] %v10697_v29  ;;  %v5228_v29 = vrot.slane %v5222_v5, 2  ;;  %v4999_v5 = vadd.f32 %v4994_v10, %v4940_v51  ;;  %v5272_v51 = vstv %s10714_s10 }
 0x619   : > { %v5265_v54 = vrot.slane %v5258_v3, 2  ;;  %v5249_v3 = vsel %vm580_vm1, %v5246_v2, %v5248_v6  ;;  %v5275_v7 = vmul.f32 %v10656_v57, %v5272_v51  ;;  %v5236_v14 = vadd.f32 %v5232_v62, %v5156_v1 }
 0x61a   : > { %v10709_v32 = vpop.permute.xlu1 %5303  ;;  %v5071_v45 = vadd.f32 %v10636_v17, %v4999_v5  ;;  %v5230_v60 = vsel %vm580_vm1, %v5228_v29, %v5229_v50  ;;  %v4983_v17 = vadd.f32 %v10630_v37, %v10614_v33  ;;  %v5274_v33 = vmul.f32 %v10602_v20, %v5272_v51 }
 0x61b   : > { %v10711_v40 = vpop.permute.xlu0 %5301  ;;  %v5266_v29 = vsel %vm580_vm1, %v5263_v12, %v5265_v54  ;;  %v5113_v2 = vadd.f32 %v10644_v15, %v5033_v24  ;;  %v5273_v58 = vmul.f32 %v10605_v48, %v5272_v51  ;;  %v5308_v38 = vadd.f32 %v10709_v32, %v5236_v14 }
 0x61c   : > { %v5155_v44 = vadd.f32 %v10654_v31, %v5071_v45  ;;  %v5034_v31 = vadd.f32 %v5030_v35, %v4969_v26  ;;  %v5051_v57 = vadd.f32 %v5047_v16, %v4983_v17  ;;  %v5264_v20 = vsel %vm580_vm1, %v5262_v25, %v5263_v12 }
 0x61d   : > { %v5282_v35 = vrot.slane %v5275_v7, 2  ;;  %v5050_v39 = vadd.f32 %v5045_v19, %v4982_v22  ;;  %v5197_v27 = vadd.f32 %v10678_v36, %v5113_v2  ;;  %v5253_v15 = vadd.f32 %v5249_v3, %v5177_v55 }
 0x61e   : > { %v10727_v61 = vpop.permute.xlu1 %5324  ;;  %v5235_v47 = vadd.f32 %v5230_v60, %v5155_v44  ;;  %v5114_v34 = vadd.f32 %v10642_v59, %v5034_v31  ;;  %v5135_v41 = vadd.f32 %v10646_v52, %v5051_v57  ;;  %v5252_v16 = vadd.f32 %v5247_v63, %v5176_v53 }
 0x61f   : > { %v10729_v8 = vpop.permute.xlu0 %5322  ;;  %v5134_v32 = vadd.f32 %v10648_v9, %v5050_v39  ;;  %v5280_v62 = vrot.slane %v5274_v33, 2  ;;  %v5279_v6 = vrot.slane %v5273_v58, 2  ;;  %v5329_v52 = vadd.f32 %v10727_v61, %v5253_v15  ;;  %v11510_v30 = vld [vmem:[#allocation73_spill] sm:$0xff] }
 0x620   : > { %v5307_v23 = vadd.f32 %v10711_v40, %v5235_v47  ;;  %v5198_v21 = vadd.f32 %v10676_v49, %v5114_v34  ;;  %v11509_v40 = vld [vmem:[#allocation42_spill] sm:$0xff]  ;;  %v5328_v49 = vadd.f32 %v10729_v8, %v5252_v16  ;;  %v5269_v45 = vadd.f32 %v5264_v20, %v5197_v27 }
 0x621   : > { %v5219_v5 = vadd.f32 %v11509_v40, %v5135_v41  ;;  %v5218_v43 = vadd.f32 %v11510_v30, %v5134_v32  ;;  %v5283_v26 = vsel %vm580_vm1, %v5280_v62, %v5282_v35  ;;  %v5281_v0 = vsel %vm580_vm1, %v5279_v6, %v5280_v62 }
 0x622   : > { %v5346_v10 = vpop.permute.xlu1 %5345  ;;  %v5270_v42 = vadd.f32 %v5266_v29, %v5198_v21 }
 0x623   : > { %v5344_v46 = vpop.permute.xlu0 %5343  ;;  %v5287_v51 = vadd.f32 %v5283_v26, %v5219_v5  ;;  %v5286_v3 = vadd.f32 %v5281_v0, %v5218_v43 }
 0x624   : > { %v5350_v8 = vadd.f32 %v5346_v10, %v5270_v42  ;;  %v5349_v12 = vadd.f32 %v5344_v46, %v5269_v45 }
 0x626   : > { %v5367_v37 = vpop.permute.xlu1 %5366 }
 0x627   : > { %v5365_v50 = vpop.permute.xlu0 %5364  ;;  %v5371_v31 = vadd.f32 %v5367_v37, %v5287_v51 }
 0x628   : > { %v5370_v24 = vadd.f32 %v5365_v50, %v5286_v3 }
 0x62a   : > { %v5388_v59 = vpop.permute.xlu1 %5387 }
 0x62b   : > { %v5386_v13 = vpop.permute.xlu0 %5385  ;;  %v10768_v28 = vadd.f32 %v5388_v59, %v5308_v38 }
 0x62c   : > { %v10770_v48 = vadd.f32 %v5386_v13, %v5307_v23 }
 0x62d   : > { %v5457_v19 = vsel %vm2645_vm2, %v10768_v28, 0.0  ;;  %v5470_v10 = vmul.f32 %v10768_v28, %v10768_v28 }
 0x62e   : > { %v5456_v36 = vsel %vm2645_vm2, %v10770_v48, 0.0  ;;  %v5409_v60 = vpop.permute.xlu1 %5408  ;;  %v5469_v46 = vmul.f32 %v10770_v48, %v10770_v48 }
 0x62f   : > { %v5407_v9 = vpop.permute.xlu0 %5406  ;;  %v5458_v54 = vadd.f32 %v5457_v19, %v5456_v36  ;;  %v10782_v56 = vadd.f32 %v5409_v60, %v5329_v52  ;;  %v5472_v50 = vsel %vm2645_vm2, %v5470_v10, 0.0 }
 0x630   : > { %v10784_v61 = vadd.f32 %v5407_v9, %v5328_v49  ;;  %v5471_v37 = vsel %vm2645_vm2, %v5469_v46, 0.0 }
 0x631   : > { %5459 = vadd.xlane.f32.xlu0 %v5458_v54  ;;  %v5509_v11 = vmul.f32 %v10782_v56, %v10782_v56  ;;  %v5496_v17 = vsel %vm2645_vm2, %v10782_v56, 0.0  ;;  %v5473_v21 = vadd.f32 %v5472_v50, %v5471_v37 }
 0x632   : > { %v5508_v1 = vmul.f32 %v10784_v61, %v10784_v61  ;;  %v5495_v44 = vsel %vm2645_vm2, %v10784_v61, 0.0  ;;  %v5430_v63 = vpop.permute.xlu1 %5429 }
 0x633   : > { %v5428_v25 = vpop.permute.xlu0 %5427  ;;  %v5497_v4 = vadd.f32 %v5496_v17, %v5495_v44  ;;  %v10799_v18 = vadd.f32 %v5430_v63, %v5350_v8  ;;  %v5511_v22 = vsel %vm2645_vm2, %v5509_v11, 0.0 }
 0x634   : > { %v10801_v29 = vadd.f32 %v5428_v25, %v5349_v12  ;;  %v5510_v7 = vsel %vm2645_vm2, %v5508_v1, 0.0 }
 0x635   : > { %5498 = vadd.xlane.f32.xlu0 %v5497_v4  ;;  %v5548_v33 = vmul.f32 %v10799_v18, %v10799_v18  ;;  %v5535_v14 = vsel %vm2645_vm2, %v10799_v18, 0.0  ;;  %v5512_v2 = vadd.f32 %v5511_v22, %v5510_v7 }
 0x636   : > { %v5547_v55 = vmul.f32 %v10801_v29, %v10801_v29  ;;  %v5534_v53 = vsel %vm2645_vm2, %v10801_v29, 0.0  ;;  %v5451_v47 = vpop.permute.xlu1 %5450 }
 0x637   : > { %v5449_v34 = vpop.permute.xlu0 %5448  ;;  %v5536_v57 = vadd.f32 %v5535_v14, %v5534_v53  ;;  %v10815_v58 = vadd.f32 %v5451_v47, %v5371_v31  ;;  %v5550_v20 = vsel %vm2645_vm2, %v5548_v33, 0.0 }
 0x638   : > { %v10817_v38 = vadd.f32 %v5449_v34, %v5370_v24  ;;  %v5549_v23 = vsel %vm2645_vm2, %v5547_v55, 0.0 }
 0x639   : > { %5513 = vadd.xlane.f32.xlu0 %v5512_v2  ;;  %5537 = vadd.xlane.f32.xlu1 %v5536_v57  ;;  %v5587_v35 = vmul.f32 %v10815_v58, %v10815_v58  ;;  %v5551_v39 = vadd.f32 %v5550_v20, %v5549_v23  ;;  %v5574_v15 = vsel %vm2645_vm2, %v10815_v58, 0.0 }
 0x63a   : > { %v5586_v41 = vmul.f32 %v10817_v38, %v10817_v38  ;;  %v5573_v13 = vsel %vm2645_vm2, %v10817_v38, 0.0 }
 0x63b   : > { %v5589_v59 = vsel %vm2645_vm2, %v5587_v35, 0.0  ;;  %v5575_v32 = vadd.f32 %v5574_v15, %v5573_v13 }
 0x63c   : > { %v5588_v27 = vsel %vm2645_vm2, %v5586_v41, 0.0 }
 0x63d   : > { %5552 = vadd.xlane.f32.xlu0 %v5551_v39  ;;  %5474 = vadd.xlane.f32.xlu1 %v5473_v21  ;;  %v5590_v16 = vadd.f32 %v5589_v59, %v5588_v27 }
 0x641   : > { %5591 = vadd.xlane.f32.xlu0 %v5590_v16  ;;  %5576 = vadd.xlane.f32.xlu1 %v5575_v32 }
 0x6ba   : > { %v5460_v40 = vpop.xlane.xlu0 %5459 }
 0x6bb   : > { %v5461_v5 = vrot.slane %v5460_v40, 4 }
 0x6bd   : > { %v5462_v62 = vadd.f32 %v5461_v5, %v5460_v40 }
 0x6be   : > { %v5499_v6 = vpop.xlane.xlu0 %5498 }
 0x6bf   : > { %v5463_v52 = vrot.slane %v5462_v62, 2  ;;  %v5500_v49 = vrot.slane %v5499_v6, 4 }
 0x6c1   : > { %v5464_v36 = vadd.f32 %v5463_v52, %v5462_v62  ;;  %v5501_v19 = vadd.f32 %v5500_v49, %v5499_v6 }
 0x6c2   : > { %v5538_v30 = vpop.xlane.xlu1 %5537  ;;  %v5514_v43 = vpop.xlane.xlu0 %5513 }
 0x6c3   : > { %v5539_v42 = vrot.slane %v5538_v30, 4  ;;  %v5515_v45 = vrot.slane %v5514_v43, 4  ;;  %v5465_v60 = vrot.slane %v5464_v36, 1  ;;  %v5502_v8 = vrot.slane %v5501_v19, 2 }
 0x6c5   : > { %v5540_v9 = vadd.f32 %v5539_v42, %v5538_v30  ;;  %v5516_v54 = vadd.f32 %v5515_v45, %v5514_v43  ;;  %v5466_v26 = vadd.f32 %v5465_v60, %v5464_v36  ;;  %v5503_v63 = vadd.f32 %v5502_v8, %v5501_v19 }
 0x6c6   : > { %v5475_v12 = vpop.xlane.xlu1 %5474  ;;  %v5553_v51 = vpop.xlane.xlu0 %5552 }
 0x6c7   : > { %v5517_v0 = vrot.slane %v5516_v54, 2  ;;  %v5476_v11 = vrot.slane %v5475_v12, 4  ;;  %v5554_v1 = vrot.slane %v5553_v51, 4  ;;  %6141 = vpush %v5466_v26  ;;  %v5541_v44 = vrot.slane %v5540_v9, 2 }
 0x6c8   : > { %v5504_v47 = vrot.slane %v5503_v63, 1 }
 0x6c9   : > { %v5477_v17 = vadd.f32 %v5476_v11, %v5475_v12  ;;  %v5555_v3 = vadd.f32 %v5554_v1, %v5553_v51  ;;  %v5518_v25 = vadd.f32 %v5517_v0, %v5516_v54  ;;  %v5542_v24 = vadd.f32 %v5541_v44, %v5540_v9 }
 0x6ca   : > { %v5577_v10 = vpop.xlane.xlu1 %5576  ;;  %v5592_v46 = vpop.xlane.xlu0 %5591  ;;  %v5505_v39 = vadd.f32 %v5504_v47, %v5503_v63 }
 0x6cb   : > { %v5478_v4 = vrot.slane %v5477_v17, 2  ;;  %v5556_v7 = vrot.slane %v5555_v3, 2  ;;  %v5578_v22 = vrot.slane %v5577_v10, 4  ;;  %v5593_v31 = vrot.slane %v5592_v46, 4 }
 0x6cc   : > { %v5519_v34 = vrot.slane %v5518_v25, 1  ;;  %v5543_v23 = vrot.slane %v5542_v24, 1 }
 0x6cd   : > { %v5579_v33 = vadd.f32 %v5578_v22, %v5577_v10  ;;  %v5594_v55 = vadd.f32 %v5593_v31, %v5592_v46  ;;  %v5479_v53 = vadd.f32 %v5478_v4, %v5477_v17  ;;  %v5557_v14 = vadd.f32 %v5556_v7, %v5555_v3 }
 0x6ce   : > { %v5520_v21 = vadd.f32 %v5519_v34, %v5518_v25  ;;  %v5544_v15 = vadd.f32 %v5543_v23, %v5542_v24 }
 0x6cf   : > { %v5580_v2 = vrot.slane %v5579_v33, 2  ;;  %v5595_v57 = vrot.slane %v5594_v55, 2  ;;  %v5480_v37 = vrot.slane %v5479_v53, 1  ;;  %v5558_v50 = vrot.slane %v5557_v14, 1 }
 0x6d1   : > { %v5481_v20 = vadd.f32 %v5480_v37, %v5479_v53  ;;  %v5581_v35 = vadd.f32 %v5580_v2, %v5579_v33  ;;  %v5596_v41 = vadd.f32 %v5595_v57, %v5594_v55  ;;  %v5559_v27 = vadd.f32 %v5558_v50, %v5557_v14 }
 0x6d3   : > { %6143 = vpush %v5481_v20  ;;  %v5582_v59 = vrot.slane %v5581_v35, 1  ;;  %v5597_v13 = vrot.slane %v5596_v41, 1 }
 0x6d4   : > { %6145 = vpush %v5505_v39 }
 0x6d5   : > { %6147 = vpush %v5520_v21  ;;  %v5583_v16 = vadd.f32 %v5582_v59, %v5581_v35  ;;  %v5598_v32 = vadd.f32 %v5597_v13, %v5596_v41  ;;  %v5613_v41 = vld [vmem:[%s6498_s25 + $0x9] sm:$0xff]  ;;  %v6106_v59 = vld [vmem:[%s6498_s25 + $0x19] sm:$0xff] }
 0x6d6   : > { %6149 = vpush %v5544_v15  ;;  %v6110_v15 = vld [vmem:[%s6498_s25 + $0x31] sm:$0xff] }
 0x6d7   : > { %6151 = vpush %v5559_v27 }
 0x6d8   : > { %6153 = vpush %v5583_v16 }
 0x6d9   : > { %6155 = vpush %v5598_v32  ;;  %v6107_v32 = vld [vmem:[%s6498_s25 + $0x21] sm:$0xff] }
 0x6f8   : > { %s6142_s17 = spop %6141 }
 0x6f9   : > { %v5468_v40 = vstv %s6142_s17 }
 0x6fa   : > { %v5484_v5 = vmul.f32 0.00390625, %v5468_v40 }
 0x6fc   : > { %v5486_v52 = vmul.f32 %v5484_v5, %v5484_v5  ;;  %v5489_v31 = vsub.f32 %v10770_v48, %v5484_v5  ;;  %v5490_v24 = vsub.f32 %v10768_v28, %v5484_v5 }
 0x704   : > { %s6144_s19 = spop %6143 }
 0x705   : > { %v5483_v62 = vstv %s6144_s19  ;;  %s6146_s28 = spop %6145 }
 0x706   : > { %v5485_v6 = vmul.f32 0.00390625, %v5483_v62  ;;  %v5507_v49 = vstv %s6146_s28  ;;  %s6148_s5 = spop %6147 }
 0x707   : > { %v5523_v36 = vmul.f32 0.00390625, %v5507_v49  ;;  %v5522_v19 = vstv %s6148_s5  ;;  %s6150_s6 = spop %6149  ;;  %v6111_v49 = vld [vmem:[%s6498_s25 + $0x39] sm:$0xff] }
 0x708   : > { %v5487_v30 = vsub.f32 %v5485_v6, %v5486_v52  ;;  %v5546_v43 = vstv %s6150_s6  ;;  %s6152_s8 = spop %6151  ;;  %v5524_v42 = vmul.f32 0.00390625, %v5522_v19  ;;  %v6114_v6 = vld [vmem:[%s6498_s25 + $0x49] sm:$0xff] }
 0x709   : > { %v5525_v45 = vmul.f32 %v5523_v36, %v5523_v36  ;;  %v5562_v60 = vmul.f32 0.00390625, %v5546_v43  ;;  %s6154_s9 = spop %6153  ;;  %v5561_v54 = vstv %s6152_s8  ;;  %v5528_v47 = vsub.f32 %v10784_v61, %v5523_v36  ;;  %v6115_v43 = vld [vmem:[%s6498_s25 + $0x51] sm:$0xff] }
 0x70a   : > { %v5488_v9 = vmax.f32 %v5487_v30, 0.0  ;;  %v5585_v26 = vstv %s6154_s9  ;;  %s6156_s0 = spop %6155  ;;  %v5563_v12 = vmul.f32 0.00390625, %v5561_v54  ;;  %v5529_v37 = vsub.f32 %v10782_v56, %v5523_v36 }
 0x70b   : > { %v5526_v8 = vsub.f32 %v5524_v42, %v5525_v45  ;;  %v5564_v0 = vmul.f32 %v5562_v60, %v5562_v60  ;;  %v5601_v11 = vmul.f32 0.00390625, %v5585_v26  ;;  %v5600_v1 = vstv %s6156_s0 }
 0x70c   : > { %v5491_v51 = vadd.f32 1e-05, %v5488_v9  ;;  %v5602_v10 = vmul.f32 0.00390625, %v5600_v1  ;;  %v5567_v34 = vsub.f32 %v10801_v29, %v5562_v60  ;;  %v5568_v23 = vsub.f32 %v10799_v18, %v5562_v60 }
 0x70d   : > { %v5527_v44 = vmax.f32 %v5526_v8, 0.0  ;;  %v5565_v17 = vsub.f32 %v5563_v12, %v5564_v0  ;;  %v5603_v46 = vmul.f32 %v5601_v11, %v5601_v11  ;;  %v5606_v50 = vsub.f32 %v10817_v38, %v5601_v11  ;;  %v5612_v38 = vld [vmem:[%s6498_s25 + $0x1] sm:$0xff]  ;;  %s11512_s25 = sld [smem:[#allocation17_spill]] }
 0x70e   : > { %6231 = vrsqrt.f32 %v5491_v51  ;;  %v5607_v20 = vsub.f32 %v10815_v58, %v5601_v11 }
 0x70f   : > { %v5530_v3 = vadd.f32 1e-05, %v5527_v44  ;;  %v5566_v63 = vmax.f32 %v5565_v17, 0.0  ;;  %v5604_v25 = vsub.f32 %v5602_v10, %v5603_v46 }
 0x711   : > { %6233 = vrsqrt.f32 %v5530_v3  ;;  %v5569_v4 = vadd.f32 1e-05, %v5566_v63  ;;  %v5605_v7 = vmax.f32 %v5604_v25, 0.0 }
 0x713   : > { %6235 = vrsqrt.f32 %v5569_v4  ;;  %v5608_v22 = vadd.f32 1e-05, %v5605_v7  ;;  %p11514_p12 = scmp.ne.s32.totalorder %s11512_s25, 0 }
 0x715   : > { %6237 = vrsqrt.f32 %v5608_v22  ;;  %p6313_p0 = pnand %p6312_p10, %p11514_p12 }
 0x717   : > { %p6314_p7 = pneg %p6313_p0 }
 0x719   : > { %p6321_p1 = pnand %p6320_p13, %p6314_p7 }
 0x71b   : > { %v6232_v33 = vpop.eup %6231 }
 0x71c   : > { %v5494_v55 = vmul.f32 %v6232_v33, %v5490_v24  ;;  %v5493_v53 = vmul.f32 %v6232_v33, %v5489_v31 }
 0x71e   : > { %v6234_v14 = vpop.eup %6233  ;;  %5618 = vrot.lane.b32.xlu0 %v5494_v55, %s11511_s1  ;;  %5616 = vrot.lane.b32.xlu1 %v5493_v53, %s11511_s1 }
 0x71f   : > { %v5532_v2 = vmul.f32 %v6234_v14, %v5528_v47  ;;  %v5533_v61 = vmul.f32 %v6234_v14, %v5529_v37 }
 0x720   : > { %v6236_v57 = vpop.eup %6235 }
 0x721   : > { %v5571_v28 = vmul.f32 %v6236_v57, %v5567_v34  ;;  %v5572_v56 = vmul.f32 %v6236_v57, %v5568_v23 }
 0x722   : > { %5638 = vrot.lane.b32.xlu1 %v5532_v2, %s11511_s1  ;;  %v6238_v48 = vpop.eup %6237 }
 0x723   : > { %5661 = vrot.lane.b32.xlu0 %v5571_v28, %s11511_s1  ;;  %v5610_v29 = vmul.f32 %v6238_v48, %v5606_v50  ;;  %v5611_v35 = vmul.f32 %v6238_v48, %v5607_v20 }
 0x726   : > { %5640 = vrot.lane.b32.xlu1 %v5533_v61, %s11511_s1 }
 0x727   : > { %5684 = vrot.lane.b32.xlu0 %v5610_v29, %s11511_s1 }
 0x72a   : > { %5663 = vrot.lane.b32.xlu1 %v5572_v56, %s11511_s1 }
 0x72e   : > { %5686 = vrot.lane.b32.xlu1 %v5611_v35, %s11511_s1 }
 0x790   : > { %v5617_v39 = vpop.permute.xlu1 %5616  ;;  %v5619_v18 = vpop.permute.xlu0 %5618 }
 0x791   : > { %v5622_v21 = vadd.f32 %v5617_v39, %v5612_v38  ;;  %v5623_v27 = vadd.f32 %v5619_v18, %v5613_v41 }
 0x793   : > { %5626 = vrot.lane.b32.xlu0 %v5622_v21, %s11228_s30  ;;  %5628 = vrot.lane.b32.xlu1 %v5623_v27, %s11228_s30 }
 0x794   : > { %v5639_v58 = vpop.permute.xlu1 %5638 }
 0x795   : > { %v5644_v13 = vadd.f32 %v6106_v59, %v5639_v58  ;;  %v5662_v16 = vpop.permute.xlu0 %5661 }
 0x796   : > { %v5667_v5 = vadd.f32 %v6110_v15, %v5662_v16 }
 0x797   : > { %5648 = vrot.lane.b32.xlu0 %v5644_v13, %s11228_s30 }
 0x798   : > { %v5641_v40 = vpop.permute.xlu1 %5640 }
 0x799   : > { %v5645_v62 = vadd.f32 %v6107_v32, %v5641_v40  ;;  %v5685_v52 = vpop.permute.xlu0 %5684 }
 0x79a   : > { %v5690_v19 = vadd.f32 %v6114_v6, %v5685_v52 }
 0x79b   : > { %5650 = vrot.lane.b32.xlu1 %v5645_v62, %s11228_s30  ;;  %5671 = vrot.lane.b32.xlu0 %v5667_v5, %s11228_s30 }
 0x79c   : > { %v5664_v36 = vpop.permute.xlu1 %5663 }
 0x79d   : > { %v5668_v30 = vadd.f32 %v6111_v49, %v5664_v36 }
 0x79f   : > { %5673 = vrot.lane.b32.xlu1 %v5668_v30, %s11228_s30  ;;  %5694 = vrot.lane.b32.xlu0 %v5690_v19, %s11228_s30 }
 0x7a0   : > { %v5687_v42 = vpop.permute.xlu1 %5686 }
 0x7a1   : > { %v5691_v45 = vadd.f32 %v6115_v43, %v5687_v42 }
 0x7a3   : > { %5696 = vrot.lane.b32.xlu1 %v5691_v45, %s11228_s30  ;;  %s6123_s30 = sshll.u32 %s6431_s16, 10  ;;  %s10880_s16 = scalar_lea.sflag [#allocation4], %s188_s2 }
 0x7a4   : > { %s10875_s21 = scalar_lea.hbm %s11513_s4, %s6123_s30 }
 0x805   : > { %v5629_v60 = vpop.permute.xlu1 %5628  ;;  %v5627_v9 = vpop.permute.xlu0 %5626 }
 0x806   : > { %5633 = vst.msk [vmem:[%s190_s12 + $0x8] sm:$0xff] %vm2645_vm2, %v5629_v60  ;;  %5632 = vst.msk [vmem:[%s190_s12] sm:$0xff] %vm2645_vm2, %v5627_v9 }
 0x809   : > { %v5649_v54 = vpop.permute.xlu0 %5648 }
 0x80a   : > { %6108 = vst.msk [vmem:[%s190_s12 + $0x10] sm:$0xff] %vm2645_vm2, %v5649_v54 }
 0x80d   : > { %v5651_v26 = vpop.permute.xlu1 %5650  ;;  %v5672_v8 = vpop.permute.xlu0 %5671 }
 0x80e   : > { %6109 = vst.msk [vmem:[%s190_s12 + $0x18] sm:$0xff] %vm2645_vm2, %v5651_v26  ;;  %6112 = vst.msk [vmem:[%s190_s12 + $0x20] sm:$0xff] %vm2645_vm2, %v5672_v8 }
 0x811   : > { %v5674_v12 = vpop.permute.xlu1 %5673  ;;  %v5695_v51 = vpop.permute.xlu0 %5694 }
 0x812   : > { %6113 = vst.msk [vmem:[%s190_s12 + $0x28] sm:$0xff] %vm2645_vm2, %v5674_v12  ;;  %6116 = vst.msk [vmem:[%s190_s12 + $0x30] sm:$0xff] %vm2645_vm2, %v5695_v51 }
 0x815   : > { %v5697_v0 = vpop.permute.xlu1 %5696 }
 0x816   : > { %6117 = vst.msk [vmem:[%s190_s12 + $0x38] sm:$0xff] %vm2645_vm2, %v5697_v0 }
 0x817   : > { %6324 = shalt.err (!%p6321_p1)
}
 0x818   : > { %s6325_s11 = scalar_lea.hbm %s10875_s21, 1024  ;;  %s6329_s26 = scalar_lea.hbm %s11513_s4, 2048 }
 0x819   : > { %p6326_p2 = scmp.ne.s32.totalorder %s10875_s21, %s6325_s11  ;;  %p6330_p9 = scmp.lt.s32.totalorder %s10875_s21, %s11513_s4 }
 0x81a   : > { %p6331_p5 = scmp.lt.s32.totalorder %s6329_s26, %s6325_s11 }
 0x81b   : > { %p6327_p3 = pnand %p6326_p2, %p11514_p12 }
 0x81c   : > { %p6332_p6 = por %p6331_p5, %p6330_p9 }
 0x81d   : > { %p6328_p4 = pneg %p6327_p3 }
 0x81f   : > { %p6333_p10 = pnand %p6332_p6, %p6328_p4 }
 0x821   : > { %6336 = shalt.err (!%p6333_p10)
}
 0x822   : > { %s6388_s17 = smov 128   ;;  %s6389_s19 = smov 8  }
 0x823   : > { %6165 = dma.vmem_to_hbm [thread:$0]  (%p11514_p12), %s10877_s14, 1024, %s10875_s21, %s10880_s16, %s6388_s17, %s6388_s17, %s6389_s19  }
 0x824 PF: > { %s11515_s28 = sld [smem:[#allocation14_spill]] }
 0x825   : > { %s11516_s5 = sld [smem:[#allocation12_spill]] }
 0x826   : > { %s11517_s6 = sld [smem:[#allocation18_spill]] }
 0x82a   : > { %p6182_p0 = scmp.ge.s32.totalorder %s11515_s28, 2 }
 0x82b   : > { %s5732_s8 = sand.u32 1, %s11516_s5  }
 0x82c   : > { %p11518_p7 = scmp.ne.s32.totalorder %s11517_s6, 0  ;;  %s5733_s9 = scalar_lea.sflag [#allocation4], %s5732_s8 }
 0x82e   : > { %p6175_p8 = pnand %p6182_p0, %p11518_p7 }
 0x830   : > { %p6176_p11 = pneg %p6175_p8 }
 0x832   : > { %6362 = dma.done.wait (%p6176_p11), %s5733_s9, 1024  }
 0x833   : > { %6364 = vsyncadd (%p6176_p11), %s5733_s9, 4294966272  ;;  %s11519_s15 = sld [smem:[#allocation15_spill]]  ;;  %s11522_s12 = smov %s6371_s13 }
 0x834   : > { %s11520_s0 = sld [smem:[#allocation13_spill]] }
 0x835   : > { %s11521_s14 = sld [smem:[#allocation16_spill]] }
 0x839   : > { %p15_p13 = scmp.ge.s32.totalorder %s11519_s15, 4  }
 0x83a   : > { %s11523_s13 = smov %s11520_s0 }
 0x83b   :  { %17 = sbr.rel (!%p15_p13) target bundleno = 10 (0xa), region = 85 }
 0x840   :  { %5738 = vsyncpa [#allocation4], 1 }
 0x841   :  { %5740 = vsyncpa [#allocation4 + $0x1], 1 }
 0x842   :  { %5741 = vsyncpa [#allocation5], 1 }
 0x843   :  { %5743 = vsyncpa [#allocation5 + $0x1], 1 }
 0x844   :  { %5744 = vsyncpa [#allocation7], 1 }

</bundles_post_ra>
